<compile_context>
chip_gen: v6e
topology: v6e:2x2x1
jax: 0.10.0
libtpu: 0.0.40
codegen_flags: <defaults>
</compile_context>

<pallas_src>
import functools

import jax
import jax.numpy as jnp
from jax.experimental import pallas as pl
from jax.experimental.pallas import tpu as pltpu

_BN_EPS = 1e-5


# ---------------------------------------------------------------------------
# in-kernel helpers
# ---------------------------------------------------------------------------
def _window(xp, dy, dx, hout, wout, stride):
    """(Hout, Wout, C) window of a zero-padded (Hin+2, Win+2, C) value."""
    if stride == 1:
        return xp[dy:dy + hout, dx:dx + wout, :]
    # TODO(synk): stride>1 uses strided basic slicing which may lower to
    # sublane gathers; only stride=1 is exercised in __main__.
    return xp[dy:dy + (hout - 1) * stride + 1:stride,
              dx:dx + (wout - 1) * stride + 1:stride, :]


def _im2col(xp, hout, wout, stride, c):
    """(Hout*Wout, 9*C) im2col slab for a 3x3 conv, built in xp's dtype."""
    cols = [_window(xp, dy, dx, hout, wout, stride)
            for dy in range(3) for dx in range(3)]
    return jnp.concatenate(cols, axis=-1).reshape(hout * wout, 9 * c)


def _stage_padded(pad_ref, interior, hin, win):
    """Write `interior` into pad_ref[1:-1, 1:-1, :]; zero the 1-px border.

    The border is rewritten every grid step: the VMEM scratch is per-core and
    `pl.program_id(0) == 0` is not guaranteed to be seen by every core when the
    batch axis is split across TensorCores, so a one-time init would be unsafe.
    The four border slabs are thin, so the cost is small.
    """
    c = pad_ref.shape[-1]
    dt = pad_ref.dtype
    pad_ref[0:1, :, :] = jnp.zeros((1, win + 2, c), dt)
    pad_ref[hin + 1:hin + 2, :, :] = jnp.zeros((1, win + 2, c), dt)
    pad_ref[:, 0:1, :] = jnp.zeros((hin + 2, 1, c), dt)
    pad_ref[:, win + 1:win + 2, :] = jnp.zeros((hin + 2, 1, c), dt)
    pad_ref[1:hin + 1, 1:win + 1, :] = interior.astype(dt)


def _partial_stats(y):
    """Per-channel [sum; sum-of-squares] of an (N, C) f32 value -> (2, C)."""
    return jnp.concatenate([jnp.sum(y, axis=0, keepdims=True),
                            jnp.sum(y * y, axis=0, keepdims=True)], axis=0)


# ---------------------------------------------------------------------------
# kernels
# ---------------------------------------------------------------------------
def _conv1_kernel(*refs, stride, h, w, hout, wout, cin, cout, has_proj):
    """conv1 (3x3) with the 1x1 projection fused into the same matmul."""
    if has_proj:
        (x_ref, w_ref, y1_ref, st1_ref, ysc_ref, stsc_ref, pad_ref) = refs
    else:
        (x_ref, w_ref, y1_ref, st1_ref, pad_ref) = refs

    # x arrives pre-cast to the MXU operand dtype; staging stays in mm_dtype.
    _stage_padded(pad_ref, x_ref[0], h, w)
    patches = _im2col(pad_ref[...], hout, wout, stride, cin)     # (N, 9*Cin)
    y = jnp.dot(patches, w_ref[...], preferred_element_type=jnp.float32)

    y1 = y[:, :cout]
    st1_ref[0] = _partial_stats(y1)                              # BN1 stats
    y1_ref[0] = y1.astype(y1_ref.dtype)
    if has_proj:
        ysc = y[:, cout:]                                        # fused 1x1 proj
        stsc_ref[0] = _partial_stats(ysc)
        ysc_ref[0] = ysc.astype(ysc_ref.dtype)


def _conv2_kernel(y1_ref, s1_ref, b1_ref, w2_ref, y2_ref, st2_ref, pad_ref,
                  *, hout, wout, cout):
    """BN1 (pre-folded affine) + ReLU + conv2 (3x3, stride 1)."""
    h1 = jnp.maximum(y1_ref[0].astype(jnp.float32) * s1_ref[...] + b1_ref[...],
                     0.0)
    _stage_padded(pad_ref, h1, hout, wout)        # cast to mm_dtype inside
    patches = _im2col(pad_ref[...], hout, wout, 1, cout)
    y2 = jnp.dot(patches, w2_ref[...], preferred_element_type=jnp.float32)
    st2_ref[0] = _partial_stats(y2)                              # BN2 stats
    y2_ref[0] = y2.astype(y2_ref.dtype)


def _epilogue_kernel(y2_ref, s2_ref, b2_ref, sc_ref, ssc_ref, bsc_ref, o_ref):
    """BN2 + shortcut affine + add + ReLU on lane-dense (Hout, Wout*Cout)."""
    left = y2_ref[0].astype(jnp.float32) * s2_ref[...] + b2_ref[...]
    short = sc_ref[0].astype(jnp.float32) * ssc_ref[...] + bsc_ref[...]
    o_ref[0] = jnp.maximum(left + short, 0.0)


# ---------------------------------------------------------------------------
# pallas_call wrappers (grid over batch, "parallel")
# ---------------------------------------------------------------------------
def _vmem_ceiling():
    """Generation-aware VMEM ceiling (leave headroom under physical VMEM)."""
    cap = 64 * 1024 * 1024
    try:
        info = pltpu.get_tpu_info()
        cap = int(getattr(info, "vmem_capacity_bytes", cap))
    except Exception:  # pragma: no cover - conservative fallback
        pass
    return max(32 * 1024 * 1024, (cap * 3) // 4)   # ~48 MiB v7x, ~96 MiB v5e/v6e


def _compiler_params(block_bytes):
    limit = int(min(_vmem_ceiling(), max(32 * 1024 * 1024, 6 * block_bytes)))
    return pltpu.CompilerParams(dimension_semantics=("parallel",),
                                vmem_limit_bytes=limit)


def _run_conv1(x, w_aug, *, stride, hout, wout, cout, has_proj, store_dtype):
    b, h, w, cin = x.shape
    ct = w_aug.shape[-1]                     # Cout (no proj) or 2*Cout (fused)
    n = hout * wout
    mm_item = jnp.dtype(x.dtype).itemsize
    st_item = jnp.dtype(store_dtype).itemsize

    # TODO(synk): the constant-index weight block is double-buffered by
    # default; at large channel counts request single buffering.
    in_specs = [pl.BlockSpec((1, h, w, cin), lambda i: (i, 0, 0, 0)),
                pl.BlockSpec((9 * cin, ct), lambda i: (0, 0))]
    out_shape = [jax.ShapeDtypeStruct((b, n, cout), store_dtype),
                 jax.ShapeDtypeStruct((b, 2, cout), jnp.float32)]
    out_specs = [pl.BlockSpec((1, n, cout), lambda i: (i, 0, 0)),
                 pl.BlockSpec((1, 2, cout), lambda i: (i, 0, 0))]
    if has_proj:
        out_shape += [jax.ShapeDtypeStruct((b, n, cout), store_dtype),
                      jax.ShapeDtypeStruct((b, 2, cout), jnp.float32)]
        out_specs += [pl.BlockSpec((1, n, cout), lambda i: (i, 0, 0)),
                      pl.BlockSpec((1, 2, cout), lambda i: (i, 0, 0))]

    kernel = functools.partial(
        _conv1_kernel, stride=stride, h=h, w=w, hout=hout, wout=wout,
        cin=cin, cout=cout, has_proj=has_proj)

    block_bytes = (h * w * cin * mm_item
                   + (h + 2) * (w + 2) * cin * mm_item
                   + 9 * cin * ct * mm_item
                   + n * 9 * cin * mm_item
                   + n * ct * 4
                   + (2 if has_proj else 1) * n * cout * st_item
                   + 4 * cout * 4)
    flops = 2 * b * n * 9 * cin * ct
    bytes_accessed = (x.size * mm_item + w_aug.size * mm_item
                      + (2 if has_proj else 1) * b * n * cout * st_item
                      + (2 if has_proj else 1) * b * 2 * cout * 4)

    return pl.pallas_call(
        kernel,
        grid=(b,),
        in_specs=in_specs,
        out_specs=out_specs,
        out_shape=out_shape,
        scratch_shapes=[pltpu.VMEM((h + 2, w + 2, cin), x.dtype)],
        compiler_params=_compiler_params(block_bytes),
        cost_estimate=pl.CostEstimate(flops=flops, transcendentals=0,
                                      bytes_accessed=bytes_accessed),
    )(x, w_aug)


def _run_conv2(y1_4d, s1, b1, w2, *, hout, wout, mm_dtype, store_dtype):
    b = y1_4d.shape[0]
    cout = w2.shape[-1]
    n = hout * wout
    mm_item = jnp.dtype(mm_dtype).itemsize
    in_item = jnp.dtype(y1_4d.dtype).itemsize
    st_item = jnp.dtype(store_dtype).itemsize

    kernel = functools.partial(_conv2_kernel, hout=hout, wout=wout, cout=cout)
    in_specs = [pl.BlockSpec((1, hout, wout, cout), lambda i: (i, 0, 0, 0)),
                pl.BlockSpec((1, cout), lambda i: (0, 0)),
                pl.BlockSpec((1, cout), lambda i: (0, 0)),
                pl.BlockSpec((9 * cout, cout), lambda i: (0, 0))]
    out_shape = [jax.ShapeDtypeStruct((b, n, cout), store_dtype),
                 jax.ShapeDtypeStruct((b, 2, cout), jnp.float32)]
    out_specs = [pl.BlockSpec((1, n, cout), lambda i: (i, 0, 0)),
                 pl.BlockSpec((1, 2, cout), lambda i: (i, 0, 0))]

    block_bytes = (n * cout * (in_item + st_item + 4)
                   + (hout + 2) * (wout + 2) * cout * mm_item
                   + 9 * cout * cout * mm_item
                   + n * 9 * cout * mm_item
                   + 4 * cout * 4)
    flops = 2 * b * n * 9 * cout * cout
    bytes_accessed = (b * n * cout * (in_item + st_item)
                      + 9 * cout * cout * mm_item + b * 2 * cout * 4)

    return pl.pallas_call(
        kernel,
        grid=(b,),
        in_specs=in_specs,
        out_specs=out_specs,
        out_shape=out_shape,
        scratch_shapes=[pltpu.VMEM((hout + 2, wout + 2, cout), mm_dtype)],
        compiler_params=_compiler_params(block_bytes),
        cost_estimate=pl.CostEstimate(flops=flops, transcendentals=0,
                                      bytes_accessed=bytes_accessed),
    )(y1_4d, s1, b1, w2)


def _run_epilogue(y2d, s2, b2, scd, ssc, bsc, *, hout, lane):
    b = y2d.shape[0]
    in_item = jnp.dtype(y2d.dtype).itemsize
    in_specs = [pl.BlockSpec((1, hout, lane), lambda i: (i, 0, 0)),
                pl.BlockSpec((1, lane), lambda i: (0, 0)),
                pl.BlockSpec((1, lane), lambda i: (0, 0)),
                pl.BlockSpec((1, hout, lane), lambda i: (i, 0, 0)),
                pl.BlockSpec((1, lane), lambda i: (0, 0)),
                pl.BlockSpec((1, lane), lambda i: (0, 0))]
    out_spec = pl.BlockSpec((1, hout, lane), lambda i: (i, 0, 0))

    block_bytes = hout * lane * (2 * in_item + 4) + 4 * lane * 4
    flops = 6 * b * hout * lane
    bytes_accessed = b * hout * lane * (2 * in_item + 4)

    return pl.pallas_call(
        _epilogue_kernel,
        grid=(b,),
        in_specs=in_specs,
        out_specs=out_spec,
        out_shape=jax.ShapeDtypeStruct((b, hout, lane), jnp.float32),
        compiler_params=_compiler_params(block_bytes),
        cost_estimate=pl.CostEstimate(flops=flops, transcendentals=0,
                                      bytes_accessed=bytes_accessed),
    )(y2d, s2, b2, scd, ssc, bsc)


# ---------------------------------------------------------------------------
# JAX glue (tiny per-channel BN finalization between the kernels)
# ---------------------------------------------------------------------------
def _bn_affine(stats, gamma, beta, count):
    """Partial (sum, sumsq) per batch tile -> training-mode BN scale/shift."""
    s = jnp.sum(stats, axis=0)                    # (2, C)
    mean = s[0] / count
    var = s[1] / count - mean * mean              # biased variance
    scale = gamma * jax.lax.rsqrt(var + _BN_EPS)
    shift = beta - mean * scale
    return scale, shift


def _tile_lane(v, wout):
    """Per-channel (C,) vector -> lane-dense (1, Wout*C) row (w*C + c order)."""
    return jnp.tile(v, (wout,)).reshape(1, -1)


@functools.partial(jax.jit, static_argnames=("stride", "mm_dtype"))
def residual_block_forward(x_nchw, params, *, stride=1, mm_dtype=jnp.bfloat16):
    """Forward pass of ResidualBlock. x_nchw: (B, Cin, H, W) f32 (NCHW)."""
    b, cin, h, w = x_nchw.shape
    cout = params["w1"].shape[-1]
    hout = (h - 1) // stride + 1
    wout = (w - 1) // stride + 1
    has_proj = (stride != 1) or (cin != cout)
    count = float(b * hout * wout)
    lane = wout * cout
    store_dtype = mm_dtype   # inter-stage activations cross HBM at operand width

    # NCHW -> NHWC; cast activations once at the boundary.
    # TODO(synk): the boundary NCHW<->NHWC transposes remain plain XLA ops.
    x = jnp.transpose(x_nchw, (0, 2, 3, 1)).astype(mm_dtype)

    # Weights in im2col layout, pre-cast to the MXU operand dtype.
    w1 = params["w1"].reshape(9 * cin, cout).astype(mm_dtype)
    w2 = params["w2"].reshape(9 * cout, cout).astype(mm_dtype)
    if has_proj:
        # Fuse the 1x1 projection into conv1's matmul: the center tap
        # (dy=dx=1) of the 3x3 im2col patches equals x[::stride, ::stride, :],
        # so `ws` occupies rows [4*Cin:5*Cin] of extra output columns.
        proj = jnp.zeros((9 * cin, cout), mm_dtype)
        proj = proj.at[4 * cin:5 * cin, :].set(
            params["ws"].reshape(cin, cout).astype(mm_dtype))
        w_aug = jnp.concatenate([w1, proj], axis=1)          # (9*Cin, 2*Cout)
    else:
        w_aug = w1

    # ---- stage 1: conv1 (+ fused projection) and BN partial statistics -----
    outs = _run_conv1(x, w_aug, stride=stride, hout=hout, wout=wout,
                      cout=cout, has_proj=has_proj, store_dtype=store_dtype)
    if has_proj:
        y1, st1, ysc, stsc = outs
    else:
        y1, st1 = outs
    scale1, shift1 = _bn_affine(st1, params["g1"], params["b1"], count)

    # ---- stage 2: BN1 + ReLU + conv2, BN2 partial statistics ---------------
    y2, st2 = _run_conv2(y1.reshape(b, hout, wout, cout),
                         scale1.reshape(1, cout), shift1.reshape(1, cout),
                         w2, hout=hout, wout=wout, mm_dtype=mm_dtype,
                         store_dtype=store_dtype)
    scale2, shift2 = _bn_affine(st2, params["g2"], params["b2"], count)

    # ---- shortcut affine ----------------------------------------------------
    if has_proj:
        scale_sc, shift_sc = _bn_affine(stsc, params["gs"], params["bs"], count)
        sc_dense = ysc.reshape(b, hout, lane)
    else:
        scale_sc = jnp.ones((cout,), jnp.float32)
        shift_sc = jnp.zeros((cout,), jnp.float32)
        sc_dense = x.reshape(b, h, w * cin)       # identity: stride=1, cin=cout

    # ---- stage 3: lane-dense BN2 + shortcut + add + ReLU epilogue ----------
    out = _run_epilogue(y2.reshape(b, hout, lane),
                        _tile_lane(scale2, wout), _tile_lane(shift2, wout),
                        sc_dense,
                        _tile_lane(scale_sc, wout), _tile_lane(shift_sc, wout),
                        hout=hout, lane=lane)

    out = out.reshape(b, hout, wout, cout)
    return jnp.transpose(out, (0, 3, 1, 2))       # -> NCHW


# ---------------------------------------------------------------------------
# parameters and pure-JAX reference (verification only)
# ---------------------------------------------------------------------------
def init_params(key, cin, cout, stride=1):
    """Deterministic synthetic parameters (PyTorch BN defaults: gamma=1, beta=0)."""
    k1, k2, k3 = jax.random.split(key, 3)
    p = {
        "w1": 0.1 * jax.random.normal(k1, (3, 3, cin, cout), jnp.float32),
        "g1": jnp.ones((cout,), jnp.float32),
        "b1": jnp.zeros((cout,), jnp.float32),
        "w2": 0.1 * jax.random.normal(k2, (3, 3, cout, cout), jnp.float32),
        "g2": jnp.ones((cout,), jnp.float32),
        "b2": jnp.zeros((cout,), jnp.float32),
    }
    if stride != 1 or cin != cout:
        p.update({
            "ws": 0.1 * jax.random.normal(k3, (1, 1, cin, cout), jnp.float32),
            "gs": jnp.ones((cout,), jnp.float32),
            "bs": jnp.zeros((cout,), jnp.float32),
        })
    return p


def ref_forward(x_nchw, params, *, stride=1):
    """Pure-JAX f32 reference with the PyTorch module's semantics."""
    x = jnp.transpose(x_nchw, (0, 2, 3, 1)).astype(jnp.float32)
    dn = ("NHWC", "HWIO", "NHWC")

    def conv(t, wgt, s, pad):
        return jax.lax.conv_general_dilated(t, wgt, (s, s), pad,
                                            dimension_numbers=dn)

    def bn(t, g, b_):
        mean = jnp.mean(t, axis=(0, 1, 2), keepdims=True)
        var = jnp.mean((t - mean) ** 2, axis=(0, 1, 2), keepdims=True)
        return (t - mean) * jax.lax.rsqrt(var + _BN_EPS) * g + b_

    h = jax.nn.relu(bn(conv(x, params["w1"], stride, ((1, 1), (1, 1))),
                       params["g1"], params["b1"]))
    h = bn(conv(h, params["w2"], 1, ((1, 1), (1, 1))), params["g2"], params["b2"])
    if "ws" in params:
        sc = bn(conv(x, params["ws"], stride, ((0, 0), (0, 0))),
                params["gs"], params["bs"])
    else:
        sc = x
    out = jax.nn.relu(h + sc)
    return jnp.transpose(out, (0, 3, 1, 2))


if __name__ == "__main__":
    B, CIN, COUT, H, W, STRIDE = 2, 4, 8, 16, 16, 1
    key = jax.random.PRNGKey(0)
    kx, kp = jax.random.split(key)

    x = jax.random.normal(kx, (B, CIN, H, W), jnp.float32)
    params = init_params(kp, CIN, COUT, STRIDE)   # CIN != COUT -> projection path

    ref = ref_forward(x, params, stride=STRIDE)

    # f32 MXU operands + f32 inter-stage storage: tight check vs the f32 ref.
    out_f32 = jax.block_until_ready(
        residual_block_forward(x, params, stride=STRIDE, mm_dtype=jnp.float32))
    assert out_f32.shape == ref.shape == (B, COUT, H // STRIDE, W // STRIDE)
    err_f32 = float(jnp.max(jnp.abs(out_f32 - ref)))
    assert err_f32 < 5e-3, f"f32 max abs err {err_f32}"

    # bf16 MXU operands + bf16 inter-stage storage (default fast path on
    # v6e/v7x; f32 accumulation and f32 BN statistics).  Looser tolerance is
    # purely bf16 operand/storage rounding vs the f32 reference.
    out_bf16 = jax.block_until_ready(
        residual_block_forward(x, params, stride=STRIDE))
    err_bf16 = float(jnp.max(jnp.abs(out_bf16 - ref)))
    assert err_bf16 < 1e-1, f"bf16 max abs err {err_bf16}"

    print("KERNEL_OK")
</pallas_src>

<mosaic_0001>
module attributes {stable_mosaic.version = 11 : i64} {
  func.func @_conv1_kernel(%arg0: i32, %arg1: memref<1x16x16x4xf32, #tpu.memory_space<vmem>>, %arg2: memref<36x16xf32, #tpu.memory_space<vmem>>, %arg3: memref<1x256x8xf32, #tpu.memory_space<vmem>>, %arg4: memref<1x2x8xf32, #tpu.memory_space<vmem>>, %arg5: memref<1x256x8xf32, #tpu.memory_space<vmem>>, %arg6: memref<1x2x8xf32, #tpu.memory_space<vmem>>, %arg7: memref<18x18x4xf32, #tpu.memory_space<vmem>>) attributes {dimension_semantics = [#tpu.dimension_semantics<parallel>], iteration_bounds = array<i64: 2>, scalar_prefetch = 0 : i64, scratch_operands = 1 : i64, tpu.core_type = #tpu.core_type<tc>, window_params = [{transform_indices = @transform_0, window_bounds = array<i64: 1, 16, 16, 4>}, {pipeline_mode = #tpu.pipeline_mode<synchronous>, transform_indices = @transform_1, window_bounds = array<i64: 36, 16>}, {transform_indices = @transform_2, window_bounds = array<i64: 1, 256, 8>}, {transform_indices = @transform_3, window_bounds = array<i64: 1, 2, 8>}, {transform_indices = @transform_4, window_bounds = array<i64: 1, 256, 8>}, {transform_indices = @transform_5, window_bounds = array<i64: 1, 2, 8>}]} {
    %c0 = arith.constant 0 : index
    %c0_0 = arith.constant 0 : index
    %c0_1 = arith.constant 0 : index
    %c0_2 = arith.constant 0 : index
    %0 = vector.load %arg1[%c0, %c0_0, %c0_1, %c0_2] : memref<1x16x16x4xf32, #tpu.memory_space<vmem>>, vector<1x16x16x4xf32>
    %1 = vector.shape_cast %0 : vector<1x16x16x4xf32> to vector<16x16x4xf32>
    %cst = arith.constant 0.000000e+00 : f32
    %2 = vector.broadcast %cst : f32 to vector<1x18x4xf32>
    %c0_3 = arith.constant 0 : index
    %c0_4 = arith.constant 0 : index
    %c0_5 = arith.constant 0 : index
    %3 = vector.load %arg7[%c0_3, %c0_4, %c0_5] : memref<18x18x4xf32, #tpu.memory_space<vmem>>, vector<1x18x4xf32>
    tpu.vector_store %arg7[%c0_3, %c0_4, %c0_5], %2 {strides = array<i32>} : memref<18x18x4xf32, #tpu.memory_space<vmem>>, vector<1x18x4xf32>,
    %cst_6 = arith.constant 0.000000e+00 : f32
    %4 = vector.broadcast %cst_6 : f32 to vector<1x18x4xf32>
    %c17 = arith.constant 17 : index
    %c0_7 = arith.constant 0 : index
    %c0_8 = arith.constant 0 : index
    %5 = vector.load %arg7[%c17, %c0_7, %c0_8] : memref<18x18x4xf32, #tpu.memory_space<vmem>>, vector<1x18x4xf32>
    tpu.vector_store %arg7[%c17, %c0_7, %c0_8], %4 {strides = array<i32>} : memref<18x18x4xf32, #tpu.memory_space<vmem>>, vector<1x18x4xf32>,
    %cst_9 = arith.constant 0.000000e+00 : f32
    %6 = vector.broadcast %cst_9 : f32 to vector<18x1x4xf32>
    %c0_10 = arith.constant 0 : index
    %c0_11 = arith.constant 0 : index
    %c0_12 = arith.constant 0 : index
    %7 = vector.load %arg7[%c0_10, %c0_11, %c0_12] : memref<18x18x4xf32, #tpu.memory_space<vmem>>, vector<18x1x4xf32>
    tpu.vector_store %arg7[%c0_10, %c0_11, %c0_12], %6 {strides = array<i32>} : memref<18x18x4xf32, #tpu.memory_space<vmem>>, vector<18x1x4xf32>,
    %cst_13 = arith.constant 0.000000e+00 : f32
    %8 = vector.broadcast %cst_13 : f32 to vector<18x1x4xf32>
    %c0_14 = arith.constant 0 : index
    %c17_15 = arith.constant 17 : index
    %c0_16 = arith.constant 0 : index
    %9 = vector.load %arg7[%c0_14, %c17_15, %c0_16] : memref<18x18x4xf32, #tpu.memory_space<vmem>>, vector<18x1x4xf32>
    tpu.vector_store %arg7[%c0_14, %c17_15, %c0_16], %8 {strides = array<i32>} : memref<18x18x4xf32, #tpu.memory_space<vmem>>, vector<18x1x4xf32>,
    %c1 = arith.constant 1 : index
    %c1_17 = arith.constant 1 : index
    %c0_18 = arith.constant 0 : index
    %10 = vector.load %arg7[%c1, %c1_17, %c0_18] : memref<18x18x4xf32, #tpu.memory_space<vmem>>, vector<16x16x4xf32>
    tpu.vector_store %arg7[%c1, %c1_17, %c0_18], %1 {strides = array<i32>} : memref<18x18x4xf32, #tpu.memory_space<vmem>>, vector<16x16x4xf32>,
    %c0_19 = arith.constant 0 : index
    %c0_20 = arith.constant 0 : index
    %c0_21 = arith.constant 0 : index
    %11 = vector.load %arg7[%c0_19, %c0_20, %c0_21] : memref<18x18x4xf32, #tpu.memory_space<vmem>>, vector<18x18x4xf32>
    %12 = vector.extract_strided_slice %11 {offsets = [0, 0, 0], sizes = [16, 16, 4], strides = [1, 1, 1]} : vector<18x18x4xf32> to vector<16x16x4xf32>
    %13 = vector.extract_strided_slice %11 {offsets = [0, 1, 0], sizes = [16, 16, 4], strides = [1, 1, 1]} : vector<18x18x4xf32> to vector<16x16x4xf32>
    %14 = vector.extract_strided_slice %11 {offsets = [0, 2, 0], sizes = [16, 16, 4], strides = [1, 1, 1]} : vector<18x18x4xf32> to vector<16x16x4xf32>
    %15 = vector.extract_strided_slice %11 {offsets = [1, 0, 0], sizes = [16, 16, 4], strides = [1, 1, 1]} : vector<18x18x4xf32> to vector<16x16x4xf32>
    %16 = vector.extract_strided_slice %11 {offsets = [1, 1, 0], sizes = [16, 16, 4], strides = [1, 1, 1]} : vector<18x18x4xf32> to vector<16x16x4xf32>
    %17 = vector.extract_strided_slice %11 {offsets = [1, 2, 0], sizes = [16, 16, 4], strides = [1, 1, 1]} : vector<18x18x4xf32> to vector<16x16x4xf32>
    %18 = vector.extract_strided_slice %11 {offsets = [2, 0, 0], sizes = [16, 16, 4], strides = [1, 1, 1]} : vector<18x18x4xf32> to vector<16x16x4xf32>
    %19 = vector.extract_strided_slice %11 {offsets = [2, 1, 0], sizes = [16, 16, 4], strides = [1, 1, 1]} : vector<18x18x4xf32> to vector<16x16x4xf32>
    %20 = vector.extract_strided_slice %11 {offsets = [2, 2, 0], sizes = [16, 16, 4], strides = [1, 1, 1]} : vector<18x18x4xf32> to vector<16x16x4xf32>
    %21 = tpu.concatenate %12, %13, %14, %15, %16, %17, %18, %19, %20 in 2 : vector<16x16x4xf32>, vector<16x16x4xf32>, vector<16x16x4xf32>, vector<16x16x4xf32>, vector<16x16x4xf32>, vector<16x16x4xf32>, vector<16x16x4xf32>, vector<16x16x4xf32>, vector<16x16x4xf32> -> vector<16x16x36xf32>
    %22 = vector.shape_cast %21 : vector<16x16x36xf32> to vector<256x36xf32>
    %c0_22 = arith.constant 0 : index
    %c0_23 = arith.constant 0 : index
    %23 = vector.load %arg2[%c0_22, %c0_23] : memref<36x16xf32, #tpu.memory_space<vmem>>, vector<36x16xf32>
    %cst_24 = arith.constant dense<0.000000e+00> : vector<256x16xf32>
    %24 = tpu.matmul %22, %23, %cst_24 {dimension_numbers = #tpu.dot_dimension_numbers<[1], [0], [0], [1], [0, 0, 1, 1], [], []>} : vector<256x36xf32>, vector<36x16xf32>, vector<256x16xf32> -> vector<256x16xf32>
    %25 = vector.extract_strided_slice %24 {offsets = [0, 0], sizes = [256, 8], strides = [1, 1]} : vector<256x16xf32> to vector<256x8xf32>
    %cst_25 = arith.constant dense<0.000000e+00> : vector<8xf32>
    %26 = vector.multi_reduction <add>, %25, %cst_25 [0] : vector<256x8xf32> to vector<8xf32>
    %27 = vector.shape_cast %26 : vector<8xf32> to vector<1x8xf32>
    %28 = arith.mulf %25, %25 : vector<256x8xf32>
    %cst_26 = arith.constant dense<0.000000e+00> : vector<8xf32>
    %29 = vector.multi_reduction <add>, %28, %cst_26 [0] : vector<256x8xf32> to vector<8xf32>
    %30 = vector.shape_cast %29 : vector<8xf32> to vector<1x8xf32>
    %31 = tpu.concatenate %27, %30 in 0 : vector<1x8xf32>, vector<1x8xf32> -> vector<2x8xf32>
    %c0_27 = arith.constant 0 : index
    %c0_28 = arith.constant 0 : index
    %c0_29 = arith.constant 0 : index
    %32 = vector.load %arg4[%c0_27, %c0_28, %c0_29] : memref<1x2x8xf32, #tpu.memory_space<vmem>>, vector<1x2x8xf32>
    %33 = vector.shape_cast %32 : vector<1x2x8xf32> to vector<2x8xf32>
    %34 = vector.shape_cast %31 : vector<2x8xf32> to vector<1x2x8xf32>
    tpu.vector_store %arg4[%c0_27, %c0_28, %c0_29], %34 {strides = array<i32>} : memref<1x2x8xf32, #tpu.memory_space<vmem>>, vector<1x2x8xf32>,
    %c0_30 = arith.constant 0 : index
    %c0_31 = arith.constant 0 : index
    %c0_32 = arith.constant 0 : index
    %35 = vector.load %arg3[%c0_30, %c0_31, %c0_32] : memref<1x256x8xf32, #tpu.memory_space<vmem>>, vector<1x256x8xf32>
    %36 = vector.shape_cast %35 : vector<1x256x8xf32> to vector<256x8xf32>
    %37 = vector.shape_cast %25 : vector<256x8xf32> to vector<1x256x8xf32>
    tpu.vector_store %arg3[%c0_30, %c0_31, %c0_32], %37 {strides = array<i32>} : memref<1x256x8xf32, #tpu.memory_space<vmem>>, vector<1x256x8xf32>,
    %38 = vector.extract_strided_slice %24 {offsets = [0, 8], sizes = [256, 8], strides = [1, 1]} : vector<256x16xf32> to vector<256x8xf32>
    %cst_33 = arith.constant dense<0.000000e+00> : vector<8xf32>
    %39 = vector.multi_reduction <add>, %38, %cst_33 [0] : vector<256x8xf32> to vector<8xf32>
    %40 = vector.shape_cast %39 : vector<8xf32> to vector<1x8xf32>
    %41 = arith.mulf %38, %38 : vector<256x8xf32>
    %cst_34 = arith.constant dense<0.000000e+00> : vector<8xf32>
    %42 = vector.multi_reduction <add>, %41, %cst_34 [0] : vector<256x8xf32> to vector<8xf32>
    %43 = vector.shape_cast %42 : vector<8xf32> to vector<1x8xf32>
    %44 = tpu.concatenate %40, %43 in 0 : vector<1x8xf32>, vector<1x8xf32> -> vector<2x8xf32>
    %c0_35 = arith.constant 0 : index
    %c0_36 = arith.constant 0 : index
    %c0_37 = arith.constant 0 : index
    %45 = vector.load %arg6[%c0_35, %c0_36, %c0_37] : memref<1x2x8xf32, #tpu.memory_space<vmem>>, vector<1x2x8xf32>
    %46 = vector.shape_cast %45 : vector<1x2x8xf32> to vector<2x8xf32>
    %47 = vector.shape_cast %44 : vector<2x8xf32> to vector<1x2x8xf32>
    tpu.vector_store %arg6[%c0_35, %c0_36, %c0_37], %47 {strides = array<i32>} : memref<1x2x8xf32, #tpu.memory_space<vmem>>, vector<1x2x8xf32>,
    %c0_38 = arith.constant 0 : index
    %c0_39 = arith.constant 0 : index
    %c0_40 = arith.constant 0 : index
    %48 = vector.load %arg5[%c0_38, %c0_39, %c0_40] : memref<1x256x8xf32, #tpu.memory_space<vmem>>, vector<1x256x8xf32>
    %49 = vector.shape_cast %48 : vector<1x256x8xf32> to vector<256x8xf32>
    %50 = vector.shape_cast %38 : vector<256x8xf32> to vector<1x256x8xf32>
    tpu.vector_store %arg5[%c0_38, %c0_39, %c0_40], %50 {strides = array<i32>} : memref<1x256x8xf32, #tpu.memory_space<vmem>>, vector<1x256x8xf32>,
    return
  }
  func.func @transform_0(%arg0: i32) -> (i32, i32, i32, i32) {
    %c0_i32 = arith.constant 0 : i32
    %c0_i32_0 = arith.constant 0 : i32
    %c0_i32_1 = arith.constant 0 : i32
    %c0_i32_2 = arith.constant 0 : i32
    return %arg0, %c0_i32, %c0_i32_0, %c0_i32_1 : i32, i32, i32, i32
  }
  func.func @transform_1(%arg0: i32) -> (i32, i32) {
    %c0_i32 = arith.constant 0 : i32
    %c0_i32_0 = arith.constant 0 : i32
    %c0_i32_1 = arith.constant 0 : i32
    return %c0_i32, %c0_i32_0 : i32, i32
  }
  func.func @transform_2(%arg0: i32) -> (i32, i32, i32) {
    %c0_i32 = arith.constant 0 : i32
    %c0_i32_0 = arith.constant 0 : i32
    %c0_i32_1 = arith.constant 0 : i32
    return %arg0, %c0_i32, %c0_i32_0 : i32, i32, i32
  }
  func.func @transform_3(%arg0: i32) -> (i32, i32, i32) {
    %c0_i32 = arith.constant 0 : i32
    %c0_i32_0 = arith.constant 0 : i32
    %c0_i32_1 = arith.constant 0 : i32
    return %arg0, %c0_i32, %c0_i32_0 : i32, i32, i32
  }
  func.func @transform_4(%arg0: i32) -> (i32, i32, i32) {
    %c0_i32 = arith.constant 0 : i32
    %c0_i32_0 = arith.constant 0 : i32
    %c0_i32_1 = arith.constant 0 : i32
    return %arg0, %c0_i32, %c0_i32_0 : i32, i32, i32
  }
  func.func @transform_5(%arg0: i32) -> (i32, i32, i32) {
    %c0_i32 = arith.constant 0 : i32
    %c0_i32_0 = arith.constant 0 : i32
    %c0_i32_1 = arith.constant 0 : i32
    return %arg0, %c0_i32, %c0_i32_0 : i32, i32, i32
  }
}

module attributes {stable_mosaic.version = 11 : i64} {
  func.func @_conv2_kernel(%arg0: i32, %arg1: memref<1x16x16x8xf32, #tpu.memory_space<vmem>>, %arg2: memref<1x8xf32, #tpu.memory_space<vmem>>, %arg3: memref<1x8xf32, #tpu.memory_space<vmem>>, %arg4: memref<72x8xf32, #tpu.memory_space<vmem>>, %arg5: memref<1x256x8xf32, #tpu.memory_space<vmem>>, %arg6: memref<1x2x8xf32, #tpu.memory_space<vmem>>, %arg7: memref<18x18x8xf32, #tpu.memory_space<vmem>>) attributes {dimension_semantics = [#tpu.dimension_semantics<parallel>], iteration_bounds = array<i64: 2>, scalar_prefetch = 0 : i64, scratch_operands = 1 : i64, tpu.core_type = #tpu.core_type<tc>, window_params = [{transform_indices = @transform_0, window_bounds = array<i64: 1, 16, 16, 8>}, {pipeline_mode = #tpu.pipeline_mode<synchronous>, transform_indices = @transform_1, window_bounds = array<i64: 1, 8>}, {pipeline_mode = #tpu.pipeline_mode<synchronous>, transform_indices = @transform_2, window_bounds = array<i64: 1, 8>}, {pipeline_mode = #tpu.pipeline_mode<synchronous>, transform_indices = @transform_3, window_bounds = array<i64: 72, 8>}, {transform_indices = @transform_4, window_bounds = array<i64: 1, 256, 8>}, {transform_indices = @transform_5, window_bounds = array<i64: 1, 2, 8>}]} {
    %c0 = arith.constant 0 : index
    %c0_0 = arith.constant 0 : index
    %c0_1 = arith.constant 0 : index
    %c0_2 = arith.constant 0 : index
    %0 = vector.load %arg1[%c0, %c0_0, %c0_1, %c0_2] : memref<1x16x16x8xf32, #tpu.memory_space<vmem>>, vector<1x16x16x8xf32>
    %1 = vector.shape_cast %0 : vector<1x16x16x8xf32> to vector<16x16x8xf32>
    %c0_3 = arith.constant 0 : index
    %c0_4 = arith.constant 0 : index
    %2 = vector.load %arg2[%c0_3, %c0_4] : memref<1x8xf32, #tpu.memory_space<vmem>>, vector<1x8xf32>
    %3 = vector.shape_cast %2 : vector<1x8xf32> to vector<1x1x8xf32>
    %4 = vector.broadcast %3 : vector<1x1x8xf32> to vector<16x16x8xf32>
    %5 = arith.mulf %1, %4 : vector<16x16x8xf32>
    %c0_5 = arith.constant 0 : index
    %c0_6 = arith.constant 0 : index
    %6 = vector.load %arg3[%c0_5, %c0_6] : memref<1x8xf32, #tpu.memory_space<vmem>>, vector<1x8xf32>
    %7 = vector.shape_cast %6 : vector<1x8xf32> to vector<1x1x8xf32>
    %8 = vector.broadcast %7 : vector<1x1x8xf32> to vector<16x16x8xf32>
    %9 = arith.addf %5, %8 : vector<16x16x8xf32>
    %cst = arith.constant 0.000000e+00 : f32
    %10 = vector.broadcast %cst : f32 to vector<16x16x8xf32>
    %11 = arith.maximumf %9, %10 : vector<16x16x8xf32>
    %cst_7 = arith.constant 0.000000e+00 : f32
    %12 = vector.broadcast %cst_7 : f32 to vector<1x18x8xf32>
    %c0_8 = arith.constant 0 : index
    %c0_9 = arith.constant 0 : index
    %c0_10 = arith.constant 0 : index
    %13 = vector.load %arg7[%c0_8, %c0_9, %c0_10] : memref<18x18x8xf32, #tpu.memory_space<vmem>>, vector<1x18x8xf32>
    tpu.vector_store %arg7[%c0_8, %c0_9, %c0_10], %12 {strides = array<i32>} : memref<18x18x8xf32, #tpu.memory_space<vmem>>, vector<1x18x8xf32>,
    %cst_11 = arith.constant 0.000000e+00 : f32
    %14 = vector.broadcast %cst_11 : f32 to vector<1x18x8xf32>
    %c17 = arith.constant 17 : index
    %c0_12 = arith.constant 0 : index
    %c0_13 = arith.constant 0 : index
    %15 = vector.load %arg7[%c17, %c0_12, %c0_13] : memref<18x18x8xf32, #tpu.memory_space<vmem>>, vector<1x18x8xf32>
    tpu.vector_store %arg7[%c17, %c0_12, %c0_13], %14 {strides = array<i32>} : memref<18x18x8xf32, #tpu.memory_space<vmem>>, vector<1x18x8xf32>,
    %cst_14 = arith.constant 0.000000e+00 : f32
    %16 = vector.broadcast %cst_14 : f32 to vector<18x1x8xf32>
    %c0_15 = arith.constant 0 : index
    %c0_16 = arith.constant 0 : index
    %c0_17 = arith.constant 0 : index
    %17 = vector.load %arg7[%c0_15, %c0_16, %c0_17] : memref<18x18x8xf32, #tpu.memory_space<vmem>>, vector<18x1x8xf32>
    tpu.vector_store %arg7[%c0_15, %c0_16, %c0_17], %16 {strides = array<i32>} : memref<18x18x8xf32, #tpu.memory_space<vmem>>, vector<18x1x8xf32>,
    %cst_18 = arith.constant 0.000000e+00 : f32
    %18 = vector.broadcast %cst_18 : f32 to vector<18x1x8xf32>
    %c0_19 = arith.constant 0 : index
    %c17_20 = arith.constant 17 : index
    %c0_21 = arith.constant 0 : index
    %19 = vector.load %arg7[%c0_19, %c17_20, %c0_21] : memref<18x18x8xf32, #tpu.memory_space<vmem>>, vector<18x1x8xf32>
    tpu.vector_store %arg7[%c0_19, %c17_20, %c0_21], %18 {strides = array<i32>} : memref<18x18x8xf32, #tpu.memory_space<vmem>>, vector<18x1x8xf32>,
    %c1 = arith.constant 1 : index
    %c1_22 = arith.constant 1 : index
    %c0_23 = arith.constant 0 : index
    %20 = vector.load %arg7[%c1, %c1_22, %c0_23] : memref<18x18x8xf32, #tpu.memory_space<vmem>>, vector<16x16x8xf32>
    tpu.vector_store %arg7[%c1, %c1_22, %c0_23], %11 {strides = array<i32>} : memref<18x18x8xf32, #tpu.memory_space<vmem>>, vector<16x16x8xf32>,
    %c0_24 = arith.constant 0 : index
    %c0_25 = arith.constant 0 : index
    %c0_26 = arith.constant 0 : index
    %21 = vector.load %arg7[%c0_24, %c0_25, %c0_26] : memref<18x18x8xf32, #tpu.memory_space<vmem>>, vector<18x18x8xf32>
    %22 = vector.extract_strided_slice %21 {offsets = [0, 0, 0], sizes = [16, 16, 8], strides = [1, 1, 1]} : vector<18x18x8xf32> to vector<16x16x8xf32>
    %23 = vector.extract_strided_slice %21 {offsets = [0, 1, 0], sizes = [16, 16, 8], strides = [1, 1, 1]} : vector<18x18x8xf32> to vector<16x16x8xf32>
    %24 = vector.extract_strided_slice %21 {offsets = [0, 2, 0], sizes = [16, 16, 8], strides = [1, 1, 1]} : vector<18x18x8xf32> to vector<16x16x8xf32>
    %25 = vector.extract_strided_slice %21 {offsets = [1, 0, 0], sizes = [16, 16, 8], strides = [1, 1, 1]} : vector<18x18x8xf32> to vector<16x16x8xf32>
    %26 = vector.extract_strided_slice %21 {offsets = [1, 1, 0], sizes = [16, 16, 8], strides = [1, 1, 1]} : vector<18x18x8xf32> to vector<16x16x8xf32>
    %27 = vector.extract_strided_slice %21 {offsets = [1, 2, 0], sizes = [16, 16, 8], strides = [1, 1, 1]} : vector<18x18x8xf32> to vector<16x16x8xf32>
    %28 = vector.extract_strided_slice %21 {offsets = [2, 0, 0], sizes = [16, 16, 8], strides = [1, 1, 1]} : vector<18x18x8xf32> to vector<16x16x8xf32>
    %29 = vector.extract_strided_slice %21 {offsets = [2, 1, 0], sizes = [16, 16, 8], strides = [1, 1, 1]} : vector<18x18x8xf32> to vector<16x16x8xf32>
    %30 = vector.extract_strided_slice %21 {offsets = [2, 2, 0], sizes = [16, 16, 8], strides = [1, 1, 1]} : vector<18x18x8xf32> to vector<16x16x8xf32>
    %31 = tpu.concatenate %22, %23, %24, %25, %26, %27, %28, %29, %30 in 2 : vector<16x16x8xf32>, vector<16x16x8xf32>, vector<16x16x8xf32>, vector<16x16x8xf32>, vector<16x16x8xf32>, vector<16x16x8xf32>, vector<16x16x8xf32>, vector<16x16x8xf32>, vector<16x16x8xf32> -> vector<16x16x72xf32>
    %32 = vector.shape_cast %31 : vector<16x16x72xf32> to vector<256x72xf32>
    %c0_27 = arith.constant 0 : index
    %c0_28 = arith.constant 0 : index
    %33 = vector.load %arg4[%c0_27, %c0_28] : memref<72x8xf32, #tpu.memory_space<vmem>>, vector<72x8xf32>
    %cst_29 = arith.constant dense<0.000000e+00> : vector<256x8xf32>
    %34 = tpu.matmul %32, %33, %cst_29 {dimension_numbers = #tpu.dot_dimension_numbers<[1], [0], [0], [1], [0, 0, 1, 1], [], []>} : vector<256x72xf32>, vector<72x8xf32>, vector<256x8xf32> -> vector<256x8xf32>
    %cst_30 = arith.constant dense<0.000000e+00> : vector<8xf32>
    %35 = vector.multi_reduction <add>, %34, %cst_30 [0] : vector<256x8xf32> to vector<8xf32>
    %36 = vector.shape_cast %35 : vector<8xf32> to vector<1x8xf32>
    %37 = arith.mulf %34, %34 : vector<256x8xf32>
    %cst_31 = arith.constant dense<0.000000e+00> : vector<8xf32>
    %38 = vector.multi_reduction <add>, %37, %cst_31 [0] : vector<256x8xf32> to vector<8xf32>
    %39 = vector.shape_cast %38 : vector<8xf32> to vector<1x8xf32>
    %40 = tpu.concatenate %36, %39 in 0 : vector<1x8xf32>, vector<1x8xf32> -> vector<2x8xf32>
    %c0_32 = arith.constant 0 : index
    %c0_33 = arith.constant 0 : index
    %c0_34 = arith.constant 0 : index
    %41 = vector.load %arg6[%c0_32, %c0_33, %c0_34] : memref<1x2x8xf32, #tpu.memory_space<vmem>>, vector<1x2x8xf32>
    %42 = vector.shape_cast %41 : vector<1x2x8xf32> to vector<2x8xf32>
    %43 = vector.shape_cast %40 : vector<2x8xf32> to vector<1x2x8xf32>
    tpu.vector_store %arg6[%c0_32, %c0_33, %c0_34], %43 {strides = array<i32>} : memref<1x2x8xf32, #tpu.memory_space<vmem>>, vector<1x2x8xf32>,
    %c0_35 = arith.constant 0 : index
    %c0_36 = arith.constant 0 : index
    %c0_37 = arith.constant 0 : index
    %44 = vector.load %arg5[%c0_35, %c0_36, %c0_37] : memref<1x256x8xf32, #tpu.memory_space<vmem>>, vector<1x256x8xf32>
    %45 = vector.shape_cast %44 : vector<1x256x8xf32> to vector<256x8xf32>
    %46 = vector.shape_cast %34 : vector<256x8xf32> to vector<1x256x8xf32>
    tpu.vector_store %arg5[%c0_35, %c0_36, %c0_37], %46 {strides = array<i32>} : memref<1x256x8xf32, #tpu.memory_space<vmem>>, vector<1x256x8xf32>,
    return
  }
  func.func @transform_0(%arg0: i32) -> (i32, i32, i32, i32) {
    %c0_i32 = arith.constant 0 : i32
    %c0_i32_0 = arith.constant 0 : i32
    %c0_i32_1 = arith.constant 0 : i32
    %c0_i32_2 = arith.constant 0 : i32
    return %arg0, %c0_i32, %c0_i32_0, %c0_i32_1 : i32, i32, i32, i32
  }
  func.func @transform_1(%arg0: i32) -> (i32, i32) {
    %c0_i32 = arith.constant 0 : i32
    %c0_i32_0 = arith.constant 0 : i32
    %c0_i32_1 = arith.constant 0 : i32
    return %c0_i32, %c0_i32_0 : i32, i32
  }
  func.func @transform_2(%arg0: i32) -> (i32, i32) {
    %c0_i32 = arith.constant 0 : i32
    %c0_i32_0 = arith.constant 0 : i32
    %c0_i32_1 = arith.constant 0 : i32
    return %c0_i32, %c0_i32_0 : i32, i32
  }
  func.func @transform_3(%arg0: i32) -> (i32, i32) {
    %c0_i32 = arith.constant 0 : i32
    %c0_i32_0 = arith.constant 0 : i32
    %c0_i32_1 = arith.constant 0 : i32
    return %c0_i32, %c0_i32_0 : i32, i32
  }
  func.func @transform_4(%arg0: i32) -> (i32, i32, i32) {
    %c0_i32 = arith.constant 0 : i32
    %c0_i32_0 = arith.constant 0 : i32
    %c0_i32_1 = arith.constant 0 : i32
    return %arg0, %c0_i32, %c0_i32_0 : i32, i32, i32
  }
  func.func @transform_5(%arg0: i32) -> (i32, i32, i32) {
    %c0_i32 = arith.constant 0 : i32
    %c0_i32_0 = arith.constant 0 : i32
    %c0_i32_1 = arith.constant 0 : i32
    return %arg0, %c0_i32, %c0_i32_0 : i32, i32, i32
  }
}

module attributes {stable_mosaic.version = 11 : i64} {
  func.func @_epilogue_kernel(%arg0: i32, %arg1: memref<1x16x128xf32, #tpu.memory_space<vmem>>, %arg2: memref<1x128xf32, #tpu.memory_space<vmem>>, %arg3: memref<1x128xf32, #tpu.memory_space<vmem>>, %arg4: memref<1x16x128xf32, #tpu.memory_space<vmem>>, %arg5: memref<1x128xf32, #tpu.memory_space<vmem>>, %arg6: memref<1x128xf32, #tpu.memory_space<vmem>>, %arg7: memref<1x16x128xf32, #tpu.memory_space<vmem>>) attributes {dimension_semantics = [#tpu.dimension_semantics<parallel>], iteration_bounds = array<i64: 2>, scalar_prefetch = 0 : i64, scratch_operands = 0 : i64, tpu.core_type = #tpu.core_type<tc>, window_params = [{transform_indices = @transform_0, window_bounds = array<i64: 1, 16, 128>}, {pipeline_mode = #tpu.pipeline_mode<synchronous>, transform_indices = @transform_1, window_bounds = array<i64: 1, 128>}, {pipeline_mode = #tpu.pipeline_mode<synchronous>, transform_indices = @transform_2, window_bounds = array<i64: 1, 128>}, {transform_indices = @transform_3, window_bounds = array<i64: 1, 16, 128>}, {pipeline_mode = #tpu.pipeline_mode<synchronous>, transform_indices = @transform_4, window_bounds = array<i64: 1, 128>}, {pipeline_mode = #tpu.pipeline_mode<synchronous>, transform_indices = @transform_5, window_bounds = array<i64: 1, 128>}, {transform_indices = @transform_6, window_bounds = array<i64: 1, 16, 128>}]} {
    %c0 = arith.constant 0 : index
    %c0_0 = arith.constant 0 : index
    %c0_1 = arith.constant 0 : index
    %0 = vector.load %arg1[%c0, %c0_0, %c0_1] : memref<1x16x128xf32, #tpu.memory_space<vmem>>, vector<1x16x128xf32>
    %1 = vector.shape_cast %0 : vector<1x16x128xf32> to vector<16x128xf32>
    %c0_2 = arith.constant 0 : index
    %c0_3 = arith.constant 0 : index
    %2 = vector.load %arg2[%c0_2, %c0_3] : memref<1x128xf32, #tpu.memory_space<vmem>>, vector<1x128xf32>
    %3 = vector.broadcast %2 : vector<1x128xf32> to vector<16x128xf32>
    %4 = arith.mulf %1, %3 : vector<16x128xf32>
    %c0_4 = arith.constant 0 : index
    %c0_5 = arith.constant 0 : index
    %5 = vector.load %arg3[%c0_4, %c0_5] : memref<1x128xf32, #tpu.memory_space<vmem>>, vector<1x128xf32>
    %6 = vector.broadcast %5 : vector<1x128xf32> to vector<16x128xf32>
    %7 = arith.addf %4, %6 : vector<16x128xf32>
    %c0_6 = arith.constant 0 : index
    %c0_7 = arith.constant 0 : index
    %c0_8 = arith.constant 0 : index
    %8 = vector.load %arg4[%c0_6, %c0_7, %c0_8] : memref<1x16x128xf32, #tpu.memory_space<vmem>>, vector<1x16x128xf32>
    %9 = vector.shape_cast %8 : vector<1x16x128xf32> to vector<16x128xf32>
    %c0_9 = arith.constant 0 : index
    %c0_10 = arith.constant 0 : index
    %10 = vector.load %arg5[%c0_9, %c0_10] : memref<1x128xf32, #tpu.memory_space<vmem>>, vector<1x128xf32>
    %11 = vector.broadcast %10 : vector<1x128xf32> to vector<16x128xf32>
    %12 = arith.mulf %9, %11 : vector<16x128xf32>
    %c0_11 = arith.constant 0 : index
    %c0_12 = arith.constant 0 : index
    %13 = vector.load %arg6[%c0_11, %c0_12] : memref<1x128xf32, #tpu.memory_space<vmem>>, vector<1x128xf32>
    %14 = vector.broadcast %13 : vector<1x128xf32> to vector<16x128xf32>
    %15 = arith.addf %12, %14 : vector<16x128xf32>
    %16 = arith.addf %7, %15 : vector<16x128xf32>
    %cst = arith.constant 0.000000e+00 : f32
    %17 = vector.broadcast %cst : f32 to vector<16x128xf32>
    %18 = arith.maximumf %16, %17 : vector<16x128xf32>
    %c0_13 = arith.constant 0 : index
    %c0_14 = arith.constant 0 : index
    %c0_15 = arith.constant 0 : index
    %19 = vector.load %arg7[%c0_13, %c0_14, %c0_15] : memref<1x16x128xf32, #tpu.memory_space<vmem>>, vector<1x16x128xf32>
    %20 = vector.shape_cast %19 : vector<1x16x128xf32> to vector<16x128xf32>
    %21 = vector.shape_cast %18 : vector<16x128xf32> to vector<1x16x128xf32>
    tpu.vector_store %arg7[%c0_13, %c0_14, %c0_15], %21 {strides = array<i32>} : memref<1x16x128xf32, #tpu.memory_space<vmem>>, vector<1x16x128xf32>,
    return
  }
  func.func @transform_0(%arg0: i32) -> (i32, i32, i32) {
    %c0_i32 = arith.constant 0 : i32
    %c0_i32_0 = arith.constant 0 : i32
    %c0_i32_1 = arith.constant 0 : i32
    return %arg0, %c0_i32, %c0_i32_0 : i32, i32, i32
  }
  func.func @transform_1(%arg0: i32) -> (i32, i32) {
    %c0_i32 = arith.constant 0 : i32
    %c0_i32_0 = arith.constant 0 : i32
    %c0_i32_1 = arith.constant 0 : i32
    return %c0_i32, %c0_i32_0 : i32, i32
  }
  func.func @transform_2(%arg0: i32) -> (i32, i32) {
    %c0_i32 = arith.constant 0 : i32
    %c0_i32_0 = arith.constant 0 : i32
    %c0_i32_1 = arith.constant 0 : i32
    return %c0_i32, %c0_i32_0 : i32, i32
  }
  func.func @transform_3(%arg0: i32) -> (i32, i32, i32) {
    %c0_i32 = arith.constant 0 : i32
    %c0_i32_0 = arith.constant 0 : i32
    %c0_i32_1 = arith.constant 0 : i32
    return %arg0, %c0_i32, %c0_i32_0 : i32, i32, i32
  }
  func.func @transform_4(%arg0: i32) -> (i32, i32) {
    %c0_i32 = arith.constant 0 : i32
    %c0_i32_0 = arith.constant 0 : i32
    %c0_i32_1 = arith.constant 0 : i32
    return %c0_i32, %c0_i32_0 : i32, i32
  }
  func.func @transform_5(%arg0: i32) -> (i32, i32) {
    %c0_i32 = arith.constant 0 : i32
    %c0_i32_0 = arith.constant 0 : i32
    %c0_i32_1 = arith.constant 0 : i32
    return %c0_i32, %c0_i32_0 : i32, i32
  }
  func.func @transform_6(%arg0: i32) -> (i32, i32, i32) {
    %c0_i32 = arith.constant 0 : i32
    %c0_i32_0 = arith.constant 0 : i32
    %c0_i32_1 = arith.constant 0 : i32
    return %arg0, %c0_i32, %c0_i32_0 : i32, i32, i32
  }
}

</mosaic_0001>

<bundles_post_ra>
// kernel: tile.28
= control target key start
LH: loop header
LB: loop body
LE: loop exit
PB: predicated region body
PF: predicated region fallthrough
CT: control target
= control target key end

     0   :  { %s28_s0 = inlined_call_operand.vmem [shape: f32[8], index: 0, kind: input, shape index: {}]   ;;  %s29_s1 = inlined_call_operand.vmem [shape: f32[16,8], index: 1, kind: output, shape index: {}]  }
   0x1   :  { %v4_v0 = vld [vmem:[%s28_s0] ss:$0 sm:$0xff] }
   0x2   :  { %5 = vst [vmem:[%s29_s1] sm:$0xff] %v4_v0  ;;  %8 = vst [vmem:[%s29_s1 + $0x8] sm:$0xff] %v4_v0 }

// kernel: tile.29
= control target key start
LH: loop header
LB: loop body
LE: loop exit
PB: predicated region body
PF: predicated region fallthrough
CT: control target
= control target key end

     0   :  { %s133_s10 = smov 120   ;;  %s134_s11 = smov 104   ;;  %vm3_vm0 = vcmask 64512   ;;  %vm9_vm1 = vcmask 1048512   ;;  %vm15_vm2 = vcmask 982912   ;;  %vm21_vm3 = vcmask 917312   ;;  %s209_s0 = inlined_call_operand.vmem [shape: f32[16,8], index: 0, kind: input, shape index: {}]   ;;  %s210_s1 = inlined_call_operand.vmem [shape: f32[1,128], index: 1, kind: output, shape index: {}]  }
   0x1   :  { %v103_v0 = vld [vmem:[%s209_s0 + $0xf] sm:$0x1]   ;;  %v105_v1 = vld [vmem:[%s209_s0 + $0xd] sm:$0x1]   ;;  %v104_v2 = vld [vmem:[%s209_s0 + $0xe] sm:$0x1]  }
   0x2   :  { %7 = vrot.lane.b32.xlu0 %v103_v0, %s133_s10  ;;  %19 = vrot.lane.b32.xlu1 %v105_v1, %s134_s11  ;;  %v106_v3 = vld [vmem:[%s209_s0 + $0xc] sm:$0x1]   ;;  %s135_s16 = smov 112   ;;  %s136_s17 = smov 96   ;;  %v107_v4 = vld [vmem:[%s209_s0 + $0xb] sm:$0x1]  }
   0x3   :  { %v108_v5 = vld [vmem:[%s209_s0 + $0xa] sm:$0x1]   ;;  %v2_v6 = vld [vmem:[%s209_s0] sm:$0x1]   ;;  %s137_s24 = smov 88   ;;  %s138_s25 = smov 80  }
   0x4   :  { %4 = vst.msk [vmem:[#allocation0] sm:$0x1] %vm3_vm0, %v2_v6   ;;  %v109_v7 = vld [vmem:[%s209_s0 + $0x9] sm:$0x1]   ;;  %v110_v8 = vld [vmem:[%s209_s0 + $0x8] sm:$0x1]  }
   0x5   :  { %s139_s30 = smov 72   ;;  %s140_s2 = smov 64   ;;  %v111_v9 = vld [vmem:[%s209_s0 + $0x7] sm:$0x1]   ;;  %v112_v10 = vld [vmem:[%s209_s0 + $0x6] sm:$0x1]  }
   0x6   :  { %13 = vrot.lane.b32.xlu0 %v104_v2, %s135_s16  ;;  %25 = vrot.lane.b32.xlu1 %v106_v3, %s136_s17  ;;  %s141_s7 = smov 56   ;;  %s142_s8 = smov 48   ;;  %v113_v11 = vld [vmem:[%s209_s0 + $0x5] sm:$0x1]   ;;  %v114_v12 = vld [vmem:[%s209_s0 + $0x4] sm:$0x1]  }
   0x7   :  { %s143_s13 = smov 40   ;;  %s144_s14 = smov 32   ;;  %v115_v13 = vld [vmem:[%s209_s0 + $0x3] sm:$0x1]   ;;  %v116_v14 = vld [vmem:[%s209_s0 + $0x2] sm:$0x1]  }
   0x8   :  { %s145_s19 = smov 24   ;;  %s146_s20 = smov 16   ;;  %v117_v15 = vld [vmem:[%s209_s0 + $0x1] sm:$0x1]   ;;  %vm27_vm4 = vcmask 851712   ;;  %vm33_vm5 = vcmask 786112  }
   0x9   :  { %s147_s0 = smov 8   ;;  %vm39_vm6 = vcmask 720512   ;;  %vm45_vm7 = vcmask 654912   ;;  %vm51_vm8 = vcmask 589312   ;;  %vm57_vm9 = vcmask 523712  }
   0xa   :  { %31 = vrot.lane.b32.xlu0 %v107_v4, %s137_s24  ;;  %37 = vrot.lane.b32.xlu1 %v108_v5, %s138_s25  ;;  %vm63_vm10 = vcmask 458112   ;;  %vm69_vm11 = vcmask 392512   ;;  %vm75_vm12 = vcmask 326912   ;;  %vm81_vm13 = vcmask 261312  }
   0xb   :  { %vm87_vm14 = vcmask 195712   ;;  %vm93_vm15 = vcmask 130112  }
   0xe   :  { %43 = vrot.lane.b32.xlu0 %v109_v7, %s139_s30  ;;  %49 = vrot.lane.b32.xlu1 %v110_v8, %s140_s2 }
  0x12   :  { %55 = vrot.lane.b32.xlu0 %v111_v9, %s141_s7  ;;  %61 = vrot.lane.b32.xlu1 %v112_v10, %s142_s8 }
  0x16   :  { %67 = vrot.lane.b32.xlu0 %v113_v11, %s143_s13  ;;  %73 = vrot.lane.b32.xlu1 %v114_v12, %s144_s14 }
  0x1a   :  { %79 = vrot.lane.b32.xlu0 %v115_v13, %s145_s19  ;;  %85 = vrot.lane.b32.xlu1 %v116_v14, %s146_s20 }
  0x1e   :  { %91 = vrot.lane.b32.xlu0 %v117_v15, %s147_s0 }
  0x74   :  { %v8_v16 = vpop.permute.xlu0 %7   ;;  %v20_v17 = vpop.permute.xlu1 %19  }
  0x75   :  { %10 = vst.msk [vmem:[#allocation0] sm:$0x1] %vm9_vm1, %v8_v16  }
  0x78   :  { %v14_v18 = vpop.permute.xlu0 %13   ;;  %v26_v19 = vpop.permute.xlu1 %25  }
  0x79   :  { %16 = vst.msk [vmem:[#allocation0] sm:$0x1] %vm15_vm2, %v14_v18  }
  0x7a   :  { %22 = vst.msk [vmem:[#allocation0] sm:$0x1] %vm21_vm3, %v20_v17  }
  0x7b   :  { %28 = vst.msk [vmem:[#allocation0] sm:$0x1] %vm27_vm4, %v26_v19  }
  0x7c   :  { %v32_v20 = vpop.permute.xlu0 %31   ;;  %v38_v21 = vpop.permute.xlu1 %37  }
  0x7d   :  { %34 = vst.msk [vmem:[#allocation0] sm:$0x1] %vm33_vm5, %v32_v20  }
  0x7e   :  { %40 = vst.msk [vmem:[#allocation0] sm:$0x1] %vm39_vm6, %v38_v21  }
  0x80   :  { %v44_v22 = vpop.permute.xlu0 %43   ;;  %v50_v23 = vpop.permute.xlu1 %49  }
  0x81   :  { %46 = vst.msk [vmem:[#allocation0] sm:$0x1] %vm45_vm7, %v44_v22  }
  0x82   :  { %52 = vst.msk [vmem:[#allocation0] sm:$0x1] %vm51_vm8, %v50_v23  }
  0x84   :  { %v56_v24 = vpop.permute.xlu0 %55   ;;  %v62_v25 = vpop.permute.xlu1 %61  }
  0x85   :  { %58 = vst.msk [vmem:[#allocation0] sm:$0x1] %vm57_vm9, %v56_v24  }
  0x86   :  { %64 = vst.msk [vmem:[#allocation0] sm:$0x1] %vm63_vm10, %v62_v25  }
  0x88   :  { %v68_v26 = vpop.permute.xlu0 %67   ;;  %v74_v27 = vpop.permute.xlu1 %73  }
  0x89   :  { %70 = vst.msk [vmem:[#allocation0] sm:$0x1] %vm69_vm11, %v68_v26  }
  0x8a   :  { %76 = vst.msk [vmem:[#allocation0] sm:$0x1] %vm75_vm12, %v74_v27  }
  0x8c   :  { %v80_v28 = vpop.permute.xlu0 %79   ;;  %v86_v29 = vpop.permute.xlu1 %85  }
  0x8d   :  { %82 = vst.msk [vmem:[#allocation0] sm:$0x1] %vm81_vm13, %v80_v28  }
  0x8e   :  { %88 = vst.msk [vmem:[#allocation0] sm:$0x1] %vm87_vm14, %v86_v29  }
  0x90   :  { %v92_v30 = vpop.permute.xlu0 %91  }
  0x91   :  { %94 = vst.msk [vmem:[#allocation0] sm:$0x1] %vm93_vm15, %v92_v30  }
  0x98   :  { %v99_v31 = vld [vmem:[#allocation0] sm:$0x1] }
  0x99   :  { %102 = vst [vmem:[%s210_s1] sm:$0x1] %v99_v31 }

// kernel: residual_block_forward.5
= control target key start
LH: loop header
LB: loop body
LE: loop exit
PB: predicated region body
PF: predicated region fallthrough
CT: control target
= control target key end

     0   :  { %s456_s21 = smov 0   ;;  %s488_s0 = inlined_call_operand.vmem [shape: f32[2,16,128], index: 0, kind: input, shape index: {}]   ;;  %s489_s1 = inlined_call_operand.vmem [shape: f32[1,128], index: 1, kind: input, shape index: {}]   ;;  %s490_s2 = inlined_call_operand.vmem [shape: f32[1,128], index: 2, kind: input, shape index: {}]   ;;  %s491_s3 = inlined_call_operand.vmem [shape: f32[2,16,128], index: 3, kind: input, shape index: {}]   ;;  %s492_s4 = inlined_call_operand.vmem [shape: f32[1,128], index: 4, kind: input, shape index: {}]   ;;  %s493_s5 = inlined_call_operand.vmem [shape: f32[1,128], index: 5, kind: input, shape index: {}]   ;;  %s494_s6 = inlined_call_operand.vmem [shape: f32[2,16,128], index: 6, kind: output, shape index: {}]  }
   0x1 LB: > { %s385_s22 = sadd.s32 4294967295, %s419_s21   ;;  %p389_p0 = scmp.ge.s32.totalorder %s419_s21, 1  ;;  %s419_s21 = sphi %s456_s21, %s16_s21  }
   0x2   : > { %p222_p1 = scmp.lt.s32.totalorder %s419_s21, 3 }
   0x4   : > { %p223_p2 = pnand %p389_p0, %p222_p1 }
   0x5   : > { %p257_p3 = scmp.lt.s32.totalorder (!%p223_p2), %s385_s22, 1 }
   0x6   : > { %226 = sbr.rel (%p223_p2) target bundleno = 26 (0x1a), region = 44 }
   0xb   : > { %s496_s22 = smov (!%p257_p3, %s385_s22), 1  ;;  %v396_v0 = vld [vmem:[%s489_s1] ss:$0 sm:$0xff] }
   0xc   : > { %s402_s23 = sshll.u32 %s496_s22, 4  ;;  %v398_v1 = vld [vmem:[%s492_s4] ss:$0 sm:$0xff] }
   0xd   : > { %s261_s30 = scalar_lea.vmem %s488_s0, %s402_s23  ;;  %s266_s9 = scalar_lea.vmem %s491_s3, %s402_s23  ;;  %v397_v2 = vld [vmem:[%s490_s2] ss:$0 sm:$0xff] }
   0xe   : > { %v399_v3 = vld [vmem:[%s493_s5] ss:$0 sm:$0xff]  ;;  %v273_v5 = vld [vmem:[%s261_s30 + $0x8] sm:$0xff]  ;;  %s271_s16 = scalar_lea.vmem %s494_s6, %s402_s23 }
   0xf   : > { %v272_v4 = vld [vmem:[%s261_s30] sm:$0xff]  ;;  %v293_v8 = vld [vmem:[%s266_s9 + $0x8] sm:$0xff]  ;;  %v282_v10 = vmul.f32 %v396_v0, %v273_v5 }
  0x10   : > { %v292_v6 = vld [vmem:[%s266_s9] sm:$0xff]  ;;  %v281_v7 = vmul.f32 %v396_v0, %v272_v4  ;;  %v302_v11 = vmul.f32 %v398_v1, %v293_v8 }
  0x11   : > { %v301_v9 = vmul.f32 %v398_v1, %v292_v6  ;;  %v291_v14 = vadd.f32 %v397_v2, %v282_v10 }
  0x12   : > { %v290_v12 = vadd.f32 %v397_v2, %v281_v7  ;;  %v311_v15 = vadd.f32 %v399_v3, %v302_v11 }
  0x13   : > { %v310_v13 = vadd.f32 %v399_v3, %v301_v9 }
  0x14   : > { %v313_v17 = vadd.f32 %v311_v15, %v291_v14 }
  0x15   : > { %v312_v16 = vadd.f32 %v310_v13, %v290_v12 }
  0x16   : > { %v315_v19 = vmax.f32 %v313_v17, 0.0 }
  0x17   : > { %v314_v18 = vmax.f32 %v312_v16, 0.0 }
  0x18   : > { %317 = vst [vmem:[%s271_s16 + $0x8] sm:$0xff] %v315_v19 }
  0x19   : > { %316 = vst [vmem:[%s271_s16] sm:$0xff] %v314_v18 }
  0x1a PF: > { %s16_s21 = sadd.s32 1, %s419_s21  }
  0x1b   : > { %p13_p4 = scmp.ge.s32.totalorder %s16_s21, 4  }
  0x1d   :  { %15 = sbr.rel (!%p13_p4) target bundleno = 1 (0x1), region = 77 }

// kernel: residual_block_forward.3
= control target key start
LH: loop header
LB: loop body
LE: loop exit
PB: predicated region body
PF: predicated region fallthrough
CT: control target
= control target key end

     0   :  { %s2936_s18 = smov 0   ;;  %s5015_s0 = inlined_call_operand.vmem [shape: f32[2,16,16,4], index: 0, kind: input, shape index: {}]   ;;  %s5016_s1 = inlined_call_operand.vmem [shape: f32[36,16], index: 1, kind: input, shape index: {}]   ;;  %s5017_s2 = inlined_call_operand.vmem [shape: f32[2,256,8], index: 2, kind: output, shape index: {0}]   ;;  %s5018_s3 = inlined_call_operand.vmem [shape: f32[2,2,8], index: 3, kind: output, shape index: {1}]   ;;  %s5019_s4 = inlined_call_operand.vmem [shape: f32[2,256,8], index: 4, kind: output, shape index: {2}]   ;;  %s5020_s5 = inlined_call_operand.vmem [shape: f32[2,2,8], index: 5, kind: output, shape index: {3}]  }
   0x1 LB: > { %s2682_s19 = sadd.s32 4294967295, %s2894_s18   ;;  %p2686_p0 = scmp.ge.s32.totalorder %s2894_s18, 1  ;;  %s2894_s18 = sphi %s2936_s18, %s16_s18  }
   0x2   : > { %p194_p1 = scmp.lt.s32.totalorder %s2894_s18, 3 }
   0x4   : > { %p195_p2 = pnand %p2686_p0, %p194_p1 }
   0x6   : > { %198 = sbr.rel (%p195_p2) target bundleno = 1063 (0x427), region = 28 }
   0xb   : > { %vm290_vm0 = vcmask 31744   ;;  %vm299_vm1 = vcmask 24576   ;;  %p2946_p3 = scmp.lt.s32.totalorder %s2682_s19, 1  ;;  %v2896_v0 = vmov 0.0   ;;  %vm293_vm2 = vcmask 25600   ;;  %s2897_s25 = smov 4  }
   0xc   : > { %291 = vst.msk [vmem:[#allocation2] sm:$0xff] %vm290_vm0, %v2896_v0  ;;  %292 = vst.msk [vmem:[#allocation2 + $0x8] sm:$0xff] %vm290_vm0, %v2896_v0  ;;  %vm471_vm3 = vcmask 1046528   ;;  %vm648_vm4 = vcmask 1045504   ;;  %s2898_s26 = smov 8   ;;  %s2899_s27 = smov 12  }
   0xd   : > { %296 = vst.msk [vmem:[#allocation2 + $0x198] sm:$0xff] %vm290_vm0, %v2896_v0  ;;  %297 = vst.msk [vmem:[#allocation2 + $0x1a0] sm:$0xff] %vm290_vm0, %v2896_v0  ;;  %s5283_s19 = smov (!%p2946_p3, %s2682_s19), 1  ;;  %s2900_s28 = smov 16   ;;  %vm1792_vm5 = vcmask 1043456   ;;  %vm1459_vm6 = vcmask 64512  }
   0xe   : > { %301 = vst.msk [vmem:[#allocation2 + $0x18] sm:$0x1] %vm299_vm1, %v2896_v0  ;;  %302 = vst.msk [vmem:[#allocation2 + $0x30] sm:$0x1] %vm299_vm1, %v2896_v0  ;;  %s2997_s21 = sshll.u32 %s5283_s19, 8  ;;  %s2901_s6 = smov 20  }
   0xf   : > { %303 = vst.msk [vmem:[#allocation2 + $0x48] sm:$0x1] %vm299_vm1, %v2896_v0  ;;  %304 = vst.msk [vmem:[#allocation2 + $0x60] sm:$0x1] %vm299_vm1, %v2896_v0  ;;  %s3003_s24 = scalar_lea.vmem %s5015_s0, %s2997_s21  ;;  %s2902_s11 = smov 24   ;;  %vm1492_vm7 = vcmask 97280  }
  0x10   : > { %305 = vst.msk [vmem:[#allocation2 + $0x78] sm:$0x1] %vm299_vm1, %v2896_v0  ;;  %306 = vst.msk [vmem:[#allocation2 + $0x90] sm:$0x1] %vm299_vm1, %v2896_v0  ;;  %v258_v1 = vld [vmem:[%s3003_s24] sm:$0xff]  ;;  %v259_v2 = vld [vmem:[%s3003_s24 + $0x8] sm:$0xff]  ;;  %s4415_s23 = scalar_lea.vmem %s5017_s2, %s2997_s21 }
  0x11   : > { %307 = vst.msk [vmem:[#allocation2 + $0xa8] sm:$0x1] %vm299_vm1, %v2896_v0  ;;  %308 = vst.msk [vmem:[#allocation2 + $0xc0] sm:$0x1] %vm299_vm1, %v2896_v0  ;;  %v260_v3 = vld [vmem:[%s3003_s24 + $0x10] sm:$0xff]  ;;  %v261_v4 = vld [vmem:[%s3003_s24 + $0x18] sm:$0xff] }
  0x12   : > { %309 = vst.msk [vmem:[#allocation2 + $0xd8] sm:$0x1] %vm299_vm1, %v2896_v0  ;;  %310 = vst.msk [vmem:[#allocation2 + $0xf0] sm:$0x1] %vm299_vm1, %v2896_v0  ;;  %v262_v5 = vld [vmem:[%s3003_s24 + $0x20] sm:$0xff]  ;;  %v263_v6 = vld [vmem:[%s3003_s24 + $0x28] sm:$0xff] }
  0x13   : > { %311 = vst.msk [vmem:[#allocation2 + $0x108] sm:$0x1] %vm299_vm1, %v2896_v0  ;;  %312 = vst.msk [vmem:[#allocation2 + $0x120] sm:$0x1] %vm299_vm1, %v2896_v0  ;;  %v3014_v7 = vld [vmem:[#allocation2 + $0x8] sm:$0xff]  ;;  %v264_v8 = vld [vmem:[%s3003_s24 + $0x30] sm:$0xff] }
  0x14   : > { %313 = vst.msk [vmem:[#allocation2 + $0x138] sm:$0x1] %vm299_vm1, %v2896_v0  ;;  %314 = vst.msk [vmem:[#allocation2 + $0x150] sm:$0x1] %vm299_vm1, %v2896_v0  ;;  %v265_v9 = vld [vmem:[%s3003_s24 + $0x38] sm:$0xff]  ;;  %v473_v11 = vrot.slane %v3014_v7, 1 }
  0x15   : > { %315 = vst.msk [vmem:[#allocation2 + $0x168] sm:$0x1] %vm299_vm1, %v2896_v0  ;;  %316 = vst.msk [vmem:[#allocation2 + $0x180] sm:$0x1] %vm299_vm1, %v2896_v0  ;;  %v266_v12 = vld [vmem:[%s3003_s24 + $0x40] sm:$0xff]  ;;  %v267_v13 = vld [vmem:[%s3003_s24 + $0x48] sm:$0xff] }
  0x16   : > { %319 = vst.msk [vmem:[#allocation2 + $0x29] sm:$0x1] %vm299_vm1, %v2896_v0  ;;  %320 = vst.msk [vmem:[#allocation2 + $0x41] sm:$0x1] %vm299_vm1, %v2896_v0  ;;  %v268_v16 = vld [vmem:[%s3003_s24 + $0x50] sm:$0xff]  ;;  %v269_v17 = vld [vmem:[%s3003_s24 + $0x58] sm:$0xff] }
  0x17   : > { %321 = vst.msk [vmem:[#allocation2 + $0x59] sm:$0x1] %vm299_vm1, %v2896_v0  ;;  %322 = vst.msk [vmem:[#allocation2 + $0x71] sm:$0x1] %vm299_vm1, %v2896_v0  ;;  %v270_v19 = vld [vmem:[%s3003_s24 + $0x60] sm:$0xff]  ;;  %v271_v20 = vld [vmem:[%s3003_s24 + $0x68] sm:$0xff] }
  0x18   : > { %323 = vst.msk [vmem:[#allocation2 + $0x89] sm:$0x1] %vm299_vm1, %v2896_v0  ;;  %324 = vst.msk [vmem:[#allocation2 + $0xa1] sm:$0x1] %vm299_vm1, %v2896_v0  ;;  %v272_v21 = vld [vmem:[%s3003_s24 + $0x70] sm:$0xff]  ;;  %v273_v23 = vld [vmem:[%s3003_s24 + $0x78] sm:$0xff] }
  0x19   : > { %325 = vst.msk [vmem:[#allocation2 + $0xb9] sm:$0x1] %vm299_vm1, %v2896_v0  ;;  %326 = vst.msk [vmem:[#allocation2 + $0xd1] sm:$0x1] %vm299_vm1, %v2896_v0  ;;  %v274_v24 = vld [vmem:[%s3003_s24 + $0x80] sm:$0xff]  ;;  %v275_v25 = vld [vmem:[%s3003_s24 + $0x88] sm:$0xff] }
  0x1a   : > { %327 = vst.msk [vmem:[#allocation2 + $0xe9] sm:$0x1] %vm299_vm1, %v2896_v0  ;;  %328 = vst.msk [vmem:[#allocation2 + $0x101] sm:$0x1] %vm299_vm1, %v2896_v0  ;;  %v276_v26 = vld [vmem:[%s3003_s24 + $0x90] sm:$0xff]  ;;  %v277_v27 = vld [vmem:[%s3003_s24 + $0x98] sm:$0xff] }
  0x1b   : > { %329 = vst.msk [vmem:[#allocation2 + $0x119] sm:$0x1] %vm299_vm1, %v2896_v0  ;;  %330 = vst.msk [vmem:[#allocation2 + $0x131] sm:$0x1] %vm299_vm1, %v2896_v0  ;;  %v278_v28 = vld [vmem:[%s3003_s24 + $0xa0] sm:$0xff]  ;;  %v279_v60 = vld [vmem:[%s3003_s24 + $0xa8] sm:$0xff] }
  0x1c   : > { %331 = vst.msk [vmem:[#allocation2 + $0x149] sm:$0x1] %vm299_vm1, %v2896_v0  ;;  %332 = vst.msk [vmem:[#allocation2 + $0x161] sm:$0x1] %vm299_vm1, %v2896_v0  ;;  %s2903_s16 = smov 28   ;;  %s2904_s17 = smov 32  }
  0x1d   : > { %333 = vst.msk [vmem:[#allocation2 + $0x179] sm:$0x1] %vm299_vm1, %v2896_v0  ;;  %334 = vst.msk [vmem:[#allocation2 + $0x191] sm:$0x1] %vm299_vm1, %v2896_v0  ;;  %vm1525_vm8 = vcmask 130048   ;;  %vm1558_vm9 = vcmask 162816  }
  0x1e   : > { %300 = vst.msk [vmem:[#allocation2] sm:$0x1] %vm299_vm1, %v2896_v0  ;;  %317 = vst.msk [vmem:[#allocation2 + $0x198] sm:$0x1] %vm299_vm1, %v2896_v0  ;;  %vm1591_vm10 = vcmask 195584   ;;  %vm1624_vm11 = vcmask 228352  }
  0x1f   : > { %294 = vst.msk [vmem:[#allocation2 + $0x10] sm:$0x3] %vm293_vm2, %v2896_v0  ;;  %298 = vst.msk [vmem:[#allocation2 + $0x1a8] sm:$0x3] %vm293_vm2, %v2896_v0  ;;  %vm1657_vm12 = vcmask 261120   ;;  %vm1695_vm13 = vcmask 293888  }
  0x20   : > { %318 = vst.msk [vmem:[#allocation2 + $0x11] sm:$0x1] %vm299_vm1, %v2896_v0  ;;  %335 = vst.msk [vmem:[#allocation2 + $0x1a9] sm:$0x1] %vm299_vm1, %v2896_v0  ;;  %vm2227_vm14 = vcmask 130112   ;;  %vm2191_vm15 = vcmask 1040384  }
  0x21   : > { %337 = vst.msk [vmem:[#allocation2 + $0x19] sm:$0xff] %vm290_vm0, %v258_v1  ;;  %338 = vst.msk [vmem:[#allocation2 + $0x21] sm:$0xff] %vm290_vm0, %v259_v2  ;;  %v280_v2 = vld [vmem:[%s3003_s24 + $0xb0] sm:$0xff] }
  0x22   : > { %339 = vst.msk [vmem:[#allocation2 + $0x31] sm:$0xff] %vm290_vm0, %v260_v3  ;;  %340 = vst.msk [vmem:[#allocation2 + $0x39] sm:$0xff] %vm290_vm0, %v261_v4  ;;  %v281_v3 = vld [vmem:[%s3003_s24 + $0xb8] sm:$0xff]  ;;  %v282_v4 = vld [vmem:[%s3003_s24 + $0xc0] sm:$0xff] }
  0x23   : > { %341 = vst.msk [vmem:[#allocation2 + $0x49] sm:$0xff] %vm290_vm0, %v262_v5  ;;  %342 = vst.msk [vmem:[#allocation2 + $0x51] sm:$0xff] %vm290_vm0, %v263_v6 }
  0x24   : > { %343 = vst.msk [vmem:[#allocation2 + $0x61] sm:$0xff] %vm290_vm0, %v264_v8  ;;  %344 = vst.msk [vmem:[#allocation2 + $0x69] sm:$0xff] %vm290_vm0, %v265_v9  ;;  %v283_v8 = vld [vmem:[%s3003_s24 + $0xc8] sm:$0xff]  ;;  %v284_v9 = vld [vmem:[%s3003_s24 + $0xd0] sm:$0xff] }
  0x25   : > { %v3021_v10 = vld [vmem:[#allocation2] sm:$0xff]  ;;  %345 = vst.msk [vmem:[#allocation2 + $0x79] sm:$0xff] %vm290_vm0, %v266_v12  ;;  %346 = vst.msk [vmem:[#allocation2 + $0x81] sm:$0xff] %vm290_vm0, %v267_v13 }
  0x26   : > { %v472_v14 = vrot.slane %v3021_v10, 1  ;;  %347 = vst.msk [vmem:[#allocation2 + $0x91] sm:$0xff] %vm290_vm0, %v268_v16  ;;  %348 = vst.msk [vmem:[#allocation2 + $0x99] sm:$0xff] %vm290_vm0, %v269_v17  ;;  %v286_v13 = vld [vmem:[%s3003_s24 + $0xe0] sm:$0xff] }
  0x27   : > { %v3029_v15 = vld [vmem:[#allocation2 + $0x10] sm:$0x3]  ;;  %349 = vst.msk [vmem:[#allocation2 + $0xa9] sm:$0xff] %vm290_vm0, %v270_v19  ;;  %350 = vst.msk [vmem:[#allocation2 + $0xb1] sm:$0xff] %vm290_vm0, %v271_v20 }
  0x28   : > { %v475_v18 = vrot.slane %v3029_v15, 1  ;;  %v474_v22 = vsel %vm471_vm3, %v472_v14, %v473_v11  ;;  %351 = vst.msk [vmem:[#allocation2 + $0xc1] sm:$0xff] %vm290_vm0, %v272_v21  ;;  %352 = vst.msk [vmem:[#allocation2 + $0xc9] sm:$0xff] %vm290_vm0, %v273_v23  ;;  %v3056_v30 = vld [vmem:[#allocation2 + $0x18] sm:$0xff]  ;;  %v3058_v31 = vld [vmem:[#allocation2 + $0x20] sm:$0xff] }
  0x29   : > { %552 = vrot.lane.b32.xlu0 %v474_v22, %s2897_s25  ;;  %353 = vst.msk [vmem:[#allocation2 + $0xd9] sm:$0xff] %vm290_vm0, %v274_v24  ;;  %354 = vst.msk [vmem:[#allocation2 + $0xe1] sm:$0xff] %vm290_vm0, %v275_v25  ;;  %v3060_v32 = vld [vmem:[#allocation2 + $0x30] sm:$0xff]  ;;  %v477_v33 = vrot.slane %v3056_v30, 1  ;;  %v478_v34 = vrot.slane %v3058_v31, 1  ;;  %v3067_v35 = vld [vmem:[#allocation2 + $0x38] sm:$0xff] }
  0x2a   : > { %v476_v29 = vsel %vm471_vm3, %v473_v11, %v475_v18  ;;  %355 = vst.msk [vmem:[#allocation2 + $0xf1] sm:$0xff] %vm290_vm0, %v276_v26  ;;  %356 = vst.msk [vmem:[#allocation2 + $0xf9] sm:$0xff] %vm290_vm0, %v277_v27  ;;  %v482_v36 = vrot.slane %v3060_v32, 1  ;;  %v3070_v37 = vld [vmem:[#allocation2 + $0x28] sm:$0x3]  ;;  %v483_v38 = vrot.slane %v3067_v35, 1 }
  0x2b   : > { %357 = vst.msk [vmem:[#allocation2 + $0x109] sm:$0xff] %vm290_vm0, %v278_v28  ;;  %v480_v39 = vrot.slane %v3070_v37, 1  ;;  %v3074_v40 = vld [vmem:[#allocation2 + $0x48] sm:$0xff]  ;;  %v3076_v41 = vld [vmem:[#allocation2 + $0x50] sm:$0xff]  ;;  %v3078_v42 = vld [vmem:[#allocation2 + $0x40] sm:$0x3]  ;;  %v3082_v43 = vsel %vm471_vm3, %v477_v33, %v478_v34 }
  0x2c   : > { %556 = vrot.lane.b32.xlu1 %v3082_v43, %s2897_s25  ;;  %v3087_v44 = vsel %vm471_vm3, %v482_v36, %v483_v38  ;;  %v487_v45 = vrot.slane %v3074_v40, 1  ;;  %v488_v46 = vrot.slane %v3076_v41, 1  ;;  %v485_v48 = vrot.slane %v3078_v42, 1  ;;  %v3095_v49 = vld [vmem:[#allocation2 + $0x60] sm:$0xff]  ;;  %v3097_v50 = vld [vmem:[#allocation2 + $0x68] sm:$0xff]  ;;  %v3114_v57 = vld [vmem:[#allocation2 + $0x78] sm:$0xff] }
  0x2d   : > { %554 = vrot.lane.b32.xlu0 %v476_v29, %s2897_s25  ;;  %v3092_v47 = vsel %vm471_vm3, %v478_v34, %v480_v39  ;;  %v3099_v51 = vld [vmem:[#allocation2 + $0x58] sm:$0x3]  ;;  %v492_v53 = vrot.slane %v3095_v49, 1  ;;  %v493_v54 = vrot.slane %v3097_v50, 1  ;;  %v3116_v58 = vld [vmem:[#allocation2 + $0x80] sm:$0xff]  ;;  %v3123_v61 = vld [vmem:[#allocation2 + $0x90] sm:$0xff] }
  0x2e   : > { %v3106_v52 = vsel %vm471_vm3, %v487_v45, %v488_v46  ;;  %v3111_v55 = vsel %vm471_vm3, %v483_v38, %v485_v48  ;;  %v490_v56 = vrot.slane %v3099_v51, 1  ;;  %v3118_v59 = vld [vmem:[#allocation2 + $0x70] sm:$0x3]  ;;  %v3125_v62 = vld [vmem:[#allocation2 + $0x98] sm:$0xff]  ;;  %358 = vst.msk [vmem:[#allocation2 + $0x111] sm:$0xff] %vm290_vm0, %v279_v60  ;;  %v497_v0 = vrot.slane %v3114_v57, 1 }
  0x2f   : > { %v3131_v63 = vsel %vm471_vm3, %v492_v53, %v493_v54  ;;  %v498_v1 = vrot.slane %v3116_v58, 1  ;;  %v495_v6 = vrot.slane %v3118_v59, 1  ;;  %359 = vst.msk [vmem:[#allocation2 + $0x121] sm:$0xff] %vm290_vm0, %v280_v2  ;;  %360 = vst.msk [vmem:[#allocation2 + $0x129] sm:$0xff] %vm290_vm0, %v281_v3  ;;  %v285_v11 = vld [vmem:[%s3003_s24 + $0xd8] sm:$0xff]  ;;  %v287_v14 = vld [vmem:[%s3003_s24 + $0xe8] sm:$0xff] }
  0x30   : > { %558 = vrot.lane.b32.xlu1 %v3092_v47, %s2897_s25  ;;  %5100 = vst [vmem:[#allocation3_spill] sm:$0xff] %v3131_v63  ;;  %v3139_v5 = vsel %vm471_vm3, %v488_v46, %v490_v56  ;;  %361 = vst.msk [vmem:[#allocation2 + $0x139] sm:$0xff] %vm290_vm0, %v282_v4  ;;  %v3148_v12 = vld [vmem:[#allocation2 + $0x88] sm:$0x3]  ;;  %v502_v17 = vrot.slane %v3123_v61, 1  ;;  %v503_v18 = vrot.slane %v3125_v62, 1 }
  0x31   : > { %560 = vrot.lane.b32.xlu0 %v3087_v44, %s2897_s25  ;;  %5101 = vst [vmem:[#allocation4_spill] sm:$0xff] %v3139_v5  ;;  %362 = vst.msk [vmem:[#allocation2 + $0x141] sm:$0xff] %vm290_vm0, %v283_v8  ;;  %v3162_v16 = vsel %vm471_vm3, %v497_v0, %v498_v1  ;;  %v3167_v19 = vsel %vm471_vm3, %v493_v54, %v495_v6  ;;  %v500_v20 = vrot.slane %v3148_v12, 1  ;;  %v3170_v21 = vld [vmem:[#allocation2 + $0xa8] sm:$0xff]  ;;  %v3172_v22 = vld [vmem:[#allocation2 + $0xb0] sm:$0xff] }
  0x32   : > { %363 = vst.msk [vmem:[#allocation2 + $0x151] sm:$0xff] %vm290_vm0, %v284_v9  ;;  %364 = vst.msk [vmem:[#allocation2 + $0x159] sm:$0xff] %vm290_vm0, %v285_v11  ;;  %v3174_v23 = vld [vmem:[#allocation2 + $0xa0] sm:$0x3]  ;;  %v3181_v24 = vsel %vm471_vm3, %v502_v17, %v503_v18  ;;  %v507_v25 = vrot.slane %v3170_v21, 1  ;;  %v508_v26 = vrot.slane %v3172_v22, 1 }
  0x33   : > { %365 = vst.msk [vmem:[#allocation2 + $0x169] sm:$0xff] %vm290_vm0, %v286_v13  ;;  %366 = vst.msk [vmem:[#allocation2 + $0x171] sm:$0xff] %vm290_vm0, %v287_v14  ;;  %v3186_v27 = vsel %vm471_vm3, %v498_v1, %v500_v20  ;;  %v505_v28 = vrot.slane %v3174_v23, 1  ;;  %v3189_v29 = vld [vmem:[#allocation2 + $0xc0] sm:$0xff]  ;;  %v3191_v33 = vld [vmem:[#allocation2 + $0xc8] sm:$0xff] }
  0x34   : > { %562 = vrot.lane.b32.xlu1 %v3111_v55, %s2897_s25  ;;  %5102 = vst [vmem:[#allocation5_spill] sm:$0xff] %v3162_v16  ;;  %5103 = vst [vmem:[#allocation6_spill] sm:$0xff] %v3167_v19  ;;  %v3193_v34 = vld [vmem:[#allocation2 + $0xb8] sm:$0x3]  ;;  %v3200_v36 = vsel %vm471_vm3, %v507_v25, %v508_v26  ;;  %v512_v38 = vrot.slane %v3189_v29, 1  ;;  %v513_v39 = vrot.slane %v3191_v33, 1 }
  0x35   : > { %564 = vrot.lane.b32.xlu0 %v3106_v52, %s2897_s25  ;;  %5104 = vst [vmem:[#allocation7_spill] sm:$0xff] %v3181_v24  ;;  %5105 = vst [vmem:[#allocation8_spill] sm:$0xff] %v3186_v27  ;;  %v3205_v45 = vsel %vm471_vm3, %v503_v18, %v505_v28  ;;  %v510_v46 = vrot.slane %v3193_v34, 1  ;;  %v3208_v48 = vld [vmem:[#allocation2 + $0xd8] sm:$0xff]  ;;  %v3210_v53 = vld [vmem:[#allocation2 + $0xe0] sm:$0xff] }
  0x36   : > { %5106 = vst [vmem:[#allocation9_spill] sm:$0xff] %v3200_v36  ;;  %5107 = vst [vmem:[#allocation10_spill] sm:$0xff] %v3205_v45  ;;  %v3212_v54 = vld [vmem:[#allocation2 + $0xd0] sm:$0x3]  ;;  %v3219_v56 = vsel %vm471_vm3, %v512_v38, %v513_v39  ;;  %v517_v60 = vrot.slane %v3208_v48, 1  ;;  %v518_v0 = vrot.slane %v3210_v53, 1 }
  0x37   : > { %5108 = vst [vmem:[#allocation11_spill] sm:$0xff] %v3219_v56  ;;  %v3224_v1 = vsel %vm471_vm3, %v508_v26, %v510_v46  ;;  %v515_v2 = vrot.slane %v3212_v54, 1  ;;  %v3227_v3 = vld [vmem:[#allocation2 + $0xf0] sm:$0xff]  ;;  %v3229_v4 = vld [vmem:[#allocation2 + $0xf8] sm:$0xff]  ;;  %v3231_v6 = vld [vmem:[#allocation2 + $0xe8] sm:$0x3] }
  0x38   : > { %566 = vrot.lane.b32.xlu1 %v3139_v5, %s2897_s25  ;;  %5109 = vst [vmem:[#allocation12_spill] sm:$0xff] %v3224_v1  ;;  %v3238_v8 = vsel %vm471_vm3, %v517_v60, %v518_v0  ;;  %v522_v9 = vrot.slane %v3227_v3, 1  ;;  %v523_v11 = vrot.slane %v3229_v4, 1  ;;  %v520_v14 = vrot.slane %v3231_v6, 1  ;;  %v3246_v17 = vld [vmem:[#allocation2 + $0x108] sm:$0xff]  ;;  %v3248_v18 = vld [vmem:[#allocation2 + $0x110] sm:$0xff] }
  0x39   : > { %568 = vrot.lane.b32.xlu0 %v3131_v63, %s2897_s25  ;;  %5110 = vst [vmem:[#allocation13_spill] sm:$0xff] %v3238_v8  ;;  %v3243_v13 = vsel %vm471_vm3, %v513_v39, %v515_v2  ;;  %v3250_v20 = vld [vmem:[#allocation2 + $0x100] sm:$0x3]  ;;  %v527_v26 = vrot.slane %v3246_v17, 1  ;;  %v528_v28 = vrot.slane %v3248_v18, 1  ;;  %v3267_v60 = vld [vmem:[#allocation2 + $0x128] sm:$0xff] }
  0x3a   : > { %5111 = vst [vmem:[#allocation14_spill] sm:$0xff] %v3243_v13  ;;  %v3257_v25 = vsel %vm471_vm3, %v522_v9, %v523_v11  ;;  %v3262_v38 = vsel %vm471_vm3, %v518_v0, %v520_v14  ;;  %v525_v39 = vrot.slane %v3250_v20, 1  ;;  %v3265_v46 = vld [vmem:[#allocation2 + $0x120] sm:$0xff]  ;;  %v3269_v2 = vld [vmem:[#allocation2 + $0x118] sm:$0x3]  ;;  %v533_v14 = vrot.slane %v3267_v60, 1 }
  0x3b   : > { %5112 = vst [vmem:[#allocation15_spill] sm:$0xff] %v3257_v25  ;;  %5113 = vst [vmem:[#allocation16_spill] sm:$0xff] %v3262_v38  ;;  %v3276_v9 = vsel %vm471_vm3, %v527_v26, %v528_v28  ;;  %v532_v0 = vrot.slane %v3265_v46, 1  ;;  %v3341_v5 = vld [vmem:[#allocation2 + $0x178] sm:$0x3] }
  0x3c   : > { %570 = vrot.lane.b32.xlu1 %v3167_v19, %s2897_s25  ;;  %5114 = vst [vmem:[#allocation17_spill] sm:$0xff] %v3276_v9  ;;  %v3324_v19 = vld [vmem:[#allocation2 + $0x170] sm:$0xff] }
  0x3d   : > { %572 = vrot.lane.b32.xlu0 %v3162_v16, %s2897_s25  ;;  %v3295_v26 = vsel %vm471_vm3, %v532_v0, %v533_v14  ;;  %v3322_v16 = vld [vmem:[#allocation2 + $0x168] sm:$0xff] }
  0x3e   : > { %5116 = vst [vmem:[#allocation19_spill] sm:$0xff] %v3295_v26 }
  0x40   : > { %574 = vrot.lane.b32.xlu1 %v3186_v27, %s2897_s25 }
  0x41   : > { %576 = vrot.lane.b32.xlu0 %v3181_v24, %s2897_s25  ;;  %v3305_v24 = vld [vmem:[#allocation2 + $0x158] sm:$0xff] }
  0x44   : > { %578 = vrot.lane.b32.xlu1 %v3205_v45, %s2897_s25  ;;  %v3303_v45 = vld [vmem:[#allocation2 + $0x150] sm:$0xff] }
  0x45   : > { %580 = vrot.lane.b32.xlu0 %v3200_v36, %s2897_s25 }
  0x48   : > { %582 = vrot.lane.b32.xlu1 %v3224_v1, %s2897_s25  ;;  %v3286_v1 = vld [vmem:[#allocation2 + $0x140] sm:$0xff] }
  0x49   : > { %584 = vrot.lane.b32.xlu0 %v3219_v56, %s2897_s25  ;;  %v3284_v56 = vld [vmem:[#allocation2 + $0x138] sm:$0xff] }
  0x4c   : > { %586 = vrot.lane.b32.xlu1 %v3243_v13, %s2897_s25  ;;  %v530_v13 = vrot.slane %v3269_v2, 1 }
  0x4d   : > { %588 = vrot.lane.b32.xlu0 %v3238_v8, %s2897_s25  ;;  %v3281_v8 = vsel %vm471_vm3, %v523_v11, %v525_v39  ;;  %v537_v11 = vrot.slane %v3284_v56, 1  ;;  %v538_v39 = vrot.slane %v3286_v1, 1 }
  0x4e   : > { %5115 = vst [vmem:[#allocation18_spill] sm:$0xff] %v3281_v8 }
  0x4f   : > { %v3314_v0 = vsel %vm471_vm3, %v537_v11, %v538_v39 }
  0x50   : > { %590 = vrot.lane.b32.xlu1 %v3262_v38, %s2897_s25  ;;  %v3300_v38 = vsel %vm471_vm3, %v528_v28, %v530_v13  ;;  %5118 = vst [vmem:[#allocation21_spill] sm:$0xff] %v3314_v0  ;;  %v542_v13 = vrot.slane %v3303_v45, 1  ;;  %v543_v28 = vrot.slane %v3305_v24, 1 }
  0x51   : > { %592 = vrot.lane.b32.xlu0 %v3257_v25, %s2897_s25  ;;  %v3288_v25 = vld [vmem:[#allocation2 + $0x130] sm:$0x3]  ;;  %5117 = vst [vmem:[#allocation20_spill] sm:$0xff] %v3300_v38 }
  0x52   : > { %v535_v36 = vrot.slane %v3288_v25, 1  ;;  %v3333_v11 = vsel %vm471_vm3, %v542_v13, %v543_v28 }
  0x53   : > { %5120 = vst [vmem:[#allocation23_spill] sm:$0xff] %v3333_v11 }
  0x54   : > { %594 = vrot.lane.b32.xlu1 %v3281_v8, %s2897_s25  ;;  %v3319_v8 = vsel %vm471_vm3, %v533_v14, %v535_v36  ;;  %v547_v36 = vrot.slane %v3322_v16, 1  ;;  %v548_v14 = vrot.slane %v3324_v19, 1 }
  0x55   : > { %596 = vrot.lane.b32.xlu0 %v3276_v9, %s2897_s25  ;;  %v3307_v9 = vld [vmem:[#allocation2 + $0x148] sm:$0x3]  ;;  %5119 = vst [vmem:[#allocation22_spill] sm:$0xff] %v3319_v8 }
  0x56   : > { %v540_v27 = vrot.slane %v3307_v9, 1  ;;  %v3348_v13 = vsel %vm471_vm3, %v547_v36, %v548_v14  ;;  %v654_v36 = vrot.slane %v3056_v30, 2 }
  0x57   : > { %5122 = vst [vmem:[#allocation25_spill] sm:$0xff] %v3348_v13 }
  0x58   : > { %598 = vrot.lane.b32.xlu1 %v3300_v38, %s2897_s25  ;;  %v3338_v38 = vsel %vm471_vm3, %v538_v39, %v540_v27  ;;  %v550_v39 = vrot.slane %v3341_v5, 1 }
  0x59   : > { %600 = vrot.lane.b32.xlu0 %v3295_v26, %s2897_s25  ;;  %v3326_v26 = vld [vmem:[#allocation2 + $0x160] sm:$0x3]  ;;  %5121 = vst [vmem:[#allocation24_spill] sm:$0xff] %v3338_v38 }
  0x5a   : > { %v545_v63 = vrot.slane %v3326_v26, 1 }
  0x5c   : > { %602 = vrot.lane.b32.xlu1 %v3319_v8, %s2897_s25  ;;  %v650_v8 = vrot.slane %v3014_v7, 2  ;;  %v3353_v27 = vsel %vm471_vm3, %v543_v28, %v545_v63  ;;  %v3364_v7 = vsel %vm471_vm3, %v548_v14, %v550_v39  ;;  %v652_v63 = vrot.slane %v3029_v15, 2 }
  0x5d   : > { %604 = vrot.lane.b32.xlu0 %v3314_v0, %s2897_s25  ;;  %v649_v0 = vrot.slane %v3021_v10, 2  ;;  %5123 = vst [vmem:[#allocation26_spill] sm:$0xff] %v3353_v27  ;;  %v655_v10 = vrot.slane %v3058_v31, 2  ;;  %5124 = vst [vmem:[#allocation27_spill] sm:$0xff] %v3364_v7  ;;  %v657_v14 = vrot.slane %v3070_v37, 2  ;;  %v665_v39 = vrot.slane %v3076_v41, 2 }
  0x5f   : > { %v3371_v28 = vsel %vm648_vm4, %v654_v36, %v655_v10  ;;  %v3386_v36 = vsel %vm648_vm4, %v655_v10, %v657_v14  ;;  %v667_v10 = vrot.slane %v3099_v51, 2  ;;  %v675_v14 = vrot.slane %v3116_v58, 2 }
  0x60   : > { %606 = vrot.lane.b32.xlu1 %v3338_v38, %s2897_s25 }
  0x61   : > { %608 = vrot.lane.b32.xlu0 %v3333_v11, %s2897_s25  ;;  %v651_v11 = vsel %vm648_vm4, %v649_v0, %v650_v8  ;;  %v659_v0 = vrot.slane %v3060_v32, 2 }
  0x64   : > { %610 = vrot.lane.b32.xlu1 %v3353_v27, %s2897_s25  ;;  %v653_v27 = vsel %vm648_vm4, %v650_v8, %v652_v63  ;;  %v669_v8 = vrot.slane %v3095_v49, 2 }
  0x65   : > { %612 = vrot.lane.b32.xlu0 %v3348_v13, %s2897_s25  ;;  %v660_v13 = vrot.slane %v3067_v35, 2 }
  0x67   : > { %v3381_v15 = vsel %vm648_vm4, %v659_v0, %v660_v13  ;;  %v674_v0 = vrot.slane %v3114_v57, 2 }
  0x68   : > { %614 = vrot.lane.b32.xlu1 %v3364_v7, %s2897_s25  ;;  %v662_v7 = vrot.slane %v3078_v42, 2 }
  0x69   : > { %729 = vrot.lane.b32.xlu0 %v651_v11, %s2898_s26  ;;  %v664_v11 = vrot.slane %v3074_v40, 2  ;;  %v3420_v51 = vsel %vm648_vm4, %v674_v0, %v675_v14  ;;  %v685_v0 = vrot.slane %v3172_v22, 2 }
  0x6a   : > { %v3399_v63 = vsel %vm648_vm4, %v660_v13, %v662_v7  ;;  %v672_v13 = vrot.slane %v3118_v59, 2  ;;  %5126 = vst [vmem:[#allocation29_spill] sm:$0xff] %v3420_v51  ;;  %v679_v7 = vrot.slane %v3123_v61, 2 }
  0x6b   : > { %v3394_v37 = vsel %vm648_vm4, %v664_v11, %v665_v39  ;;  %v3412_v11 = vsel %vm648_vm4, %v665_v39, %v667_v10  ;;  %v677_v39 = vrot.slane %v3148_v12, 2  ;;  %v684_v10 = vrot.slane %v3170_v21, 2 }
  0x6c   : > { %731 = vrot.lane.b32.xlu1 %v653_v27, %s2898_s26  ;;  %v670_v27 = vrot.slane %v3097_v50, 2 }
  0x6d   : > { %733 = vrot.lane.b32.xlu0 %v3371_v28, %s2898_s26  ;;  %v3446_v12 = vsel %vm648_vm4, %v684_v10, %v685_v0  ;;  %v695_v10 = vrot.slane %v3210_v53, 2 }
  0x6e   : > { %v3407_v42 = vsel %vm648_vm4, %v669_v8, %v670_v27  ;;  %v680_v8 = vrot.slane %v3125_v62, 2  ;;  %v3425_v38 = vsel %vm648_vm4, %v670_v27, %v672_v13  ;;  %v682_v27 = vrot.slane %v3174_v23, 2  ;;  %5128 = vst [vmem:[#allocation31_spill] sm:$0xff] %v3446_v12 }
  0x6f   : > { %5125 = vst [vmem:[#allocation28_spill] sm:$0xff] %v3407_v42  ;;  %v689_v13 = vrot.slane %v3189_v29, 2 }
  0x70   : > { %735 = vrot.lane.b32.xlu1 %v3386_v36, %s2898_s26  ;;  %v3433_v59 = vsel %vm648_vm4, %v679_v7, %v680_v8  ;;  %v690_v7 = vrot.slane %v3191_v33, 2 }
  0x71   : > { %737 = vrot.lane.b32.xlu0 %v3381_v15, %s2898_s26  ;;  %5127 = vst [vmem:[#allocation30_spill] sm:$0xff] %v3433_v59 }
  0x72   : > { %v3459_v23 = vsel %vm648_vm4, %v689_v13, %v690_v7  ;;  %v700_v13 = vrot.slane %v3229_v4, 2 }
  0x73   : > { %5129 = vst [vmem:[#allocation32_spill] sm:$0xff] %v3459_v23 }
  0x74   : > { %739 = vrot.lane.b32.xlu1 %v3399_v63, %s2898_s26 }
  0x75   : > { %741 = vrot.lane.b32.xlu0 %v3394_v37, %s2898_s26 }
  0x78   : > { %743 = vrot.lane.b32.xlu1 %v3412_v11, %s2898_s26 }
  0x79   : > { %745 = vrot.lane.b32.xlu0 %v3407_v42, %s2898_s26  ;;  %v3438_v42 = vsel %vm648_vm4, %v675_v14, %v677_v39  ;;  %v687_v14 = vrot.slane %v3193_v34, 2  ;;  %v694_v39 = vrot.slane %v3208_v48, 2 }
  0x7b   : > { %v3472_v34 = vsel %vm648_vm4, %v694_v39, %v695_v10  ;;  %v705_v39 = vrot.slane %v3248_v18, 2 }
  0x7c   : > { %747 = vrot.lane.b32.xlu1 %v3425_v38, %s2898_s26  ;;  %5130 = vst [vmem:[#allocation33_spill] sm:$0xff] %v3472_v34 }
  0x7d   : > { %749 = vrot.lane.b32.xlu0 %v3420_v51, %s2898_s26  ;;  %v3451_v51 = vsel %vm648_vm4, %v680_v8, %v682_v27  ;;  %v692_v8 = vrot.slane %v3212_v54, 2  ;;  %v699_v27 = vrot.slane %v3227_v3, 2 }
  0x7f   : > { %v3485_v54 = vsel %vm648_vm4, %v699_v27, %v700_v13  ;;  %v710_v27 = vrot.slane %v3267_v60, 2 }
  0x80   : > { %751 = vrot.lane.b32.xlu1 %v3438_v42, %s2898_s26  ;;  %5131 = vst [vmem:[#allocation34_spill] sm:$0xff] %v3485_v54 }
  0x81   : > { %753 = vrot.lane.b32.xlu0 %v3433_v59, %s2898_s26  ;;  %v3464_v59 = vsel %vm648_vm4, %v685_v0, %v687_v14  ;;  %v697_v0 = vrot.slane %v3231_v6, 2  ;;  %v704_v14 = vrot.slane %v3246_v17, 2 }
  0x83   : > { %v3498_v6 = vsel %vm648_vm4, %v704_v14, %v705_v39  ;;  %v715_v14 = vrot.slane %v3286_v1, 2 }
  0x84   : > { %755 = vrot.lane.b32.xlu1 %v3451_v51, %s2898_s26  ;;  %5132 = vst [vmem:[#allocation35_spill] sm:$0xff] %v3498_v6 }
  0x85   : > { %757 = vrot.lane.b32.xlu0 %v3446_v12, %s2898_s26  ;;  %v3477_v12 = vsel %vm648_vm4, %v690_v7, %v692_v8  ;;  %v702_v7 = vrot.slane %v3250_v20, 2  ;;  %v709_v8 = vrot.slane %v3265_v46, 2 }
  0x87   : > { %v3511_v20 = vsel %vm648_vm4, %v709_v8, %v710_v27  ;;  %v720_v8 = vrot.slane %v3305_v24, 2  ;;  %v725_v24 = vrot.slane %v3324_v19, 2 }
  0x88   : > { %759 = vrot.lane.b32.xlu1 %v3464_v59, %s2898_s26  ;;  %5133 = vst [vmem:[#allocation36_spill] sm:$0xff] %v3511_v20 }
  0x89   : > { %761 = vrot.lane.b32.xlu0 %v3459_v23, %s2898_s26  ;;  %v3490_v23 = vsel %vm648_vm4, %v695_v10, %v697_v0  ;;  %v707_v10 = vrot.slane %v3269_v2, 2  ;;  %v714_v0 = vrot.slane %v3284_v56, 2 }
  0x8b   : > { %v3524_v2 = vsel %vm648_vm4, %v714_v0, %v715_v14  ;;  %v724_v0 = vrot.slane %v3322_v16, 2 }
  0x8c   : > { %763 = vrot.lane.b32.xlu1 %v3477_v12, %s2898_s26 }
  0x8d   : > { %765 = vrot.lane.b32.xlu0 %v3472_v34, %s2898_s26  ;;  %v3503_v34 = vsel %vm648_vm4, %v700_v13, %v702_v7  ;;  %v712_v13 = vrot.slane %v3288_v25, 2  ;;  %v719_v7 = vrot.slane %v3303_v45, 2  ;;  %v717_v25 = vrot.slane %v3307_v9, 2 }
  0x8e   : > { %v722_v9 = vrot.slane %v3326_v26, 2 }
  0x90   : > { %767 = vrot.lane.b32.xlu1 %v3490_v23, %s2898_s26  ;;  %v3561_v19 = vsel %vm648_vm4, %v720_v8, %v722_v9 }
  0x91   : > { %769 = vrot.lane.b32.xlu0 %v3485_v54, %s2898_s26  ;;  %v3516_v54 = vsel %vm648_vm4, %v705_v39, %v707_v10  ;;  %v3531_v39 = vsel %vm648_vm4, %v710_v27, %v712_v13  ;;  %v3539_v10 = vsel %vm648_vm4, %v719_v7, %v720_v8  ;;  %v3546_v27 = vsel %vm648_vm4, %v715_v14, %v717_v25 }
  0x92   : > { %5134 = vst [vmem:[#allocation37_spill] sm:$0xff] %v3539_v10  ;;  %5135 = vst [vmem:[#allocation38_spill] sm:$0xff] %v3546_v27  ;;  %v3556_v7 = vsel %vm648_vm4, %v724_v0, %v725_v24  ;;  %v727_v14 = vrot.slane %v3341_v5, 2 }
  0x93   : > { %5136 = vst [vmem:[#allocation39_spill] sm:$0xff] %v3556_v7  ;;  %5137 = vst [vmem:[#allocation40_spill] sm:$0xff] %v3561_v19 }
  0x94   : > { %771 = vrot.lane.b32.xlu1 %v3503_v34, %s2898_s26  ;;  %v3573_v0 = vsel %vm648_vm4, %v725_v24, %v727_v14 }
  0x95   : > { %773 = vrot.lane.b32.xlu0 %v3498_v6, %s2898_s26  ;;  %5138 = vst [vmem:[#allocation41_spill] sm:$0xff] %v3573_v0 }
  0x98   : > { %775 = vrot.lane.b32.xlu1 %v3516_v54, %s2898_s26 }
  0x99   : > { %777 = vrot.lane.b32.xlu0 %v3511_v20, %s2898_s26 }
  0x9b   : > { %v3528_v6 = vpop.permute.xlu0 %552 }
  0x9c   : > { %779 = vrot.lane.b32.xlu1 %v3531_v39, %s2898_s26 }
  0x9d   : > { %781 = vrot.lane.b32.xlu0 %v3524_v2, %s2898_s26 }
  0x9e   : > { %v3549_v13 = vpop.permute.xlu1 %556 }
  0x9f   : > { %v3543_v20 = vpop.permute.xlu0 %554 }
  0xa0   : > { %783 = vrot.lane.b32.xlu1 %v3546_v27, %s2898_s26 }
  0xa1   : > { %785 = vrot.lane.b32.xlu0 %v3539_v10, %s2898_s26 }
  0xa2   : > { %v3564_v25 = vpop.permute.xlu1 %558 }
  0xa3   : > { %v3558_v16 = vpop.permute.xlu0 %560 }
  0xa4   : > { %787 = vrot.lane.b32.xlu1 %v3561_v19, %s2898_s26 }
  0xa5   : > { %789 = vrot.lane.b32.xlu0 %v3556_v7, %s2898_s26 }
  0xa6   : > { %v3575_v10 = vpop.permute.xlu1 %562 }
  0xa7   : > { %v3570_v26 = vpop.permute.xlu0 %564 }
  0xa8   : > { %791 = vrot.lane.b32.xlu1 %v3573_v0, %s2898_s26 }
  0xa9   : > { %827 = vrot.lane.b32.xlu0 %v3056_v30, %s2899_s27 }
  0xaa   : > { %v3583_v8 = vpop.permute.xlu1 %566 }
  0xab   : > { %v3581_v5 = vpop.permute.xlu0 %568 }
  0xac   : > { %829 = vrot.lane.b32.xlu1 %v3058_v31, %s2899_s27 }
  0xad   : > { %831 = vrot.lane.b32.xlu0 %v3060_v32, %s2899_s27 }
  0xae   : > { %v3591_v9 = vpop.permute.xlu1 %570 }
  0xaf   : > { %v3589_v24 = vpop.permute.xlu0 %572 }
  0xb0   : > { %833 = vrot.lane.b32.xlu1 %v3067_v35, %s2899_s27 }
  0xb1   : > { %835 = vrot.lane.b32.xlu0 %v3074_v40, %s2899_s27 }
  0xb2   : > { %v3599_v14 = vpop.permute.xlu1 %574 }
  0xb3   : > { %v3597_v30 = vpop.permute.xlu0 %576 }
  0xb4   : > { %837 = vrot.lane.b32.xlu1 %v3076_v41, %s2899_s27 }
  0xb5   : > { %839 = vrot.lane.b32.xlu0 %v3095_v49, %s2899_s27 }
  0xb6   : > { %v3607_v0 = vpop.permute.xlu1 %578 }
  0xb7   : > { %v3605_v31 = vpop.permute.xlu0 %580  ;;  %5140 = vst [vmem:[#allocation43_spill] sm:$0xff] %v3607_v0 }
  0xb8   : > { %5139 = vst [vmem:[#allocation42_spill] sm:$0xff] %v3605_v31  ;;  %841 = vrot.lane.b32.xlu1 %v3097_v50, %s2899_s27 }
  0xb9   : > { %843 = vrot.lane.b32.xlu0 %v3114_v57, %s2899_s27 }
  0xba   : > { %v3615_v19 = vpop.permute.xlu1 %582 }
  0xbb   : > { %v3613_v7 = vpop.permute.xlu0 %584  ;;  %5142 = vst [vmem:[#allocation45_spill] sm:$0xff] %v3615_v19 }
  0xbc   : > { %5141 = vst [vmem:[#allocation44_spill] sm:$0xff] %v3613_v7  ;;  %845 = vrot.lane.b32.xlu1 %v3116_v58, %s2899_s27 }
  0xbd   : > { %847 = vrot.lane.b32.xlu0 %v3123_v61, %s2899_s27 }
  0xbe   : > { %v3623_v31 = vpop.permute.xlu1 %586 }
  0xbf   : > { %v3621_v27 = vpop.permute.xlu0 %588  ;;  %5144 = vst [vmem:[#allocation47_spill] sm:$0xff] %v3623_v31 }
  0xc0   : > { %5143 = vst [vmem:[#allocation46_spill] sm:$0xff] %v3621_v27  ;;  %849 = vrot.lane.b32.xlu1 %v3125_v62, %s2899_s27 }
  0xc1   : > { %851 = vrot.lane.b32.xlu0 %v3170_v21, %s2899_s27 }
  0xc2   : > { %v3631_v7 = vpop.permute.xlu1 %590 }
  0xc3   : > { %v3629_v0 = vpop.permute.xlu0 %592  ;;  %5146 = vst [vmem:[#allocation49_spill] sm:$0xff] %v3631_v7 }
  0xc4   : > { %5145 = vst [vmem:[#allocation48_spill] sm:$0xff] %v3629_v0  ;;  %853 = vrot.lane.b32.xlu1 %v3172_v22, %s2899_s27 }
  0xc5   : > { %855 = vrot.lane.b32.xlu0 %v3189_v29, %s2899_s27 }
  0xc6   : > { %v3639_v27 = vpop.permute.xlu1 %594 }
  0xc7   : > { %v3637_v19 = vpop.permute.xlu0 %596  ;;  %5148 = vst [vmem:[#allocation51_spill] sm:$0xff] %v3639_v27 }
  0xc8   : > { %5147 = vst [vmem:[#allocation50_spill] sm:$0xff] %v3637_v19  ;;  %857 = vrot.lane.b32.xlu1 %v3191_v33, %s2899_s27 }
  0xc9   : > { %859 = vrot.lane.b32.xlu0 %v3208_v48, %s2899_s27 }
  0xca   : > { %v3647_v0 = vpop.permute.xlu1 %598 }
  0xcb   : > { %v3645_v31 = vpop.permute.xlu0 %600  ;;  %5150 = vst [vmem:[#allocation53_spill] sm:$0xff] %v3647_v0 }
  0xcc   : > { %5149 = vst [vmem:[#allocation52_spill] sm:$0xff] %v3645_v31  ;;  %861 = vrot.lane.b32.xlu1 %v3210_v53, %s2899_s27 }
  0xcd   : > { %863 = vrot.lane.b32.xlu0 %v3227_v3, %s2899_s27 }
  0xce   : > { %v3655_v19 = vpop.permute.xlu1 %602 }
  0xcf   : > { %v3653_v7 = vpop.permute.xlu0 %604  ;;  %5152 = vst [vmem:[#allocation55_spill] sm:$0xff] %v3655_v19 }
  0xd0   : > { %5151 = vst [vmem:[#allocation54_spill] sm:$0xff] %v3653_v7  ;;  %865 = vrot.lane.b32.xlu1 %v3229_v4, %s2899_s27 }
  0xd1   : > { %867 = vrot.lane.b32.xlu0 %v3246_v17, %s2899_s27 }
  0xd2   : > { %v3663_v31 = vpop.permute.xlu1 %606 }
  0xd3   : > { %v3661_v27 = vpop.permute.xlu0 %608  ;;  %5154 = vst [vmem:[#allocation57_spill] sm:$0xff] %v3663_v31 }
  0xd4   : > { %5153 = vst [vmem:[#allocation56_spill] sm:$0xff] %v3661_v27  ;;  %869 = vrot.lane.b32.xlu1 %v3248_v18, %s2899_s27 }
  0xd5   : > { %871 = vrot.lane.b32.xlu0 %v3265_v46, %s2899_s27 }
  0xd6   : > { %v3671_v7 = vpop.permute.xlu1 %610 }
  0xd7   : > { %v3669_v0 = vpop.permute.xlu0 %612  ;;  %5156 = vst [vmem:[#allocation59_spill] sm:$0xff] %v3671_v7 }
  0xd8   : > { %5155 = vst [vmem:[#allocation58_spill] sm:$0xff] %v3669_v0  ;;  %873 = vrot.lane.b32.xlu1 %v3267_v60, %s2899_s27 }
  0xd9   : > { %875 = vrot.lane.b32.xlu0 %v3284_v56, %s2899_s27 }
  0xda   : > { %v3679_v27 = vpop.permute.xlu1 %614 }
  0xdb   : > { %v3677_v17 = vpop.permute.xlu0 %729  ;;  %5157 = vst [vmem:[#allocation60_spill] sm:$0xff] %v3679_v27 }
  0xdc   : > { %877 = vrot.lane.b32.xlu1 %v3286_v1, %s2899_s27  ;;  %v1692_v1 = vld [vmem:[%s5016_s1 + $0x10] sm:$0xff] }
  0xdd   : > { %879 = vrot.lane.b32.xlu0 %v3303_v45, %s2899_s27  ;;  %v1694_v45 = vld [vmem:[%s5016_s1 + $0x20] sm:$0xf] }
  0xde   : > { %v3687_v46 = vpop.permute.xlu1 %731  ;;  %2770 = vmatprep.subr.msk.mxu0 %vm1792_vm5, %v1694_v45  ;;  %2828 = vmatprep.subr.msk.mxu1 %vm1792_vm5, %v1694_v45 }
  0xdf   : > { %v3685_v18 = vpop.permute.xlu0 %733  ;;  %2771 = vmatpush3.msk.msra.mxu0 %vm1792_vm5, %v1694_v45  ;;  %2833 = vmatpush3.msk.msra.mxu1 %vm1792_vm5, %v1694_v45  ;;  %v1690_v45 = vld [vmem:[%s5016_s1] sm:$0xff] }
  0xe0   : > { %929 = vrot.lane.b32.xlu1 %v3082_v43, %s2900_s28  ;;  %v1693_v43 = vld [vmem:[%s5016_s1 + $0x18] sm:$0xff] }
  0xe1   : > { %931 = vrot.lane.b32.xlu0 %v3092_v47, %s2900_s28  ;;  %2772 = vmatprep.subr.mxu0 %v1693_v43 }
  0xe2   : > { %v3698_v60 = vpop.permute.xlu1 %735  ;;  %2773 = vmatpush3.msra.mxu0 %v1693_v43  ;;  %2829 = vmatprep.subr.mxu1 %v1693_v43 }
  0xe3   : > { %v3693_v56 = vpop.permute.xlu0 %737  ;;  %2774 = vmatprep.subr.mxu0 %v1692_v1  ;;  %2834 = vmatpush3.msra.mxu1 %v1693_v43 }
  0xe4   : > { %1030 = vrot.lane.b32.xlu1 %v3371_v28, %s2901_s6  ;;  %2775 = vmatpush3.msra.mxu0 %v1692_v1  ;;  %v1691_v28 = vld [vmem:[%s5016_s1 + $0x8] sm:$0xff] }
  0xe5   : > { %1032 = vrot.lane.b32.xlu0 %v3386_v36, %s2901_s6  ;;  %2776 = vmatprep.subr.mxu0 %v1691_v28 }
  0xe6   : > { %v3712_v27 = vpop.permute.xlu1 %739  ;;  %2777 = vmatpush3.msra.mxu0 %v1691_v28  ;;  %2830 = vmatprep.subr.mxu1 %v1692_v1 }
  0xe7   : > { %v3707_v47 = vpop.permute.xlu0 %741  ;;  %2778 = vmatprep.subr.mxu0 %v1690_v45  ;;  %2835 = vmatpush3.msra.mxu1 %v1692_v1 }
  0xe8   : > { %1128 = vrot.lane.b32.xlu1 %v3060_v32, %s2902_s11  ;;  %2779 = vmatpush3.msra.mxu0 %v1690_v45 }
  0xe9   : > { %1130 = vrot.lane.b32.xlu0 %v3067_v35, %s2902_s11  ;;  %2831 = vmatprep.subr.mxu1 %v1691_v28 }
  0xea   : > { %v3726_v0 = vpop.permute.xlu1 %743  ;;  %2836 = vmatpush3.msra.mxu1 %v1691_v28 }
  0xeb   : > { %v3721_v36 = vpop.permute.xlu0 %745  ;;  %2832 = vmatprep.subr.mxu1 %v1690_v45 }
  0xec   : > { %1230 = vrot.lane.b32.xlu1 %v3087_v44, %s2903_s16  ;;  %2837 = vmatpush3.msra.mxu1 %v1690_v45 }
  0xed   : > { %933 = vrot.lane.b32.xlu0 %v3087_v44, %s2900_s28 }
  0xee   : > { %v3734_v35 = vpop.permute.xlu1 %747 }
  0xef   : > { %v3732_v32 = vpop.permute.xlu0 %749 }
  0xf0   : > { %1232 = vrot.lane.b32.xlu1 %v3111_v55, %s2903_s16 }
  0xf1   : > { %1331 = vrot.lane.b32.xlu0 %v3381_v15, %s2904_s17 }
  0xf2   : > { %v3742_v7 = vpop.permute.xlu1 %751 }
  0xf3   : > { %v3740_v43 = vpop.permute.xlu0 %753 }
  0xf4   : > { %935 = vrot.lane.b32.xlu1 %v3111_v55, %s2900_s28 }
  0xf5   : > { %1034 = vrot.lane.b32.xlu0 %v3381_v15, %s2901_s6 }
  0xf6   : > { %v3750_v1 = vpop.permute.xlu1 %755 }
  0xf7   : > { %v3748_v44 = vpop.permute.xlu0 %757  ;;  %5159 = vst [vmem:[#allocation62_spill] sm:$0xff] %v3750_v1 }
  0xf8   : > { %5158 = vst [vmem:[#allocation61_spill] sm:$0xff] %v3748_v44  ;;  %1333 = vrot.lane.b32.xlu1 %v3399_v63, %s2904_s17  ;;  %v5188_v44 = vld [vmem:[#allocation7_spill] sm:$0xff] }
  0xf9   : > { %1036 = vrot.lane.b32.xlu0 %v3399_v63, %s2901_s6 }
  0xfa   : > { %v3758_v45 = vpop.permute.xlu1 %759 }
  0xfb   : > { %v3756_v28 = vpop.permute.xlu0 %761  ;;  %5161 = vst [vmem:[#allocation64_spill] sm:$0xff] %v3758_v45 }
  0xfc   : > { %5160 = vst [vmem:[#allocation63_spill] sm:$0xff] %v3756_v28  ;;  %1132 = vrot.lane.b32.xlu1 %v3074_v40, %s2902_s11 }
  0xfd   : > { %1134 = vrot.lane.b32.xlu0 %v3076_v41, %s2902_s11  ;;  %v5166_v41 = vld [vmem:[#allocation4_spill] sm:$0xff] }
  0xfe   : > { %v3766_v15 = vpop.permute.xlu1 %763 }
  0xff   : > { %v3764_v55 = vpop.permute.xlu0 %765  ;;  %5163 = vst [vmem:[#allocation66_spill] sm:$0xff] %v3766_v15 }
 0x100   : > { %5162 = vst [vmem:[#allocation65_spill] sm:$0xff] %v3764_v55  ;;  %1234 = vrot.lane.b32.xlu1 %v3106_v52, %s2903_s16 }
 0x101   : > { %937 = vrot.lane.b32.xlu0 %v3106_v52, %s2900_s28 }
 0x102   : > { %v3774_v31 = vpop.permute.xlu1 %767 }
 0x103   : > { %v3772_v63 = vpop.permute.xlu0 %769  ;;  %5165 = vst [vmem:[#allocation68_spill] sm:$0xff] %v3774_v31 }
 0x104   : > { %5164 = vst [vmem:[#allocation67_spill] sm:$0xff] %v3772_v63  ;;  %1236 = vrot.lane.b32.xlu1 %v5166_v41, %s2903_s16 }
 0x105   : > { %1335 = vrot.lane.b32.xlu0 %v3394_v37, %s2904_s17 }
 0x106   : > { %v3782_v19 = vpop.permute.xlu1 %771 }
 0x107   : > { %v3780_v40 = vpop.permute.xlu0 %773  ;;  %5168 = vst [vmem:[#allocation69_spill] sm:$0xff] %v3782_v19  ;;  %v5182_v19 = vld [vmem:[#allocation29_spill] sm:$0xff] }
 0x108   : > { %5167 = vst [vmem:[#allocation4_spill] sm:$0xff] %v3780_v40  ;;  %939 = vrot.lane.b32.xlu1 %v5166_v41, %s2900_s28 }
 0x109   : > { %1038 = vrot.lane.b32.xlu0 %v3394_v37, %s2901_s6 }
 0x10a   : > { %v3790_v63 = vpop.permute.xlu1 %775 }
 0x10b   : > { %v3788_v52 = vpop.permute.xlu0 %777  ;;  %5170 = vst [vmem:[#allocation71_spill] sm:$0xff] %v3790_v63 }
 0x10c   : > { %5169 = vst [vmem:[#allocation70_spill] sm:$0xff] %v3788_v52  ;;  %1337 = vrot.lane.b32.xlu1 %v3412_v11, %s2904_s17  ;;  %v5175_v52 = vld [vmem:[#allocation3_spill] sm:$0xff] }
 0x10d   : > { %1040 = vrot.lane.b32.xlu0 %v3412_v11, %s2901_s6 }
 0x10e   : > { %v3798_v40 = vpop.permute.xlu1 %779 }
 0x10f   : > { %v3796_v31 = vpop.permute.xlu0 %781  ;;  %5172 = vst [vmem:[#allocation73_spill] sm:$0xff] %v3798_v40  ;;  %v5178_v40 = vld [vmem:[#allocation28_spill] sm:$0xff] }
 0x110   : > { %5171 = vst [vmem:[#allocation72_spill] sm:$0xff] %v3796_v31  ;;  %1136 = vrot.lane.b32.xlu1 %v3095_v49, %s2902_s11 }
 0x111   : > { %1138 = vrot.lane.b32.xlu0 %v3097_v50, %s2902_s11  ;;  %v5179_v50 = vld [vmem:[#allocation6_spill] sm:$0xff] }
 0x112   : > { %v3806_v41 = vpop.permute.xlu1 %783 }
 0x113   : > { %v3804_v37 = vpop.permute.xlu0 %785  ;;  %5174 = vst [vmem:[#allocation75_spill] sm:$0xff] %v3806_v41 }
 0x114   : > { %5173 = vst [vmem:[#allocation74_spill] sm:$0xff] %v3804_v37  ;;  %1238 = vrot.lane.b32.xlu1 %v5175_v52, %s2903_s16 }
 0x115   : > { %941 = vrot.lane.b32.xlu0 %v5175_v52, %s2900_s28 }
 0x116   : > { %v3814_v31 = vpop.permute.xlu1 %787 }
 0x117   : > { %v3812_v11 = vpop.permute.xlu0 %789  ;;  %5177 = vst [vmem:[#allocation76_spill] sm:$0xff] %v3814_v31 }
 0x118   : > { %5176 = vst [vmem:[#allocation3_spill] sm:$0xff] %v3812_v11  ;;  %1240 = vrot.lane.b32.xlu1 %v5179_v50, %s2903_s16 }
 0x119   : > { %1339 = vrot.lane.b32.xlu0 %v5178_v40, %s2904_s17 }
 0x11a   : > { %v3822_v37 = vpop.permute.xlu1 %791 }
 0x11b   : > { %v3820_v49 = vpop.permute.xlu0 %827  ;;  %5180 = vst [vmem:[#allocation28_spill] sm:$0xff] %v3822_v37  ;;  %v5181_v37 = vld [vmem:[#allocation5_spill] sm:$0xff] }
 0x11c   : > { %943 = vrot.lane.b32.xlu1 %v5179_v50, %s2900_s28 }
 0x11d   : > { %1042 = vrot.lane.b32.xlu0 %v5178_v40, %s2901_s6 }
 0x11e   : > { %v3830_v11 = vpop.permute.xlu1 %829 }
 0x11f   : > { %v3828_v52 = vpop.permute.xlu0 %831 }
 0x120   : > { %1341 = vrot.lane.b32.xlu1 %v3425_v38, %s2904_s17 }
 0x121   : > { %1044 = vrot.lane.b32.xlu0 %v3425_v38, %s2901_s6 }
 0x122   : > { %v3838_v41 = vpop.permute.xlu1 %833 }
 0x123   : > { %v3836_v31 = vpop.permute.xlu0 %835 }
 0x124   : > { %1140 = vrot.lane.b32.xlu1 %v3114_v57, %s2902_s11 }
 0x125   : > { %1142 = vrot.lane.b32.xlu0 %v3116_v58, %s2902_s11  ;;  %v5183_v58 = vld [vmem:[#allocation8_spill] sm:$0xff] }
 0x126   : > { %v3846_v50 = vpop.permute.xlu1 %837 }
 0x127   : > { %v3844_v40 = vpop.permute.xlu0 %839 }
 0x128   : > { %1242 = vrot.lane.b32.xlu1 %v5181_v37, %s2903_s16 }
 0x129   : > { %945 = vrot.lane.b32.xlu0 %v5181_v37, %s2900_s28 }
 0x12a   : > { %v3854_v63 = vpop.permute.xlu1 %841 }
 0x12b   : > { %v3852_v38 = vpop.permute.xlu0 %843 }
 0x12c   : > { %1244 = vrot.lane.b32.xlu1 %v5183_v58, %s2903_s16 }
 0x12d   : > { %1343 = vrot.lane.b32.xlu0 %v5182_v19, %s2904_s17 }
 0x12e   : > { %v3862_v55 = vpop.permute.xlu1 %845 }
 0x12f   : > { %v3860_v57 = vpop.permute.xlu0 %847 }
 0x130   : > { %947 = vrot.lane.b32.xlu1 %v5183_v58, %s2900_s28 }
 0x131   : > { %1046 = vrot.lane.b32.xlu0 %v5182_v19, %s2901_s6 }
 0x132   : > { %v3870_v15 = vpop.permute.xlu1 %849 }
 0x133   : > { %v3868_v37 = vpop.permute.xlu0 %851 }
 0x134   : > { %1345 = vrot.lane.b32.xlu1 %v3438_v42, %s2904_s17 }
 0x135   : > { %1048 = vrot.lane.b32.xlu0 %v3438_v42, %s2901_s6 }
 0x136   : > { %v3878_v45 = vpop.permute.xlu1 %853 }
 0x137   : > { %v3876_v28 = vpop.permute.xlu0 %855  ;;  %5185 = vst [vmem:[#allocation5_spill] sm:$0xff] %v3878_v45  ;;  %v5191_v45 = vld [vmem:[#allocation30_spill] sm:$0xff] }
 0x138   : > { %5184 = vst [vmem:[#allocation6_spill] sm:$0xff] %v3876_v28  ;;  %1144 = vrot.lane.b32.xlu1 %v3123_v61, %s2902_s11 }
 0x139   : > { %1146 = vrot.lane.b32.xlu0 %v3125_v62, %s2902_s11  ;;  %v5192_v62 = vld [vmem:[#allocation10_spill] sm:$0xff] }
 0x13a   : > { %v3886_v58 = vpop.permute.xlu1 %857 }
 0x13b   : > { %v3884_v19 = vpop.permute.xlu0 %859  ;;  %5187 = vst [vmem:[#allocation8_spill] sm:$0xff] %v3886_v58 }
 0x13c   : > { %5186 = vst [vmem:[#allocation29_spill] sm:$0xff] %v3884_v19  ;;  %1246 = vrot.lane.b32.xlu1 %v5188_v44, %s2903_s16 }
 0x13d   : > { %949 = vrot.lane.b32.xlu0 %v5188_v44, %s2900_s28 }
 0x13e   : > { %v3894_v28 = vpop.permute.xlu1 %861 }
 0x13f   : > { %v3892_v42 = vpop.permute.xlu0 %863  ;;  %5190 = vst [vmem:[#allocation77_spill] sm:$0xff] %v3894_v28 }
 0x140   : > { %5189 = vst [vmem:[#allocation7_spill] sm:$0xff] %v3892_v42  ;;  %1248 = vrot.lane.b32.xlu1 %v5192_v62, %s2903_s16 }
 0x141   : > { %1347 = vrot.lane.b32.xlu0 %v5191_v45, %s2904_s17 }
 0x142   : > { %v3902_v19 = vpop.permute.xlu1 %865 }
 0x143   : > { %v3900_v61 = vpop.permute.xlu0 %867  ;;  %5194 = vst [vmem:[#allocation10_spill] sm:$0xff] %v3902_v19 }
 0x144   : > { %5193 = vst [vmem:[#allocation30_spill] sm:$0xff] %v3900_v61  ;;  %951 = vrot.lane.b32.xlu1 %v5192_v62, %s2900_s28 }
 0x145   : > { %1050 = vrot.lane.b32.xlu0 %v5191_v45, %s2901_s6 }
 0x146   : > { %v3910_v42 = vpop.permute.xlu1 %869 }
 0x147   : > { %v3908_v44 = vpop.permute.xlu0 %871  ;;  %5196 = vst [vmem:[#allocation79_spill] sm:$0xff] %v3910_v42 }
 0x148   : > { %5195 = vst [vmem:[#allocation78_spill] sm:$0xff] %v3908_v44  ;;  %1349 = vrot.lane.b32.xlu1 %v3451_v51, %s2904_s17  ;;  %v5201_v44 = vld [vmem:[#allocation9_spill] sm:$0xff] }
 0x149   : > { %1052 = vrot.lane.b32.xlu0 %v3451_v51, %s2901_s6 }
 0x14a   : > { %v3918_v61 = vpop.permute.xlu1 %873 }
 0x14b   : > { %v3916_v28 = vpop.permute.xlu0 %875  ;;  %5198 = vst [vmem:[#allocation81_spill] sm:$0xff] %v3918_v61  ;;  %v5202_v61 = vld [vmem:[#allocation31_spill] sm:$0xff] }
 0x14c   : > { %5197 = vst [vmem:[#allocation80_spill] sm:$0xff] %v3916_v28  ;;  %1148 = vrot.lane.b32.xlu1 %v3170_v21, %s2902_s11 }
 0x14d   : > { %1150 = vrot.lane.b32.xlu0 %v3172_v22, %s2902_s11  ;;  %v5203_v22 = vld [vmem:[#allocation12_spill] sm:$0xff] }
 0x14e   : > { %v3926_v62 = vpop.permute.xlu1 %877 }
 0x14f   : > { %v3924_v45 = vpop.permute.xlu0 %879  ;;  %5200 = vst [vmem:[#allocation83_spill] sm:$0xff] %v3926_v62  ;;  %v2856_v62 = vld [vmem:[#allocation2] sm:$0xff] }
 0x150   : > { %5199 = vst [vmem:[#allocation82_spill] sm:$0xff] %v3924_v45  ;;  %1250 = vrot.lane.b32.xlu1 %v5201_v44, %s2903_s16  ;;  %v1427_v19 = vsel %vm290_vm0, %v2856_v62, %v3528_v6 }
 0x151   : > { %953 = vrot.lane.b32.xlu0 %v5201_v44, %s2900_s28  ;;  %v1460_v58 = vsel %vm1459_vm6, %v1427_v19, %v3677_v17 }
 0x152   : > { %v930_v28 = vpop.permute.xlu1 %929 }
 0x153   : > { %v932_v51 = vpop.permute.xlu0 %931 }
 0x154   : > { %1252 = vrot.lane.b32.xlu1 %v5203_v22, %s2903_s16 }
 0x155   : > { %1351 = vrot.lane.b32.xlu0 %v5202_v61, %s2904_s17 }
 0x156   : > { %v1031_v21 = vpop.permute.xlu1 %1030 }
 0x157   : > { %v1033_v42 = vpop.permute.xlu0 %1032 }
 0x158   : > { %955 = vrot.lane.b32.xlu1 %v5203_v22, %s2900_s28 }
 0x159   : > { %1054 = vrot.lane.b32.xlu0 %v5202_v61, %s2901_s6  ;;  %v1493_v61 = vsel %vm1492_vm7, %v1460_v58, %v3820_v49  ;;  %v5204_v58 = vld [vmem:[#allocation11_spill] sm:$0xff] }
 0x15a   : > { %v1129_v44 = vpop.permute.xlu1 %1128  ;;  %v1526_v1 = vsel %vm1525_vm8, %v1493_v61, %v930_v28 }
 0x15b   : > { %v1131_v45 = vpop.permute.xlu0 %1130  ;;  %v1559_v62 = vsel %vm1558_vm9, %v1526_v1, %v1031_v21  ;;  %v2857_v1 = vld [vmem:[#allocation2 + $0x8] sm:$0xff] }
 0x15c   : > { %1353 = vrot.lane.b32.xlu1 %v3464_v59, %s2904_s17  ;;  %v1592_v17 = vsel %vm1591_vm10, %v1559_v62, %v1129_v44  ;;  %v5205_v62 = vld [vmem:[#allocation32_spill] sm:$0xff] }
 0x15d   : > { %1056 = vrot.lane.b32.xlu0 %v3464_v59, %s2901_s6 }
 0x15e   : > { %v1231_v6 = vpop.permute.xlu1 %1230 }
 0x15f   : > { %v934_v22 = vpop.permute.xlu0 %933  ;;  %v1625_v59 = vsel %vm1624_vm11, %v1592_v17, %v1231_v6 }
 0x160   : > { %1152 = vrot.lane.b32.xlu1 %v3189_v29, %s2902_s11 }
 0x161   : > { %1154 = vrot.lane.b32.xlu0 %v3191_v33, %s2902_s11  ;;  %v1428_v33 = vsel %vm290_vm0, %v2857_v1, %v3543_v20  ;;  %v5206_v20 = vld [vmem:[#allocation14_spill] sm:$0xff] }
 0x162   : > { %v1233_v19 = vpop.permute.xlu1 %1232  ;;  %v1461_v29 = vsel %vm1459_vm6, %v1428_v33, %v3687_v46 }
 0x163   : > { %v1332_v49 = vpop.permute.xlu0 %1331  ;;  %v1494_v44 = vsel %vm1492_vm7, %v1461_v29, %v3830_v11 }
 0x164   : > { %v1658_v28 = vsel %vm1657_vm12, %v1625_v59, %v1332_v49  ;;  %1254 = vrot.lane.b32.xlu1 %v5204_v58, %s2903_s16  ;;  %v1527_v6 = vsel %vm1525_vm8, %v1494_v44, %v932_v51  ;;  %v2858_v51 = vld [vmem:[#allocation2 + $0x18] sm:$0xff] }
 0x165   : > { %957 = vrot.lane.b32.xlu0 %v5204_v58, %s2900_s28  ;;  %2780 = vmatprep.mubr.msk.f32.mxu0 %vm1695_vm13, %v1658_v28  ;;  %v1560_v17 = vsel %vm1558_vm9, %v1527_v6, %v1033_v42 }
 0x166   : > { %v936_v61 = vpop.permute.xlu1 %935  ;;  %v1593_v59 = vsel %vm1591_vm10, %v1560_v17, %v1131_v45  ;;  %v1429_v45 = vsel %vm290_vm0, %v2858_v51, %v3549_v13 }
 0x167   : > { %v1035_v21 = vpop.permute.xlu0 %1034  ;;  %v1626_v46 = vsel %vm1624_vm11, %v1593_v59, %v1233_v19  ;;  %v1462_v19 = vsel %vm1459_vm6, %v1429_v45, %v3685_v18 }
 0x168   : > { %1256 = vrot.lane.b32.xlu1 %v5206_v20, %s2903_s16  ;;  %v1495_v1 = vsel %vm1492_vm7, %v1462_v19, %v3828_v52  ;;  %v289_v19 = vld [vmem:[%s3003_s24 + $0xf8] sm:$0xff] }
 0x169   : > { %1355 = vrot.lane.b32.xlu0 %v5205_v62, %s2904_s17  ;;  %v1528_v29 = vsel %vm1525_vm8, %v1495_v1, %v934_v22  ;;  %v5207_v22 = vld [vmem:[#allocation13_spill] sm:$0xff]  ;;  %368 = vst.msk [vmem:[#allocation2 + $0x189] sm:$0xff] %vm290_vm0, %v289_v19 }
 0x16a   : > { %v1334_v28 = vpop.permute.xlu1 %1333  ;;  %v1561_v6 = vsel %vm1558_vm9, %v1528_v29, %v1035_v21  ;;  %v2859_v21 = vld [vmem:[#allocation2 + $0x20] sm:$0xff] }
 0x16b   : > { %v1037_v49 = vpop.permute.xlu0 %1036  ;;  %v1659_v58 = vsel %vm1657_vm12, %v1626_v46, %v1334_v28  ;;  %v288_v46 = vld [vmem:[%s3003_s24 + $0xf0] sm:$0xff]  ;;  %s2905_s24 = smov 120  }
 0x16c   : > { %959 = vrot.lane.b32.xlu1 %v5206_v20, %s2900_s28  ;;  %2781 = vmatmul.mubr.msk.f32.vlgmr.msra.gmra.mxu0 %vm1695_vm13, %v1659_v58  ;;  %v5208_v58 = vld [vmem:[#allocation33_spill] sm:$0xff]  ;;  %367 = vst.msk [vmem:[#allocation2 + $0x181] sm:$0xff] %vm290_vm0, %v288_v46 }
 0x16d   : > { %1058 = vrot.lane.b32.xlu0 %v5205_v62, %s2901_s6 }
 0x16e   : > { %v1133_v42 = vpop.permute.xlu1 %1132 }
 0x16f   : > { %v1135_v11 = vpop.permute.xlu0 %1134  ;;  %v1594_v13 = vsel %vm1591_vm10, %v1561_v6, %v1133_v42  ;;  %v5209_v42 = vld [vmem:[#allocation16_spill] sm:$0xff] }
 0x170   : > { %1357 = vrot.lane.b32.xlu1 %v3477_v12, %s2904_s17 }
 0x171   : > { %1060 = vrot.lane.b32.xlu0 %v3477_v12, %s2901_s6 }
 0x172   : > { %v1235_v44 = vpop.permute.xlu1 %1234 }
 0x173   : > { %v938_v33 = vpop.permute.xlu0 %937  ;;  %v1627_v12 = vsel %vm1624_vm11, %v1594_v13, %v1235_v44 }
 0x174   : > { %1156 = vrot.lane.b32.xlu1 %v3208_v48, %s2902_s11 }
 0x175   : > { %1158 = vrot.lane.b32.xlu0 %v3210_v53, %s2902_s11  ;;  %v1430_v53 = vsel %vm290_vm0, %v2859_v21, %v3564_v25 }
 0x176   : > { %v1237_v62 = vpop.permute.xlu1 %1236  ;;  %v1463_v48 = vsel %vm1459_vm6, %v1430_v53, %v3698_v60 }
 0x177   : > { %v1336_v18 = vpop.permute.xlu0 %1335  ;;  %v1496_v20 = vsel %vm1492_vm7, %v1463_v48, %v3838_v41 }
 0x178   : > { %v1660_v52 = vsel %vm1657_vm12, %v1627_v12, %v1336_v18  ;;  %1258 = vrot.lane.b32.xlu1 %v5207_v22, %s2903_s16  ;;  %v1529_v28 = vsel %vm1525_vm8, %v1496_v20, %v936_v61  ;;  %v5211_v20 = vld [vmem:[#allocation34_spill] sm:$0xff] }
 0x179   : > { %961 = vrot.lane.b32.xlu0 %v5207_v22, %s2900_s28  ;;  %2783 = vmatprep.mubr.msk.f32.mxu0 %vm1695_vm13, %v1660_v52  ;;  %v1562_v25 = vsel %vm1558_vm9, %v1529_v28, %v1037_v49  ;;  %v5210_v22 = vld [vmem:[#allocation15_spill] sm:$0xff] }
 0x17a   : > { %v940_v59 = vpop.permute.xlu1 %939  ;;  %v1595_v60 = vsel %vm1591_vm10, %v1562_v25, %v1135_v11  ;;  %v2860_v11 = vld [vmem:[#allocation2 + $0x30] sm:$0xff] }
 0x17b   : > { %v1039_v17 = vpop.permute.xlu0 %1038  ;;  %v1628_v45 = vsel %vm1624_vm11, %v1595_v60, %v1237_v62  ;;  %v1431_v29 = vsel %vm290_vm0, %v2860_v11, %v3558_v16  ;;  %v2862_v60 = vld [vmem:[#allocation2 + $0x48] sm:$0xff]  ;;  %v4088_v11 = vld [vmem:[#allocation2 + $0x110] sm:$0xff] }
 0x17c   : > { %1260 = vrot.lane.b32.xlu1 %v5209_v42, %s2903_s16  ;;  %v1464_v44 = vsel %vm1459_vm6, %v1431_v29, %v3693_v56 }
 0x17d   : > { %1359 = vrot.lane.b32.xlu0 %v5208_v58, %s2904_s17  ;;  %v1497_v6 = vsel %vm1492_vm7, %v1464_v44, %v3836_v31 }
 0x17e   : > { %v1338_v41 = vpop.permute.xlu1 %1337  ;;  %v1530_v12 = vsel %vm1525_vm8, %v1497_v6, %v938_v33  ;;  %v2861_v33 = vld [vmem:[#allocation2 + $0x38] sm:$0xff]  ;;  %v5213_v6 = vld [vmem:[#allocation17_spill] sm:$0xff] }
 0x17f   : > { %v1041_v51 = vpop.permute.xlu0 %1040  ;;  %v1661_v1 = vsel %vm1657_vm12, %v1628_v45, %v1338_v41  ;;  %v1563_v52 = vsel %vm1558_vm9, %v1530_v12, %v1039_v17 }
 0x180   : > { %963 = vrot.lane.b32.xlu1 %v5209_v42, %s2900_s28  ;;  %2784 = vmatmul.mubr.msk.f32.gmra.mxu0 %vm1695_vm13, %v1661_v1 }
 0x181   : > { %1062 = vrot.lane.b32.xlu0 %v5208_v58, %s2901_s6 }
 0x182   : > { %v1137_v49 = vpop.permute.xlu1 %1136 }
 0x183   : > { %v1139_v61 = vpop.permute.xlu0 %1138  ;;  %v1596_v16 = vsel %vm1591_vm10, %v1563_v52, %v1137_v49 }
 0x184   : > { %1361 = vrot.lane.b32.xlu1 %v3490_v23, %s2904_s17 }
 0x185   : > { %1064 = vrot.lane.b32.xlu0 %v3490_v23, %s2901_s6 }
 0x186   : > { %v1239_v18 = vpop.permute.xlu1 %1238 }
 0x187   : > { %v942_v13 = vpop.permute.xlu0 %941  ;;  %v1629_v56 = vsel %vm1624_vm11, %v1596_v16, %v1239_v18 }
 0x188   : > { %1160 = vrot.lane.b32.xlu1 %v3227_v3, %s2902_s11 }
 0x189   : > { %1162 = vrot.lane.b32.xlu0 %v3229_v4, %s2902_s11  ;;  %v1432_v4 = vsel %vm290_vm0, %v2861_v33, %v3575_v10  ;;  %v5212_v10 = vld [vmem:[#allocation18_spill] sm:$0xff] }
 0x18a   : > { %v1241_v31 = vpop.permute.xlu1 %1240  ;;  %v1465_v3 = vsel %vm1459_vm6, %v1432_v4, %v3712_v27 }
 0x18b   : > { %v1340_v23 = vpop.permute.xlu0 %1339  ;;  %v1498_v53 = vsel %vm1492_vm7, %v1465_v3, %v3846_v50 }
 0x18c   : > { %v1662_v62 = vsel %vm1657_vm12, %v1629_v56, %v1340_v23  ;;  %1262 = vrot.lane.b32.xlu1 %v5210_v22, %s2903_s16  ;;  %v1531_v17 = vsel %vm1525_vm8, %v1498_v53, %v940_v59  ;;  %v2866_v53 = vld [vmem:[#allocation2 + $0x60] sm:$0xff] }
 0x18d   : > { %965 = vrot.lane.b32.xlu0 %v5210_v22, %s2900_s28  ;;  %2786 = vmatprep.mubr.msk.f32.mxu0 %vm1695_vm13, %v1662_v62  ;;  %v1564_v46 = vsel %vm1558_vm9, %v1531_v17, %v1041_v51  ;;  %v1433_v51 = vsel %vm290_vm0, %v2862_v60, %v3570_v26  ;;  %v5214_v62 = vld [vmem:[#allocation35_spill] sm:$0xff] }
 0x18e   : > { %v944_v48 = vpop.permute.xlu1 %943  ;;  %v1597_v28 = vsel %vm1591_vm10, %v1564_v46, %v1139_v61  ;;  %v1466_v45 = vsel %vm1459_vm6, %v1433_v51, %v3707_v47  ;;  %v4093_v47 = vld [vmem:[#allocation2 + $0x108] sm:$0xff] }
 0x18f   : > { %v1043_v21 = vpop.permute.xlu0 %1042  ;;  %v1630_v27 = vsel %vm1624_vm11, %v1597_v28, %v1241_v31  ;;  %v1499_v41 = vsel %vm1492_vm7, %v1466_v45, %v3844_v40 }
 0x190   : > { %1264 = vrot.lane.b32.xlu1 %v5212_v10, %s2903_s16  ;;  %v1532_v1 = vsel %vm1525_vm8, %v1499_v41, %v942_v13  ;;  %v2865_v13 = vld [vmem:[#allocation2 + $0x50] sm:$0xff] }
 0x191   : > { %1363 = vrot.lane.b32.xlu0 %v5211_v20, %s2904_s17  ;;  %v1565_v49 = vsel %vm1558_vm9, %v1532_v1, %v1043_v21  ;;  %v1434_v12 = vsel %vm290_vm0, %v2865_v13, %v3583_v8  ;;  %v5215_v8 = vld [vmem:[#allocation20_spill] sm:$0xff] }
 0x192   : > { %v1342_v25 = vpop.permute.xlu1 %1341  ;;  %v1467_v18 = vsel %vm1459_vm6, %v1434_v12, %v3726_v0 }
 0x193   : > { %v1045_v58 = vpop.permute.xlu0 %1044  ;;  %v1663_v42 = vsel %vm1657_vm12, %v1630_v27, %v1342_v25  ;;  %v1500_v16 = vsel %vm1492_vm7, %v1467_v18, %v3854_v63  ;;  %v4136_v27 = vld [vmem:[#allocation2 + $0x128] sm:$0xff] }
 0x194   : > { %967 = vrot.lane.b32.xlu1 %v5212_v10, %s2900_s28  ;;  %2787 = vmatmul.mubr.msk.f32.gmra.mxu0 %vm1695_vm13, %v1663_v42  ;;  %v1533_v23 = vsel %vm1525_vm8, %v1500_v16, %v944_v48  ;;  %v1435_v48 = vsel %vm290_vm0, %v2866_v53, %v3581_v5 }
 0x195   : > { %1066 = vrot.lane.b32.xlu0 %v5211_v20, %s2901_s6  ;;  %v1566_v31 = vsel %vm1558_vm9, %v1533_v23, %v1045_v58  ;;  %v1468_v17 = vsel %vm1459_vm6, %v1435_v48, %v3721_v36  ;;  %v4141_v36 = vld [vmem:[#allocation2 + $0x120] sm:$0xff] }
 0x196   : > { %v1141_v59 = vpop.permute.xlu1 %1140  ;;  %v1501_v20 = vsel %vm1492_vm7, %v1468_v17, %v3852_v38 }
 0x197   : > { %v1143_v50 = vpop.permute.xlu0 %1142  ;;  %v1598_v26 = vsel %vm1591_vm10, %v1565_v49, %v1141_v59  ;;  %v2869_v59 = vld [vmem:[#allocation2 + $0x68] sm:$0xff] }
 0x198   : > { %1365 = vrot.lane.b32.xlu1 %v3503_v34, %s2904_s17  ;;  %v1599_v22 = vsel %vm1591_vm10, %v1566_v31, %v1143_v50  ;;  %v5216_v50 = vld [vmem:[#allocation19_spill] sm:$0xff]  ;;  %v1436_v60 = vsel %vm290_vm0, %v2869_v59, %v3591_v9  ;;  %v5218_v9 = vld [vmem:[#allocation22_spill] sm:$0xff] }
 0x199   : > { %1068 = vrot.lane.b32.xlu0 %v3503_v34, %s2901_s6  ;;  %v1469_v51 = vsel %vm1459_vm6, %v1436_v60, %v3734_v35  ;;  %v4232_v60 = vld [vmem:[#allocation2 + $0x158] sm:$0xff] }
 0x19a   : > { %v1243_v61 = vpop.permute.xlu1 %1242  ;;  %v1502_v41 = vsel %vm1492_vm7, %v1469_v51, %v3862_v55 }
 0x19b   : > { %v946_v19 = vpop.permute.xlu0 %945  ;;  %v1631_v34 = vsel %vm1624_vm11, %v1598_v26, %v1243_v61  ;;  %v5217_v61 = vld [vmem:[#allocation36_spill] sm:$0xff] }
 0x19c   : > { %1164 = vrot.lane.b32.xlu1 %v4093_v47, %s2902_s11  ;;  %v1534_v10 = vsel %vm1525_vm8, %v1501_v20, %v946_v19 }
 0x19d   : > { %1166 = vrot.lane.b32.xlu0 %v4088_v11, %s2902_s11 }
 0x19e   : > { %v1245_v44 = vpop.permute.xlu1 %1244 }
 0x19f   : > { %v1344_v40 = vpop.permute.xlu0 %1343  ;;  %v1632_v0 = vsel %vm1624_vm11, %v1599_v22, %v1245_v44  ;;  %v5219_v22 = vld [vmem:[#allocation21_spill] sm:$0xff] }
 0x1a0   : > { %v1664_v29 = vsel %vm1657_vm12, %v1631_v34, %v1344_v40  ;;  %1266 = vrot.lane.b32.xlu1 %v5213_v6, %s2903_s16 }
 0x1a1   : > { %969 = vrot.lane.b32.xlu0 %v5213_v6, %s2900_s28  ;;  %2789 = vmatprep.mubr.msk.f32.mxu0 %vm1695_vm13, %v1664_v29  ;;  %v2870_v6 = vld [vmem:[#allocation2 + $0x78] sm:$0xff] }
 0x1a2   : > { %v948_v56 = vpop.permute.xlu1 %947  ;;  %v1437_v13 = vsel %vm290_vm0, %v2870_v6, %v3589_v24 }
 0x1a3   : > { %v1047_v52 = vpop.permute.xlu0 %1046  ;;  %v1535_v1 = vsel %vm1525_vm8, %v1502_v41, %v948_v56  ;;  %v1470_v12 = vsel %vm1459_vm6, %v1437_v13, %v3732_v32  ;;  %v4189_v32 = vld [vmem:[#allocation2 + $0x138] sm:$0xff] }
 0x1a4   : > { %1268 = vrot.lane.b32.xlu1 %v5215_v8, %s2903_s16  ;;  %v1567_v58 = vsel %vm1558_vm9, %v1534_v10, %v1047_v52  ;;  %v1503_v18 = vsel %vm1492_vm7, %v1470_v12, %v3860_v57 }
 0x1a5   : > { %1367 = vrot.lane.b32.xlu0 %v5214_v62, %s2904_s17 }
 0x1a6   : > { %v1346_v4 = vpop.permute.xlu1 %1345 }
 0x1a7   : > { %v1049_v33 = vpop.permute.xlu0 %1048  ;;  %v1665_v3 = vsel %vm1657_vm12, %v1632_v0, %v1346_v4 }
 0x1a8   : > { %971 = vrot.lane.b32.xlu1 %v5215_v8, %s2900_s28  ;;  %2790 = vmatmul.mubr.msk.f32.gmra.mxu0 %vm1695_vm13, %v1665_v3  ;;  %v1568_v49 = vsel %vm1558_vm9, %v1535_v1, %v1049_v33  ;;  %v2873_v33 = vld [vmem:[#allocation2 + $0x80] sm:$0xff]  ;;  %v5222_v1 = vld [vmem:[#allocation43_spill] sm:$0xff] }
 0x1a9   : > { %1070 = vrot.lane.b32.xlu0 %v5214_v62, %s2901_s6  ;;  %v4184_v62 = vld [vmem:[#allocation2 + $0x140] sm:$0xff]  ;;  %v1438_v0 = vsel %vm290_vm0, %v2873_v33, %v3599_v14  ;;  %v5220_v14 = vld [vmem:[#allocation24_spill] sm:$0xff] }
 0x1aa   : > { %v1145_v21 = vpop.permute.xlu1 %1144  ;;  %v1471_v4 = vsel %vm1459_vm6, %v1438_v0, %v3742_v7  ;;  %v5231_v0 = vld [vmem:[#allocation6_spill] sm:$0xff] }
 0x1ab   : > { %v1147_v63 = vpop.permute.xlu0 %1146  ;;  %v1600_v5 = vsel %vm1591_vm10, %v1567_v58, %v1145_v21  ;;  %v2874_v58 = vld [vmem:[#allocation2 + $0x90] sm:$0xff] }
 0x1ac   : > { %1369 = vrot.lane.b32.xlu1 %v3516_v54, %s2904_s17  ;;  %v1601_v26 = vsel %vm1591_vm10, %v1568_v49, %v1147_v63  ;;  %v1504_v63 = vsel %vm1492_vm7, %v1471_v4, %v3870_v15  ;;  %v5223_v49 = vld [vmem:[#allocation23_spill] sm:$0xff] }
 0x1ad   : > { %1072 = vrot.lane.b32.xlu0 %v3516_v54, %s2901_s6 }
 0x1ae   : > { %v1247_v28 = vpop.permute.xlu1 %1246 }
 0x1af   : > { %v950_v46 = vpop.permute.xlu0 %949  ;;  %v1633_v54 = vsel %vm1624_vm11, %v1600_v5, %v1247_v28  ;;  %v1439_v5 = vsel %vm290_vm0, %v2874_v58, %v3597_v30 }
 0x1b0   : > { %1168 = vrot.lane.b32.xlu1 %v4141_v36, %s2902_s11  ;;  %v1536_v16 = vsel %vm1525_vm8, %v1503_v18, %v950_v46 }
 0x1b1   : > { %1170 = vrot.lane.b32.xlu0 %v4136_v27, %s2902_s11 }
 0x1b2   : > { %v1249_v42 = vpop.permute.xlu1 %1248 }
 0x1b3   : > { %v1348_v38 = vpop.permute.xlu0 %1347  ;;  %v1634_v35 = vsel %vm1624_vm11, %v1601_v26, %v1249_v42 }
 0x1b4   : > { %v1666_v25 = vsel %vm1657_vm12, %v1633_v54, %v1348_v38  ;;  %1270 = vrot.lane.b32.xlu1 %v5216_v50, %s2903_s16  ;;  %v5221_v54 = vld [vmem:[#allocation38_spill] sm:$0xff]  ;;  %v1472_v38 = vsel %vm1459_vm6, %v1439_v5, %v3740_v43  ;;  %v4237_v43 = vld [vmem:[#allocation2 + $0x150] sm:$0xff]  ;;  %v5233_v5 = vld [vmem:[#allocation64_spill] sm:$0xff] }
 0x1b5   : > { %973 = vrot.lane.b32.xlu0 %v5216_v50, %s2900_s28  ;;  %2792 = vmatprep.mubr.msk.f32.mxu0 %vm1695_vm13, %v1666_v25 }
 0x1b6   : > { %v952_v19 = vpop.permute.xlu1 %951 }
 0x1b7   : > { %v1051_v45 = vpop.permute.xlu0 %1050  ;;  %v1537_v53 = vsel %vm1525_vm8, %v1504_v63, %v952_v19  ;;  %v2877_v19 = vld [vmem:[#allocation2 + $0x98] sm:$0xff] }
 0x1b8   : > { %1272 = vrot.lane.b32.xlu1 %v5218_v9, %s2903_s16  ;;  %v1569_v23 = vsel %vm1558_vm9, %v1536_v16, %v1051_v45 }
 0x1b9   : > { %1371 = vrot.lane.b32.xlu0 %v5217_v61, %s2904_s17 }
 0x1ba   : > { %v1350_v40 = vpop.permute.xlu1 %1349 }
 0x1bb   : > { %v1053_v34 = vpop.permute.xlu0 %1052  ;;  %v1667_v29 = vsel %vm1657_vm12, %v1634_v35, %v1350_v40  ;;  %v5225_v35 = vld [vmem:[#allocation5_spill] sm:$0xff] }
 0x1bc   : > { %975 = vrot.lane.b32.xlu1 %v5218_v9, %s2900_s28  ;;  %2793 = vmatmul.mubr.msk.f32.gmra.mxu0 %vm1695_vm13, %v1667_v29  ;;  %v1570_v48 = vsel %vm1558_vm9, %v1537_v53, %v1053_v34  ;;  %v5224_v9 = vld [vmem:[#allocation62_spill] sm:$0xff] }
 0x1bd   : > { %1074 = vrot.lane.b32.xlu0 %v5217_v61, %s2901_s6  ;;  %v1440_v61 = vsel %vm290_vm0, %v2877_v19, %v5222_v1  ;;  %v5236_v1 = vld [vmem:[#allocation27_spill] sm:$0xff] }
 0x1be   : > { %v1149_v44 = vpop.permute.xlu1 %1148  ;;  %v1473_v26 = vsel %vm1459_vm6, %v1440_v61, %v5224_v9  ;;  %v2882_v9 = vld [vmem:[#allocation2 + $0xc0] sm:$0xff] }
 0x1bf   : > { %v1151_v55 = vpop.permute.xlu0 %1150  ;;  %v1602_v24 = vsel %vm1591_vm10, %v1569_v23, %v1149_v44  ;;  %v1506_v40 = vsel %vm1492_vm7, %v1473_v26, %v5225_v35  ;;  %v5226_v44 = vld [vmem:[#allocation26_spill] sm:$0xff]  ;;  %v5237_v26 = vld [vmem:[#allocation44_spill] sm:$0xff]  ;;  %v5238_v35 = vld [vmem:[#allocation63_spill] sm:$0xff] }
 0x1c0   : > { %1373 = vrot.lane.b32.xlu1 %v3531_v39, %s2904_s17  ;;  %v1603_v17 = vsel %vm1591_vm10, %v1570_v48, %v1151_v55  ;;  %v4280_v48 = vld [vmem:[#allocation2 + $0x168] sm:$0xff] }
 0x1c1   : > { %1076 = vrot.lane.b32.xlu0 %v3531_v39, %s2901_s6 }
 0x1c2   : > { %v1251_v56 = vpop.permute.xlu1 %1250 }
 0x1c3   : > { %v954_v52 = vpop.permute.xlu0 %953  ;;  %v1635_v39 = vsel %vm1624_vm11, %v1602_v24, %v1251_v56  ;;  %v5227_v56 = vld [vmem:[#allocation37_spill] sm:$0xff] }
 0x1c4   : > { %1172 = vrot.lane.b32.xlu1 %v4189_v32, %s2902_s11 }
 0x1c5   : > { %1174 = vrot.lane.b32.xlu0 %v4184_v62, %s2902_s11 }
 0x1c6   : > { %v1253_v8 = vpop.permute.xlu1 %1252 }
 0x1c7   : > { %v1352_v57 = vpop.permute.xlu0 %1351  ;;  %v1636_v7 = vsel %vm1624_vm11, %v1603_v17, %v1253_v8  ;;  %v5229_v8 = vld [vmem:[#allocation40_spill] sm:$0xff] }
 0x1c8   : > { %v1668_v31 = vsel %vm1657_vm12, %v1635_v39, %v1352_v57  ;;  %1274 = vrot.lane.b32.xlu1 %v5219_v22, %s2903_s16  ;;  %v2878_v39 = vld [vmem:[#allocation2 + $0xa8] sm:$0xff] }
 0x1c9   : > { %977 = vrot.lane.b32.xlu0 %v5219_v22, %s2900_s28  ;;  %2795 = vmatprep.mubr.msk.f32.mxu0 %vm1695_vm13, %v1668_v31  ;;  %v5228_v57 = vld [vmem:[#allocation42_spill] sm:$0xff]  ;;  %v5230_v22 = vld [vmem:[#allocation61_spill] sm:$0xff] }
 0x1ca   : > { %v956_v21 = vpop.permute.xlu1 %955  ;;  %v1441_v31 = vsel %vm290_vm0, %v2878_v39, %v5228_v57 }
 0x1cb   : > { %v1055_v3 = vpop.permute.xlu0 %1054  ;;  %v1539_v55 = vsel %vm1525_vm8, %v1506_v40, %v956_v21  ;;  %v1474_v33 = vsel %vm1459_vm6, %v1441_v31, %v5230_v22  ;;  %v2883_v31 = vld [vmem:[#allocation2 + $0xc8] sm:$0xff] }
 0x1cc   : > { %1276 = vrot.lane.b32.xlu1 %v5220_v14, %s2903_s16  ;;  %v1507_v4 = vsel %vm1492_vm7, %v1474_v33, %v5231_v0  ;;  %v418_v33 = vld [vmem:[#allocation2 + $0x188] sm:$0xff] }
 0x1cd   : > { %1375 = vrot.lane.b32.xlu0 %v3524_v2, %s2904_s17  ;;  %v5243_v0 = vld [vmem:[#allocation66_spill] sm:$0xff] }
 0x1ce   : > { %v1354_v46 = vpop.permute.xlu1 %1353 }
 0x1cf   : > { %v1057_v20 = vpop.permute.xlu0 %1056  ;;  %v1669_v10 = vsel %vm1657_vm12, %v1636_v7, %v1354_v46 }
 0x1d0   : > { %979 = vrot.lane.b32.xlu1 %v5220_v14, %s2900_s28  ;;  %2796 = vmatmul.mubr.msk.f32.gmra.mxu0 %vm1695_vm13, %v1669_v10  ;;  %v1572_v6 = vsel %vm1558_vm9, %v1539_v55, %v1057_v20  ;;  %v4289_v10 = vld [vmem:[#allocation2 + $0x170] sm:$0xff]  ;;  %v5240_v55 = vld [vmem:[#allocation29_spill] sm:$0xff] }
 0x1d1   : > { %1078 = vrot.lane.b32.xlu0 %v3524_v2, %s2901_s6  ;;  %v1505_v2 = vsel %vm1492_vm7, %v1472_v38, %v3868_v37 }
 0x1d2   : > { %v1153_v28 = vpop.permute.xlu1 %1152  ;;  %v1538_v42 = vsel %vm1525_vm8, %v1505_v2, %v954_v52  ;;  %v5234_v2 = vld [vmem:[#allocation8_spill] sm:$0xff] }
 0x1d3   : > { %v1155_v15 = vpop.permute.xlu0 %1154  ;;  %v1571_v59 = vsel %vm1558_vm9, %v1538_v42, %v1055_v3 }
 0x1d4   : > { %1377 = vrot.lane.b32.xlu1 %v5221_v54, %s2904_s17  ;;  %v1604_v30 = vsel %vm1591_vm10, %v1571_v59, %v1153_v28  ;;  %v1605_v13 = vsel %vm1591_vm10, %v1572_v6, %v1155_v15  ;;  %v2881_v15 = vld [vmem:[#allocation2 + $0xb0] sm:$0xff]  ;;  %v5232_v28 = vld [vmem:[#allocation45_spill] sm:$0xff] }
 0x1d5   : > { %1080 = vrot.lane.b32.xlu0 %v5221_v54, %s2901_s6  ;;  %v1442_v58 = vsel %vm290_vm0, %v2881_v15, %v5232_v28 }
 0x1d6   : > { %v1255_v50 = vpop.permute.xlu1 %1254  ;;  %v1475_v54 = vsel %vm1459_vm6, %v1442_v58, %v5233_v5 }
 0x1d7   : > { %v958_v25 = vpop.permute.xlu0 %957  ;;  %v1637_v37 = vsel %vm1624_vm11, %v1604_v30, %v1255_v50  ;;  %v5235_v30 = vld [vmem:[#allocation25_spill] sm:$0xff] }
 0x1d8   : > { %1176 = vrot.lane.b32.xlu1 %v4237_v43, %s2902_s11  ;;  %v1540_v63 = vsel %vm1525_vm8, %v1507_v4, %v958_v25  ;;  %v1508_v25 = vsel %vm1492_vm7, %v1475_v54, %v5234_v2 }
 0x1d9   : > { %1178 = vrot.lane.b32.xlu0 %v4232_v60, %s2902_s11 }
 0x1da   : > { %v1257_v41 = vpop.permute.xlu1 %1256 }
 0x1db   : > { %v1356_v51 = vpop.permute.xlu0 %1355  ;;  %v1638_v18 = vsel %vm1624_vm11, %v1605_v13, %v1257_v41 }
 0x1dc   : > { %v1670_v45 = vsel %vm1657_vm12, %v1637_v37, %v1356_v51  ;;  %1278 = vrot.lane.b32.xlu1 %v5223_v49, %s2903_s16 }
 0x1dd   : > { %881 = vrot.lane.b32.xlu0 %v4232_v60, %s2899_s27  ;;  %2798 = vmatprep.mubr.msk.f32.mxu0 %vm1695_vm13, %v1670_v45 }
 0x1de   : > { %v960_v29 = vpop.permute.xlu1 %959 }
 0x1df   : > { %v1059_v34 = vpop.permute.xlu0 %1058  ;;  %v1541_v50 = vsel %vm1525_vm8, %v1508_v25, %v960_v29  ;;  %v5239_v29 = vld [vmem:[#allocation39_spill] sm:$0xff] }
 0x1e0   : > { %981 = vrot.lane.b32.xlu1 %v5223_v49, %s2900_s28  ;;  %v1573_v53 = vsel %vm1558_vm9, %v1540_v63, %v1059_v34  ;;  %v1443_v34 = vsel %vm290_vm0, %v2882_v9, %v5237_v26 }
 0x1e1   : > { %1280 = vrot.lane.b32.xlu0 %v5226_v44, %s2903_s16  ;;  %v1476_v40 = vsel %vm1459_vm6, %v1443_v34, %v5238_v35 }
 0x1e2   : > { %v1358_v52 = vpop.permute.xlu1 %1357 }
 0x1e3   : > { %v1061_v12 = vpop.permute.xlu0 %1060  ;;  %v1671_v16 = vsel %vm1657_vm12, %v1638_v18, %v1358_v52  ;;  %v5241_v52 = vld [vmem:[#allocation41_spill] sm:$0xff] }
 0x1e4   : > { %1379 = vrot.lane.b32.xlu1 %v5227_v56, %s2904_s17  ;;  %2799 = vmatmul.mubr.msk.f32.gmra.mxu0 %vm1695_vm13, %v1671_v16  ;;  %v1574_v59 = vsel %vm1558_vm9, %v1541_v50, %v1061_v12  ;;  %v1026_v50 = vrot.slane %v418_v33, 2 }
 0x1e5   : > { %983 = vrot.lane.b32.xlu0 %v5226_v44, %s2900_s28  ;;  %v1509_v44 = vsel %vm1492_vm7, %v1476_v40, %v5240_v55 }
 0x1e6   : > { %v1157_v24 = vpop.permute.xlu1 %1156 }
 0x1e7   : > { %v1159_v23 = vpop.permute.xlu0 %1158  ;;  %v1606_v14 = vsel %vm1591_vm10, %v1573_v53, %v1157_v24  ;;  %v419_v53 = vld [vmem:[#allocation2 + $0x190] sm:$0x3] }
 0x1e8   : > { %1082 = vrot.lane.b32.xlu1 %v5227_v56, %s2901_s6  ;;  %v1607_v37 = vsel %vm1591_vm10, %v1574_v59, %v1159_v23  ;;  %v417_v56 = vld [vmem:[#allocation2 + $0x180] sm:$0xff]  ;;  %v927_v15 = vrot.slane %v419_v53, 1 }
 0x1e9   : > { %1381 = vrot.lane.b32.xlu0 %v5229_v8, %s2904_s17 }
 0x1ea   : > { %v1259_v21 = vpop.permute.xlu1 %1258 }
 0x1eb   : > { %v962_v3 = vpop.permute.xlu0 %961  ;;  %v1639_v17 = vsel %vm1624_vm11, %v1606_v14, %v1259_v21  ;;  %v925_v21 = vrot.slane %v418_v33, 1  ;;  %v5244_v14 = vld [vmem:[#allocation77_spill] sm:$0xff] }
 0x1ec   : > { %1084 = vrot.lane.b32.xlu1 %v5229_v8, %s2901_s6  ;;  %v1542_v13 = vsel %vm1525_vm8, %v1509_v44, %v962_v3  ;;  %v5242_v8 = vld [vmem:[#allocation47_spill] sm:$0xff]  ;;  %v924_v3 = vrot.slane %v417_v56, 1 }
 0x1ed   : > { %1180 = vrot.lane.b32.xlu0 %v4280_v48, %s2902_s11  ;;  %v1444_v22 = vsel %vm290_vm0, %v2883_v31, %v5242_v8  ;;  %v928_v25 = vsel %vm471_vm3, %v925_v21, %v927_v15 }
 0x1ee   : > { %v1261_v46 = vpop.permute.xlu1 %1260  ;;  %v1477_v4 = vsel %vm1459_vm6, %v1444_v22, %v5243_v0  ;;  %v926_v5 = vsel %vm471_vm3, %v924_v3, %v925_v21  ;;  %v5250_v22 = vld [vmem:[#allocation10_spill] sm:$0xff] }
 0x1ef   : > { %v1360_v20 = vpop.permute.xlu0 %1359  ;;  %v1640_v45 = vsel %vm1624_vm11, %v1607_v37, %v1261_v46  ;;  %v2884_v37 = vld [vmem:[#allocation2 + $0xd8] sm:$0xff] }
 0x1f0   : > { %v1672_v7 = vsel %vm1657_vm12, %v1639_v17, %v1360_v20  ;;  %883 = vrot.lane.b32.xlu1 %v4280_v48, %s2899_s27  ;;  %v1510_v17 = vsel %vm1492_vm7, %v1477_v4, %v5244_v14  ;;  %v422_v4 = vld [vmem:[#allocation2 + $0x1a8] sm:$0x3] }
 0x1f1   : > { %1182 = vrot.lane.b32.xlu0 %v4289_v10, %s2902_s11  ;;  %2801 = vmatprep.mubr.msk.f32.mxu0 %vm1695_vm13, %v1672_v7 }
 0x1f2   : > { %v964_v42 = vpop.permute.xlu1 %963 }
 0x1f3   : > { %v1063_v38 = vpop.permute.xlu0 %1062  ;;  %v1543_v7 = vsel %vm1525_vm8, %v1510_v17, %v964_v42  ;;  %v1025_v42 = vrot.slane %v417_v56, 2 }
 0x1f4   : > { %1282 = vrot.lane.b32.xlu1 %v5235_v30, %s2903_s16  ;;  %v1575_v18 = vsel %vm1558_vm9, %v1542_v13, %v1063_v38 }
 0x1f5   : > { %885 = vrot.lane.b32.xlu0 %v4289_v10, %s2899_s27  ;;  %v1027_v26 = vsel %vm648_vm4, %v1025_v42, %v1026_v50  ;;  %v5251_v42 = vld [vmem:[#allocation48_spill] sm:$0xff] }
 0x1f6   : > { %v1362_v41 = vpop.permute.xlu1 %1361 }
 0x1f7   : > { %v1065_v51 = vpop.permute.xlu0 %1064  ;;  %v1673_v19 = vsel %vm1657_vm12, %v1640_v45, %v1362_v41  ;;  %v5246_v41 = vld [vmem:[#allocation65_spill] sm:$0xff] }
 0x1f8   : > { %985 = vrot.lane.b32.xlu1 %v5235_v30, %s2900_s28  ;;  %2802 = vmatmul.mubr.msk.f32.gmra.mxu0 %vm1695_vm13, %v1673_v19  ;;  %v1576_v46 = vsel %vm1558_vm9, %v1543_v7, %v1065_v51  ;;  %v5245_v51 = vld [vmem:[#allocation46_spill] sm:$0xff] }
 0x1f9   : > { %1284 = vrot.lane.b32.xlu0 %v5236_v1, %s2903_s16  ;;  %v1445_v45 = vsel %vm290_vm0, %v2884_v37, %v5245_v51  ;;  %v5253_v37 = vld [vmem:[#allocation30_spill] sm:$0xff] }
 0x1fa   : > { %v1161_v49 = vpop.permute.xlu1 %1160  ;;  %v1478_v19 = vsel %vm1459_vm6, %v1445_v45, %v5246_v41 }
 0x1fb   : > { %v1163_v61 = vpop.permute.xlu0 %1162  ;;  %v1608_v16 = vsel %vm1591_vm10, %v1575_v18, %v1161_v49  ;;  %v421_v18 = vld [vmem:[#allocation2 + $0x1a0] sm:$0xff] }
 0x1fc   : > { %1383 = vrot.lane.b32.xlu1 %v5239_v29, %s2904_s17  ;;  %v1609_v28 = vsel %vm1591_vm10, %v1576_v46, %v1163_v61  ;;  %v5247_v61 = vld [vmem:[#allocation7_spill] sm:$0xff]  ;;  %v1327_v14 = vrot.slane %v421_v18, 2  ;;  %v1228_v46 = vrot.slane %v422_v4, 1 }
 0x1fd   : > { %987 = vrot.lane.b32.xlu0 %v5236_v1, %s2900_s28  ;;  %v1028_v1 = vrot.slane %v419_v53, 2  ;;  %v1511_v49 = vsel %vm1492_vm7, %v1478_v19, %v5247_v61 }
 0x1fe   : > { %v1263_v12 = vpop.permute.xlu1 %1262 }
 0x1ff   : > { %v966_v6 = vpop.permute.xlu0 %965  ;;  %v1641_v23 = vsel %vm1624_vm11, %v1608_v16, %v1263_v12  ;;  %v1029_v55 = vsel %vm648_vm4, %v1026_v50, %v1028_v1  ;;  %v420_v12 = vld [vmem:[#allocation2 + $0x198] sm:$0xff] }
 0x200   : > { %1086 = vrot.lane.b32.xlu1 %v5239_v29, %s2901_s6  ;;  %v1544_v34 = vsel %vm1525_vm8, %v1511_v49, %v966_v6  ;;  %v2885_v6 = vld [vmem:[#allocation2 + $0xe0] sm:$0xff]  ;;  %v1326_v21 = vrot.slane %v420_v12, 2 }
 0x201   : > { %1385 = vrot.lane.b32.xlu0 %v5241_v52, %s2904_s17 }
 0x202   : > { %v1265_v39 = vpop.permute.xlu1 %1264 }
 0x203   : > { %v1364_v24 = vpop.permute.xlu0 %1363  ;;  %v1642_v54 = vsel %vm1624_vm11, %v1609_v28, %v1265_v39  ;;  %v1226_v39 = vrot.slane %v421_v18, 1 }
 0x204   : > { %v1674_v57 = vsel %vm1657_vm12, %v1641_v23, %v1364_v24  ;;  %1088 = vrot.lane.b32.xlu1 %v5241_v52, %s2901_s6  ;;  %v1225_v24 = vrot.slane %v420_v12, 1 }
 0x205   : > { %1184 = vrot.lane.b32.xlu0 %v417_v56, %s2902_s11  ;;  %2804 = vmatprep.mubr.msk.f32.mxu1 %vm1695_vm13, %v1674_v57  ;;  %v5249_v57 = vld [vmem:[#allocation68_spill] sm:$0xff] }
 0x206   : > { %v968_v20 = vpop.permute.xlu1 %967  ;;  %v1227_v53 = vsel %vm471_vm3, %v1225_v24, %v1226_v39 }
 0x207   : > { %v1067_v63 = vpop.permute.xlu0 %1066 }
 0x208   : > { %887 = vrot.lane.b32.xlu1 %v417_v56, %s2899_s27  ;;  %v1577_v40 = vsel %vm1558_vm9, %v1544_v34, %v1067_v63  ;;  %v5248_v56 = vld [vmem:[#allocation49_spill] sm:$0xff] }
 0x209   : > { %1186 = vrot.lane.b32.xlu0 %v418_v33, %s2902_s11  ;;  %v1446_v23 = vsel %vm290_vm0, %v2885_v6, %v5248_v56 }
 0x20a   : > { %v1366_v38 = vpop.permute.xlu1 %1365  ;;  %v1479_v31 = vsel %vm1459_vm6, %v1446_v23, %v5249_v57 }
 0x20b   : > { %v1069_v58 = vpop.permute.xlu0 %1068  ;;  %v1675_v2 = vsel %vm1657_vm12, %v1642_v54, %v1366_v38  ;;  %v1229_v54 = vsel %vm471_vm3, %v1226_v39, %v1228_v46  ;;  %v1329_v38 = vrot.slane %v422_v4, 2 }
 0x20c   : > { %1286 = vrot.lane.b32.xlu1 %v926_v5, %s2903_s16  ;;  %2805 = vmatmul.mubr.msk.f32.vlgmr.msra.gmra.mxu1 %vm1695_vm13, %v1675_v2 }
 0x20d   : > { %889 = vrot.lane.b32.xlu0 %v418_v33, %s2899_s27  ;;  %v1512_v33 = vsel %vm1492_vm7, %v1479_v31, %v5250_v22  ;;  %v1330_v41 = vsel %vm648_vm4, %v1327_v14, %v1329_v38  ;;  %s4692_s27 = scalar_lea.vmem %s5019_s4, %s2997_s21  ;;  %s2691_s21 = sshll.u32 %s5283_s19, 1 }
 0x20e   : > { %v1165_v30 = vpop.permute.xlu1 %1164  ;;  %v1545_v3 = vsel %vm1525_vm8, %v1512_v33, %v968_v20  ;;  %v1328_v20 = vsel %vm648_vm4, %v1326_v21, %v1327_v14  ;;  %s248_s30 = scalar_lea.vmem %s5018_s3, %s2691_s21  ;;  %s257_s8 = scalar_lea.vmem %s5020_s5, %s2691_s21 }
 0x20f   : > { %v1167_v59 = vpop.permute.xlu0 %1166  ;;  %v1610_v29 = vsel %vm1591_vm10, %v1577_v40, %v1165_v30  ;;  %v1578_v63 = vsel %vm1558_vm9, %v1545_v3, %v1069_v58 }
 0x210   : > { %989 = vrot.lane.b32.xlu1 %v926_v5, %s2900_s28  ;;  %v1611_v17 = vsel %vm1591_vm10, %v1578_v63, %v1167_v59  ;;  %v5252_v59 = vld [vmem:[#allocation67_spill] sm:$0xff]  ;;  %v5258_v63 = vld [vmem:[#allocation4_spill] sm:$0xff] }
 0x211   : > { %1288 = vrot.lane.b32.xlu0 %v928_v25, %s2903_s16 }
 0x212   : > { %v1267_v35 = vpop.permute.xlu1 %1266 }
 0x213   : > { %v970_v9 = vpop.permute.xlu0 %969  ;;  %v1643_v44 = vsel %vm1624_vm11, %v1610_v29, %v1267_v35  ;;  %v5254_v29 = vld [vmem:[#allocation51_spill] sm:$0xff] }
 0x214   : > { %1387 = vrot.lane.b32.xlu1 %v1027_v26, %s2904_s17 }
 0x215   : > { %991 = vrot.lane.b32.xlu0 %v928_v25, %s2900_s28  ;;  %v2886_v25 = vld [vmem:[#allocation2 + $0xf0] sm:$0xff] }
 0x216   : > { %v1269_v16 = vpop.permute.xlu1 %1268  ;;  %v1447_v50 = vsel %vm290_vm0, %v2886_v25, %v5251_v42 }
 0x217   : > { %v1368_v13 = vpop.permute.xlu0 %1367  ;;  %v1644_v15 = vsel %vm1624_vm11, %v1611_v17, %v1269_v16  ;;  %v1480_v30 = vsel %vm1459_vm6, %v1447_v50, %v5252_v59  ;;  %v5261_v50 = vld [vmem:[#allocation71_spill] sm:$0xff] }
 0x218   : > { %v1676_v52 = vsel %vm1657_vm12, %v1643_v44, %v1368_v13  ;;  %1090 = vrot.lane.b32.xlu1 %v1027_v26, %s2901_s6  ;;  %v1513_v51 = vsel %vm1492_vm7, %v1480_v30, %v5253_v37  ;;  %v5255_v13 = vld [vmem:[#allocation69_spill] sm:$0xff] }
 0x219   : > { %1389 = vrot.lane.b32.xlu0 %v1029_v55, %s2904_s17  ;;  %2807 = vmatprep.mubr.msk.f32.mxu1 %vm1695_vm13, %v1676_v52  ;;  %v1546_v19 = vsel %vm1525_vm8, %v1513_v51, %v970_v9  ;;  %v2887_v9 = vld [vmem:[#allocation2 + $0xf8] sm:$0xff]  ;;  %v5256_v52 = vld [vmem:[#allocation79_spill] sm:$0xff] }
 0x21a   : > { %v972_v0 = vpop.permute.xlu1 %971 }
 0x21b   : > { %v1071_v8 = vpop.permute.xlu0 %1070 }
 0x21c   : > { %1092 = vrot.lane.b32.xlu1 %v1029_v55, %s2901_s6  ;;  %v1579_v61 = vsel %vm1558_vm9, %v1546_v19, %v1071_v8  ;;  %v1448_v55 = vsel %vm290_vm0, %v2887_v9, %v5254_v29 }
 0x21d   : > { %1188 = vrot.lane.b32.xlu0 %v420_v12, %s2902_s11  ;;  %v1481_v12 = vsel %vm1459_vm6, %v1448_v55, %v5255_v13 }
 0x21e   : > { %v1370_v28 = vpop.permute.xlu1 %1369  ;;  %v1514_v16 = vsel %vm1492_vm7, %v1481_v12, %v5256_v52 }
 0x21f   : > { %v1073_v7 = vpop.permute.xlu0 %1072  ;;  %v1677_v5 = vsel %vm1657_vm12, %v1644_v15, %v1370_v28  ;;  %v1547_v23 = vsel %vm1525_vm8, %v1514_v16, %v972_v0  ;;  %v5257_v0 = vld [vmem:[#allocation50_spill] sm:$0xff] }
 0x220   : > { %1190 = vrot.lane.b32.xlu1 %v421_v18, %s2902_s11  ;;  %2808 = vmatmul.mubr.msk.f32.gmra.mxu1 %vm1695_vm13, %v1677_v5  ;;  %v1580_v24 = vsel %vm1558_vm9, %v1547_v23, %v1073_v7  ;;  %v1449_v3 = vsel %vm290_vm0, %v4093_v47, %v5257_v0 }
 0x221   : > { %1290 = vrot.lane.b32.xlu0 %v1227_v53, %s2903_s16  ;;  %v1482_v21 = vsel %vm1459_vm6, %v1449_v3, %v5258_v63  ;;  %v5259_v53 = vld [vmem:[#allocation78_spill] sm:$0xff] }
 0x222   : > { %v1169_v2 = vpop.permute.xlu1 %1168  ;;  %v1515_v14 = vsel %vm1492_vm7, %v1482_v21, %v5259_v53  ;;  %v5263_v53 = vld [vmem:[#allocation52_spill] sm:$0xff] }
 0x223   : > { %v1171_v58 = vpop.permute.xlu0 %1170  ;;  %v1612_v49 = vsel %vm1591_vm10, %v1579_v61, %v1169_v2  ;;  %v5260_v2 = vld [vmem:[#allocation53_spill] sm:$0xff] }
 0x224   : > { %1292 = vrot.lane.b32.xlu1 %v1229_v54, %s2903_s16  ;;  %v1613_v39 = vsel %vm1591_vm10, %v1580_v24, %v1171_v58  ;;  %v1450_v25 = vsel %vm290_vm0, %v4088_v11, %v5260_v2 }
 0x225   : > { %1391 = vrot.lane.b32.xlu0 %v1328_v20, %s2904_s17  ;;  %v1483_v59 = vsel %vm1459_vm6, %v1450_v25, %v5261_v50 }
 0x226   : > { %v1271_v1 = vpop.permute.xlu1 %1270 }
 0x227   : > { %v974_v45 = vpop.permute.xlu0 %973  ;;  %v1645_v26 = vsel %vm1624_vm11, %v1612_v49, %v1271_v1 }
 0x228   : > { %1393 = vrot.lane.b32.xlu1 %v1330_v41, %s2904_s17  ;;  %v1548_v7 = vsel %vm1525_vm8, %v1515_v14, %v974_v45  ;;  %v5262_v45 = vld [vmem:[#allocation81_spill] sm:$0xff]  ;;  %v1451_v14 = vsel %vm290_vm0, %v4141_v36, %v5263_v53  ;;  %v5268_v36 = vld [vmem:[#allocation83_spill] sm:$0xff] }
 0x229   : > { %v1516_v41 = vsel %vm1492_vm7, %v1483_v59, %v5262_v45 }
 0x22a   : > { %v1273_v40 = vpop.permute.xlu1 %1272 }
 0x22b   : > { %v1372_v34 = vpop.permute.xlu0 %1371  ;;  %v1646_v31 = vsel %vm1624_vm11, %v1613_v39, %v1273_v40 }
 0x22c   : > { %v1678_v35 = vsel %vm1657_vm12, %v1645_v26, %v1372_v34  ;;  %v4420_v44 = vpop.f32.mrf.mxu0 }
 0x22d   : > { %2810 = vmatprep.mubr.msk.f32.mxu1 %vm1695_vm13, %v1678_v35  ;;  %2196 = vst.msk [vmem:[%s4415_s23 + $0x8] sm:$0xff] %vm1459_vm6, %v4420_v44  ;;  %v2091_v47 = vmul.f32 %v4420_v44, %v4420_v44  ;;  %v2022_v11 = vsel %vm1459_vm6, %v4420_v44, 0.0  ;;  %v2229_v19 = vsel %vm2227_vm14, %v4420_v44, 0.0 }
 0x22e   : > { %v1862_v6 = vpop.f32.mrf.mxu0  ;;  %v976_v56 = vpop.permute.xlu1 %975 }
 0x22f   : > { %v1075_v18 = vpop.permute.xlu0 %1074  ;;  %2195 = vst.msk [vmem:[%s4415_s23] sm:$0xff] %vm1459_vm6, %v1862_v6  ;;  %2404 = vrot.lane.b32.xlu1 %v1862_v6, %s2905_s24  ;;  %v2090_v28 = vmul.f32 %v1862_v6, %v1862_v6  ;;  %v2021_v42 = vsel %vm1459_vm6, %v1862_v6, 0.0  ;;  %v2228_v37 = vsel %vm2227_vm14, %v1862_v6, 0.0  ;;  %v2123_v49 = vsel %vm1459_vm6, %v2091_v47, 0.0 }
 0x230   : > { %v1581_v15 = vsel %vm1558_vm9, %v1548_v7, %v1075_v18  ;;  %v2298_v26 = vsel %vm2227_vm14, %v2091_v47, 0.0  ;;  %v2023_v34 = vadd.f32 %v2022_v11, %v2021_v42  ;;  %v1549_v35 = vsel %vm1525_vm8, %v1516_v41, %v976_v56  ;;  %v5264_v7 = vld [vmem:[#allocation55_spill] sm:$0xff] }
 0x231   : > { %v2122_v30 = vsel %vm1459_vm6, %v2090_v28, 0.0  ;;  %v2297_v1 = vsel %vm2227_vm14, %v2090_v28, 0.0  ;;  %v2230_v55 = vadd.f32 %v2229_v19, %v2228_v37 }
 0x232   : > { %v1374_v8 = vpop.permute.xlu1 %1373  ;;  %v2124_v29 = vadd.f32 %v2123_v49, %v2122_v30  ;;  %v2299_v18 = vadd.f32 %v2298_v26, %v2297_v1 }
 0x233   : > { %v1077_v57 = vpop.permute.xlu0 %1076  ;;  %v1679_v22 = vsel %vm1657_vm12, %v1646_v31, %v1374_v8 }
 0x234   : > { %2811 = vmatmul.mubr.msk.f32.gmra.mxu1 %vm1695_vm13, %v1679_v22  ;;  %v1582_v52 = vsel %vm1558_vm9, %v1549_v35, %v1077_v57 }
 0x236   : > { %v1173_v4 = vpop.permute.xlu1 %1172 }
 0x237   : > { %v1175_v33 = vpop.permute.xlu0 %1174  ;;  %v1614_v5 = vsel %vm1591_vm10, %v1581_v15, %v1173_v4 }
 0x238   : > { %v1615_v23 = vsel %vm1591_vm10, %v1582_v52, %v1175_v33 }
 0x23a   : > { %v1275_v46 = vpop.permute.xlu1 %1274 }
 0x23b   : > { %v4445_v17 = vpop.permute.xlu0 %977  ;;  %v1647_v20 = vsel %vm1624_vm11, %v1614_v5, %v1275_v46  ;;  %v1452_v46 = vsel %vm290_vm0, %v4136_v27, %v5264_v7  ;;  %v5265_v5 = vld [vmem:[#allocation70_spill] sm:$0xff]  ;;  %v5270_v7 = vld [vmem:[#allocation57_spill] sm:$0xff] }
 0x23e   : > { %v1277_v38 = vpop.permute.xlu1 %1276 }
 0x23f   : > { %v1376_v58 = vpop.permute.xlu0 %1375  ;;  %v1648_v8 = vsel %vm1624_vm11, %v1615_v23, %v1277_v38  ;;  %v5267_v38 = vld [vmem:[#allocation80_spill] sm:$0xff] }
 0x240   : > { %v1680_v54 = vsel %vm1657_vm12, %v1647_v20, %v1376_v58  ;;  %v4463_v51 = vpop.f32.mrf.mxu0  ;;  %v1484_v20 = vsel %vm1459_vm6, %v1451_v14, %v5265_v5  ;;  %v5266_v58 = vld [vmem:[#allocation73_spill] sm:$0xff]  ;;  %v5272_v5 = vld [vmem:[#allocation75_spill] sm:$0xff] }
 0x241   : > { %2813 = vmatprep.mubr.msk.f32.mxu1 %vm1695_vm13, %v1680_v54  ;;  %2198 = vst.msk [vmem:[%s4415_s23 + $0x18] sm:$0xff] %vm1459_vm6, %v4463_v51  ;;  %v2093_v15 = vmul.f32 %v4463_v51, %v4463_v51  ;;  %v1485_v47 = vsel %vm1459_vm6, %v1452_v46, %v5266_v58  ;;  %v1517_v2 = vsel %vm1492_vm7, %v1484_v20, %v5267_v38  ;;  %v2026_v42 = vsel %vm1459_vm6, %v4463_v51, 0.0  ;;  %v5273_v58 = vld [vmem:[#allocation82_spill] sm:$0xff] }
 0x242   : > { %v1872_v40 = vpop.f32.mrf.mxu0  ;;  %v980_v9 = vpop.permute.xlu1 %979  ;;  %v1518_v25 = vsel %vm1492_vm7, %v1485_v47, %v5268_v36  ;;  %v1550_v27 = vsel %vm1525_vm8, %v1517_v2, %v4445_v17  ;;  %v2233_v50 = vsel %vm2227_vm14, %v4463_v51, 0.0  ;;  %v1454_v46 = vsel %vm290_vm0, %v4184_v62, %v5270_v7 }
 0x243   : > { %v1079_v61 = vpop.permute.xlu0 %1078  ;;  %v2024_v13 = vsel %vm1459_vm6, %v1872_v40, 0.0  ;;  %v2092_v12 = vmul.f32 %v1872_v40, %v1872_v40  ;;  %2197 = vst.msk [vmem:[%s4415_s23 + $0x10] sm:$0xff] %vm1459_vm6, %v1872_v40  ;;  %2408 = vrot.lane.b32.xlu1 %v1872_v40, %s2905_s24  ;;  %v2231_v6 = vsel %vm2227_vm14, %v1872_v40, 0.0  ;;  %v1551_v59 = vsel %vm1525_vm8, %v1518_v25, %v980_v9 }
 0x244   : > { %v2025_v16 = vadd.f32 %v2024_v13, %v2023_v34  ;;  %v2232_v24 = vadd.f32 %v2231_v6, %v2230_v55  ;;  %v2127_v37 = vsel %vm1459_vm6, %v2093_v15, 0.0  ;;  %v2302_v45 = vsel %vm2227_vm14, %v2093_v15, 0.0  ;;  %v5271_v15 = vld [vmem:[#allocation72_spill] sm:$0xff] }
 0x245   : > { %v2125_v56 = vsel %vm1459_vm6, %v2092_v12, 0.0  ;;  %v2300_v39 = vsel %vm2227_vm14, %v2092_v12, 0.0  ;;  %v1583_v41 = vsel %vm1558_vm9, %v1550_v27, %v1079_v61  ;;  %v1487_v20 = vsel %vm1459_vm6, %v1454_v46, %v5272_v5 }
 0x246   : > { %v2126_v22 = vadd.f32 %v2125_v56, %v2124_v29  ;;  %v2301_v4 = vadd.f32 %v2300_v39, %v2299_v18  ;;  %v1378_v0 = vpop.permute.xlu1 %1377  ;;  %v2027_v49 = vadd.f32 %v2026_v42, %v2025_v16  ;;  %v2234_v34 = vadd.f32 %v2233_v50, %v2232_v24 }
 0x247   : > { %v1081_v31 = vpop.permute.xlu0 %1080  ;;  %v1681_v3 = vsel %vm1657_vm12, %v1648_v8, %v1378_v0 }
 0x248   : > { %2814 = vmatmul.mubr.msk.f32.gmra.mxu1 %vm1695_vm13, %v1681_v3  ;;  %v1584_v11 = vsel %vm1558_vm9, %v1551_v59, %v1081_v31  ;;  %v2128_v26 = vadd.f32 %v2127_v37, %v2126_v22  ;;  %v2303_v61 = vadd.f32 %v2302_v45, %v2301_v4 }
 0x24a   : > { %v1177_v63 = vpop.permute.xlu1 %1176 }
 0x24b   : > { %v1179_v57 = vpop.permute.xlu0 %1178  ;;  %v1616_v19 = vsel %vm1591_vm10, %v1583_v41, %v1177_v63  ;;  %v5269_v63 = vld [vmem:[#allocation54_spill] sm:$0xff] }
 0x24c   : > { %v1617_v55 = vsel %vm1591_vm10, %v1584_v11, %v1179_v57 }
 0x24e   : > { %v1279_v33 = vpop.permute.xlu1 %1278 }
 0x24f   : > { %v4490_v21 = vpop.permute.xlu0 %881  ;;  %v1649_v40 = vsel %vm1624_vm11, %v1616_v19, %v1279_v33  ;;  %v1453_v33 = vsel %vm290_vm0, %v4189_v32, %v5269_v63 }
 0x250   : > { %v1520_v32 = vsel %vm1492_vm7, %v1487_v20, %v4490_v21 }
 0x252   : > { %v982_v54 = vpop.permute.xlu1 %981 }
 0x253   : > { %v1281_v28 = vpop.permute.xlu0 %1280 }
 0x254   : > { %v4515_v30 = vpop.f32.mrf.mxu0  ;;  %v1650_v52 = vsel %vm1624_vm11, %v1617_v55, %v1281_v28  ;;  %v1486_v28 = vsel %vm1459_vm6, %v1453_v33, %v5271_v15  ;;  %v5274_v33 = vld [vmem:[#allocation56_spill] sm:$0xff] }
 0x255   : > { %2200 = vst.msk [vmem:[%s4415_s23 + $0x28] sm:$0xff] %vm1459_vm6, %v4515_v30  ;;  %v2095_v53 = vmul.f32 %v4515_v30, %v4515_v30  ;;  %v1519_v47 = vsel %vm1492_vm7, %v1486_v28, %v5273_v58  ;;  %v2030_v62 = vsel %vm1459_vm6, %v4515_v30, 0.0  ;;  %v2237_v27 = vsel %vm2227_vm14, %v4515_v30, 0.0 }
 0x256   : > { %v1882_v1 = vpop.f32.mrf.mxu0  ;;  %v1380_v35 = vpop.permute.xlu1 %1379  ;;  %v1552_v2 = vsel %vm1525_vm8, %v1519_v47, %v982_v54 }
 0x257   : > { %v4524_v17 = vpop.permute.xlu0 %983  ;;  %v2028_v9 = vsel %vm1459_vm6, %v1882_v1, 0.0  ;;  %v2094_v29 = vmul.f32 %v1882_v1, %v1882_v1  ;;  %2199 = vst.msk [vmem:[%s4415_s23 + $0x20] sm:$0xff] %vm1459_vm6, %v1882_v1  ;;  %2412 = vrot.lane.b32.xlu1 %v1882_v1, %s2905_s24  ;;  %v2235_v12 = vsel %vm2227_vm14, %v1882_v1, 0.0  ;;  %v1682_v18 = vsel %vm1657_vm12, %v1649_v40, %v1380_v35 }
 0x258   : > { %v2029_v13 = vadd.f32 %v2028_v9, %v2027_v49  ;;  %v2236_v6 = vadd.f32 %v2235_v12, %v2234_v34  ;;  %2816 = vmatprep.mubr.msk.f32.mxu1 %vm1695_vm13, %v1682_v18  ;;  %v2131_v25 = vsel %vm1459_vm6, %v2095_v53, 0.0  ;;  %v2306_v42 = vsel %vm2227_vm14, %v2095_v53, 0.0 }
 0x259   : > { %v2129_v16 = vsel %vm1459_vm6, %v2094_v29, 0.0  ;;  %v2304_v23 = vsel %vm2227_vm14, %v2094_v29, 0.0  ;;  %v1553_v29 = vsel %vm1525_vm8, %v1520_v32, %v4524_v17  ;;  %v1455_v53 = vsel %vm290_vm0, %v4237_v43, %v5274_v33 }
 0x25a   : > { %v2130_v24 = vadd.f32 %v2129_v16, %v2128_v26  ;;  %v2305_v39 = vadd.f32 %v2304_v23, %v2303_v61  ;;  %v1083_v8 = vpop.permute.xlu1 %1082  ;;  %v2031_v59 = vadd.f32 %v2030_v62, %v2029_v13  ;;  %v2238_v41 = vadd.f32 %v2237_v27, %v2236_v6 }
 0x25b   : > { %v1382_v56 = vpop.permute.xlu0 %1381  ;;  %v1585_v21 = vsel %vm1558_vm9, %v1552_v2, %v1083_v8 }
 0x25c   : > { %v1683_v31 = vsel %vm1657_vm12, %v1650_v52, %v1382_v56  ;;  %v2132_v19 = vadd.f32 %v2131_v25, %v2130_v24  ;;  %v2307_v49 = vadd.f32 %v2306_v42, %v2305_v39 }
 0x25d   : > { %2817 = vmatmul.mubr.msk.f32.gmra.mxu1 %vm1695_vm13, %v1683_v31 }
 0x25e   : > { %v1085_v4 = vpop.permute.xlu1 %1084 }
 0x25f   : > { %v1181_v22 = vpop.permute.xlu0 %1180  ;;  %v1586_v18 = vsel %vm1558_vm9, %v1553_v29, %v1085_v4 }
 0x260   : > { %v1618_v26 = vsel %vm1591_vm10, %v1585_v21, %v1181_v22 }
 0x262   : > { %v4541_v3 = vpop.permute.xlu1 %883 }
 0x263   : > { %v1183_v0 = vpop.permute.xlu0 %1182 }
 0x264   : > { %v1619_v16 = vsel %vm1591_vm10, %v1586_v18, %v1183_v0 }
 0x266   : > { %v1283_v14 = vpop.permute.xlu1 %1282 }
 0x267   : > { %v4543_v57 = vpop.permute.xlu0 %885  ;;  %v1651_v61 = vsel %vm1624_vm11, %v1618_v26, %v1283_v14 }
 0x268   : > { %v4559_v38 = vpop.f32.mrf.mxu0 }
 0x269   : > { %2202 = vst.msk [vmem:[%s4415_s23 + $0x38] sm:$0xff] %vm1459_vm6, %v4559_v38  ;;  %v2097_v8 = vmul.f32 %v4559_v38, %v4559_v38  ;;  %v2034_v0 = vsel %vm1459_vm6, %v4559_v38, 0.0  ;;  %v2241_v7 = vsel %vm2227_vm14, %v4559_v38, 0.0 }
 0x26a   : > { %v1892_v50 = vpop.f32.mrf.mxu0  ;;  %v4573_v37 = vpop.permute.xlu1 %985 }
 0x26b   : > { %v1285_v36 = vpop.permute.xlu0 %1284  ;;  %v2032_v54 = vsel %vm1459_vm6, %v1892_v50, 0.0  ;;  %v2096_v45 = vmul.f32 %v1892_v50, %v1892_v50  ;;  %2201 = vst.msk [vmem:[%s4415_s23 + $0x30] sm:$0xff] %vm1459_vm6, %v1892_v50  ;;  %2416 = vrot.lane.b32.xlu1 %v1892_v50, %s2905_s24  ;;  %v2239_v1 = vsel %vm2227_vm14, %v1892_v50, 0.0  ;;  %v2135_v14 = vsel %vm1459_vm6, %v2097_v8, 0.0 }
 0x26c   : > { %v2033_v11 = vadd.f32 %v2032_v54, %v2031_v59  ;;  %v2240_v35 = vadd.f32 %v2239_v1, %v2238_v41  ;;  %v1652_v6 = vsel %vm1624_vm11, %v1619_v16, %v1285_v36  ;;  %v2310_v5 = vsel %vm2227_vm14, %v2097_v8, 0.0  ;;  %v5275_v36 = vld [vmem:[#allocation74_spill] sm:$0xff]  ;;  %v5281_v8 = vld [vmem:[#allocation28_spill] sm:$0xff] }
 0x26d   : > { %v2133_v34 = vsel %vm1459_vm6, %v2096_v45, 0.0  ;;  %v2308_v40 = vsel %vm2227_vm14, %v2096_v45, 0.0  ;;  %v1488_v25 = vsel %vm1459_vm6, %v1455_v53, %v5275_v36 }
 0x26e   : > { %v2134_v55 = vadd.f32 %v2133_v34, %v2132_v19  ;;  %v2309_v13 = vadd.f32 %v2308_v40, %v2307_v49  ;;  %v1384_v12 = vpop.permute.xlu1 %1383  ;;  %v2035_v15 = vadd.f32 %v2034_v0, %v2033_v11  ;;  %v2242_v47 = vadd.f32 %v2241_v7, %v2240_v35  ;;  %v5276_v11 = vld [vmem:[#allocation59_spill] sm:$0xff]  ;;  %v5277_v49 = vld [vmem:[#allocation76_spill] sm:$0xff] }
 0x26f   : > { %v988_v9 = vpop.permute.xlu0 %987  ;;  %v1684_v52 = vsel %vm1657_vm12, %v1651_v61, %v1384_v12  ;;  %v1521_v21 = vsel %vm1492_vm7, %v1488_v25, %v4541_v3  ;;  %v1456_v19 = vsel %vm290_vm0, %v4232_v60, %v5276_v11 }
 0x270   : > { %2819 = vmatprep.mubr.msk.f32.mxu1 %vm1695_vm13, %v1684_v52  ;;  %v2136_v43 = vadd.f32 %v2135_v14, %v2134_v55  ;;  %v2311_v62 = vadd.f32 %v2310_v5, %v2309_v13  ;;  %v1554_v1 = vsel %vm1525_vm8, %v1521_v21, %v4573_v37  ;;  %v1489_v26 = vsel %vm1459_vm6, %v1456_v19, %v5277_v49 }
 0x271   : > { %v1522_v35 = vsel %vm1492_vm7, %v1489_v26, %v4543_v57 }
 0x272   : > { %v1087_v17 = vpop.permute.xlu1 %1086  ;;  %v1555_v29 = vsel %vm1525_vm8, %v1522_v35, %v988_v9 }
 0x273   : > { %v1386_v23 = vpop.permute.xlu0 %1385  ;;  %v1587_v34 = vsel %vm1558_vm9, %v1554_v1, %v1087_v17  ;;  %v5279_v17 = vld [vmem:[#allocation60_spill] sm:$0xff] }
 0x274   : > { %v1685_v56 = vsel %vm1657_vm12, %v1652_v6, %v1386_v23  ;;  %v5278_v23 = vld [vmem:[#allocation58_spill] sm:$0xff] }
 0x275   : > { %2820 = vmatmul.mubr.msk.f32.gmra.mxu1 %vm1695_vm13, %v1685_v56  ;;  %v1457_v56 = vsel %vm290_vm0, %v4280_v48, %v5278_v23 }
 0x276   : > { %v1089_v39 = vpop.permute.xlu1 %1088 }
 0x277   : > { %v1185_v24 = vpop.permute.xlu0 %1184  ;;  %v1588_v60 = vsel %vm1558_vm9, %v1555_v29, %v1089_v39  ;;  %v5280_v39 = vld [vmem:[#allocation3_spill] sm:$0xff] }
 0x278   : > { %v1620_v3 = vsel %vm1591_vm10, %v1587_v34, %v1185_v24  ;;  %v1458_v24 = vsel %vm290_vm0, %v4289_v10, %v5279_v17  ;;  %vm2193_vm0 = vcmask 58368  }
 0x279   : > { %v1491_v0 = vsel %vm1459_vm6, %v1458_v24, %v5281_v8 }
 0x27a   : > { %v888_v22 = vpop.permute.xlu1 %887 }
 0x27b   : > { %v1187_v31 = vpop.permute.xlu0 %1186 }
 0x27c   : > { %v4596_v4 = vpop.f32.mrf.mxu0  ;;  %v1621_v13 = vsel %vm1591_vm10, %v1588_v60, %v1187_v31  ;;  %v1490_v31 = vsel %vm1459_vm6, %v1457_v56, %v5280_v39 }
 0x27d   : > { %2204 = vst.msk [vmem:[%s4415_s23 + $0x48] sm:$0xff] %vm1459_vm6, %v4596_v4  ;;  %v2099_v9 = vmul.f32 %v4596_v4, %v4596_v4  ;;  %v1523_v53 = vsel %vm1492_vm7, %v1490_v31, %v888_v22  ;;  %v2038_v14 = vsel %vm1459_vm6, %v4596_v4, 0.0  ;;  %v2245_v7 = vsel %vm2227_vm14, %v4596_v4, 0.0 }
 0x27e   : > { %v1902_v46 = vpop.f32.mrf.mxu0  ;;  %v1287_v28 = vpop.permute.xlu1 %1286 }
 0x27f   : > { %v4603_v63 = vpop.permute.xlu0 %889  ;;  %v2036_v20 = vsel %vm1459_vm6, %v1902_v46, 0.0  ;;  %v2098_v58 = vmul.f32 %v1902_v46, %v1902_v46  ;;  %2203 = vst.msk [vmem:[%s4415_s23 + $0x40] sm:$0xff] %vm1459_vm6, %v1902_v46  ;;  %2420 = vrot.lane.b32.xlu1 %v1902_v46, %s2905_s24  ;;  %v2243_v2 = vsel %vm2227_vm14, %v1902_v46, 0.0  ;;  %v1653_v61 = vsel %vm1624_vm11, %v1620_v3, %v1287_v28 }
 0x280   : > { %v2037_v32 = vadd.f32 %v2036_v20, %v2035_v15  ;;  %v2244_v42 = vadd.f32 %v2243_v2, %v2242_v47  ;;  %v2139_v48 = vsel %vm1459_vm6, %v2099_v9, 0.0  ;;  %v2314_v46 = vsel %vm2227_vm14, %v2099_v9, 0.0 }
 0x281   : > { %v2137_v27 = vsel %vm1459_vm6, %v2098_v58, 0.0  ;;  %v2312_v50 = vsel %vm2227_vm14, %v2098_v58, 0.0 }
 0x282   : > { %v2138_v54 = vadd.f32 %v2137_v27, %v2136_v43  ;;  %v2313_v45 = vadd.f32 %v2312_v50, %v2311_v62  ;;  %v990_v41 = vpop.permute.xlu1 %989  ;;  %v2039_v5 = vadd.f32 %v2038_v14, %v2037_v32  ;;  %v2246_v22 = vadd.f32 %v2245_v7, %v2244_v42 }
 0x283   : > { %v1289_v59 = vpop.permute.xlu0 %1288  ;;  %v1556_v15 = vsel %vm1525_vm8, %v1523_v53, %v990_v41 }
 0x284   : > { %v1654_v12 = vsel %vm1624_vm11, %v1621_v13, %v1289_v59  ;;  %v2140_v2 = vadd.f32 %v2139_v48, %v2138_v54  ;;  %v2315_v27 = vadd.f32 %v2314_v46, %v2313_v45  ;;  %v1524_v54 = vsel %vm1492_vm7, %v1491_v0, %v4603_v63 }
 0x286   : > { %v1388_v55 = vpop.permute.xlu1 %1387 }
 0x287   : > { %v992_v40 = vpop.permute.xlu0 %991  ;;  %v1686_v37 = vsel %vm1657_vm12, %v1653_v61, %v1388_v55 }
 0x288   : > { %2822 = vmatprep.mubr.msk.f32.mxu1 %vm1695_vm13, %v1686_v37  ;;  %v1557_v45 = vsel %vm1525_vm8, %v1524_v54, %v992_v40 }
 0x28a   : > { %v1091_v52 = vpop.permute.xlu1 %1090 }
 0x28b   : > { %v1390_v18 = vpop.permute.xlu0 %1389  ;;  %v1589_v58 = vsel %vm1558_vm9, %v1556_v15, %v1091_v52 }
 0x28c   : > { %v1687_v57 = vsel %vm1657_vm12, %v1654_v12, %v1390_v18 }
 0x28d   : > { %2823 = vmatmul.mubr.msk.f32.gmra.mxu1 %vm1695_vm13, %v1687_v57 }
 0x28e   : > { %v1093_v6 = vpop.permute.xlu1 %1092 }
 0x28f   : > { %v1189_v16 = vpop.permute.xlu0 %1188  ;;  %v1590_v49 = vsel %vm1558_vm9, %v1557_v45, %v1093_v6 }
 0x290   : > { %v4655_v33 = vpop.f32.mrf.mxu0  ;;  %v1622_v62 = vsel %vm1591_vm10, %v1589_v58, %v1189_v16 }
 0x291   : > { %2206 = vst.msk [vmem:[%s4415_s23 + $0x58] sm:$0xff] %vm1459_vm6, %v4655_v33  ;;  %v2101_v40 = vmul.f32 %v4655_v33, %v4655_v33  ;;  %v2042_v61 = vsel %vm1459_vm6, %v4655_v33, 0.0  ;;  %v2249_v60 = vsel %vm2227_vm14, %v4655_v33, 0.0 }
 0x292   : > { %v1912_v28 = vpop.f32.mrf.mxu0  ;;  %v1191_v20 = vpop.permute.xlu1 %1190 }
 0x293   : > { %v1291_v10 = vpop.permute.xlu0 %1290  ;;  %v2040_v47 = vsel %vm1459_vm6, %v1912_v28, 0.0  ;;  %v2100_v43 = vmul.f32 %v1912_v28, %v1912_v28  ;;  %2205 = vst.msk [vmem:[%s4415_s23 + $0x50] sm:$0xff] %vm1459_vm6, %v1912_v28  ;;  %2424 = vrot.lane.b32.xlu1 %v1912_v28, %s2905_s24  ;;  %v2247_v25 = vsel %vm2227_vm14, %v1912_v28, 0.0  ;;  %v1623_v26 = vsel %vm1591_vm10, %v1590_v49, %v1191_v20 }
 0x294   : > { %v2041_v36 = vadd.f32 %v2040_v47, %v2039_v5  ;;  %v1655_v32 = vsel %vm1624_vm11, %v1622_v62, %v1291_v10  ;;  %v2248_v50 = vadd.f32 %v2247_v25, %v2246_v22  ;;  %v2143_v55 = vsel %vm1459_vm6, %v2101_v40, 0.0 }
 0x295   : > { %v2141_v42 = vsel %vm1459_vm6, %v2100_v43, 0.0  ;;  %v2316_v59 = vsel %vm2227_vm14, %v2100_v43, 0.0  ;;  %v2318_v12 = vsel %vm2227_vm14, %v2101_v40, 0.0 }
 0x296   : > { %v2142_v41 = vadd.f32 %v2141_v42, %v2140_v2  ;;  %v2317_v11 = vadd.f32 %v2316_v59, %v2315_v27  ;;  %v1293_v1 = vpop.permute.xlu1 %1292  ;;  %v2043_v13 = vadd.f32 %v2042_v61, %v2041_v36  ;;  %v2250_v52 = vadd.f32 %v2249_v60, %v2248_v50 }
 0x297   : > { %v1392_v21 = vpop.permute.xlu0 %1391  ;;  %v1656_v34 = vsel %vm1624_vm11, %v1623_v26, %v1293_v1 }
 0x298   : > { %v1688_v19 = vsel %vm1657_vm12, %v1655_v32, %v1392_v21  ;;  %v2144_v16 = vadd.f32 %v2143_v55, %v2142_v41  ;;  %v2319_v23 = vadd.f32 %v2318_v12, %v2317_v11 }
 0x299   : > { %2825 = vmatprep.mubr.msk.f32.mxu1 %vm1695_vm13, %v1688_v19 }
 0x29a   : > { %v1394_v35 = vpop.permute.xlu1 %1393 }
 0x29b   : > { %v1689_v3 = vsel %vm1657_vm12, %v1656_v34, %v1394_v35 }
 0x29c   : > { %2826 = vmatmul.mubr.msk.f32.gmra.mxu1 %vm1695_vm13, %v1689_v3 }
 0x2a1   : > { %v2405_v63 = vpop.permute.xlu1 %2404 }
 0x2a2   : > { %2500 = vst.msk [vmem:[%s4692_s27] sm:$0xff] %vm1459_vm6, %v2405_v63 }
 0x2a4   : > { %v4698_v29 = vpop.f32.mrf.mxu0 }
 0x2a5   : > { %2208 = vst.msk [vmem:[%s4415_s23 + $0x68] sm:$0xff] %vm1459_vm6, %v4698_v29  ;;  %v2103_v0 = vmul.f32 %v4698_v29, %v4698_v29  ;;  %v2046_v14 = vsel %vm1459_vm6, %v4698_v29, 0.0  ;;  %v2253_v7 = vsel %vm2227_vm14, %v4698_v29, 0.0 }
 0x2a6   : > { %v1922_v37 = vpop.f32.mrf.mxu0 }
 0x2a7   : > { %v2044_v18 = vsel %vm1459_vm6, %v1922_v37, 0.0  ;;  %v2102_v57 = vmul.f32 %v1922_v37, %v1922_v37  ;;  %2207 = vst.msk [vmem:[%s4415_s23 + $0x60] sm:$0xff] %vm1459_vm6, %v1922_v37  ;;  %2428 = vrot.lane.b32.xlu1 %v1922_v37, %s2905_s24  ;;  %v2251_v6 = vsel %vm2227_vm14, %v1922_v37, 0.0  ;;  %v2147_v48 = vsel %vm1459_vm6, %v2103_v0, 0.0 }
 0x2a8   : > { %v2045_v9 = vadd.f32 %v2044_v18, %v2043_v13  ;;  %v2252_v17 = vadd.f32 %v2251_v6, %v2250_v52  ;;  %v2322_v15 = vsel %vm2227_vm14, %v2103_v0, 0.0 }
 0x2a9   : > { %v2145_v56 = vsel %vm1459_vm6, %v2102_v57, 0.0  ;;  %v2320_v24 = vsel %vm2227_vm14, %v2102_v57, 0.0 }
 0x2aa   : > { %v2146_v39 = vadd.f32 %v2145_v56, %v2144_v16  ;;  %v2321_v31 = vadd.f32 %v2320_v24, %v2319_v23  ;;  %v2047_v46 = vadd.f32 %v2046_v14, %v2045_v9  ;;  %v2254_v22 = vadd.f32 %v2253_v7, %v2252_v17 }
 0x2ac   : > { %v2148_v58 = vadd.f32 %v2147_v48, %v2146_v39  ;;  %v2323_v43 = vadd.f32 %v2322_v15, %v2321_v31 }
 0x2b5   : > { %v2409_v8 = vpop.permute.xlu1 %2408 }
 0x2b6   : > { %2502 = vst.msk [vmem:[%s4692_s27 + $0x10] sm:$0xff] %vm1459_vm6, %v2409_v8 }
 0x2b8   : > { %v4720_v53 = vpop.f32.mrf.mxu0 }
 0x2b9   : > { %2210 = vst.msk [vmem:[%s4415_s23 + $0x78] sm:$0xff] %vm1459_vm6, %v4720_v53  ;;  %v2105_v42 = vmul.f32 %v4720_v53, %v4720_v53  ;;  %v2050_v59 = vsel %vm1459_vm6, %v4720_v53, 0.0  ;;  %v2257_v54 = vsel %vm2227_vm14, %v4720_v53, 0.0 }
 0x2ba   : > { %v1932_v10 = vpop.f32.mrf.mxu0 }
 0x2bb   : > { %v2048_v28 = vsel %vm1459_vm6, %v1932_v10, 0.0  ;;  %v2104_v5 = vmul.f32 %v1932_v10, %v1932_v10  ;;  %2209 = vst.msk [vmem:[%s4415_s23 + $0x70] sm:$0xff] %vm1459_vm6, %v1932_v10  ;;  %2432 = vrot.lane.b32.xlu1 %v1932_v10, %s2905_s24  ;;  %v2255_v47 = vsel %vm2227_vm14, %v1932_v10, 0.0  ;;  %v2151_v21 = vsel %vm1459_vm6, %v2105_v42, 0.0 }
 0x2bc   : > { %v2049_v20 = vadd.f32 %v2048_v28, %v2047_v46  ;;  %v2256_v62 = vadd.f32 %v2255_v47, %v2254_v22  ;;  %v2326_v19 = vsel %vm2227_vm14, %v2105_v42, 0.0 }
 0x2bd   : > { %v2149_v2 = vsel %vm1459_vm6, %v2104_v5, 0.0  ;;  %v2324_v36 = vsel %vm2227_vm14, %v2104_v5, 0.0 }
 0x2be   : > { %v2150_v25 = vadd.f32 %v2149_v2, %v2148_v58  ;;  %v2325_v27 = vadd.f32 %v2324_v36, %v2323_v43  ;;  %v2051_v41 = vadd.f32 %v2050_v59, %v2049_v20  ;;  %v2258_v1 = vadd.f32 %v2257_v54, %v2256_v62 }
 0x2c0   : > { %v2152_v26 = vadd.f32 %v2151_v21, %v2150_v25  ;;  %v2327_v34 = vadd.f32 %v2326_v19, %v2325_v27 }
 0x2c9   : > { %v2413_v32 = vpop.permute.xlu1 %2412 }
 0x2ca   : > { %2504 = vst.msk [vmem:[%s4692_s27 + $0x20] sm:$0xff] %vm1459_vm6, %v2413_v32 }
 0x2cc   : > { %v4742_v50 = vpop.f32.mrf.mxu1 }
 0x2cd   : > { %2212 = vst.msk [vmem:[%s4415_s23 + $0x88] sm:$0xff] %vm1459_vm6, %v4742_v50  ;;  %v2107_v13 = vmul.f32 %v4742_v50, %v4742_v50  ;;  %v2054_v18 = vsel %vm1459_vm6, %v4742_v50, 0.0  ;;  %v2261_v52 = vsel %vm2227_vm14, %v4742_v50, 0.0 }
 0x2ce   : > { %v1942_v11 = vpop.f32.mrf.mxu1 }
 0x2cf   : > { %v2052_v45 = vsel %vm1459_vm6, %v1942_v11, 0.0  ;;  %v2106_v49 = vmul.f32 %v1942_v11, %v1942_v11  ;;  %2211 = vst.msk [vmem:[%s4415_s23 + $0x80] sm:$0xff] %vm1459_vm6, %v1942_v11  ;;  %2436 = vrot.lane.b32.xlu1 %v1942_v11, %s2905_s24  ;;  %v2259_v3 = vsel %vm2227_vm14, %v1942_v11, 0.0  ;;  %v2155_v57 = vsel %vm1459_vm6, %v2107_v13, 0.0 }
 0x2d0   : > { %v2053_v35 = vadd.f32 %v2052_v45, %v2051_v41  ;;  %v2260_v40 = vadd.f32 %v2259_v3, %v2258_v1  ;;  %v2330_v6 = vsel %vm2227_vm14, %v2107_v13, 0.0 }
 0x2d1   : > { %v2153_v63 = vsel %vm1459_vm6, %v2106_v49, 0.0  ;;  %v2328_v61 = vsel %vm2227_vm14, %v2106_v49, 0.0 }
 0x2d2   : > { %v2154_v55 = vadd.f32 %v2153_v63, %v2152_v26  ;;  %v2329_v60 = vadd.f32 %v2328_v61, %v2327_v34  ;;  %v2055_v16 = vadd.f32 %v2054_v18, %v2053_v35  ;;  %v2262_v17 = vadd.f32 %v2261_v52, %v2260_v40 }
 0x2d4   : > { %v2156_v39 = vadd.f32 %v2155_v57, %v2154_v55  ;;  %v2331_v8 = vadd.f32 %v2330_v6, %v2329_v60 }
 0x2dd   : > { %v2417_v37 = vpop.permute.xlu1 %2416 }
 0x2de   : > { %2506 = vst.msk [vmem:[%s4692_s27 + $0x30] sm:$0xff] %vm1459_vm6, %v2417_v37 }
 0x2e0   : > { %v4764_v12 = vpop.f32.mrf.mxu1 }
 0x2e1   : > { %2214 = vst.msk [vmem:[%s4415_s23 + $0x98] sm:$0xff] %vm1459_vm6, %v4764_v12  ;;  %v2109_v15 = vmul.f32 %v4764_v12, %v4764_v12  ;;  %v2058_v5 = vsel %vm1459_vm6, %v4764_v12, 0.0  ;;  %v2265_v20 = vsel %vm2227_vm14, %v4764_v12, 0.0 }
 0x2e2   : > { %v1952_v9 = vpop.f32.mrf.mxu1 }
 0x2e3   : > { %v2056_v23 = vsel %vm1459_vm6, %v1952_v9, 0.0  ;;  %v2108_v56 = vmul.f32 %v1952_v9, %v1952_v9  ;;  %2213 = vst.msk [vmem:[%s4415_s23 + $0x90] sm:$0xff] %vm1459_vm6, %v1952_v9  ;;  %2440 = vrot.lane.b32.xlu1 %v1952_v9, %s2905_s24  ;;  %v2263_v31 = vsel %vm2227_vm14, %v1952_v9, 0.0  ;;  %v2159_v22 = vsel %vm1459_vm6, %v2109_v15, 0.0 }
 0x2e4   : > { %v2057_v24 = vadd.f32 %v2056_v23, %v2055_v16  ;;  %v2264_v14 = vadd.f32 %v2263_v31, %v2262_v17  ;;  %v2334_v43 = vsel %vm2227_vm14, %v2109_v15, 0.0 }
 0x2e5   : > { %v2157_v0 = vsel %vm1459_vm6, %v2108_v56, 0.0  ;;  %v2332_v48 = vsel %vm2227_vm14, %v2108_v56, 0.0 }
 0x2e6   : > { %v2158_v7 = vadd.f32 %v2157_v0, %v2156_v39  ;;  %v2333_v10 = vadd.f32 %v2332_v48, %v2331_v8  ;;  %v2059_v47 = vadd.f32 %v2058_v5, %v2057_v24  ;;  %v2266_v36 = vadd.f32 %v2265_v20, %v2264_v14 }
 0x2e8   : > { %v2160_v27 = vadd.f32 %v2159_v22, %v2158_v7  ;;  %v2335_v42 = vadd.f32 %v2334_v43, %v2333_v10 }
 0x2f1   : > { %v2421_v46 = vpop.permute.xlu1 %2420 }
 0x2f2   : > { %2508 = vst.msk [vmem:[%s4692_s27 + $0x40] sm:$0xff] %vm1459_vm6, %v2421_v46 }
 0x2f4   : > { %v4786_v28 = vpop.f32.mrf.mxu1 }
 0x2f5   : > { %2216 = vst.msk [vmem:[%s4415_s23 + $0xa8] sm:$0xff] %vm1459_vm6, %v4786_v28  ;;  %v2111_v1 = vmul.f32 %v4786_v28, %v4786_v28  ;;  %v2062_v49 = vsel %vm1459_vm6, %v4786_v28, 0.0  ;;  %v2269_v34 = vsel %vm2227_vm14, %v4786_v28, 0.0 }
 0x2f6   : > { %v1962_v58 = vpop.f32.mrf.mxu1 }
 0x2f7   : > { %v2060_v2 = vsel %vm1459_vm6, %v1962_v58, 0.0  ;;  %v2110_v62 = vmul.f32 %v1962_v58, %v1962_v58  ;;  %2215 = vst.msk [vmem:[%s4415_s23 + $0xa0] sm:$0xff] %vm1459_vm6, %v1962_v58  ;;  %2444 = vrot.lane.b32.xlu1 %v1962_v58, %s2905_s24  ;;  %v2267_v32 = vsel %vm2227_vm14, %v1962_v58, 0.0  ;;  %v2163_v26 = vsel %vm1459_vm6, %v2111_v1, 0.0 }
 0x2f8   : > { %v2061_v25 = vadd.f32 %v2060_v2, %v2059_v47  ;;  %v2268_v21 = vadd.f32 %v2267_v32, %v2266_v36  ;;  %v2338_v63 = vsel %vm2227_vm14, %v2111_v1, 0.0 }
 0x2f9   : > { %v2161_v59 = vsel %vm1459_vm6, %v2110_v62, 0.0  ;;  %v2336_v54 = vsel %vm2227_vm14, %v2110_v62, 0.0 }
 0x2fa   : > { %v2162_v41 = vadd.f32 %v2161_v59, %v2160_v27  ;;  %v2337_v11 = vadd.f32 %v2336_v54, %v2335_v42  ;;  %v2063_v3 = vadd.f32 %v2062_v49, %v2061_v25  ;;  %v2270_v55 = vadd.f32 %v2269_v34, %v2268_v21 }
 0x2fc   : > { %v2164_v37 = vadd.f32 %v2163_v26, %v2162_v41  ;;  %v2339_v18 = vadd.f32 %v2338_v63, %v2337_v11 }
 0x305   : > { %v2425_v19 = vpop.permute.xlu1 %2424 }
 0x306   : > { %2510 = vst.msk [vmem:[%s4692_s27 + $0x50] sm:$0xff] %vm1459_vm6, %v2425_v19 }
 0x308   : > { %v4808_v45 = vpop.f32.mrf.mxu1 }
 0x309   : > { %2218 = vst.msk [vmem:[%s4415_s23 + $0xb8] sm:$0xff] %vm1459_vm6, %v4808_v45  ;;  %v2113_v0 = vmul.f32 %v4808_v45, %v4808_v45  ;;  %v2066_v48 = vsel %vm1459_vm6, %v4808_v45, 0.0  ;;  %v2273_v15 = vsel %vm2227_vm14, %v4808_v45, 0.0 }
 0x30a   : > { %v1972_v35 = vpop.f32.mrf.mxu1 }
 0x30b   : > { %v2064_v40 = vsel %vm1459_vm6, %v1972_v35, 0.0  ;;  %v2112_v61 = vmul.f32 %v1972_v35, %v1972_v35  ;;  %2217 = vst.msk [vmem:[%s4415_s23 + $0xb0] sm:$0xff] %vm1459_vm6, %v1972_v35  ;;  %2448 = vrot.lane.b32.xlu1 %v1972_v35, %s2905_s24  ;;  %v2271_v13 = vsel %vm2227_vm14, %v1972_v35, 0.0  ;;  %v2167_v46 = vsel %vm1459_vm6, %v2113_v0, 0.0 }
 0x30c   : > { %v2065_v60 = vadd.f32 %v2064_v40, %v2063_v3  ;;  %v2272_v52 = vadd.f32 %v2271_v13, %v2270_v55  ;;  %v2342_v20 = vsel %vm2227_vm14, %v2113_v0, 0.0 }
 0x30d   : > { %v2165_v57 = vsel %vm1459_vm6, %v2112_v61, 0.0  ;;  %v2340_v9 = vsel %vm2227_vm14, %v2112_v61, 0.0 }
 0x30e   : > { %v2166_v16 = vadd.f32 %v2165_v57, %v2164_v37  ;;  %v2341_v6 = vadd.f32 %v2340_v9, %v2339_v18  ;;  %v2067_v5 = vadd.f32 %v2066_v48, %v2065_v60  ;;  %v2274_v47 = vadd.f32 %v2273_v15, %v2272_v52 }
 0x310   : > { %v2168_v25 = vadd.f32 %v2167_v46, %v2166_v16  ;;  %v2343_v27 = vadd.f32 %v2342_v20, %v2341_v6 }
 0x319   : > { %v2429_v23 = vpop.permute.xlu1 %2428 }
 0x31a   : > { %2512 = vst.msk [vmem:[%s4692_s27 + $0x60] sm:$0xff] %vm1459_vm6, %v2429_v23 }
 0x31d   : > { %v4828_v56 = vpop.f32.mrf.mxu1 }
 0x31e   : > { %2220 = vst.msk [vmem:[%s4415_s23 + $0xc8] sm:$0xff] %vm1459_vm6, %v4828_v56  ;;  %v2115_v62 = vmul.f32 %v4828_v56, %v4828_v56  ;;  %v2070_v54 = vsel %vm1459_vm6, %v4828_v56, 0.0  ;;  %v2277_v19 = vsel %vm2227_vm14, %v4828_v56, 0.0 }
 0x31f   : > { %v1982_v17 = vpop.f32.mrf.mxu1 }
 0x320   : > { %2219 = vst.msk [vmem:[%s4415_s23 + $0xc0] sm:$0xff] %vm1459_vm6, %v1982_v17  ;;  %2452 = vrot.lane.b32.xlu1 %v1982_v17, %s2905_s24  ;;  %v2114_v14 = vmul.f32 %v1982_v17, %v1982_v17  ;;  %v2068_v7 = vsel %vm1459_vm6, %v1982_v17, 0.0  ;;  %v2275_v22 = vsel %vm2227_vm14, %v1982_v17, 0.0  ;;  %v2171_v11 = vsel %vm1459_vm6, %v2115_v62, 0.0 }
 0x321   : > { %v2069_v36 = vadd.f32 %v2068_v7, %v2067_v5  ;;  %v2276_v32 = vadd.f32 %v2275_v22, %v2274_v47  ;;  %v2346_v26 = vsel %vm2227_vm14, %v2115_v62, 0.0 }
 0x322   : > { %v2169_v58 = vsel %vm1459_vm6, %v2114_v14, 0.0  ;;  %v2344_v43 = vsel %vm2227_vm14, %v2114_v14, 0.0 }
 0x323   : > { %v2170_v59 = vadd.f32 %v2169_v58, %v2168_v25  ;;  %v2345_v21 = vadd.f32 %v2344_v43, %v2343_v27  ;;  %v2071_v1 = vadd.f32 %v2070_v54, %v2069_v36  ;;  %v2278_v35 = vadd.f32 %v2277_v19, %v2276_v32 }
 0x325   : > { %v2172_v61 = vadd.f32 %v2171_v11, %v2170_v59  ;;  %v2347_v55 = vadd.f32 %v2346_v26, %v2345_v21 }
 0x32d   : > { %v2433_v24 = vpop.permute.xlu1 %2432 }
 0x32e   : > { %2514 = vst.msk [vmem:[%s4692_s27 + $0x70] sm:$0xff] %vm1459_vm6, %v2433_v24 }
 0x335   : > { %v4838_v39 = vpop.f32.mrf.mxu1 }
 0x336   : > { %2222 = vst.msk [vmem:[%s4415_s23 + $0xd8] sm:$0xff] %vm1459_vm6, %v4838_v39  ;;  %v2117_v63 = vmul.f32 %v4838_v39, %v4838_v39  ;;  %v2074_v52 = vsel %vm1459_vm6, %v4838_v39, 0.0  ;;  %v2281_v6 = vsel %vm2227_vm14, %v4838_v39, 0.0 }
 0x337   : > { %v1992_v31 = vpop.f32.mrf.mxu1 }
 0x338   : > { %2221 = vst.msk [vmem:[%s4415_s23 + $0xd0] sm:$0xff] %vm1459_vm6, %v1992_v31  ;;  %2456 = vrot.lane.b32.xlu1 %v1992_v31, %s2905_s24  ;;  %v2116_v42 = vmul.f32 %v1992_v31, %v1992_v31  ;;  %v2072_v41 = vsel %vm1459_vm6, %v1992_v31, 0.0  ;;  %v2279_v49 = vsel %vm2227_vm14, %v1992_v31, 0.0  ;;  %v2175_v16 = vsel %vm1459_vm6, %v2117_v63, 0.0 }
 0x339   : > { %v2073_v40 = vadd.f32 %v2072_v41, %v2071_v1  ;;  %v2280_v60 = vadd.f32 %v2279_v49, %v2278_v35  ;;  %v2350_v24 = vsel %vm2227_vm14, %v2117_v63, 0.0 }
 0x33a   : > { %v2173_v34 = vsel %vm1459_vm6, %v2116_v42, 0.0  ;;  %v2348_v3 = vsel %vm2227_vm14, %v2116_v42, 0.0 }
 0x33b   : > { %v2174_v18 = vadd.f32 %v2173_v34, %v2172_v61  ;;  %v2349_v57 = vadd.f32 %v2348_v3, %v2347_v55  ;;  %v2075_v23 = vadd.f32 %v2074_v52, %v2073_v40 }
 0x33d   : > { %v2176_v7 = vadd.f32 %v2175_v16, %v2174_v18  ;;  %v2351_v46 = vadd.f32 %v2350_v24, %v2349_v57 }
 0x341   : > { %v2437_v8 = vpop.permute.xlu1 %2436 }
 0x342   : > { %2516 = vst.msk [vmem:[%s4692_s27 + $0x80] sm:$0xff] %vm1459_vm6, %v2437_v8  ;;  %v2282_v8 = vadd.f32 %v2281_v6, %v2280_v60 }
 0x34d   : > { %v4853_v10 = vpop.f32.mrf.mxu1 }
 0x34e   : > { %2224 = vst.msk [vmem:[%s4415_s23 + $0xe8] sm:$0xff] %vm1459_vm6, %v4853_v10  ;;  %v2119_v14 = vmul.f32 %v4853_v10, %v4853_v10  ;;  %v2078_v58 = vsel %vm1459_vm6, %v4853_v10, 0.0  ;;  %v2285_v43 = vsel %vm2227_vm14, %v4853_v10, 0.0 }
 0x34f   : > { %v2002_v2 = vpop.f32.mrf.mxu1 }
 0x350   : > { %2223 = vst.msk [vmem:[%s4415_s23 + $0xe0] sm:$0xff] %vm1459_vm6, %v2002_v2  ;;  %2460 = vrot.lane.b32.xlu1 %v2002_v2, %s2905_s24  ;;  %v2118_v37 = vmul.f32 %v2002_v2, %v2002_v2  ;;  %v2076_v9 = vsel %vm1459_vm6, %v2002_v2, 0.0  ;;  %v2283_v17 = vsel %vm2227_vm14, %v2002_v2, 0.0  ;;  %v2179_v47 = vsel %vm1459_vm6, %v2119_v14, 0.0 }
 0x351   : > { %v2077_v48 = vadd.f32 %v2076_v9, %v2075_v23  ;;  %v2284_v15 = vadd.f32 %v2283_v17, %v2282_v8  ;;  %v2354_v2 = vsel %vm2227_vm14, %v2119_v14, 0.0 }
 0x352   : > { %v2177_v31 = vsel %vm1459_vm6, %v2118_v37, 0.0  ;;  %v2352_v0 = vsel %vm2227_vm14, %v2118_v37, 0.0 }
 0x353   : > { %v2178_v5 = vadd.f32 %v2177_v31, %v2176_v7  ;;  %v2353_v22 = vadd.f32 %v2352_v0, %v2351_v46  ;;  %v2079_v36 = vadd.f32 %v2078_v58, %v2077_v48  ;;  %v2286_v42 = vadd.f32 %v2285_v43, %v2284_v15 }
 0x355   : > { %v2441_v13 = vpop.permute.xlu1 %2440  ;;  %v2180_v21 = vadd.f32 %v2179_v47, %v2178_v5  ;;  %v2355_v41 = vadd.f32 %v2354_v2, %v2353_v22 }
 0x356   : > { %2518 = vst.msk [vmem:[%s4692_s27 + $0x90] sm:$0xff] %vm1459_vm6, %v2441_v13 }
 0x35c   : > { %v4896_v20 = vpop.f32.mrf.mxu1 }
 0x35d   : > { %2226 = vst.msk [vmem:[%s4415_s23 + $0xf8] sm:$0xff] %vm1459_vm6, %v4896_v20  ;;  %v2121_v25 = vmul.f32 %v4896_v20, %v4896_v20  ;;  %v2082_v11 = vsel %vm1459_vm6, %v4896_v20, 0.0  ;;  %v2289_v26 = vsel %vm2227_vm14, %v4896_v20, 0.0 }
 0x35e   : > { %v2012_v62 = vpop.f32.mrf.mxu1 }
 0x35f   : > { %v2080_v27 = vsel %vm1459_vm6, %v2012_v62, 0.0  ;;  %v2120_v32 = vmul.f32 %v2012_v62, %v2012_v62  ;;  %2225 = vst.msk [vmem:[%s4415_s23 + $0xf0] sm:$0xff] %vm1459_vm6, %v2012_v62  ;;  %2464 = vrot.lane.b32.xlu1 %v2012_v62, %s2905_s24  ;;  %v2287_v54 = vsel %vm2227_vm14, %v2012_v62, 0.0  ;;  %v2183_v63 = vsel %vm1459_vm6, %v2121_v25, 0.0 }
 0x360   : > { %v2081_v59 = vadd.f32 %v2080_v27, %v2079_v36  ;;  %v2288_v1 = vadd.f32 %v2287_v54, %v2286_v42  ;;  %v2358_v40 = vsel %vm2227_vm14, %v2121_v25, 0.0 }
 0x361   : > { %v2181_v19 = vsel %vm1459_vm6, %v2120_v32, 0.0  ;;  %v2356_v49 = vsel %vm2227_vm14, %v2120_v32, 0.0 }
 0x362   : > { %v2083_v34 = vadd.f32 %v2082_v11, %v2081_v59  ;;  %v2182_v35 = vadd.f32 %v2181_v19, %v2180_v21  ;;  %v2357_v3 = vadd.f32 %v2356_v49, %v2355_v41  ;;  %v2290_v61 = vadd.f32 %v2289_v26, %v2288_v1 }
 0x364   : > { %v2084_v55 = vrot.slane %v2083_v34, 4  ;;  %v2184_v60 = vadd.f32 %v2183_v63, %v2182_v35  ;;  %v2359_v37 = vadd.f32 %v2358_v40, %v2357_v3  ;;  %v2291_v13 = vrot.slane %v2290_v61, 4 }
 0x366   : > { %v2085_v18 = vadd.f32 %v2084_v55, %v2083_v34  ;;  %v2185_v57 = vrot.slane %v2184_v60, 4  ;;  %v2360_v52 = vrot.slane %v2359_v37, 4  ;;  %v2292_v9 = vadd.f32 %v2291_v13, %v2290_v61 }
 0x368   : > { %v2086_v16 = vrot.slane %v2085_v18, 2  ;;  %v2186_v6 = vadd.f32 %v2185_v57, %v2184_v60  ;;  %v2361_v23 = vadd.f32 %v2360_v52, %v2359_v37  ;;  %v2293_v24 = vrot.slane %v2292_v9, 2 }
 0x369   : > { %v2445_v17 = vpop.permute.xlu1 %2444 }
 0x36a   : > { %v2087_v31 = vadd.f32 %v2086_v16, %v2085_v18  ;;  %v2187_v8 = vrot.slane %v2186_v6, 2  ;;  %2520 = vst.msk [vmem:[%s4692_s27 + $0xa0] sm:$0xff] %vm1459_vm6, %v2445_v17  ;;  %v2362_v0 = vrot.slane %v2361_v23, 2  ;;  %v2294_v14 = vadd.f32 %v2293_v24, %v2292_v9 }
 0x36c   : > { %v2363_v48 = vadd.f32 %v2362_v0, %v2361_v23  ;;  %v2088_v7 = vrot.slane %v2087_v31, 1  ;;  %v2188_v46 = vadd.f32 %v2187_v8, %v2186_v6  ;;  %v2295_v15 = vrot.slane %v2294_v14, 1 }
 0x36e   : > { %v2364_v5 = vrot.slane %v2363_v48, 1  ;;  %v2189_v22 = vrot.slane %v2188_v46, 1  ;;  %v2296_v58 = vadd.f32 %v2295_v15, %v2294_v14  ;;  %v2089_v43 = vadd.f32 %v2088_v7, %v2087_v31 }
 0x370   : > { %v2365_v47 = vadd.f32 %v2364_v5, %v2363_v48  ;;  %v2190_v2 = vadd.f32 %v2189_v22, %v2188_v46 }
 0x372   : > { %v2366_v62 = vsel %vm2191_vm15, %v2296_v58, %v2365_v47  ;;  %v2192_v36 = vsel %vm2191_vm15, %v2089_v43, %v2190_v2 }
 0x373   : > { %2368 = vrot.lane.b32.xlu0 %v2366_v62, %s2905_s24  ;;  %2194 = vst.msk [vmem:[%s248_s30] sm:$0x3] %vm2193_vm0, %v2192_v36 }
 0x377   : > { %2406 = vrot.lane.b32.xlu0 %v4420_v44, %s2905_s24 }
 0x37b   : > { %2410 = vrot.lane.b32.xlu0 %v4463_v51, %s2905_s24 }
 0x37d   : > { %v2449_v25 = vpop.permute.xlu1 %2448 }
 0x37e   : > { %2522 = vst.msk [vmem:[%s4692_s27 + $0xb0] sm:$0xff] %vm1459_vm6, %v2449_v25 }
 0x37f   : > { %2414 = vrot.lane.b32.xlu0 %v4515_v30, %s2905_s24 }
 0x383   : > { %2418 = vrot.lane.b32.xlu0 %v4559_v38, %s2905_s24 }
 0x387   : > { %2422 = vrot.lane.b32.xlu0 %v4596_v4, %s2905_s24 }
 0x38b   : > { %2426 = vrot.lane.b32.xlu0 %v4655_v33, %s2905_s24 }
 0x38f   : > { %2430 = vrot.lane.b32.xlu0 %v4698_v29, %s2905_s24 }
 0x392   : > { %v2453_v44 = vpop.permute.xlu1 %2452 }
 0x393   : > { %2524 = vst.msk [vmem:[%s4692_s27 + $0xc0] sm:$0xff] %vm1459_vm6, %v2453_v44  ;;  %2434 = vrot.lane.b32.xlu0 %v4720_v53, %s2905_s24 }
 0x397   : > { %2438 = vrot.lane.b32.xlu0 %v4742_v50, %s2905_s24 }
 0x39b   : > { %2442 = vrot.lane.b32.xlu0 %v4764_v12, %s2905_s24 }
 0x39f   : > { %2446 = vrot.lane.b32.xlu0 %v4786_v28, %s2905_s24 }
 0x3a3   : > { %2450 = vrot.lane.b32.xlu0 %v4808_v45, %s2905_s24 }
 0x3a7   : > { %2454 = vrot.lane.b32.xlu0 %v4828_v56, %s2905_s24 }
 0x3aa   : > { %v2457_v51 = vpop.permute.xlu1 %2456 }
 0x3ab   : > { %2526 = vst.msk [vmem:[%s4692_s27 + $0xd0] sm:$0xff] %vm1459_vm6, %v2457_v51  ;;  %2458 = vrot.lane.b32.xlu0 %v4838_v39, %s2905_s24 }
 0x3af   : > { %2462 = vrot.lane.b32.xlu0 %v4853_v10, %s2905_s24 }
 0x3b3   : > { %2466 = vrot.lane.b32.xlu0 %v4896_v20, %s2905_s24 }
 0x3c2   : > { %v2461_v30 = vpop.permute.xlu1 %2460 }
 0x3c3   : > { %2528 = vst.msk [vmem:[%s4692_s27 + $0xe0] sm:$0xff] %vm1459_vm6, %v2461_v30 }
 0x3d1   : > { %v2465_v38 = vpop.permute.xlu1 %2464 }
 0x3d2   : > { %2530 = vst.msk [vmem:[%s4692_s27 + $0xf0] sm:$0xff] %vm1459_vm6, %v2465_v38 }
 0x3e5   : > { %v2369_v4 = vpop.permute.xlu0 %2368 }
 0x3e6   : > { %2371 = vst.msk [vmem:[%s257_s8] sm:$0x3] %vm2193_vm0, %v2369_v4 }
 0x3e9   : > { %v2407_v33 = vpop.permute.xlu0 %2406 }
 0x3ea   : > { %2501 = vst.msk [vmem:[%s4692_s27 + $0x8] sm:$0xff] %vm1459_vm6, %v2407_v33 }
 0x3ed   : > { %v2411_v29 = vpop.permute.xlu0 %2410 }
 0x3ee   : > { %2503 = vst.msk [vmem:[%s4692_s27 + $0x18] sm:$0xff] %vm1459_vm6, %v2411_v29 }
 0x3f1   : > { %v2415_v53 = vpop.permute.xlu0 %2414 }
 0x3f2   : > { %2505 = vst.msk [vmem:[%s4692_s27 + $0x28] sm:$0xff] %vm1459_vm6, %v2415_v53 }
 0x3f5   : > { %v2419_v50 = vpop.permute.xlu0 %2418 }
 0x3f6   : > { %2507 = vst.msk [vmem:[%s4692_s27 + $0x38] sm:$0xff] %vm1459_vm6, %v2419_v50 }
 0x3f9   : > { %v2423_v12 = vpop.permute.xlu0 %2422 }
 0x3fa   : > { %2509 = vst.msk [vmem:[%s4692_s27 + $0x48] sm:$0xff] %vm1459_vm6, %v2423_v12 }
 0x3fd   : > { %v2427_v28 = vpop.permute.xlu0 %2426 }
 0x3fe   : > { %2511 = vst.msk [vmem:[%s4692_s27 + $0x58] sm:$0xff] %vm1459_vm6, %v2427_v28 }
 0x401   : > { %v2431_v45 = vpop.permute.xlu0 %2430 }
 0x402   : > { %2513 = vst.msk [vmem:[%s4692_s27 + $0x68] sm:$0xff] %vm1459_vm6, %v2431_v45 }
 0x405   : > { %v2435_v56 = vpop.permute.xlu0 %2434 }
 0x406   : > { %2515 = vst.msk [vmem:[%s4692_s27 + $0x78] sm:$0xff] %vm1459_vm6, %v2435_v56 }
 0x409   : > { %v2439_v39 = vpop.permute.xlu0 %2438 }
 0x40a   : > { %2517 = vst.msk [vmem:[%s4692_s27 + $0x88] sm:$0xff] %vm1459_vm6, %v2439_v39 }
 0x40d   : > { %v2443_v10 = vpop.permute.xlu0 %2442 }
 0x40e   : > { %2519 = vst.msk [vmem:[%s4692_s27 + $0x98] sm:$0xff] %vm1459_vm6, %v2443_v10 }
 0x411   : > { %v2447_v20 = vpop.permute.xlu0 %2446 }
 0x412   : > { %2521 = vst.msk [vmem:[%s4692_s27 + $0xa8] sm:$0xff] %vm1459_vm6, %v2447_v20 }
 0x415   : > { %v2451_v27 = vpop.permute.xlu0 %2450 }
 0x416   : > { %2523 = vst.msk [vmem:[%s4692_s27 + $0xb8] sm:$0xff] %vm1459_vm6, %v2451_v27 }
 0x419   : > { %v2455_v32 = vpop.permute.xlu0 %2454 }
 0x41a   : > { %2525 = vst.msk [vmem:[%s4692_s27 + $0xc8] sm:$0xff] %vm1459_vm6, %v2455_v32 }
 0x41d   : > { %v2459_v42 = vpop.permute.xlu0 %2458 }
 0x41e   : > { %2527 = vst.msk [vmem:[%s4692_s27 + $0xd8] sm:$0xff] %vm1459_vm6, %v2459_v42 }
 0x421   : > { %v2463_v59 = vpop.permute.xlu0 %2462 }
 0x422   : > { %2529 = vst.msk [vmem:[%s4692_s27 + $0xe8] sm:$0xff] %vm1459_vm6, %v2463_v59 }
 0x425   : > { %v2467_v21 = vpop.permute.xlu0 %2466 }
 0x426   : > { %2531 = vst.msk [vmem:[%s4692_s27 + $0xf8] sm:$0xff] %vm1459_vm6, %v2467_v21 }
 0x427 PF: > { %s16_s18 = sadd.s32 1, %s2894_s18  }
 0x428   : > { %p13_p4 = scmp.ge.s32.totalorder %s16_s18, 4  }
 0x42a   :  { %15 = sbr.rel (!%p13_p4) target bundleno = 1 (0x1), region = 96 }

// kernel: residual_block_forward.4
= control target key start
LH: loop header
LB: loop body
LE: loop exit
PB: predicated region body
PF: predicated region fallthrough
CT: control target
= control target key end

     0   :  { %s2671_s18 = smov 0   ;;  %s4540_s0 = inlined_call_operand.vmem [shape: f32[2,16,16,8], index: 0, kind: input, shape index: {}]   ;;  %s4541_s1 = inlined_call_operand.vmem [shape: f32[1,8], index: 1, kind: input, shape index: {}]   ;;  %s4542_s2 = inlined_call_operand.vmem [shape: f32[1,8], index: 2, kind: input, shape index: {}]   ;;  %s4543_s3 = inlined_call_operand.vmem [shape: f32[72,8], index: 3, kind: input, shape index: {}]   ;;  %s4544_s4 = inlined_call_operand.vmem [shape: f32[2,256,8], index: 4, kind: output, shape index: {0}]   ;;  %s4545_s5 = inlined_call_operand.vmem [shape: f32[2,2,8], index: 5, kind: output, shape index: {1}]  }
   0x1 LB: > { %s2400_s19 = sadd.s32 4294967295, %s2630_s18   ;;  %p2404_p0 = scmp.ge.s32.totalorder %s2630_s18, 1  ;;  %s2630_s18 = sphi %s2671_s18, %s16_s18  }
   0x2   : > { %p190_p1 = scmp.lt.s32.totalorder %s2630_s18, 3 }
   0x4   : > { %p191_p2 = pnand %p2404_p0, %p190_p1 }
   0x6   : > { %194 = sbr.rel (%p191_p2) target bundleno = 886 (0x376), region = 36 }
   0xb   : > { %vm378_vm0 = vcmask 64512   ;;  %vm387_vm1 = vcmask 57344   ;;  %p2681_p3 = scmp.lt.s32.totalorder %s2400_s19, 1  ;;  %v2632_v0 = vmov 0.0   ;;  %vm381_vm2 = vcmask 58368   ;;  %s2633_s29 = smov 8  }
   0xc   : > { %379 = vst.msk [vmem:[#allocation2] sm:$0xff] %vm378_vm0, %v2632_v0  ;;  %380 = vst.msk [vmem:[#allocation2 + $0x8] sm:$0xff] %vm378_vm0, %v2632_v0  ;;  %v2737_v1 = vld [vmem:[%s4541_s1] ss:$0 sm:$0xff]  ;;  %vm559_vm3 = vcmask 1046528   ;;  %vm736_vm4 = vcmask 1045504  }
   0xd   : > { %384 = vst.msk [vmem:[#allocation2 + $0x198] sm:$0xff] %vm378_vm0, %v2632_v0  ;;  %385 = vst.msk [vmem:[#allocation2 + $0x1a0] sm:$0xff] %vm378_vm0, %v2632_v0  ;;  %s4798_s19 = smov (!%p2681_p3, %s2400_s19), 1  ;;  %v2749_v2 = vld [vmem:[%s4542_s2] ss:$0 sm:$0xff]  ;;  %s2634_s30 = smov 16  }
   0xe   : > { %389 = vst.msk [vmem:[#allocation2 + $0x18] sm:$0x1] %vm387_vm1, %v2632_v0  ;;  %390 = vst.msk [vmem:[#allocation2 + $0x30] sm:$0x1] %vm387_vm1, %v2632_v0  ;;  %s2446_s21 = sshll.u32 %s4798_s19, 8  ;;  %s2635_s6 = smov 24  }
   0xf   : > { %391 = vst.msk [vmem:[#allocation2 + $0x48] sm:$0x1] %vm387_vm1, %v2632_v0  ;;  %392 = vst.msk [vmem:[#allocation2 + $0x60] sm:$0x1] %vm387_vm1, %v2632_v0  ;;  %s2744_s26 = scalar_lea.vmem %s4540_s0, %s2446_s21  ;;  %s2636_s9 = smov 32   ;;  %vm1547_vm5 = vcmask 130048  }
  0x10   : > { %393 = vst.msk [vmem:[#allocation2 + $0x78] sm:$0x1] %vm387_vm1, %v2632_v0  ;;  %394 = vst.msk [vmem:[#allocation2 + $0x90] sm:$0x1] %vm387_vm1, %v2632_v0  ;;  %v238_v3 = vld [vmem:[%s2744_s26 + $0x10] sm:$0xff]  ;;  %v239_v4 = vld [vmem:[%s2744_s26 + $0x18] sm:$0xff] }
  0x11   : > { %395 = vst.msk [vmem:[#allocation2 + $0xa8] sm:$0x1] %vm387_vm1, %v2632_v0  ;;  %396 = vst.msk [vmem:[#allocation2 + $0xc0] sm:$0x1] %vm387_vm1, %v2632_v0  ;;  %v236_v5 = vld [vmem:[%s2744_s26] sm:$0xff]  ;;  %v277_v6 = vmul.f32 %v2737_v1, %v238_v3  ;;  %v278_v7 = vmul.f32 %v2737_v1, %v239_v4  ;;  %v237_v8 = vld [vmem:[%s2744_s26 + $0x8] sm:$0xff] }
  0x12   : > { %397 = vst.msk [vmem:[#allocation2 + $0xd8] sm:$0x1] %vm387_vm1, %v2632_v0  ;;  %398 = vst.msk [vmem:[#allocation2 + $0xf0] sm:$0x1] %vm387_vm1, %v2632_v0  ;;  %v275_v9 = vmul.f32 %v2737_v1, %v236_v5  ;;  %v240_v10 = vld [vmem:[%s2744_s26 + $0x20] sm:$0xff]  ;;  %v241_v11 = vld [vmem:[%s2744_s26 + $0x28] sm:$0xff]  ;;  %v276_v13 = vmul.f32 %v2737_v1, %v237_v8 }
  0x13   : > { %399 = vst.msk [vmem:[#allocation2 + $0x108] sm:$0x1] %vm387_vm1, %v2632_v0  ;;  %400 = vst.msk [vmem:[#allocation2 + $0x120] sm:$0x1] %vm387_vm1, %v2632_v0  ;;  %v2760_v12 = vld [vmem:[#allocation2 + $0x8] sm:$0xff]  ;;  %v279_v14 = vmul.f32 %v2737_v1, %v240_v10  ;;  %v280_v15 = vmul.f32 %v2737_v1, %v241_v11  ;;  %v242_v16 = vld [vmem:[%s2744_s26 + $0x30] sm:$0xff]  ;;  %v316_v19 = vadd.f32 %v2749_v2, %v277_v6 }
  0x14   : > { %401 = vst.msk [vmem:[#allocation2 + $0x138] sm:$0x1] %vm387_vm1, %v2632_v0  ;;  %402 = vst.msk [vmem:[#allocation2 + $0x150] sm:$0x1] %vm387_vm1, %v2632_v0  ;;  %v561_v18 = vrot.slane %v2760_v12, 1  ;;  %v317_v20 = vadd.f32 %v2749_v2, %v278_v7  ;;  %v314_v21 = vadd.f32 %v2749_v2, %v275_v9  ;;  %v243_v22 = vld [vmem:[%s2744_s26 + $0x38] sm:$0xff]  ;;  %v315_v26 = vadd.f32 %v2749_v2, %v276_v13 }
  0x15   : > { %403 = vst.msk [vmem:[#allocation2 + $0x168] sm:$0x1] %vm387_vm1, %v2632_v0  ;;  %404 = vst.msk [vmem:[#allocation2 + $0x180] sm:$0x1] %vm387_vm1, %v2632_v0  ;;  %v244_v23 = vld [vmem:[%s2744_s26 + $0x40] sm:$0xff]  ;;  %v318_v27 = vadd.f32 %v2749_v2, %v279_v14  ;;  %v319_v28 = vadd.f32 %v2749_v2, %v280_v15  ;;  %v245_v29 = vld [vmem:[%s2744_s26 + $0x48] sm:$0xff]  ;;  %v281_v43 = vmul.f32 %v2737_v1, %v242_v16 }
  0x16   : > { %407 = vst.msk [vmem:[#allocation2 + $0x29] sm:$0x1] %vm387_vm1, %v2632_v0  ;;  %408 = vst.msk [vmem:[#allocation2 + $0x41] sm:$0x1] %vm387_vm1, %v2632_v0  ;;  %v246_v30 = vld [vmem:[%s2744_s26 + $0x50] sm:$0xff]  ;;  %v348_v32 = vmax.f32 %v316_v19, 0.0  ;;  %v282_v44 = vmul.f32 %v2737_v1, %v243_v22  ;;  %v283_v45 = vmul.f32 %v2737_v1, %v244_v23  ;;  %v284_v46 = vmul.f32 %v2737_v1, %v245_v29 }
  0x17   : > { %409 = vst.msk [vmem:[#allocation2 + $0x59] sm:$0x1] %vm387_vm1, %v2632_v0  ;;  %410 = vst.msk [vmem:[#allocation2 + $0x71] sm:$0x1] %vm387_vm1, %v2632_v0  ;;  %v349_v33 = vmax.f32 %v317_v20, 0.0  ;;  %v346_v34 = vmax.f32 %v314_v21, 0.0  ;;  %v285_v47 = vmul.f32 %v2737_v1, %v246_v30  ;;  %v320_v50 = vadd.f32 %v2749_v2, %v281_v43 }
  0x18   : > { %411 = vst.msk [vmem:[#allocation2 + $0x89] sm:$0x1] %vm387_vm1, %v2632_v0  ;;  %412 = vst.msk [vmem:[#allocation2 + $0xa1] sm:$0x1] %vm387_vm1, %v2632_v0  ;;  %v247_v35 = vld [vmem:[%s2744_s26 + $0x58] sm:$0xff]  ;;  %v248_v36 = vld [vmem:[%s2744_s26 + $0x60] sm:$0xff]  ;;  %v321_v51 = vadd.f32 %v2749_v2, %v282_v44  ;;  %v322_v52 = vadd.f32 %v2749_v2, %v283_v45  ;;  %v323_v54 = vadd.f32 %v2749_v2, %v284_v46 }
  0x19   : > { %413 = vst.msk [vmem:[#allocation2 + $0xb9] sm:$0x1] %vm387_vm1, %v2632_v0  ;;  %414 = vst.msk [vmem:[#allocation2 + $0xd1] sm:$0x1] %vm387_vm1, %v2632_v0  ;;  %v347_v38 = vmax.f32 %v315_v26, 0.0  ;;  %v350_v39 = vmax.f32 %v318_v27, 0.0  ;;  %v286_v48 = vmul.f32 %v2737_v1, %v247_v35  ;;  %v287_v49 = vmul.f32 %v2737_v1, %v248_v36 }
  0x1a   : > { %415 = vst.msk [vmem:[#allocation2 + $0xe9] sm:$0x1] %vm387_vm1, %v2632_v0  ;;  %416 = vst.msk [vmem:[#allocation2 + $0x101] sm:$0x1] %vm387_vm1, %v2632_v0  ;;  %v351_v40 = vmax.f32 %v319_v28, 0.0  ;;  %v249_v41 = vld [vmem:[%s2744_s26 + $0x68] sm:$0xff]  ;;  %v324_v55 = vadd.f32 %v2749_v2, %v285_v47 }
  0x1b   : > { %417 = vst.msk [vmem:[#allocation2 + $0x119] sm:$0x1] %vm387_vm1, %v2632_v0  ;;  %418 = vst.msk [vmem:[#allocation2 + $0x131] sm:$0x1] %vm387_vm1, %v2632_v0  ;;  %v288_v53 = vmul.f32 %v2737_v1, %v249_v41  ;;  %v325_v56 = vadd.f32 %v2749_v2, %v286_v48  ;;  %v326_v57 = vadd.f32 %v2749_v2, %v287_v49  ;;  %v250_v58 = vld [vmem:[%s2744_s26 + $0x70] sm:$0xff]  ;;  %v251_v59 = vld [vmem:[%s2744_s26 + $0x78] sm:$0xff] }
  0x1c   : > { %419 = vst.msk [vmem:[#allocation2 + $0x149] sm:$0x1] %vm387_vm1, %v2632_v0  ;;  %420 = vst.msk [vmem:[#allocation2 + $0x161] sm:$0x1] %vm387_vm1, %v2632_v0  ;;  %v252_v60 = vld [vmem:[%s2744_s26 + $0x80] sm:$0xff]  ;;  %v352_v61 = vmax.f32 %v320_v50, 0.0  ;;  %v289_v10 = vmul.f32 %v2737_v1, %v250_v58  ;;  %v290_v11 = vmul.f32 %v2737_v1, %v251_v59 }
  0x1d   : > { %421 = vst.msk [vmem:[#allocation2 + $0x179] sm:$0x1] %vm387_vm1, %v2632_v0  ;;  %422 = vst.msk [vmem:[#allocation2 + $0x191] sm:$0x1] %vm387_vm1, %v2632_v0  ;;  %v353_v62 = vmax.f32 %v321_v51, 0.0  ;;  %v354_v63 = vmax.f32 %v322_v52, 0.0  ;;  %v291_v13 = vmul.f32 %v2737_v1, %v252_v60 }
  0x1e   : > { %388 = vst.msk [vmem:[#allocation2] sm:$0x1] %vm387_vm1, %v2632_v0  ;;  %405 = vst.msk [vmem:[#allocation2 + $0x198] sm:$0x1] %vm387_vm1, %v2632_v0  ;;  %v253_v3 = vld [vmem:[%s2744_s26 + $0x88] sm:$0xff]  ;;  %v254_v4 = vld [vmem:[%s2744_s26 + $0x90] sm:$0xff]  ;;  %v328_v29 = vadd.f32 %v2749_v2, %v289_v10 }
  0x1f   : > { %382 = vst.msk [vmem:[#allocation2 + $0x10] sm:$0x3] %vm381_vm2, %v2632_v0  ;;  %386 = vst.msk [vmem:[#allocation2 + $0x1a8] sm:$0x3] %vm381_vm2, %v2632_v0  ;;  %v355_v5 = vmax.f32 %v323_v54, 0.0  ;;  %v356_v6 = vmax.f32 %v324_v55, 0.0  ;;  %v292_v20 = vmul.f32 %v2737_v1, %v253_v3  ;;  %v293_v21 = vmul.f32 %v2737_v1, %v254_v4 }
  0x20   : > { %406 = vst.msk [vmem:[#allocation2 + $0x11] sm:$0x1] %vm387_vm1, %v2632_v0  ;;  %423 = vst.msk [vmem:[#allocation2 + $0x1a9] sm:$0x1] %vm387_vm1, %v2632_v0  ;;  %v327_v0 = vadd.f32 %v2749_v2, %v288_v53  ;;  %v357_v7 = vmax.f32 %v325_v56, 0.0  ;;  %v358_v8 = vmax.f32 %v326_v57, 0.0 }
  0x21   : > { %427 = vst.msk [vmem:[#allocation2 + $0x31] sm:$0xff] %vm378_vm0, %v348_v32  ;;  %428 = vst.msk [vmem:[#allocation2 + $0x39] sm:$0xff] %vm378_vm0, %v349_v33  ;;  %v255_v14 = vld [vmem:[%s2744_s26 + $0x98] sm:$0xff]  ;;  %v256_v15 = vld [vmem:[%s2744_s26 + $0xa0] sm:$0xff]  ;;  %v331_v46 = vadd.f32 %v2749_v2, %v292_v20  ;;  %v332_v57 = vadd.f32 %v2749_v2, %v293_v21  ;;  %s2637_s14 = smov 40   ;;  %s2638_s22 = smov 48  }
  0x22   : > { %425 = vst.msk [vmem:[#allocation2 + $0x19] sm:$0xff] %vm378_vm0, %v346_v34  ;;  %426 = vst.msk [vmem:[#allocation2 + $0x21] sm:$0xff] %vm378_vm0, %v347_v38  ;;  %v359_v9 = vmax.f32 %v327_v0, 0.0  ;;  %v329_v34 = vadd.f32 %v2749_v2, %v290_v11  ;;  %v360_v38 = vmax.f32 %v328_v29, 0.0  ;;  %v294_v41 = vmul.f32 %v2737_v1, %v255_v14  ;;  %v257_v48 = vld [vmem:[%s2744_s26 + $0xa8] sm:$0xff]  ;;  %v258_v11 = vld [vmem:[%s2744_s26 + $0xb0] sm:$0xff] }
  0x23   : > { %429 = vst.msk [vmem:[#allocation2 + $0x49] sm:$0xff] %vm378_vm0, %v350_v39  ;;  %430 = vst.msk [vmem:[#allocation2 + $0x51] sm:$0xff] %vm378_vm0, %v351_v40  ;;  %v330_v39 = vadd.f32 %v2749_v2, %v291_v13  ;;  %v363_v4 = vmax.f32 %v331_v46, 0.0  ;;  %v364_v10 = vmax.f32 %v332_v57, 0.0  ;;  %v259_v13 = vld [vmem:[%s2744_s26 + $0xb8] sm:$0xff]  ;;  %v260_v14 = vld [vmem:[%s2744_s26 + $0xc0] sm:$0xff] }
  0x24   : > { %431 = vst.msk [vmem:[#allocation2 + $0x61] sm:$0xff] %vm378_vm0, %v352_v61  ;;  %432 = vst.msk [vmem:[#allocation2 + $0x69] sm:$0xff] %vm378_vm0, %v353_v62  ;;  %v361_v45 = vmax.f32 %v329_v34, 0.0  ;;  %v333_v62 = vadd.f32 %v2749_v2, %v294_v41  ;;  %v262_v34 = vld [vmem:[%s2744_s26 + $0xd0] sm:$0xff]  ;;  %v298_v41 = vmul.f32 %v2737_v1, %v259_v13  ;;  %s2639_s8 = smov 64   ;;  %s2640_s10 = smov 56  }
  0x25   : > { %v2766_v17 = vld [vmem:[#allocation2] sm:$0xff]  ;;  %433 = vst.msk [vmem:[#allocation2 + $0x79] sm:$0xff] %vm378_vm0, %v354_v63  ;;  %434 = vst.msk [vmem:[#allocation2 + $0x81] sm:$0xff] %vm378_vm0, %v355_v5  ;;  %v362_v47 = vmax.f32 %v330_v39, 0.0  ;;  %v296_v63 = vmul.f32 %v2737_v1, %v257_v48  ;;  %v297_v39 = vmul.f32 %v2737_v1, %v258_v11  ;;  %vm1580_vm6 = vcmask 195584  }
  0x26   : > { %v560_v24 = vrot.slane %v2766_v17, 1  ;;  %435 = vst.msk [vmem:[#allocation2 + $0x91] sm:$0xff] %vm378_vm0, %v356_v6  ;;  %436 = vst.msk [vmem:[#allocation2 + $0x99] sm:$0xff] %vm378_vm0, %v357_v7  ;;  %v365_v21 = vmax.f32 %v333_v62, 0.0  ;;  %vm1613_vm7 = vcmask 261120   ;;  %vm1646_vm8 = vcmask 326656  }
  0x27   : > { %v2775_v25 = vld [vmem:[#allocation2 + $0x10] sm:$0x3]  ;;  %437 = vst.msk [vmem:[#allocation2 + $0xa9] sm:$0xff] %vm378_vm0, %v358_v8  ;;  %438 = vst.msk [vmem:[#allocation2 + $0xb1] sm:$0xff] %vm378_vm0, %v359_v9  ;;  %vm1712_vm9 = vcmask 457728   ;;  %vm1679_vm10 = vcmask 392192  }
  0x28   : > { %v563_v31 = vrot.slane %v2775_v25, 1  ;;  %v562_v37 = vsel %vm559_vm3, %v560_v24, %v561_v18  ;;  %v2825_v16 = vld [vmem:[#allocation2 + $0x30] sm:$0xff]  ;;  %439 = vst.msk [vmem:[#allocation2 + $0xc1] sm:$0xff] %vm378_vm0, %v360_v38  ;;  %440 = vst.msk [vmem:[#allocation2 + $0xc9] sm:$0xff] %vm378_vm0, %v361_v45  ;;  %v263_v45 = vld [vmem:[%s2744_s26 + $0xd8] sm:$0xff]  ;;  %vm1745_vm11 = vcmask 523264  }
  0x29   : > { %640 = vrot.lane.b32.xlu0 %v562_v37, %s2633_s29  ;;  %v2829_v19 = vld [vmem:[#allocation2 + $0x18] sm:$0xff]  ;;  %v570_v22 = vrot.slane %v2825_v16, 1  ;;  %v2839_v24 = vld [vmem:[#allocation2 + $0x20] sm:$0xff]  ;;  %v2851_v33 = vld [vmem:[#allocation2 + $0x28] sm:$0x3]  ;;  %441 = vst.msk [vmem:[#allocation2 + $0xd9] sm:$0xff] %vm378_vm0, %v362_v47 }
  0x2a   : > { %v564_v42 = vsel %vm559_vm3, %v561_v18, %v563_v31  ;;  %v2827_v18 = vld [vmem:[#allocation2 + $0x38] sm:$0xff]  ;;  %v565_v26 = vrot.slane %v2829_v19, 1  ;;  %v2842_v27 = vld [vmem:[#allocation2 + $0x48] sm:$0xff]  ;;  %v2844_v28 = vld [vmem:[#allocation2 + $0x50] sm:$0xff]  ;;  %v566_v30 = vrot.slane %v2839_v24, 1  ;;  %v568_v36 = vrot.slane %v2851_v33, 1 }
  0x2b   : > { %v571_v23 = vrot.slane %v2827_v18, 1  ;;  %v575_v31 = vrot.slane %v2842_v27, 1  ;;  %v576_v32 = vrot.slane %v2844_v28, 1  ;;  %v2858_v37 = vld [vmem:[#allocation2 + $0x40] sm:$0x3]  ;;  %v2883_v51 = vld [vmem:[#allocation2 + $0x68] sm:$0xff] }
  0x2c   : > { %v2864_v40 = vsel %vm559_vm3, %v565_v26, %v566_v30  ;;  %v2873_v44 = vld [vmem:[#allocation2 + $0x58] sm:$0x3]  ;;  %v2879_v49 = vsel %vm559_vm3, %v566_v30, %v568_v36  ;;  %v2881_v50 = vld [vmem:[#allocation2 + $0x60] sm:$0xff]  ;;  %v573_v52 = vrot.slane %v2858_v37, 1  ;;  %v581_v55 = vrot.slane %v2883_v51, 1  ;;  %442 = vst.msk [vmem:[#allocation2 + $0xe1] sm:$0xff] %vm378_vm0, %v363_v4 }
  0x2d   : > { %642 = vrot.lane.b32.xlu0 %v564_v42, %s2633_s29  ;;  %v2855_v35 = vsel %vm559_vm3, %v570_v22, %v571_v23  ;;  %v295_v42 = vmul.f32 %v2737_v1, %v256_v15  ;;  %644 = vrot.lane.b32.xlu1 %v2864_v40, %s2633_s29  ;;  %v2871_v43 = vsel %vm559_vm3, %v575_v31, %v576_v32  ;;  %v2886_v53 = vld [vmem:[#allocation2 + $0x78] sm:$0xff]  ;;  %v580_v54 = vrot.slane %v2881_v50, 1  ;;  %v2890_v56 = vld [vmem:[#allocation2 + $0x80] sm:$0xff]  ;;  %v2899_v60 = vld [vmem:[#allocation2 + $0x90] sm:$0xff] }
  0x2e   : > { %4623 = vst [vmem:[#allocation3_spill] sm:$0xff] %v2871_v43  ;;  %v585_v58 = vrot.slane %v2886_v53, 1  ;;  %v578_v59 = vrot.slane %v2873_v44, 1  ;;  %v2901_v61 = vld [vmem:[#allocation2 + $0x98] sm:$0xff]  ;;  %v586_v3 = vrot.slane %v2890_v56, 1  ;;  %v2913_v6 = vsel %vm559_vm3, %v571_v23, %v573_v52  ;;  %v2925_v15 = vld [vmem:[#allocation2 + $0xa8] sm:$0xff] }
  0x2f   : > { %v2908_v0 = vsel %vm559_vm3, %v580_v54, %v581_v55  ;;  %v334_v5 = vadd.f32 %v2749_v2, %v295_v42  ;;  %v2915_v7 = vld [vmem:[#allocation2 + $0x70] sm:$0x3]  ;;  %v590_v8 = vrot.slane %v2899_v60, 1  ;;  %v591_v9 = vrot.slane %v2901_v61, 1  ;;  %v261_v23 = vld [vmem:[%s2744_s26 + $0xc8] sm:$0xff]  ;;  %443 = vst.msk [vmem:[#allocation2 + $0xf1] sm:$0xff] %vm378_vm0, %v364_v10 }
  0x30   : > { %4624 = vst [vmem:[#allocation4_spill] sm:$0xff] %v2908_v0  ;;  %v2927_v20 = vld [vmem:[#allocation2 + $0xb0] sm:$0xff]  ;;  %v335_v22 = vadd.f32 %v2749_v2, %v296_v63  ;;  %v2936_v26 = vsel %vm559_vm3, %v585_v58, %v586_v3  ;;  %v2939_v29 = vsel %vm559_vm3, %v576_v32, %v578_v59  ;;  %v583_v30 = vrot.slane %v2915_v7, 1  ;;  %v2944_v36 = vld [vmem:[#allocation2 + $0x88] sm:$0x3]  ;;  %444 = vst.msk [vmem:[#allocation2 + $0xf9] sm:$0xff] %vm378_vm0, %v365_v21 }
  0x31   : > { %648 = vrot.lane.b32.xlu0 %v2855_v35, %s2633_s29  ;;  %646 = vrot.lane.b32.xlu1 %v2879_v49, %s2633_s29  ;;  %4625 = vst [vmem:[#allocation5_spill] sm:$0xff] %v2936_v26  ;;  %4626 = vst [vmem:[#allocation6_spill] sm:$0xff] %v2939_v29  ;;  %v366_v31 = vmax.f32 %v334_v5, 0.0  ;;  %v299_v42 = vmul.f32 %v2737_v1, %v260_v14  ;;  %v2954_v32 = vsel %vm559_vm3, %v590_v8, %v591_v9  ;;  %v264_v5 = vld [vmem:[%s2744_s26 + $0xe0] sm:$0xff]  ;;  %v265_v8 = vld [vmem:[%s2744_s26 + $0xe8] sm:$0xff]  ;;  %vm1787_vm12 = vcmask 588800  }
  0x32   : > { %v367_v38 = vmax.f32 %v335_v22, 0.0  ;;  %4627 = vst [vmem:[#allocation7_spill] sm:$0xff] %v2954_v32  ;;  %v595_v46 = vrot.slane %v2925_v15, 1  ;;  %v596_v47 = vrot.slane %v2927_v20, 1  ;;  %v300_v48 = vmul.f32 %v2737_v1, %v261_v23  ;;  %v2977_v10 = vld [vmem:[#allocation2 + $0xc0] sm:$0xff]  ;;  %v2979_v11 = vld [vmem:[#allocation2 + $0xc8] sm:$0xff] }
  0x33   : > { %445 = vst.msk [vmem:[#allocation2 + $0x109] sm:$0xff] %vm378_vm0, %v366_v31  ;;  %v336_v52 = vadd.f32 %v2749_v2, %v297_v39  ;;  %v337_v54 = vadd.f32 %v2749_v2, %v298_v41  ;;  %v338_v57 = vadd.f32 %v2749_v2, %v299_v42  ;;  %v301_v58 = vmul.f32 %v2737_v1, %v262_v34  ;;  %v2982_v23 = vld [vmem:[#allocation2 + $0xa0] sm:$0x3] }
  0x34   : > { %446 = vst.msk [vmem:[#allocation2 + $0x111] sm:$0xff] %vm378_vm0, %v367_v38  ;;  %v2970_v59 = vsel %vm559_vm3, %v581_v55, %v583_v30  ;;  %v588_v62 = vrot.slane %v2944_v36, 1  ;;  %v339_v63 = vadd.f32 %v2749_v2, %v300_v48  ;;  %v302_v4 = vmul.f32 %v2737_v1, %v263_v45  ;;  %v3001_v45 = vld [vmem:[#allocation2 + $0xd8] sm:$0xff] }
  0x35   : > { %652 = vrot.lane.b32.xlu0 %v2871_v43, %s2633_s29  ;;  %650 = vrot.lane.b32.xlu1 %v2913_v6, %s2633_s29  ;;  %4628 = vst [vmem:[#allocation8_spill] sm:$0xff] %v2970_v59  ;;  %v368_v13 = vmax.f32 %v336_v52, 0.0  ;;  %v369_v14 = vmax.f32 %v337_v54, 0.0  ;;  %v370_v21 = vmax.f32 %v338_v57, 0.0  ;;  %v340_v22 = vadd.f32 %v2749_v2, %v301_v58  ;;  %v3010_v54 = vld [vmem:[#allocation2 + $0xe0] sm:$0xff] }
  0x36   : > { %v371_v55 = vmax.f32 %v339_v63, 0.0  ;;  %v341_v30 = vadd.f32 %v2749_v2, %v302_v4  ;;  %v303_v34 = vmul.f32 %v2737_v1, %v264_v5  ;;  %v304_v38 = vmul.f32 %v2737_v1, %v265_v8  ;;  %v3015_v58 = vld [vmem:[#allocation2 + $0xb8] sm:$0x3] }
  0x37   : > { %447 = vst.msk [vmem:[#allocation2 + $0x121] sm:$0xff] %vm378_vm0, %v368_v13  ;;  %448 = vst.msk [vmem:[#allocation2 + $0x129] sm:$0xff] %vm378_vm0, %v369_v14  ;;  %v372_v31 = vmax.f32 %v340_v22, 0.0  ;;  %v2997_v39 = vsel %vm559_vm3, %v595_v46, %v596_v47  ;;  %v600_v41 = vrot.slane %v2977_v10, 1  ;;  %v601_v42 = vrot.slane %v2979_v11, 1  ;;  %v3033_v13 = vld [vmem:[#allocation2 + $0xf0] sm:$0xff] }
  0x38   : > { %449 = vst.msk [vmem:[#allocation2 + $0x139] sm:$0xff] %vm378_vm0, %v370_v21  ;;  %4629 = vst [vmem:[#allocation9_spill] sm:$0xff] %v2997_v39  ;;  %v373_v48 = vmax.f32 %v341_v30, 0.0  ;;  %v3007_v1 = vsel %vm559_vm3, %v586_v3, %v588_v62  ;;  %v593_v52 = vrot.slane %v2982_v23, 1  ;;  %v342_v46 = vadd.f32 %v2749_v2, %v303_v34  ;;  %v3035_v14 = vld [vmem:[#allocation2 + $0xf8] sm:$0xff] }
  0x39   : > { %656 = vrot.lane.b32.xlu0 %v2908_v0, %s2633_s29  ;;  %654 = vrot.lane.b32.xlu1 %v2939_v29, %s2633_s29  ;;  %450 = vst.msk [vmem:[#allocation2 + $0x141] sm:$0xff] %vm378_vm0, %v371_v55  ;;  %4630 = vst [vmem:[#allocation10_spill] sm:$0xff] %v3007_v1  ;;  %v343_v57 = vadd.f32 %v2749_v2, %v304_v38  ;;  %v605_v3 = vrot.slane %v3001_v45, 1  ;;  %v3024_v62 = vsel %vm559_vm3, %v600_v41, %v601_v42  ;;  %v3037_v21 = vld [vmem:[#allocation2 + $0xd0] sm:$0x3]  ;;  %vm2279_vm13 = vcmask 1040384  }
  0x3a   : > { %451 = vst.msk [vmem:[#allocation2 + $0x151] sm:$0xff] %vm378_vm0, %v372_v31  ;;  %452 = vst.msk [vmem:[#allocation2 + $0x159] sm:$0xff] %vm378_vm0, %v373_v48  ;;  %v606_v63 = vrot.slane %v3010_v54, 1  ;;  %v374_v4 = vmax.f32 %v342_v46, 0.0  ;;  %v3030_v2 = vsel %vm559_vm3, %v591_v9, %v593_v52  ;;  %v598_v8 = vrot.slane %v3015_v58, 1  ;;  %v3056_v34 = vld [vmem:[#allocation2 + $0x108] sm:$0xff] }
  0x3b   : > { %4631 = vst [vmem:[#allocation11_spill] sm:$0xff] %v3024_v62  ;;  %v375_v5 = vmax.f32 %v343_v57, 0.0  ;;  %4632 = vst [vmem:[#allocation12_spill] sm:$0xff] %v3030_v2  ;;  %v610_v22 = vrot.slane %v3033_v13, 1  ;;  %v611_v55 = vrot.slane %v3035_v14, 1  ;;  %v603_v31 = vrot.slane %v3037_v21, 1 }
  0x3c   : > { %453 = vst.msk [vmem:[#allocation2 + $0x169] sm:$0xff] %vm378_vm0, %v374_v4  ;;  %v3046_v9 = vsel %vm559_vm3, %v605_v3, %v606_v63  ;;  %v3053_v30 = vsel %vm559_vm3, %v596_v47, %v598_v8  ;;  %v3058_v38 = vld [vmem:[#allocation2 + $0x110] sm:$0xff]  ;;  %v3060_v41 = vld [vmem:[#allocation2 + $0xe8] sm:$0x3]  ;;  %v615_v47 = vrot.slane %v3056_v34, 1 }
  0x3d   : > { %660 = vrot.lane.b32.xlu0 %v2936_v26, %s2633_s29  ;;  %658 = vrot.lane.b32.xlu1 %v2970_v59, %s2633_s29  ;;  %454 = vst.msk [vmem:[#allocation2 + $0x171] sm:$0xff] %vm378_vm0, %v375_v5  ;;  %4633 = vst [vmem:[#allocation13_spill] sm:$0xff] %v3046_v9  ;;  %v3067_v48 = vsel %vm559_vm3, %v610_v22, %v611_v55  ;;  %v616_v52 = vrot.slane %v3058_v38, 1  ;;  %v3072_v46 = vsel %vm559_vm3, %v601_v42, %v603_v31  ;;  %v3079_v5 = vld [vmem:[#allocation2 + $0x100] sm:$0x3] }
  0x3e   : > { %4634 = vst [vmem:[#allocation14_spill] sm:$0xff] %v3053_v30  ;;  %4635 = vst [vmem:[#allocation15_spill] sm:$0xff] %v3067_v48  ;;  %v608_v57 = vrot.slane %v3060_v41, 1  ;;  %v3075_v3 = vld [vmem:[#allocation2 + $0x120] sm:$0xff]  ;;  %v3077_v4 = vld [vmem:[#allocation2 + $0x128] sm:$0xff] }
  0x3f   : > { %4636 = vst [vmem:[#allocation16_spill] sm:$0xff] %v3072_v46  ;;  %v3086_v8 = vsel %vm559_vm3, %v615_v47, %v616_v52  ;;  %v620_v42 = vrot.slane %v3075_v3, 1  ;;  %v621_v22 = vrot.slane %v3077_v4, 1 }
  0x40   : > { %4637 = vst [vmem:[#allocation17_spill] sm:$0xff] %v3086_v8  ;;  %v3091_v31 = vsel %vm559_vm3, %v606_v63, %v608_v57 }
  0x41   : > { %664 = vrot.lane.b32.xlu0 %v2954_v32, %s2633_s29  ;;  %662 = vrot.lane.b32.xlu1 %v3007_v1, %s2633_s29  ;;  %4638 = vst [vmem:[#allocation18_spill] sm:$0xff] %v3091_v31  ;;  %v3105_v47 = vsel %vm559_vm3, %v620_v42, %v621_v22  ;;  %v3115_v32 = vld [vmem:[#allocation2 + $0x158] sm:$0xff]  ;;  %v3151_v29 = vld [vmem:[#allocation2 + $0x160] sm:$0x3] }
  0x42   : > { %4639 = vst [vmem:[#allocation19_spill] sm:$0xff] %v3105_v47 }
  0x43   : > { %v3132_v26 = vld [vmem:[#allocation2 + $0x168] sm:$0xff] }
  0x44   : > { %v3134_v59 = vld [vmem:[#allocation2 + $0x170] sm:$0xff]  ;;  %v3166_v43 = vld [vmem:[#allocation2 + $0x178] sm:$0x3] }
  0x45   : > { %668 = vrot.lane.b32.xlu0 %v2997_v39, %s2633_s29  ;;  %666 = vrot.lane.b32.xlu1 %v3030_v2, %s2633_s29  ;;  %v3113_v2 = vld [vmem:[#allocation2 + $0x150] sm:$0xff] }
  0x49   : > { %672 = vrot.lane.b32.xlu0 %v3024_v62, %s2633_s29  ;;  %670 = vrot.lane.b32.xlu1 %v3053_v30, %s2633_s29  ;;  %v3094_v62 = vld [vmem:[#allocation2 + $0x138] sm:$0xff]  ;;  %v3096_v30 = vld [vmem:[#allocation2 + $0x140] sm:$0xff] }
  0x4a   : > { %v625_v63 = vrot.slane %v3094_v62, 1  ;;  %v626_v57 = vrot.slane %v3096_v30, 1 }
  0x4c   : > { %v3124_v42 = vsel %vm559_vm3, %v625_v63, %v626_v57 }
  0x4d   : > { %676 = vrot.lane.b32.xlu0 %v3046_v9, %s2633_s29  ;;  %674 = vrot.lane.b32.xlu1 %v3072_v46, %s2633_s29  ;;  %v613_v9 = vrot.slane %v3079_v5, 1  ;;  %4641 = vst [vmem:[#allocation21_spill] sm:$0xff] %v3124_v42 }
  0x4f   : > { %v3110_v46 = vsel %vm559_vm3, %v611_v55, %v613_v9  ;;  %v630_v9 = vrot.slane %v3113_v2, 1  ;;  %v631_v55 = vrot.slane %v3115_v32, 1 }
  0x50   : > { %4640 = vst [vmem:[#allocation20_spill] sm:$0xff] %v3110_v46 }
  0x51   : > { %680 = vrot.lane.b32.xlu0 %v3067_v48, %s2633_s29  ;;  %v3098_v48 = vld [vmem:[#allocation2 + $0x118] sm:$0x3]  ;;  %678 = vrot.lane.b32.xlu1 %v3091_v31, %s2633_s29  ;;  %v3143_v63 = vsel %vm559_vm3, %v630_v9, %v631_v55 }
  0x52   : > { %v618_v39 = vrot.slane %v3098_v48, 1  ;;  %4643 = vst [vmem:[#allocation23_spill] sm:$0xff] %v3143_v63 }
  0x54   : > { %v3129_v31 = vsel %vm559_vm3, %v616_v52, %v618_v39  ;;  %v635_v39 = vrot.slane %v3132_v26, 1  ;;  %v636_v52 = vrot.slane %v3134_v59, 1 }
  0x55   : > { %684 = vrot.lane.b32.xlu0 %v3086_v8, %s2633_s29  ;;  %v3117_v8 = vld [vmem:[#allocation2 + $0x130] sm:$0x3]  ;;  %682 = vrot.lane.b32.xlu1 %v3110_v46, %s2633_s29  ;;  %4642 = vst [vmem:[#allocation22_spill] sm:$0xff] %v3129_v31 }
  0x56   : > { %v623_v1 = vrot.slane %v3117_v8, 1  ;;  %v3158_v9 = vsel %vm559_vm3, %v635_v39, %v636_v52 }
  0x57   : > { %4645 = vst [vmem:[#allocation25_spill] sm:$0xff] %v3158_v9 }
  0x58   : > { %v3148_v46 = vsel %vm559_vm3, %v621_v22, %v623_v1  ;;  %v633_v22 = vrot.slane %v3151_v29, 1 }
  0x59   : > { %688 = vrot.lane.b32.xlu0 %v3105_v47, %s2633_s29  ;;  %v3136_v47 = vld [vmem:[#allocation2 + $0x148] sm:$0x3]  ;;  %686 = vrot.lane.b32.xlu1 %v3129_v31, %s2633_s29  ;;  %4644 = vst [vmem:[#allocation24_spill] sm:$0xff] %v3148_v46  ;;  %v738_v31 = vrot.slane %v2760_v12, 2  ;;  %v743_v12 = vrot.slane %v2839_v24, 2 }
  0x5a   : > { %v628_v0 = vrot.slane %v3136_v47, 1 }
  0x5c   : > { %v3163_v1 = vsel %vm559_vm3, %v626_v57, %v628_v0  ;;  %v3176_v0 = vsel %vm559_vm3, %v631_v55, %v633_v22  ;;  %v638_v57 = vrot.slane %v3166_v43, 1  ;;  %v740_v55 = vrot.slane %v2775_v25, 2 }
  0x5d   : > { %692 = vrot.lane.b32.xlu0 %v3124_v42, %s2633_s29  ;;  %690 = vrot.lane.b32.xlu1 %v3148_v46, %s2633_s29  ;;  %v737_v42 = vrot.slane %v2766_v17, 2  ;;  %4646 = vst [vmem:[#allocation26_spill] sm:$0xff] %v3163_v1  ;;  %v742_v17 = vrot.slane %v2829_v19, 2  ;;  %4647 = vst [vmem:[#allocation27_spill] sm:$0xff] %v3176_v0  ;;  %v750_v46 = vrot.slane %v2858_v37, 2 }
  0x5f   : > { %v739_v39 = vsel %vm736_vm4, %v737_v42, %v738_v31  ;;  %v747_v42 = vrot.slane %v2825_v16, 2 }
  0x61   : > { %696 = vrot.lane.b32.xlu0 %v3143_v63, %s2633_s29  ;;  %694 = vrot.lane.b32.xlu1 %v3163_v1, %s2633_s29  ;;  %v748_v63 = vrot.slane %v2827_v18, 2  ;;  %v3188_v1 = vsel %vm559_vm3, %v636_v52, %v638_v57  ;;  %v745_v52 = vrot.slane %v2851_v33, 2  ;;  %v757_v57 = vrot.slane %v2881_v50, 2 }
  0x62   : > { %4648 = vst [vmem:[#allocation28_spill] sm:$0xff] %v3188_v1 }
  0x63   : > { %v3196_v22 = vsel %vm736_vm4, %v747_v42, %v748_v63  ;;  %v758_v42 = vrot.slane %v2883_v51, 2 }
  0x65   : > { %700 = vrot.lane.b32.xlu0 %v3158_v9, %s2633_s29  ;;  %698 = vrot.lane.b32.xlu1 %v3176_v0, %s2633_s29  ;;  %v3183_v9 = vsel %vm736_vm4, %v742_v17, %v743_v12  ;;  %v753_v17 = vrot.slane %v2844_v28, 2  ;;  %v741_v0 = vsel %vm736_vm4, %v738_v31, %v740_v55  ;;  %v3219_v33 = vsel %vm736_vm4, %v757_v57, %v758_v42 }
  0x66   : > { %4649 = vst [vmem:[#allocation29_spill] sm:$0xff] %v3219_v33  ;;  %v762_v31 = vrot.slane %v2886_v53, 2  ;;  %v3224_v55 = vsel %vm736_vm4, %v748_v63, %v750_v46  ;;  %v760_v46 = vrot.slane %v2915_v7, 2  ;;  %v772_v63 = vrot.slane %v2925_v15, 2 }
  0x69   : > { %817 = vrot.lane.b32.xlu0 %v739_v39, %s2634_s30  ;;  %702 = vrot.lane.b32.xlu1 %v3188_v1, %s2633_s29  ;;  %v752_v39 = vrot.slane %v2842_v27, 2  ;;  %v3211_v1 = vsel %vm736_vm4, %v743_v12, %v745_v52  ;;  %v755_v12 = vrot.slane %v2873_v44, 2  ;;  %v768_v52 = vrot.slane %v2901_v61, 2 }
  0x6b   : > { %v3206_v25 = vsel %vm736_vm4, %v752_v39, %v753_v17  ;;  %v767_v39 = vrot.slane %v2899_v60, 2  ;;  %v3237_v57 = vsel %vm736_vm4, %v753_v17, %v755_v12  ;;  %v765_v17 = vrot.slane %v2944_v36, 2 }
  0x6c   : > { %v777_v12 = vrot.slane %v2977_v10, 2 }
  0x6d   : > { %821 = vrot.lane.b32.xlu0 %v3183_v9, %s2634_s30  ;;  %819 = vrot.lane.b32.xlu1 %v741_v0, %s2634_s30  ;;  %v763_v0 = vrot.slane %v2890_v56, 2  ;;  %v3245_v44 = vsel %vm736_vm4, %v767_v39, %v768_v52  ;;  %v778_v39 = vrot.slane %v2979_v11, 2 }
  0x6e   : > { %4651 = vst [vmem:[#allocation31_spill] sm:$0xff] %v3245_v44 }
  0x6f   : > { %v3232_v37 = vsel %vm736_vm4, %v762_v31, %v763_v0  ;;  %v773_v31 = vrot.slane %v2927_v20, 2  ;;  %v3271_v36 = vsel %vm736_vm4, %v777_v12, %v778_v39  ;;  %v788_v12 = vrot.slane %v3035_v14, 2 }
  0x70   : > { %4650 = vst [vmem:[#allocation30_spill] sm:$0xff] %v3232_v37  ;;  %4653 = vst [vmem:[#allocation33_spill] sm:$0xff] %v3271_v36 }
  0x71   : > { %825 = vrot.lane.b32.xlu0 %v3196_v22, %s2634_s30  ;;  %823 = vrot.lane.b32.xlu1 %v3211_v1, %s2634_s30  ;;  %v3258_v7 = vsel %vm736_vm4, %v772_v63, %v773_v31  ;;  %v783_v63 = vrot.slane %v3010_v54, 2 }
  0x72   : > { %4652 = vst [vmem:[#allocation32_spill] sm:$0xff] %v3258_v7 }
  0x75   : > { %829 = vrot.lane.b32.xlu0 %v3206_v25, %s2634_s30  ;;  %827 = vrot.lane.b32.xlu1 %v3224_v55, %s2634_s30 }
  0x79   : > { %833 = vrot.lane.b32.xlu0 %v3219_v33, %s2634_s30  ;;  %831 = vrot.lane.b32.xlu1 %v3237_v57, %s2634_s30  ;;  %v3250_v33 = vsel %vm736_vm4, %v758_v42, %v760_v46  ;;  %v770_v42 = vrot.slane %v2982_v23, 2  ;;  %v782_v46 = vrot.slane %v3001_v45, 2 }
  0x7b   : > { %v3284_v23 = vsel %vm736_vm4, %v782_v46, %v783_v63  ;;  %v793_v46 = vrot.slane %v3058_v38, 2 }
  0x7c   : > { %4654 = vst [vmem:[#allocation34_spill] sm:$0xff] %v3284_v23 }
  0x7d   : > { %837 = vrot.lane.b32.xlu0 %v3232_v37, %s2634_s30  ;;  %835 = vrot.lane.b32.xlu1 %v3250_v33, %s2634_s30  ;;  %v3263_v37 = vsel %vm736_vm4, %v763_v0, %v765_v17  ;;  %v775_v0 = vrot.slane %v3015_v58, 2  ;;  %v787_v17 = vrot.slane %v3033_v13, 2 }
  0x7f   : > { %v3297_v58 = vsel %vm736_vm4, %v787_v17, %v788_v12  ;;  %v798_v17 = vrot.slane %v3077_v4, 2 }
  0x81   : > { %841 = vrot.lane.b32.xlu0 %v3245_v44, %s2634_s30  ;;  %839 = vrot.lane.b32.xlu1 %v3263_v37, %s2634_s30  ;;  %v3276_v44 = vsel %vm736_vm4, %v768_v52, %v770_v42  ;;  %v780_v52 = vrot.slane %v3037_v21, 2  ;;  %v792_v42 = vrot.slane %v3056_v34, 2 }
  0x83   : > { %v3310_v21 = vsel %vm736_vm4, %v792_v42, %v793_v46  ;;  %v803_v42 = vrot.slane %v3096_v30, 2  ;;  %v808_v30 = vrot.slane %v3115_v32, 2  ;;  %v813_v32 = vrot.slane %v3134_v59, 2 }
  0x84   : > { %v810_v59 = vrot.slane %v3151_v29, 2 }
  0x85   : > { %845 = vrot.lane.b32.xlu0 %v3258_v7, %s2634_s30  ;;  %843 = vrot.lane.b32.xlu1 %v3276_v44, %s2634_s30  ;;  %v3289_v7 = vsel %vm736_vm4, %v773_v31, %v775_v0  ;;  %v785_v31 = vrot.slane %v3060_v41, 2  ;;  %v797_v0 = vrot.slane %v3075_v3, 2 }
  0x87   : > { %v3323_v41 = vsel %vm736_vm4, %v797_v0, %v798_v17 }
  0x89   : > { %849 = vrot.lane.b32.xlu0 %v3271_v36, %s2634_s30  ;;  %847 = vrot.lane.b32.xlu1 %v3289_v7, %s2634_s30  ;;  %v3302_v36 = vsel %vm736_vm4, %v778_v39, %v780_v52  ;;  %v790_v39 = vrot.slane %v3079_v5, 2  ;;  %v802_v52 = vrot.slane %v3094_v62, 2  ;;  %v807_v62 = vrot.slane %v3113_v2, 2 }
  0x8a   : > { %v812_v2 = vrot.slane %v3132_v26, 2 }
  0x8b   : > { %v3328_v4 = vsel %vm736_vm4, %v788_v12, %v790_v39  ;;  %v3338_v5 = vsel %vm736_vm4, %v802_v52, %v803_v42  ;;  %v3353_v39 = vsel %vm736_vm4, %v807_v62, %v808_v30  ;;  %v3383_v62 = vsel %vm736_vm4, %v808_v30, %v810_v59 }
  0x8c   : > { %4655 = vst [vmem:[#allocation35_spill] sm:$0xff] %v3338_v5  ;;  %4656 = vst [vmem:[#allocation36_spill] sm:$0xff] %v3353_v39  ;;  %v3366_v52 = vsel %vm736_vm4, %v812_v2, %v813_v32 }
  0x8d   : > { %853 = vrot.lane.b32.xlu0 %v3284_v23, %s2634_s30  ;;  %851 = vrot.lane.b32.xlu1 %v3302_v36, %s2634_s30  ;;  %v3315_v23 = vsel %vm736_vm4, %v783_v63, %v785_v31  ;;  %v795_v63 = vrot.slane %v3098_v48, 2  ;;  %v800_v48 = vrot.slane %v3117_v8, 2  ;;  %v805_v8 = vrot.slane %v3136_v47, 2  ;;  %4657 = vst [vmem:[#allocation37_spill] sm:$0xff] %v3366_v52  ;;  %4659 = vst [vmem:[#allocation39_spill] sm:$0xff] %v3383_v62 }
  0x8f   : > { %v3343_v12 = vsel %vm736_vm4, %v793_v46, %v795_v63  ;;  %v3358_v46 = vsel %vm736_vm4, %v798_v17, %v800_v48  ;;  %v3371_v26 = vsel %vm736_vm4, %v803_v42, %v805_v8  ;;  %v815_v48 = vrot.slane %v3166_v43, 2 }
  0x90   : > { %4658 = vst [vmem:[#allocation38_spill] sm:$0xff] %v3371_v26 }
  0x91   : > { %857 = vrot.lane.b32.xlu0 %v3297_v58, %s2634_s30  ;;  %855 = vrot.lane.b32.xlu1 %v3315_v23, %s2634_s30  ;;  %v3395_v42 = vsel %vm736_vm4, %v813_v32, %v815_v48 }
  0x92   : > { %4660 = vst [vmem:[#allocation40_spill] sm:$0xff] %v3395_v42 }
  0x95   : > { %861 = vrot.lane.b32.xlu0 %v3310_v21, %s2634_s30  ;;  %859 = vrot.lane.b32.xlu1 %v3328_v4, %s2634_s30 }
  0x99   : > { %865 = vrot.lane.b32.xlu0 %v3323_v41, %s2634_s30  ;;  %863 = vrot.lane.b32.xlu1 %v3343_v12, %s2634_s30 }
  0x9b   : > { %v3331_v31 = vpop.permute.xlu0 %640 }
  0x9d   : > { %869 = vrot.lane.b32.xlu0 %v3338_v5, %s2634_s30  ;;  %867 = vrot.lane.b32.xlu1 %v3358_v46, %s2634_s30 }
  0x9f   : > { %v3348_v0 = vpop.permute.xlu0 %642  ;;  %v3374_v17 = vpop.permute.xlu1 %644 }
  0xa1   : > { %873 = vrot.lane.b32.xlu0 %v3353_v39, %s2634_s30  ;;  %871 = vrot.lane.b32.xlu1 %v3371_v26, %s2634_s30 }
  0xa3   : > { %v3368_v63 = vpop.permute.xlu0 %648  ;;  %v3386_v2 = vpop.permute.xlu1 %646 }
  0xa5   : > { %877 = vrot.lane.b32.xlu0 %v3366_v52, %s2634_s30  ;;  %875 = vrot.lane.b32.xlu1 %v3383_v62, %s2634_s30 }
  0xa7   : > { %v3380_v47 = vpop.permute.xlu0 %652  ;;  %v3397_v8 = vpop.permute.xlu1 %650 }
  0xa9   : > { %915 = vrot.lane.b32.xlu0 %v2829_v19, %s2635_s6  ;;  %879 = vrot.lane.b32.xlu1 %v3395_v42, %s2634_s30 }
  0xab   : > { %v3392_v29 = vpop.permute.xlu0 %656  ;;  %v3405_v30 = vpop.permute.xlu1 %654 }
  0xad   : > { %919 = vrot.lane.b32.xlu0 %v2825_v16, %s2635_s6  ;;  %917 = vrot.lane.b32.xlu1 %v2839_v24, %s2635_s6 }
  0xaf   : > { %v3403_v43 = vpop.permute.xlu0 %660  ;;  %v3413_v32 = vpop.permute.xlu1 %658 }
  0xb1   : > { %923 = vrot.lane.b32.xlu0 %v2842_v27, %s2635_s6  ;;  %921 = vrot.lane.b32.xlu1 %v2827_v18, %s2635_s6 }
  0xb3   : > { %v3411_v19 = vpop.permute.xlu0 %664  ;;  %v3421_v48 = vpop.permute.xlu1 %662 }
  0xb5   : > { %927 = vrot.lane.b32.xlu0 %v2881_v50, %s2635_s6  ;;  %925 = vrot.lane.b32.xlu1 %v2844_v28, %s2635_s6 }
  0xb7   : > { %v3419_v59 = vpop.permute.xlu0 %668  ;;  %v3429_v52 = vpop.permute.xlu1 %666 }
  0xb8   : > { %4661 = vst [vmem:[#allocation41_spill] sm:$0xff] %v3419_v59  ;;  %4663 = vst [vmem:[#allocation43_spill] sm:$0xff] %v3429_v52  ;;  %v4713_v52 = vld [vmem:[#allocation12_spill] sm:$0xff] }
  0xb9   : > { %931 = vrot.lane.b32.xlu0 %v2886_v53, %s2635_s6  ;;  %929 = vrot.lane.b32.xlu1 %v2883_v51, %s2635_s6 }
  0xbb   : > { %v3427_v24 = vpop.permute.xlu0 %672  ;;  %v3437_v39 = vpop.permute.xlu1 %670 }
  0xbc   : > { %4662 = vst [vmem:[#allocation42_spill] sm:$0xff] %v3427_v24  ;;  %4665 = vst [vmem:[#allocation45_spill] sm:$0xff] %v3437_v39 }
  0xbd   : > { %935 = vrot.lane.b32.xlu0 %v2899_v60, %s2635_s6  ;;  %933 = vrot.lane.b32.xlu1 %v2890_v56, %s2635_s6 }
  0xbf   : > { %v3435_v42 = vpop.permute.xlu0 %676  ;;  %v3445_v24 = vpop.permute.xlu1 %674 }
  0xc0   : > { %4664 = vst [vmem:[#allocation44_spill] sm:$0xff] %v3435_v42  ;;  %4667 = vst [vmem:[#allocation47_spill] sm:$0xff] %v3445_v24 }
  0xc1   : > { %939 = vrot.lane.b32.xlu0 %v2925_v15, %s2635_s6  ;;  %937 = vrot.lane.b32.xlu1 %v2901_v61, %s2635_s6 }
  0xc3   : > { %v3443_v62 = vpop.permute.xlu0 %680  ;;  %v3453_v42 = vpop.permute.xlu1 %678 }
  0xc4   : > { %4666 = vst [vmem:[#allocation46_spill] sm:$0xff] %v3443_v62  ;;  %4669 = vst [vmem:[#allocation49_spill] sm:$0xff] %v3453_v42 }
  0xc5   : > { %943 = vrot.lane.b32.xlu0 %v2977_v10, %s2635_s6  ;;  %941 = vrot.lane.b32.xlu1 %v2927_v20, %s2635_s6 }
  0xc7   : > { %v3451_v59 = vpop.permute.xlu0 %684  ;;  %v3461_v62 = vpop.permute.xlu1 %682 }
  0xc8   : > { %4668 = vst [vmem:[#allocation48_spill] sm:$0xff] %v3451_v59  ;;  %4671 = vst [vmem:[#allocation51_spill] sm:$0xff] %v3461_v62 }
  0xc9   : > { %947 = vrot.lane.b32.xlu0 %v3001_v45, %s2635_s6  ;;  %945 = vrot.lane.b32.xlu1 %v2979_v11, %s2635_s6 }
  0xcb   : > { %v3459_v39 = vpop.permute.xlu0 %688  ;;  %v3469_v59 = vpop.permute.xlu1 %686 }
  0xcc   : > { %4670 = vst [vmem:[#allocation50_spill] sm:$0xff] %v3459_v39  ;;  %4673 = vst [vmem:[#allocation53_spill] sm:$0xff] %v3469_v59  ;;  %v4686_v59 = vld [vmem:[#allocation6_spill] sm:$0xff] }
  0xcd   : > { %951 = vrot.lane.b32.xlu0 %v3033_v13, %s2635_s6  ;;  %949 = vrot.lane.b32.xlu1 %v3010_v54, %s2635_s6  ;;  %v1786_v13 = vld [vmem:[%s4543_s3 + $0x40] sm:$0xff] }
  0xce   : > { %2489 = vmatprep.subr.mxu0 %v1786_v13  ;;  %2555 = vmatprep.subr.mxu1 %v1786_v13 }
  0xcf   : > { %v3467_v24 = vpop.permute.xlu0 %692  ;;  %v3477_v39 = vpop.permute.xlu1 %690  ;;  %2490 = vmatpush3.msra.mxu0 %v1786_v13  ;;  %2564 = vmatpush3.msra.mxu1 %v1786_v13 }
  0xd0   : > { %4672 = vst [vmem:[#allocation52_spill] sm:$0xff] %v3467_v24  ;;  %4675 = vst [vmem:[#allocation55_spill] sm:$0xff] %v3477_v39 }
  0xd1   : > { %955 = vrot.lane.b32.xlu0 %v3056_v34, %s2635_s6  ;;  %953 = vrot.lane.b32.xlu1 %v3035_v14, %s2635_s6  ;;  %v1785_v14 = vld [vmem:[%s4543_s3 + $0x38] sm:$0xff] }
  0xd2   : > { %2491 = vmatprep.subr.mxu0 %v1785_v14  ;;  %2556 = vmatprep.subr.mxu1 %v1785_v14 }
  0xd3   : > { %v3475_v42 = vpop.permute.xlu0 %696  ;;  %v3488_v34 = vpop.permute.xlu1 %694  ;;  %2492 = vmatpush3.msra.mxu0 %v1785_v14  ;;  %2565 = vmatpush3.msra.mxu1 %v1785_v14  ;;  %v1782_v14 = vld [vmem:[%s4543_s3 + $0x20] sm:$0xff] }
  0xd4   : > { %4674 = vst [vmem:[#allocation54_spill] sm:$0xff] %v3475_v42  ;;  %4677 = vst [vmem:[#allocation57_spill] sm:$0xff] %v3488_v34 }
  0xd5   : > { %959 = vrot.lane.b32.xlu0 %v3075_v3, %s2635_s6  ;;  %957 = vrot.lane.b32.xlu1 %v3058_v38, %s2635_s6  ;;  %v1784_v3 = vld [vmem:[%s4543_s3 + $0x30] sm:$0xff] }
  0xd6   : > { %2493 = vmatprep.subr.mxu0 %v1784_v3  ;;  %2557 = vmatprep.subr.mxu1 %v1784_v3 }
  0xd7   : > { %v3486_v24 = vpop.permute.xlu0 %700  ;;  %v3502_v13 = vpop.permute.xlu1 %698  ;;  %2494 = vmatpush3.msra.mxu0 %v1784_v3  ;;  %2566 = vmatpush3.msra.mxu1 %v1784_v3 }
  0xd8   : > { %4676 = vst [vmem:[#allocation56_spill] sm:$0xff] %v3486_v24  ;;  %4678 = vst [vmem:[#allocation58_spill] sm:$0xff] %v3502_v13 }
  0xd9   : > { %1019 = vrot.lane.b32.xlu0 %v2879_v49, %s2636_s9  ;;  %v1783_v49 = vld [vmem:[%s4543_s3 + $0x28] sm:$0xff]  ;;  %1017 = vrot.lane.b32.xlu1 %v2864_v40, %s2636_s9  ;;  %v1781_v40 = vld [vmem:[%s4543_s3 + $0x18] sm:$0xff] }
  0xda   : > { %2495 = vmatprep.subr.mxu0 %v1783_v49  ;;  %2558 = vmatprep.subr.mxu1 %v1783_v49 }
  0xdb   : > { %v3500_v24 = vpop.permute.xlu0 %817  ;;  %2496 = vmatpush3.msra.mxu0 %v1783_v49  ;;  %v3516_v42 = vpop.permute.xlu1 %702  ;;  %2567 = vmatpush3.msra.mxu1 %v1783_v49 }
  0xdc   : > { %4679 = vst [vmem:[#allocation59_spill] sm:$0xff] %v3516_v42  ;;  %2497 = vmatprep.subr.mxu0 %v1782_v14  ;;  %2559 = vmatprep.subr.mxu1 %v1782_v14 }
  0xdd   : > { %1120 = vrot.lane.b32.xlu0 %v3211_v1, %s2637_s14  ;;  %2498 = vmatpush3.msra.mxu0 %v1782_v14  ;;  %v1780_v1 = vld [vmem:[%s4543_s3 + $0x10] sm:$0xff] }
  0xde   : > { %1118 = vrot.lane.b32.xlu1 %v3183_v9, %s2637_s14  ;;  %2499 = vmatprep.subr.mxu0 %v1781_v40  ;;  %v1778_v9 = vld [vmem:[%s4543_s3] sm:$0xff] }
  0xdf   : > { %v3511_v38 = vpop.permute.xlu0 %821  ;;  %2500 = vmatpush3.msra.mxu0 %v1781_v40  ;;  %v3530_v3 = vpop.permute.xlu1 %819  ;;  %2568 = vmatpush3.msra.mxu1 %v1782_v14 }
  0xe0   : > { %2501 = vmatprep.subr.mxu0 %v1780_v1  ;;  %2560 = vmatprep.subr.mxu1 %v1781_v40 }
  0xe1   : > { %1218 = vrot.lane.b32.xlu0 %v2827_v18, %s2638_s22  ;;  %2502 = vmatpush3.msra.mxu0 %v1780_v1  ;;  %v1779_v18 = vld [vmem:[%s4543_s3 + $0x8] sm:$0xff] }
  0xe2   : > { %1216 = vrot.lane.b32.xlu1 %v2825_v16, %s2638_s22  ;;  %2503 = vmatprep.subr.mxu0 %v1779_v18 }
  0xe3   : > { %v3528_v42 = vpop.permute.xlu0 %825  ;;  %2504 = vmatpush3.msra.mxu0 %v1779_v18  ;;  %v3544_v49 = vpop.permute.xlu1 %823  ;;  %2569 = vmatpush3.msra.mxu1 %v1781_v40 }
  0xe4   : > { %2505 = vmatprep.subr.mxu0 %v1778_v9  ;;  %2561 = vmatprep.subr.mxu1 %v1780_v1 }
  0xe5   : > { %1021 = vrot.lane.b32.xlu0 %v2855_v35, %s2636_s9  ;;  %2506 = vmatpush3.msra.mxu0 %v1778_v9 }
  0xe6   : > { %1318 = vrot.lane.b32.xlu1 %v2855_v35, %s2640_s10  ;;  %2570 = vmatpush3.msra.mxu1 %v1780_v1 }
  0xe7   : > { %v3542_v13 = vpop.permute.xlu0 %829  ;;  %v3552_v34 = vpop.permute.xlu1 %827  ;;  %2562 = vmatprep.subr.mxu1 %v1779_v18 }
  0xe8   : > { %2571 = vmatpush3.msra.mxu1 %v1779_v18  ;;  %v4681_v18 = vld [vmem:[#allocation3_spill] sm:$0xff] }
  0xe9   : > { %1419 = vrot.lane.b32.xlu0 %v3196_v22, %s2639_s8  ;;  %2563 = vmatprep.subr.mxu1 %v1778_v9 }
  0xea   : > { %1320 = vrot.lane.b32.xlu1 %v2913_v6, %s2640_s10  ;;  %2572 = vmatpush3.msra.mxu1 %v1778_v9 }
  0xeb   : > { %v3550_v16 = vpop.permute.xlu0 %833  ;;  %v3560_v39 = vpop.permute.xlu1 %831 }
  0xed   : > { %1122 = vrot.lane.b32.xlu0 %v3196_v22, %s2637_s14 }
  0xee   : > { %1023 = vrot.lane.b32.xlu1 %v2913_v6, %s2636_s9 }
  0xef   : > { %v3558_v14 = vpop.permute.xlu0 %837  ;;  %v3568_v22 = vpop.permute.xlu1 %835 }
  0xf1   : > { %1124 = vrot.lane.b32.xlu0 %v3224_v55, %s2637_s14 }
  0xf2   : > { %1421 = vrot.lane.b32.xlu1 %v3224_v55, %s2639_s8 }
  0xf3   : > { %v3566_v35 = vpop.permute.xlu0 %841  ;;  %v3576_v1 = vpop.permute.xlu1 %839 }
  0xf5   : > { %1222 = vrot.lane.b32.xlu0 %v2844_v28, %s2638_s22 }
  0xf6   : > { %1220 = vrot.lane.b32.xlu1 %v2842_v27, %s2638_s22 }
  0xf7   : > { %v3574_v40 = vpop.permute.xlu0 %845  ;;  %v3584_v9 = vpop.permute.xlu1 %843 }
  0xf8   : > { %4680 = vst [vmem:[#allocation60_spill] sm:$0xff] %v3574_v40  ;;  %4683 = vst [vmem:[#allocation61_spill] sm:$0xff] %v3584_v9  ;;  %v4710_v9 = vld [vmem:[#allocation31_spill] sm:$0xff] }
  0xf9   : > { %1025 = vrot.lane.b32.xlu0 %v4681_v18, %s2636_s9 }
  0xfa   : > { %1322 = vrot.lane.b32.xlu1 %v4681_v18, %s2640_s10 }
  0xfb   : > { %v3582_v6 = vpop.permute.xlu0 %849  ;;  %v3592_v55 = vpop.permute.xlu1 %847 }
  0xfc   : > { %4682 = vst [vmem:[#allocation3_spill] sm:$0xff] %v3582_v6  ;;  %4685 = vst [vmem:[#allocation63_spill] sm:$0xff] %v3592_v55  ;;  %v4708_v55 = vld [vmem:[#allocation7_spill] sm:$0xff] }
  0xfd   : > { %1423 = vrot.lane.b32.xlu0 %v3206_v25, %s2639_s8 }
  0xfe   : > { %1324 = vrot.lane.b32.xlu1 %v4686_v59, %s2640_s10 }
  0xff   : > { %v3590_v28 = vpop.permute.xlu0 %853  ;;  %v3600_v62 = vpop.permute.xlu1 %851 }
 0x100   : > { %4684 = vst [vmem:[#allocation62_spill] sm:$0xff] %v3590_v28  ;;  %4688 = vst [vmem:[#allocation64_spill] sm:$0xff] %v3600_v62  ;;  %v4693_v62 = vld [vmem:[#allocation4_spill] sm:$0xff] }
 0x101   : > { %1126 = vrot.lane.b32.xlu0 %v3206_v25, %s2637_s14 }
 0x102   : > { %1027 = vrot.lane.b32.xlu1 %v4686_v59, %s2636_s9 }
 0x103   : > { %v3598_v27 = vpop.permute.xlu0 %857  ;;  %v3608_v28 = vpop.permute.xlu1 %855 }
 0x104   : > { %4687 = vst [vmem:[#allocation6_spill] sm:$0xff] %v3598_v27  ;;  %4690 = vst [vmem:[#allocation66_spill] sm:$0xff] %v3608_v28  ;;  %v4696_v28 = vld [vmem:[#allocation29_spill] sm:$0xff] }
 0x105   : > { %1128 = vrot.lane.b32.xlu0 %v3237_v57, %s2637_s14 }
 0x106   : > { %1425 = vrot.lane.b32.xlu1 %v3237_v57, %s2639_s8 }
 0x107   : > { %v3606_v18 = vpop.permute.xlu0 %861  ;;  %v3616_v27 = vpop.permute.xlu1 %859 }
 0x108   : > { %4689 = vst [vmem:[#allocation65_spill] sm:$0xff] %v3606_v18  ;;  %4692 = vst [vmem:[#allocation68_spill] sm:$0xff] %v3616_v27 }
 0x109   : > { %1226 = vrot.lane.b32.xlu0 %v2883_v51, %s2638_s22 }
 0x10a   : > { %1224 = vrot.lane.b32.xlu1 %v2881_v50, %s2638_s22 }
 0x10b   : > { %v3614_v25 = vpop.permute.xlu0 %865  ;;  %v3624_v18 = vpop.permute.xlu1 %863 }
 0x10c   : > { %4691 = vst [vmem:[#allocation67_spill] sm:$0xff] %v3614_v25  ;;  %4695 = vst [vmem:[#allocation69_spill] sm:$0xff] %v3624_v18  ;;  %v4699_v25 = vld [vmem:[#allocation8_spill] sm:$0xff] }
 0x10d   : > { %1029 = vrot.lane.b32.xlu0 %v4693_v62, %s2636_s9 }
 0x10e   : > { %1326 = vrot.lane.b32.xlu1 %v4693_v62, %s2640_s10 }
 0x10f   : > { %v3622_v59 = vpop.permute.xlu0 %869  ;;  %v3632_v57 = vpop.permute.xlu1 %867 }
 0x110   : > { %4694 = vst [vmem:[#allocation4_spill] sm:$0xff] %v3622_v59  ;;  %4698 = vst [vmem:[#allocation70_spill] sm:$0xff] %v3632_v57 }
 0x111   : > { %1427 = vrot.lane.b32.xlu0 %v4696_v28, %s2639_s8 }
 0x112   : > { %1328 = vrot.lane.b32.xlu1 %v4699_v25, %s2640_s10 }
 0x113   : > { %v3630_v51 = vpop.permute.xlu0 %873  ;;  %v3640_v59 = vpop.permute.xlu1 %871 }
 0x114   : > { %4697 = vst [vmem:[#allocation29_spill] sm:$0xff] %v3630_v51  ;;  %4701 = vst [vmem:[#allocation71_spill] sm:$0xff] %v3640_v59  ;;  %v4704_v59 = vld [vmem:[#allocation5_spill] sm:$0xff] }
 0x115   : > { %1130 = vrot.lane.b32.xlu0 %v4696_v28, %s2637_s14 }
 0x116   : > { %1031 = vrot.lane.b32.xlu1 %v4699_v25, %s2636_s9 }
 0x117   : > { %v3638_v50 = vpop.permute.xlu0 %877  ;;  %v3648_v51 = vpop.permute.xlu1 %875 }
 0x118   : > { %4700 = vst [vmem:[#allocation8_spill] sm:$0xff] %v3638_v50  ;;  %4702 = vst [vmem:[#allocation72_spill] sm:$0xff] %v3648_v51  ;;  %v4705_v51 = vld [vmem:[#allocation30_spill] sm:$0xff] }
 0x119   : > { %1132 = vrot.lane.b32.xlu0 %v3250_v33, %s2637_s14 }
 0x11a   : > { %1429 = vrot.lane.b32.xlu1 %v3250_v33, %s2639_s8 }
 0x11b   : > { %v3646_v62 = vpop.permute.xlu0 %915  ;;  %v3656_v50 = vpop.permute.xlu1 %879 }
 0x11c   : > { %4703 = vst [vmem:[#allocation73_spill] sm:$0xff] %v3656_v50  ;;  %v4706_v50 = vld [vmem:[#allocation10_spill] sm:$0xff] }
 0x11d   : > { %1230 = vrot.lane.b32.xlu0 %v2890_v56, %s2638_s22 }
 0x11e   : > { %1228 = vrot.lane.b32.xlu1 %v2886_v53, %s2638_s22 }
 0x11f   : > { %v3654_v28 = vpop.permute.xlu0 %919  ;;  %v3664_v57 = vpop.permute.xlu1 %917 }
 0x121   : > { %1033 = vrot.lane.b32.xlu0 %v4704_v59, %s2636_s9 }
 0x122   : > { %1330 = vrot.lane.b32.xlu1 %v4704_v59, %s2640_s10 }
 0x123   : > { %v3662_v25 = vpop.permute.xlu0 %923  ;;  %v3672_v33 = vpop.permute.xlu1 %921 }
 0x125   : > { %1431 = vrot.lane.b32.xlu0 %v4705_v51, %s2639_s8 }
 0x126   : > { %1332 = vrot.lane.b32.xlu1 %v4706_v50, %s2640_s10 }
 0x127   : > { %v3670_v56 = vpop.permute.xlu0 %927  ;;  %v3680_v18 = vpop.permute.xlu1 %925 }
 0x129   : > { %1134 = vrot.lane.b32.xlu0 %v4705_v51, %s2637_s14 }
 0x12a   : > { %1035 = vrot.lane.b32.xlu1 %v4706_v50, %s2636_s9 }
 0x12b   : > { %v3678_v53 = vpop.permute.xlu0 %931  ;;  %v3688_v27 = vpop.permute.xlu1 %929 }
 0x12d   : > { %1136 = vrot.lane.b32.xlu0 %v3263_v37, %s2637_s14 }
 0x12e   : > { %1433 = vrot.lane.b32.xlu1 %v3263_v37, %s2639_s8 }
 0x12f   : > { %v3686_v59 = vpop.permute.xlu0 %935  ;;  %v3696_v6 = vpop.permute.xlu1 %933 }
 0x131   : > { %1234 = vrot.lane.b32.xlu0 %v2901_v61, %s2638_s22 }
 0x132   : > { %1232 = vrot.lane.b32.xlu1 %v2899_v60, %s2638_s22 }
 0x133   : > { %v3694_v51 = vpop.permute.xlu0 %939  ;;  %v3704_v40 = vpop.permute.xlu1 %937 }
 0x134   : > { %4707 = vst [vmem:[#allocation5_spill] sm:$0xff] %v3694_v51 }
 0x135   : > { %1037 = vrot.lane.b32.xlu0 %v4708_v55, %s2636_s9 }
 0x136   : > { %1334 = vrot.lane.b32.xlu1 %v4708_v55, %s2640_s10 }
 0x137   : > { %v3702_v50 = vpop.permute.xlu0 %943  ;;  %v3712_v37 = vpop.permute.xlu1 %941 }
 0x138   : > { %4709 = vst [vmem:[#allocation30_spill] sm:$0xff] %v3702_v50  ;;  %4712 = vst [vmem:[#allocation7_spill] sm:$0xff] %v3712_v37 }
 0x139   : > { %1435 = vrot.lane.b32.xlu0 %v4710_v9, %s2639_s8 }
 0x13a   : > { %1336 = vrot.lane.b32.xlu1 %v4713_v52, %s2640_s10 }
 0x13b   : > { %v3710_v61 = vpop.permute.xlu0 %947  ;;  %v3720_v50 = vpop.permute.xlu1 %945 }
 0x13c   : > { %4711 = vst [vmem:[#allocation10_spill] sm:$0xff] %v3710_v61  ;;  %4715 = vst [vmem:[#allocation12_spill] sm:$0xff] %v3720_v50  ;;  %v4720_v50 = vld [vmem:[#allocation9_spill] sm:$0xff] }
 0x13d   : > { %1138 = vrot.lane.b32.xlu0 %v4710_v9, %s2637_s14 }
 0x13e   : > { %1039 = vrot.lane.b32.xlu1 %v4713_v52, %s2636_s9 }
 0x13f   : > { %v3718_v60 = vpop.permute.xlu0 %951  ;;  %v3728_v61 = vpop.permute.xlu1 %949 }
 0x140   : > { %4714 = vst [vmem:[#allocation31_spill] sm:$0xff] %v3718_v60  ;;  %4717 = vst [vmem:[#allocation75_spill] sm:$0xff] %v3728_v61  ;;  %v4722_v61 = vld [vmem:[#allocation32_spill] sm:$0xff] }
 0x141   : > { %1140 = vrot.lane.b32.xlu0 %v3276_v44, %s2637_s14 }
 0x142   : > { %1437 = vrot.lane.b32.xlu1 %v3276_v44, %s2639_s8 }
 0x143   : > { %v3726_v55 = vpop.permute.xlu0 %955  ;;  %v3736_v60 = vpop.permute.xlu1 %953 }
 0x144   : > { %4716 = vst [vmem:[#allocation74_spill] sm:$0xff] %v3726_v55  ;;  %4719 = vst [vmem:[#allocation77_spill] sm:$0xff] %v3736_v60 }
 0x145   : > { %1238 = vrot.lane.b32.xlu0 %v2927_v20, %s2638_s22 }
 0x146   : > { %1236 = vrot.lane.b32.xlu1 %v2925_v15, %s2638_s22  ;;  %v2590_v15 = vld [vmem:[#allocation2] sm:$0xff] }
 0x147   : > { %v3734_v9 = vpop.permute.xlu0 %959  ;;  %v3742_v55 = vpop.permute.xlu1 %957 }
 0x148   : > { %4718 = vst [vmem:[#allocation76_spill] sm:$0xff] %v3734_v9  ;;  %4721 = vst [vmem:[#allocation9_spill] sm:$0xff] %v3742_v55  ;;  %v4723_v9 = vld [vmem:[#allocation14_spill] sm:$0xff] }
 0x149   : > { %1041 = vrot.lane.b32.xlu0 %v4720_v50, %s2636_s9 }
 0x14a   : > { %1338 = vrot.lane.b32.xlu1 %v4720_v50, %s2640_s10  ;;  %v1515_v50 = vsel %vm378_vm0, %v2590_v15, %v3331_v31 }
 0x14b   : > { %v1020_v52 = vpop.permute.xlu0 %1019  ;;  %v1018_v44 = vpop.permute.xlu1 %1017 }
 0x14d   : > { %1439 = vrot.lane.b32.xlu0 %v4722_v61, %s2639_s8 }
 0x14e   : > { %1340 = vrot.lane.b32.xlu1 %v4723_v9, %s2640_s10 }
 0x14f   : > { %v1121_v20 = vpop.permute.xlu0 %1120 }
 0x150   : > { %v1119_v37 = vpop.permute.xlu1 %1118 }
 0x151   : > { %1142 = vrot.lane.b32.xlu0 %v4722_v61, %s2637_s14  ;;  %v1548_v61 = vsel %vm1547_vm5, %v1515_v50, %v3500_v24 }
 0x152   : > { %1043 = vrot.lane.b32.xlu1 %v4723_v9, %s2636_s9  ;;  %v1581_v26 = vsel %vm1580_vm6, %v1548_v61, %v3646_v62 }
 0x153   : > { %v1219_v60 = vpop.permute.xlu0 %1218  ;;  %v1614_v51 = vsel %vm1613_vm7, %v1581_v26, %v1018_v44 }
 0x154   : > { %v1217_v5 = vpop.permute.xlu1 %1216  ;;  %v1647_v31 = vsel %vm1646_vm8, %v1614_v51, %v1119_v37  ;;  %v4725_v37 = vld [vmem:[#allocation33_spill] sm:$0xff] }
 0x155   : > { %1144 = vrot.lane.b32.xlu0 %v3289_v7, %s2637_s14  ;;  %v1680_v24 = vsel %vm1679_vm10, %v1647_v31, %v1217_v5  ;;  %v2591_v5 = vld [vmem:[#allocation2 + $0x8] sm:$0xff] }
 0x156   : > { %1441 = vrot.lane.b32.xlu1 %v3289_v7, %s2639_s8  ;;  %v1516_v44 = vsel %vm378_vm0, %v2591_v5, %v3348_v0  ;;  %v4726_v0 = vld [vmem:[#allocation16_spill] sm:$0xff] }
 0x157   : > { %v1022_v55 = vpop.permute.xlu0 %1021  ;;  %v1549_v50 = vsel %vm1547_vm5, %v1516_v44, %v3530_v3 }
 0x158   : > { %v1319_v15 = vpop.permute.xlu1 %1318  ;;  %v1582_v61 = vsel %vm1580_vm6, %v1549_v50, %v3664_v57  ;;  %v2592_v57 = vld [vmem:[#allocation2 + $0x18] sm:$0xff] }
 0x159   : > { %1242 = vrot.lane.b32.xlu0 %v2979_v11, %s2638_s22  ;;  %v1713_v62 = vsel %vm1712_vm9, %v1680_v24, %v1319_v15  ;;  %v4724_v11 = vld [vmem:[#allocation11_spill] sm:$0xff] }
 0x15a   : > { %1240 = vrot.lane.b32.xlu1 %v2977_v10, %s2638_s22 }
 0x15b   : > { %v1420_v9 = vpop.permute.xlu0 %1419 }
 0x15c   : > { %v1746_v7 = vsel %vm1745_vm11, %v1713_v62, %v1420_v9  ;;  %v1321_v51 = vpop.permute.xlu1 %1320  ;;  %v1615_v9 = vsel %vm1613_vm7, %v1582_v61, %v1020_v52  ;;  %v1517_v52 = vsel %vm378_vm0, %v2592_v57, %v3374_v17 }
 0x15d   : > { %1045 = vrot.lane.b32.xlu0 %v4724_v11, %s2636_s9  ;;  %2507 = vmatprep.mubr.msk.f32.mxu0 %vm1787_vm12, %v1746_v7  ;;  %v1648_v24 = vsel %vm1646_vm8, %v1615_v9, %v1121_v20  ;;  %v4727_v9 = vld [vmem:[#allocation13_spill] sm:$0xff] }
 0x15e   : > { %1342 = vrot.lane.b32.xlu1 %v4724_v11, %s2640_s10  ;;  %v1681_v15 = vsel %vm1679_vm10, %v1648_v24, %v1219_v60  ;;  %v1550_v60 = vsel %vm1547_vm5, %v1517_v52, %v3511_v38 }
 0x15f   : > { %v1123_v26 = vpop.permute.xlu0 %1122  ;;  %v1714_v3 = vsel %vm1712_vm9, %v1681_v15, %v1321_v51 }
 0x160   : > { %v1024_v31 = vpop.permute.xlu1 %1023 }
 0x161   : > { %1443 = vrot.lane.b32.xlu0 %v4725_v37, %s2639_s8 }
 0x162   : > { %1344 = vrot.lane.b32.xlu1 %v4726_v0, %s2640_s10 }
 0x163   : > { %v1125_v10 = vpop.permute.xlu0 %1124 }
 0x164   : > { %v1422_v11 = vpop.permute.xlu1 %1421 }
 0x165   : > { %1146 = vrot.lane.b32.xlu0 %v4725_v37, %s2637_s14  ;;  %v1747_v7 = vsel %vm1745_vm11, %v1714_v3, %v1422_v11  ;;  %v1583_v37 = vsel %vm1580_vm6, %v1550_v60, %v3654_v28  ;;  %v2593_v28 = vld [vmem:[#allocation2 + $0x20] sm:$0xff]  ;;  %v266_v11 = vld [vmem:[%s2744_s26 + $0xf0] sm:$0xff] }
 0x166   : > { %1047 = vrot.lane.b32.xlu1 %v4726_v0, %s2636_s9  ;;  %2508 = vmatmul.mubr.msk.f32.vlgmr.msra.gmra.mxu0 %vm1787_vm12, %v1747_v7  ;;  %v1616_v5 = vsel %vm1613_vm7, %v1583_v37, %v1022_v55  ;;  %v1518_v55 = vsel %vm378_vm0, %v2593_v28, %v3386_v2  ;;  %v4728_v0 = vld [vmem:[#allocation34_spill] sm:$0xff]  ;;  %v2594_v2 = vld [vmem:[%s4541_s1] ss:$0 sm:$0xff]  ;;  %v267_v37 = vld [vmem:[%s2744_s26 + $0xf8] sm:$0xff] }
 0x167   : > { %v1223_v62 = vpop.permute.xlu0 %1222  ;;  %v1649_v44 = vsel %vm1646_vm8, %v1616_v5, %v1123_v26  ;;  %v1551_v24 = vsel %vm1547_vm5, %v1518_v55, %v3544_v49  ;;  %v305_v49 = vmul.f32 %v2594_v2, %v266_v11  ;;  %v4730_v11 = vld [vmem:[#allocation15_spill] sm:$0xff] }
 0x168   : > { %v1221_v51 = vpop.permute.xlu1 %1220 }
 0x169   : > { %1148 = vrot.lane.b32.xlu0 %v3302_v36, %s2637_s14  ;;  %v1682_v17 = vsel %vm1679_vm10, %v1649_v44, %v1221_v51 }
 0x16a   : > { %1445 = vrot.lane.b32.xlu1 %v3302_v36, %s2639_s8 }
 0x16b   : > { %v1026_v20 = vpop.permute.xlu0 %1025 }
 0x16c   : > { %v1323_v61 = vpop.permute.xlu1 %1322 }
 0x16d   : > { %1246 = vrot.lane.b32.xlu0 %v3010_v54, %s2638_s22  ;;  %v1715_v38 = vsel %vm1712_vm9, %v1682_v17, %v1323_v61  ;;  %v306_v17 = vmul.f32 %v2594_v2, %v267_v37  ;;  %v3872_v2 = vld [vmem:[#allocation2 + $0xf0] sm:$0xff] }
 0x16e   : > { %1244 = vrot.lane.b32.xlu1 %v3001_v45, %s2638_s22  ;;  %v1584_v45 = vsel %vm1580_vm6, %v1551_v24, %v3672_v33  ;;  %v4729_v33 = vld [vmem:[#allocation18_spill] sm:$0xff]  ;;  %v3859_v24 = vld [vmem:[#allocation2 + $0xf8] sm:$0xff] }
 0x16f   : > { %v1424_v50 = vpop.permute.xlu0 %1423  ;;  %v1617_v15 = vsel %vm1613_vm7, %v1584_v45, %v1024_v31  ;;  %v2595_v31 = vld [vmem:[%s4542_s2] ss:$0 sm:$0xff] }
 0x170   : > { %v1748_v54 = vsel %vm1745_vm11, %v1715_v38, %v1424_v50  ;;  %v1325_v26 = vpop.permute.xlu1 %1324  ;;  %v1650_v57 = vsel %vm1646_vm8, %v1617_v15, %v1125_v10  ;;  %v344_v52 = vadd.f32 %v2595_v31, %v305_v49  ;;  %v345_v10 = vadd.f32 %v2595_v31, %v306_v17 }
 0x171   : > { %1049 = vrot.lane.b32.xlu0 %v4727_v9, %s2636_s9  ;;  %2510 = vmatprep.mubr.msk.f32.mxu0 %vm1787_vm12, %v1748_v54  ;;  %v1683_v60 = vsel %vm1679_vm10, %v1650_v57, %v1223_v62  ;;  %v2596_v62 = vld [vmem:[#allocation2 + $0x30] sm:$0xff] }
 0x172   : > { %1346 = vrot.lane.b32.xlu1 %v4727_v9, %s2640_s10  ;;  %v1716_v5 = vsel %vm1712_vm9, %v1683_v60, %v1325_v26  ;;  %v376_v50 = vmax.f32 %v344_v52, 0.0  ;;  %v1519_v38 = vsel %vm378_vm0, %v2596_v62, %v3368_v63  ;;  %v377_v55 = vmax.f32 %v345_v10, 0.0  ;;  %v3908_v62 = vld [vmem:[#allocation2 + $0x110] sm:$0xff] }
 0x173   : > { %v1127_v36 = vpop.permute.xlu0 %1126  ;;  %v1552_v54 = vsel %vm1547_vm5, %v1519_v38, %v3528_v42 }
 0x174   : > { %v1028_v7 = vpop.permute.xlu1 %1027  ;;  %455 = vst.msk [vmem:[#allocation2 + $0x181] sm:$0xff] %vm378_vm0, %v376_v50  ;;  %v1585_v26 = vsel %vm1580_vm6, %v1552_v54, %v3662_v25  ;;  %456 = vst.msk [vmem:[#allocation2 + $0x189] sm:$0xff] %vm378_vm0, %v377_v55 }
 0x175   : > { %1447 = vrot.lane.b32.xlu0 %v4728_v0, %s2639_s8 }
 0x176   : > { %1348 = vrot.lane.b32.xlu1 %v4729_v33, %s2640_s10 }
 0x177   : > { %v1129_v3 = vpop.permute.xlu0 %1128 }
 0x178   : > { %v1426_v44 = vpop.permute.xlu1 %1425 }
 0x179   : > { %1150 = vrot.lane.b32.xlu0 %v4728_v0, %s2637_s14  ;;  %v1749_v61 = vsel %vm1745_vm11, %v1716_v5, %v1426_v44  ;;  %v1618_v0 = vsel %vm1613_vm7, %v1585_v26, %v1026_v20  ;;  %v3920_v26 = vld [vmem:[#allocation2 + $0x108] sm:$0xff] }
 0x17a   : > { %1051 = vrot.lane.b32.xlu1 %v4729_v33, %s2636_s9  ;;  %2511 = vmatmul.mubr.msk.f32.gmra.mxu0 %vm1787_vm12, %v1749_v61  ;;  %v1651_v63 = vsel %vm1646_vm8, %v1618_v0, %v1127_v36  ;;  %v2599_v36 = vld [vmem:[#allocation2 + $0x38] sm:$0xff]  ;;  %v2603_v0 = vld [vmem:[#allocation2 + $0x50] sm:$0xff] }
 0x17b   : > { %v1227_v51 = vpop.permute.xlu0 %1226  ;;  %v1520_v49 = vsel %vm378_vm0, %v2599_v36, %v3397_v8 }
 0x17c   : > { %v1225_v28 = vpop.permute.xlu1 %1224  ;;  %v1553_v33 = vsel %vm1547_vm5, %v1520_v49, %v3552_v34  ;;  %v4731_v34 = vld [vmem:[#allocation20_spill] sm:$0xff] }
 0x17d   : > { %1152 = vrot.lane.b32.xlu0 %v3315_v23, %s2637_s14  ;;  %v1684_v45 = vsel %vm1679_vm10, %v1651_v63, %v1225_v28  ;;  %v1586_v31 = vsel %vm1580_vm6, %v1553_v33, %v3680_v18  ;;  %v1522_v63 = vsel %vm378_vm0, %v2603_v0, %v3405_v30 }
 0x17e   : > { %1449 = vrot.lane.b32.xlu1 %v3315_v23, %s2639_s8  ;;  %v1619_v52 = vsel %vm1613_vm7, %v1586_v31, %v1028_v7 }
 0x17f   : > { %v1030_v9 = vpop.permute.xlu0 %1029  ;;  %v1652_v8 = vsel %vm1646_vm8, %v1619_v52, %v1129_v3 }
 0x180   : > { %v1327_v15 = vpop.permute.xlu1 %1326  ;;  %v1685_v5 = vsel %vm1679_vm10, %v1652_v8, %v1227_v51  ;;  %v3956_v8 = vld [vmem:[#allocation2 + $0x128] sm:$0xff] }
 0x181   : > { %1250 = vrot.lane.b32.xlu0 %v3859_v24, %s2638_s22  ;;  %v1717_v25 = vsel %vm1712_vm9, %v1684_v45, %v1327_v15  ;;  %v1555_v45 = vsel %vm1547_vm5, %v1522_v63, %v3560_v39  ;;  %v4733_v39 = vld [vmem:[#allocation22_spill] sm:$0xff] }
 0x182   : > { %1248 = vrot.lane.b32.xlu1 %v3872_v2, %s2638_s22  ;;  %v1588_v15 = vsel %vm1580_vm6, %v1555_v45, %v3688_v27  ;;  %v4004_v45 = vld [vmem:[#allocation2 + $0x138] sm:$0xff] }
 0x183   : > { %v1428_v42 = vpop.permute.xlu0 %1427 }
 0x184   : > { %v1750_v23 = vsel %vm1745_vm11, %v1717_v25, %v1428_v42  ;;  %v1329_v57 = vpop.permute.xlu1 %1328 }
 0x185   : > { %1053 = vrot.lane.b32.xlu0 %v4730_v11, %s2636_s9  ;;  %2513 = vmatprep.mubr.msk.f32.mxu0 %vm1787_vm12, %v1750_v23  ;;  %v1718_v18 = vsel %vm1712_vm9, %v1685_v5, %v1329_v57 }
 0x186   : > { %1350 = vrot.lane.b32.xlu1 %v4730_v11, %s2640_s10 }
 0x187   : > { %v1131_v20 = vpop.permute.xlu0 %1130 }
 0x188   : > { %v1032_v37 = vpop.permute.xlu1 %1031 }
 0x189   : > { %1451 = vrot.lane.b32.xlu0 %v3297_v58, %s2639_s8  ;;  %v1621_v25 = vsel %vm1613_vm7, %v1588_v15, %v1032_v37 }
 0x18a   : > { %1352 = vrot.lane.b32.xlu1 %v4731_v34, %s2640_s10 }
 0x18b   : > { %v1133_v60 = vpop.permute.xlu0 %1132 }
 0x18c   : > { %v1430_v50 = vpop.permute.xlu1 %1429  ;;  %v1654_v30 = vsel %vm1646_vm8, %v1621_v25, %v1133_v60 }
 0x18d   : > { %1154 = vrot.lane.b32.xlu0 %v3297_v58, %s2637_s14  ;;  %v1751_v17 = vsel %vm1745_vm11, %v1718_v18, %v1430_v50  ;;  %v2600_v58 = vld [vmem:[#allocation2 + $0x48] sm:$0xff] }
 0x18e   : > { %1055 = vrot.lane.b32.xlu1 %v4731_v34, %s2636_s9  ;;  %2514 = vmatmul.mubr.msk.f32.gmra.mxu0 %vm1787_vm12, %v1751_v17  ;;  %v1521_v3 = vsel %vm378_vm0, %v2600_v58, %v3380_v47  ;;  %v2607_v17 = vld [vmem:[#allocation2 + $0x68] sm:$0xff] }
 0x18f   : > { %v1231_v44 = vpop.permute.xlu0 %1230  ;;  %v1554_v51 = vsel %vm1547_vm5, %v1521_v3, %v3542_v13  ;;  %v1524_v58 = vsel %vm378_vm0, %v2607_v17, %v3413_v32 }
 0x190   : > { %v1229_v61 = vpop.permute.xlu1 %1228  ;;  %v1587_v10 = vsel %vm1580_vm6, %v1554_v51, %v3670_v56  ;;  %v4732_v56 = vld [vmem:[#allocation17_spill] sm:$0xff]  ;;  %v4734_v51 = vld [vmem:[#allocation24_spill] sm:$0xff] }
 0x191   : > { %1156 = vrot.lane.b32.xlu0 %v3328_v4, %s2637_s14  ;;  %v1620_v38 = vsel %vm1613_vm7, %v1587_v10, %v1030_v9  ;;  %v4735_v10 = vld [vmem:[#allocation19_spill] sm:$0xff] }
 0x192   : > { %1453 = vrot.lane.b32.xlu1 %v3328_v4, %s2639_s8  ;;  %v1653_v47 = vsel %vm1646_vm8, %v1620_v38, %v1131_v20  ;;  %v1687_v20 = vsel %vm1679_vm10, %v1654_v30, %v1231_v44  ;;  %v4014_v30 = vld [vmem:[#allocation2 + $0x140] sm:$0xff] }
 0x193   : > { %v1034_v7 = vpop.permute.xlu0 %1033  ;;  %v1686_v28 = vsel %vm1679_vm10, %v1653_v47, %v1229_v61 }
 0x194   : > { %v1331_v13 = vpop.permute.xlu1 %1330 }
 0x195   : > { %1254 = vrot.lane.b32.xlu0 %v3908_v62, %s2638_s22  ;;  %v1719_v55 = vsel %vm1712_vm9, %v1686_v28, %v1331_v13 }
 0x196   : > { %1252 = vrot.lane.b32.xlu1 %v3920_v26, %s2638_s22 }
 0x197   : > { %v1432_v54 = vpop.permute.xlu0 %1431 }
 0x198   : > { %v1752_v9 = vsel %vm1745_vm11, %v1719_v55, %v1432_v54  ;;  %v1333_v42 = vpop.permute.xlu1 %1332 }
 0x199   : > { %1057 = vrot.lane.b32.xlu0 %v4732_v56, %s2636_s9  ;;  %2516 = vmatprep.mubr.msk.f32.mxu0 %vm1787_vm12, %v1752_v9  ;;  %v1720_v27 = vsel %vm1712_vm9, %v1687_v20, %v1333_v42 }
 0x19a   : > { %1354 = vrot.lane.b32.xlu1 %v4732_v56, %s2640_s10  ;;  %v2608_v56 = vld [vmem:[#allocation2 + $0x78] sm:$0xff] }
 0x19b   : > { %v1135_v4 = vpop.permute.xlu0 %1134  ;;  %v1525_v9 = vsel %vm378_vm0, %v2608_v56, %v3403_v43 }
 0x19c   : > { %v1036_v23 = vpop.permute.xlu1 %1035  ;;  %v1558_v0 = vsel %vm1547_vm5, %v1525_v9, %v3558_v14 }
 0x19d   : > { %1455 = vrot.lane.b32.xlu0 %v3310_v21, %s2639_s8  ;;  %v1591_v42 = vsel %vm1580_vm6, %v1558_v0, %v3686_v59 }
 0x19e   : > { %1356 = vrot.lane.b32.xlu1 %v4733_v39, %s2640_s10 }
 0x19f   : > { %v1137_v11 = vpop.permute.xlu0 %1136 }
 0x1a0   : > { %v1434_v49 = vpop.permute.xlu1 %1433 }
 0x1a1   : > { %1158 = vrot.lane.b32.xlu0 %v3310_v21, %s2637_s14  ;;  %v1753_v57 = vsel %vm1745_vm11, %v1720_v27, %v1434_v49  ;;  %v2604_v21 = vld [vmem:[#allocation2 + $0x60] sm:$0xff] }
 0x1a2   : > { %1059 = vrot.lane.b32.xlu1 %v4733_v39, %s2636_s9  ;;  %2517 = vmatmul.mubr.msk.f32.gmra.mxu0 %vm1787_vm12, %v1753_v57  ;;  %v1523_v33 = vsel %vm378_vm0, %v2604_v21, %v3392_v29  ;;  %v2611_v39 = vld [vmem:[#allocation2 + $0x80] sm:$0xff] }
 0x1a3   : > { %v1235_v36 = vpop.permute.xlu0 %1234  ;;  %v1556_v52 = vsel %vm1547_vm5, %v1523_v33, %v3550_v16  ;;  %v1526_v20 = vsel %vm378_vm0, %v2611_v39, %v3421_v48  ;;  %v4736_v33 = vld [vmem:[#allocation26_spill] sm:$0xff] }
 0x1a4   : > { %v1233_v60 = vpop.permute.xlu1 %1232  ;;  %v1589_v37 = vsel %vm1580_vm6, %v1556_v52, %v3678_v53  ;;  %v3968_v53 = vld [vmem:[#allocation2 + $0x120] sm:$0xff]  ;;  %v1559_v27 = vsel %vm1547_vm5, %v1526_v20, %v3576_v1 }
 0x1a5   : > { %1160 = vrot.lane.b32.xlu0 %v3343_v12, %s2637_s14  ;;  %v1622_v34 = vsel %vm1613_vm7, %v1589_v37, %v1034_v7  ;;  %v1557_v7 = vsel %vm1547_vm5, %v1524_v58, %v3568_v22  ;;  %v1592_v49 = vsel %vm1580_vm6, %v1559_v27, %v3704_v40  ;;  %v4737_v1 = vld [vmem:[#allocation21_spill] sm:$0xff]  ;;  %v4740_v58 = vld [vmem:[#allocation35_spill] sm:$0xff] }
 0x1a6   : > { %1457 = vrot.lane.b32.xlu1 %v3343_v12, %s2639_s8  ;;  %v1655_v29 = vsel %vm1646_vm8, %v1622_v34, %v1135_v4  ;;  %v1590_v61 = vsel %vm1580_vm6, %v1557_v7, %v3696_v6  ;;  %v2612_v34 = vld [vmem:[#allocation2 + $0x90] sm:$0xff] }
 0x1a7   : > { %v1038_v31 = vpop.permute.xlu0 %1037  ;;  %v1688_v44 = vsel %vm1679_vm10, %v1655_v29, %v1233_v60  ;;  %v1623_v38 = vsel %vm1613_vm7, %v1590_v61, %v1036_v23  ;;  %v1527_v29 = vsel %vm378_vm0, %v2612_v34, %v3411_v19  ;;  %v4060_v61 = vld [vmem:[#allocation2 + $0x150] sm:$0xff] }
 0x1a8   : > { %v1335_v16 = vpop.permute.xlu1 %1334  ;;  %v1656_v32 = vsel %vm1646_vm8, %v1623_v38, %v1137_v11  ;;  %v1624_v15 = vsel %vm1613_vm7, %v1591_v42, %v1038_v31 }
 0x1a9   : > { %1258 = vrot.lane.b32.xlu0 %v3956_v8, %s2638_s22  ;;  %v1721_v18 = vsel %vm1712_vm9, %v1688_v44, %v1335_v16  ;;  %v1689_v22 = vsel %vm1679_vm10, %v1656_v32, %v1235_v36  ;;  %v1560_v44 = vsel %vm1547_vm5, %v1527_v29, %v3566_v35  ;;  %v2617_v29 = vld [vmem:[#allocation2 + $0xb0] sm:$0xff] }
 0x1aa   : > { %1256 = vrot.lane.b32.xlu1 %v3968_v53, %s2638_s22 }
 0x1ab   : > { %v1436_v5 = vpop.permute.xlu0 %1435 }
 0x1ac   : > { %v1754_v50 = vsel %vm1745_vm11, %v1721_v18, %v1436_v5  ;;  %v1337_v3 = vpop.permute.xlu1 %1336  ;;  %v4738_v18 = vld [vmem:[#allocation5_spill] sm:$0xff] }
 0x1ad   : > { %961 = vrot.lane.b32.xlu0 %v3956_v8, %s2635_s6  ;;  %2519 = vmatprep.mubr.msk.f32.mxu0 %vm1787_vm12, %v1754_v50  ;;  %v1722_v6 = vsel %vm1712_vm9, %v1689_v22, %v1337_v3  ;;  %v1593_v50 = vsel %vm1580_vm6, %v1560_v44, %v4738_v18  ;;  %v4752_v18 = vld [vmem:[#allocation63_spill] sm:$0xff] }
 0x1ae   : > { %1358 = vrot.lane.b32.xlu1 %v4735_v10, %s2640_s10 }
 0x1af   : > { %v1139_v12 = vpop.permute.xlu0 %1138 }
 0x1b0   : > { %v1040_v54 = vpop.permute.xlu1 %1039  ;;  %v1657_v43 = vsel %vm1646_vm8, %v1624_v15, %v1139_v12  ;;  %v4739_v12 = vld [vmem:[#allocation38_spill] sm:$0xff] }
 0x1b1   : > { %1360 = vrot.lane.b32.xlu0 %v4734_v51, %s2640_s10 }
 0x1b2   : > { %1061 = vrot.lane.b32.xlu1 %v4735_v10, %s2636_s9 }
 0x1b3   : > { %v1141_v47 = vpop.permute.xlu0 %1140 }
 0x1b4   : > { %v1438_v13 = vpop.permute.xlu1 %1437 }
 0x1b5   : > { %1063 = vrot.lane.b32.xlu0 %v4734_v51, %s2636_s9  ;;  %v1755_v55 = vsel %vm1745_vm11, %v1722_v6, %v1438_v13  ;;  %v4072_v13 = vld [vmem:[#allocation2 + $0x158] sm:$0xff] }
 0x1b6   : > { %1459 = vrot.lane.b32.xlu1 %v3323_v41, %s2639_s8  ;;  %2520 = vmatmul.mubr.msk.f32.gmra.mxu0 %vm1787_vm12, %v1755_v55  ;;  %v4743_v55 = vld [vmem:[#allocation7_spill] sm:$0xff] }
 0x1b7   : > { %v1239_v28 = vpop.permute.xlu0 %1238 }
 0x1b8   : > { %v1237_v63 = vpop.permute.xlu1 %1236 }
 0x1b9   : > { %1461 = vrot.lane.b32.xlu0 %v3358_v46, %s2639_s8  ;;  %v1690_v11 = vsel %vm1679_vm10, %v1657_v43, %v1237_v63 }
 0x1ba   : > { %1162 = vrot.lane.b32.xlu1 %v3323_v41, %s2637_s14 }
 0x1bb   : > { %v1042_v4 = vpop.permute.xlu0 %1041 }
 0x1bc   : > { %v1339_v14 = vpop.permute.xlu1 %1338  ;;  %v1626_v17 = vsel %vm1613_vm7, %v1593_v50, %v1042_v4 }
 0x1bd   : > { %1260 = vrot.lane.b32.xlu0 %v4004_v45, %s2638_s22  ;;  %v1723_v23 = vsel %vm1712_vm9, %v1690_v11, %v1339_v14  ;;  %v4744_v14 = vld [vmem:[#allocation27_spill] sm:$0xff] }
 0x1be   : > { %1164 = vrot.lane.b32.xlu1 %v3358_v46, %s2637_s14  ;;  %v1625_v46 = vsel %vm1613_vm7, %v1592_v49, %v1040_v54  ;;  %v4741_v54 = vld [vmem:[#allocation43_spill] sm:$0xff] }
 0x1bf   : > { %v1440_v25 = vpop.permute.xlu0 %1439  ;;  %v1658_v48 = vsel %vm1646_vm8, %v1625_v46, %v1141_v47  ;;  %v2614_v47 = vld [vmem:[#allocation2 + $0x98] sm:$0xff]  ;;  %v4748_v46 = vld [vmem:[#allocation30_spill] sm:$0xff] }
 0x1c0   : > { %v1756_v59 = vsel %vm1745_vm11, %v1723_v23, %v1440_v25  ;;  %v1341_v36 = vpop.permute.xlu1 %1340  ;;  %v1691_v31 = vsel %vm1679_vm10, %v1658_v48, %v1239_v28  ;;  %v1528_v32 = vsel %vm378_vm0, %v2614_v47, %v4741_v54  ;;  %v4742_v28 = vld [vmem:[#allocation61_spill] sm:$0xff]  ;;  %v4745_v23 = vld [vmem:[#allocation23_spill] sm:$0xff] }
 0x1c1   : > { %1262 = vrot.lane.b32.xlu0 %v4014_v30, %s2638_s22  ;;  %2522 = vmatprep.mubr.msk.f32.mxu0 %vm1787_vm12, %v1756_v59  ;;  %v1724_v40 = vsel %vm1712_vm9, %v1691_v31, %v1341_v36  ;;  %v1561_v6 = vsel %vm1547_vm5, %v1528_v32, %v4742_v28  ;;  %v2616_v59 = vld [vmem:[#allocation2 + $0xa8] sm:$0xff]  ;;  %v4747_v36 = vld [vmem:[#allocation60_spill] sm:$0xff] }
 0x1c2   : > { %963 = vrot.lane.b32.xlu1 %v4004_v45, %s2635_s6  ;;  %v1594_v56 = vsel %vm1580_vm6, %v1561_v6, %v4743_v55  ;;  %v4754_v28 = vld [vmem:[#allocation42_spill] sm:$0xff] }
 0x1c3   : > { %v1143_v41 = vpop.permute.xlu0 %1142 }
 0x1c4   : > { %v1044_v21 = vpop.permute.xlu1 %1043  ;;  %v1659_v3 = vsel %vm1646_vm8, %v1626_v17, %v1143_v41  ;;  %v4746_v41 = vld [vmem:[#allocation41_spill] sm:$0xff]  ;;  %v4753_v17 = vld [vmem:[#allocation12_spill] sm:$0xff] }
 0x1c5   : > { %965 = vrot.lane.b32.xlu0 %v4014_v30, %s2635_s6  ;;  %v1627_v9 = vsel %vm1613_vm7, %v1594_v56, %v1044_v21  ;;  %v1529_v39 = vsel %vm378_vm0, %v2616_v59, %v4746_v41  ;;  %v4755_v56 = vld [vmem:[#allocation3_spill] sm:$0xff] }
 0x1c6   : > { %1362 = vrot.lane.b32.xlu1 %v4737_v1, %s2640_s10  ;;  %v1562_v27 = vsel %vm1547_vm5, %v1529_v39, %v4747_v36  ;;  %v4759_v36 = vld [vmem:[#allocation47_spill] sm:$0xff] }
 0x1c7   : > { %v1145_v57 = vpop.permute.xlu0 %1144 }
 0x1c8   : > { %v1442_v60 = vpop.permute.xlu1 %1441  ;;  %v1660_v63 = vsel %vm1646_vm8, %v1627_v9, %v1145_v57  ;;  %v1595_v57 = vsel %vm1580_vm6, %v1562_v27, %v4748_v46  ;;  %v4760_v46 = vld [vmem:[#allocation64_spill] sm:$0xff] }
 0x1c9   : > { %1364 = vrot.lane.b32.xlu0 %v4736_v33, %s2640_s10  ;;  %v1757_v37 = vsel %vm1745_vm11, %v1724_v40, %v1442_v60  ;;  %v4749_v40 = vld [vmem:[#allocation39_spill] sm:$0xff]  ;;  %v4750_v60 = vld [vmem:[#allocation36_spill] sm:$0xff] }
 0x1ca   : > { %1065 = vrot.lane.b32.xlu1 %v4737_v1, %s2636_s9  ;;  %2523 = vmatmul.mubr.msk.f32.gmra.mxu0 %vm1787_vm12, %v1757_v37 }
 0x1cb   : > { %v1243_v52 = vpop.permute.xlu0 %1242 }
 0x1cc   : > { %v1241_v16 = vpop.permute.xlu1 %1240  ;;  %v1693_v42 = vsel %vm1679_vm10, %v1660_v63, %v1243_v52 }
 0x1cd   : > { %1067 = vrot.lane.b32.xlu0 %v4736_v33, %s2636_s9  ;;  %v1692_v19 = vsel %vm1679_vm10, %v1659_v3, %v1241_v16 }
 0x1ce   : > { %1463 = vrot.lane.b32.xlu1 %v4740_v58, %s2639_s8 }
 0x1cf   : > { %v1046_v5 = vpop.permute.xlu0 %1045 }
 0x1d0   : > { %v1343_v51 = vpop.permute.xlu1 %1342  ;;  %v1628_v21 = vsel %vm1613_vm7, %v1595_v57, %v1046_v5  ;;  %v4751_v5 = vld [vmem:[#allocation45_spill] sm:$0xff] }
 0x1d1   : > { %1465 = vrot.lane.b32.xlu0 %v4739_v12, %s2639_s8  ;;  %v1725_v35 = vsel %vm1712_vm9, %v1692_v19, %v1343_v51  ;;  %v1530_v44 = vsel %vm378_vm0, %v2617_v29, %v4751_v5  ;;  %v4127_v51 = vld [vmem:[#allocation2 + $0x170] sm:$0xff] }
 0x1d2   : > { %1166 = vrot.lane.b32.xlu1 %v4740_v58, %s2637_s14  ;;  %v1563_v50 = vsel %vm1547_vm5, %v1530_v44, %v4752_v18  ;;  %v507_v44 = vld [vmem:[#allocation2 + $0x190] sm:$0x3] }
 0x1d3   : > { %v1444_v7 = vpop.permute.xlu0 %1443  ;;  %v1596_v58 = vsel %vm1580_vm6, %v1563_v50, %v4753_v17 }
 0x1d4   : > { %v1758_v10 = vsel %vm1745_vm11, %v1725_v35, %v1444_v7  ;;  %v1345_v22 = vpop.permute.xlu1 %1344 }
 0x1d5   : > { %1264 = vrot.lane.b32.xlu0 %v4060_v61, %s2638_s22  ;;  %2525 = vmatprep.mubr.msk.f32.mxu0 %vm1787_vm12, %v1758_v10  ;;  %v1726_v43 = vsel %vm1712_vm9, %v1693_v42, %v1345_v22  ;;  %v2620_v22 = vld [vmem:[#allocation2 + $0xc0] sm:$0xff]  ;;  %v4757_v42 = vld [vmem:[#allocation28_spill] sm:$0xff] }
 0x1d6   : > { %1168 = vrot.lane.b32.xlu1 %v4739_v12, %s2637_s14  ;;  %v4118_v12 = vld [vmem:[#allocation2 + $0x168] sm:$0xff]  ;;  %v1531_v6 = vsel %vm378_vm0, %v2620_v22, %v4754_v28 }
 0x1d7   : > { %v1147_v38 = vpop.permute.xlu0 %1146  ;;  %v1564_v9 = vsel %vm1547_vm5, %v1531_v6, %v4755_v56 }
 0x1d8   : > { %v1048_v0 = vpop.permute.xlu1 %1047  ;;  %v1661_v33 = vsel %vm1646_vm8, %v1628_v21, %v1147_v38  ;;  %v4761_v21 = vld [vmem:[#allocation40_spill] sm:$0xff] }
 0x1d9   : > { %1266 = vrot.lane.b32.xlu0 %v4072_v13, %s2638_s22  ;;  %v1629_v3 = vsel %vm1613_vm7, %v1596_v58, %v1048_v0  ;;  %v4756_v0 = vld [vmem:[#allocation10_spill] sm:$0xff]  ;;  %v1015_v58 = vrot.slane %v507_v44, 1 }
 0x1da   : > { %967 = vrot.lane.b32.xlu1 %v4060_v61, %s2635_s6  ;;  %v1597_v63 = vsel %vm1580_vm6, %v1564_v9, %v4756_v0 }
 0x1db   : > { %v1149_v4 = vpop.permute.xlu0 %1148 }
 0x1dc   : > { %v1446_v25 = vpop.permute.xlu1 %1445  ;;  %v1662_v35 = vsel %vm1646_vm8, %v1629_v3, %v1149_v4  ;;  %v2622_v3 = vld [vmem:[#allocation2 + $0xd8] sm:$0xff] }
 0x1dd   : > { %969 = vrot.lane.b32.xlu0 %v4072_v13, %s2635_s6  ;;  %v1759_v11 = vsel %vm1745_vm11, %v1726_v43, %v1446_v25  ;;  %v4758_v43 = vld [vmem:[#allocation25_spill] sm:$0xff] }
 0x1de   : > { %1366 = vrot.lane.b32.xlu1 %v4745_v23, %s2640_s10  ;;  %2526 = vmatmul.mubr.msk.f32.gmra.mxu0 %vm1787_vm12, %v1759_v11 }
 0x1df   : > { %v1247_v15 = vpop.permute.xlu0 %1246 }
 0x1e0   : > { %v1245_v49 = vpop.permute.xlu1 %1244  ;;  %v1695_v10 = vsel %vm1679_vm10, %v1662_v35, %v1247_v15 }
 0x1e1   : > { %1368 = vrot.lane.b32.xlu0 %v4744_v14, %s2640_s10  ;;  %v1694_v1 = vsel %vm1679_vm10, %v1661_v33, %v1245_v49  ;;  %v4762_v33 = vld [vmem:[#allocation75_spill] sm:$0xff] }
 0x1e2   : > { %1069 = vrot.lane.b32.xlu1 %v4745_v23, %s2636_s9 }
 0x1e3   : > { %v1050_v20 = vpop.permute.xlu0 %1049 }
 0x1e4   : > { %v1347_v31 = vpop.permute.xlu1 %1346  ;;  %v1630_v15 = vsel %vm1613_vm7, %v1597_v63, %v1050_v20  ;;  %v2621_v20 = vld [vmem:[#allocation2 + $0xc8] sm:$0xff] }
 0x1e5   : > { %1071 = vrot.lane.b32.xlu0 %v4744_v14, %s2636_s9  ;;  %v1727_v52 = vsel %vm1712_vm9, %v1694_v1, %v1347_v31  ;;  %v1532_v27 = vsel %vm378_vm0, %v2621_v20, %v4759_v36  ;;  %v4763_v1 = vld [vmem:[#allocation37_spill] sm:$0xff] }
 0x1e6   : > { %1467 = vrot.lane.b32.xlu1 %v4750_v60, %s2639_s8  ;;  %v1565_v57 = vsel %vm1547_vm5, %v1532_v27, %v4760_v46  ;;  %v505_v31 = vld [vmem:[#allocation2 + $0x180] sm:$0xff] }
 0x1e7   : > { %v1448_v48 = vpop.permute.xlu0 %1447  ;;  %v1012_v35 = vrot.slane %v505_v31, 1  ;;  %v4769_v36 = vld [vmem:[#allocation77_spill] sm:$0xff] }
 0x1e8   : > { %v1760_v37 = vsel %vm1745_vm11, %v1727_v52, %v1448_v48  ;;  %v1349_v16 = vpop.permute.xlu1 %1348  ;;  %v1598_v48 = vsel %vm1580_vm6, %v1565_v57, %v4762_v33  ;;  %v508_v33 = vld [vmem:[#allocation2 + $0x198] sm:$0xff] }
 0x1e9   : > { %1469 = vrot.lane.b32.xlu0 %v4749_v40, %s2639_s8  ;;  %2528 = vmatprep.mubr.msk.f32.mxu0 %vm1787_vm12, %v1760_v37  ;;  %v1728_v47 = vsel %vm1712_vm9, %v1695_v10, %v1349_v16 }
 0x1ea   : > { %1170 = vrot.lane.b32.xlu1 %v4750_v60, %s2637_s14 }
 0x1eb   : > { %v1151_v34 = vpop.permute.xlu0 %1150 }
 0x1ec   : > { %v1052_v19 = vpop.permute.xlu1 %1051  ;;  %v1663_v25 = vsel %vm1646_vm8, %v1630_v15, %v1151_v34  ;;  %v506_v34 = vld [vmem:[#allocation2 + $0x188] sm:$0xff] }
 0x1ed   : > { %1268 = vrot.lane.b32.xlu0 %v4118_v12, %s2638_s22  ;;  %v1631_v52 = vsel %vm1613_vm7, %v1598_v48, %v1052_v19  ;;  %v1013_v17 = vrot.slane %v506_v34, 1  ;;  %v1114_v15 = vrot.slane %v506_v34, 2  ;;  %v509_v48 = vld [vmem:[#allocation2 + $0x1a0] sm:$0xff] }
 0x1ee   : > { %1172 = vrot.lane.b32.xlu1 %v4749_v40, %s2637_s14 }
 0x1ef   : > { %v1153_v7 = vpop.permute.xlu0 %1152  ;;  %v1016_v6 = vsel %vm559_vm3, %v1013_v17, %v1015_v58 }
 0x1f0   : > { %v1450_v54 = vpop.permute.xlu1 %1449  ;;  %v1664_v37 = vsel %vm1646_vm8, %v1631_v52, %v1153_v7  ;;  %v4764_v7 = vld [vmem:[#allocation44_spill] sm:$0xff]  ;;  %v1313_v52 = vrot.slane %v508_v33, 1 }
 0x1f1   : > { %1270 = vrot.lane.b32.xlu0 %v4127_v51, %s2638_s22  ;;  %v1761_v32 = vsel %vm1745_vm11, %v1728_v47, %v1450_v54  ;;  %v1533_v19 = vsel %vm378_vm0, %v2622_v3, %v4764_v7  ;;  %v4770_v7 = vld [vmem:[#allocation51_spill] sm:$0xff] }
 0x1f2   : > { %971 = vrot.lane.b32.xlu1 %v4118_v12, %s2635_s6  ;;  %2529 = vmatmul.mubr.msk.f32.gmra.mxu0 %vm1787_vm12, %v1761_v32  ;;  %v4766_v32 = vld [vmem:[#allocation31_spill] sm:$0xff] }
 0x1f3   : > { %v1251_v38 = vpop.permute.xlu0 %1250 }
 0x1f4   : > { %v1249_v4 = vpop.permute.xlu1 %1248  ;;  %v1697_v29 = vsel %vm1679_vm10, %v1664_v37, %v1251_v38  ;;  %v4765_v38 = vld [vmem:[#allocation62_spill] sm:$0xff]  ;;  %v1314_v37 = vrot.slane %v509_v48, 1 }
 0x1f5   : > { %973 = vrot.lane.b32.xlu0 %v4127_v51, %s2635_s6  ;;  %v1696_v14 = vsel %vm1679_vm10, %v1663_v25, %v1249_v4  ;;  %v1566_v47 = vsel %vm1547_vm5, %v1533_v19, %v4765_v38  ;;  %v1014_v4 = vsel %vm559_vm3, %v1012_v35, %v1013_v17  ;;  %v1113_v25 = vrot.slane %v505_v31, 2 }
 0x1f6   : > { %1370 = vrot.lane.b32.xlu1 %v4758_v43, %s2640_s10  ;;  %v1599_v22 = vsel %vm1580_vm6, %v1566_v47, %v4766_v32  ;;  %v1536_v19 = vsel %vm378_vm0, %v3859_v24, %v4770_v7  ;;  %v4771_v47 = vld [vmem:[#allocation68_spill] sm:$0xff]  ;;  %v4774_v24 = vld [vmem:[#allocation6_spill] sm:$0xff]  ;;  %v4778_v7 = vld [vmem:[#allocation69_spill] sm:$0xff] }
 0x1f7   : > { %v1054_v55 = vpop.permute.xlu0 %1053 }
 0x1f8   : > { %v1351_v23 = vpop.permute.xlu1 %1350  ;;  %v1632_v28 = vsel %vm1613_vm7, %v1599_v22, %v1054_v55  ;;  %v4772_v22 = vld [vmem:[#allocation9_spill] sm:$0xff] }
 0x1f9   : > { %1372 = vrot.lane.b32.xlu0 %v4757_v42, %s2640_s10  ;;  %v1729_v59 = vsel %vm1712_vm9, %v1696_v14, %v1351_v23  ;;  %v2623_v14 = vld [vmem:[#allocation2 + $0xe0] sm:$0xff] }
 0x1fa   : > { %1073 = vrot.lane.b32.xlu1 %v4758_v43, %s2636_s9  ;;  %v1116_v43 = vrot.slane %v507_v44, 2  ;;  %v4767_v23 = vld [vmem:[#allocation49_spill] sm:$0xff] }
 0x1fb   : > { %v1452_v11 = vpop.permute.xlu0 %1451 }
 0x1fc   : > { %v1762_v41 = vsel %vm1745_vm11, %v1729_v59, %v1452_v11  ;;  %v1353_v49 = vpop.permute.xlu1 %1352  ;;  %v1534_v59 = vsel %vm378_vm0, %v2623_v14, %v4767_v23 }
 0x1fd   : > { %1075 = vrot.lane.b32.xlu0 %v4757_v42, %s2636_s9  ;;  %2531 = vmatprep.mubr.msk.f32.mxu1 %vm1787_vm12, %v1762_v41  ;;  %v1730_v16 = vsel %vm1712_vm9, %v1697_v29, %v1353_v49  ;;  %v1117_v49 = vsel %vm736_vm4, %v1114_v15, %v1116_v43 }
 0x1fe   : > { %1471 = vrot.lane.b32.xlu1 %v4763_v1, %s2639_s8 }
 0x1ff   : > { %v1155_v39 = vpop.permute.xlu0 %1154 }
 0x200   : > { %v1056_v60 = vpop.permute.xlu1 %1055  ;;  %v1665_v56 = vsel %vm1646_vm8, %v1632_v28, %v1155_v39  ;;  %v4768_v39 = vld [vmem:[#allocation66_spill] sm:$0xff] }
 0x201   : > { %1473 = vrot.lane.b32.xlu0 %v4761_v21, %s2639_s8  ;;  %v1567_v20 = vsel %vm1547_vm5, %v1534_v59, %v4768_v39 }
 0x202   : > { %1174 = vrot.lane.b32.xlu1 %v4763_v1, %s2637_s14  ;;  %v1600_v27 = vsel %vm1580_vm6, %v1567_v20, %v4769_v36 }
 0x203   : > { %v1157_v40 = vpop.permute.xlu0 %1156  ;;  %v1633_v46 = vsel %vm1613_vm7, %v1600_v27, %v1056_v60 }
 0x204   : > { %v1454_v18 = vpop.permute.xlu1 %1453 }
 0x205   : > { %1272 = vrot.lane.b32.xlu0 %v505_v31, %s2638_s22  ;;  %v1763_v50 = vsel %vm1745_vm11, %v1730_v16, %v1454_v18  ;;  %v1414_v18 = vrot.slane %v508_v33, 2 }
 0x206   : > { %1176 = vrot.lane.b32.xlu1 %v4761_v21, %s2637_s14  ;;  %2532 = vmatmul.mubr.msk.f32.vlgmr.msra.gmra.mxu1 %vm1787_vm12, %v1763_v50  ;;  %v1115_v21 = vsel %vm736_vm4, %v1113_v25, %v1114_v15  ;;  %v1415_v50 = vrot.slane %v509_v48, 2  ;;  %v4775_v15 = vld [vmem:[#allocation74_spill] sm:$0xff] }
 0x207   : > { %v1255_v5 = vpop.permute.xlu0 %1254 }
 0x208   : > { %v1253_v54 = vpop.permute.xlu1 %1252  ;;  %v1416_v3 = vsel %vm736_vm4, %v1414_v18, %v1415_v50 }
 0x209   : > { %1274 = vrot.lane.b32.xlu0 %v506_v34, %s2638_s22  ;;  %v1698_v0 = vsel %vm1679_vm10, %v1665_v56, %v1253_v54  ;;  %v1569_v54 = vsel %vm1547_vm5, %v1536_v19, %v4771_v47 }
 0x20a   : > { %975 = vrot.lane.b32.xlu1 %v505_v31, %s2635_s6  ;;  %v1666_v31 = vsel %vm1646_vm8, %v1633_v46, %v1157_v40  ;;  %v1315_v40 = vsel %vm559_vm3, %v1313_v52, %v1314_v37  ;;  %v1602_v28 = vsel %vm1580_vm6, %v1569_v54, %v4772_v22 }
 0x20b   : > { %v4186_v10 = vpop.permute.xlu0 %1057 }
 0x20c   : > { %v1355_v63 = vpop.permute.xlu1 %1354 }
 0x20d   : > { %977 = vrot.lane.b32.xlu0 %v506_v34, %s2635_s6  ;;  %v1731_v42 = vsel %vm1712_vm9, %v1698_v0, %v1355_v63  ;;  %v1699_v34 = vsel %vm1679_vm10, %v1666_v31, %v1255_v5  ;;  %v510_v5 = vld [vmem:[#allocation2 + $0x1a8] sm:$0x3] }
 0x20e   : > { %1374 = vrot.lane.b32.xlu1 %v1014_v4, %s2640_s10  ;;  %v1316_v38 = vrot.slane %v510_v5, 1 }
 0x20f   : > { %v1456_v9 = vpop.permute.xlu0 %1455 }
 0x210   : > { %v1764_v55 = vsel %vm1745_vm11, %v1731_v42, %v1456_v9  ;;  %v1357_v41 = vpop.permute.xlu1 %1356  ;;  %v1317_v63 = vsel %vm559_vm3, %v1314_v37, %v1316_v38  ;;  %v1417_v42 = vrot.slane %v510_v5, 2  ;;  %v4777_v5 = vld [vmem:[#allocation48_spill] sm:$0xff]  ;;  %v4779_v38 = vld [vmem:[#allocation65_spill] sm:$0xff] }
 0x211   : > { %1376 = vrot.lane.b32.xlu0 %v1016_v6, %s2640_s10  ;;  %2534 = vmatprep.mubr.msk.f32.mxu1 %vm1787_vm12, %v1764_v55  ;;  %v1732_v44 = vsel %vm1712_vm9, %v1699_v34, %v1357_v41 }
 0x212   : > { %1077 = vrot.lane.b32.xlu1 %v1014_v4, %s2636_s9 }
 0x213   : > { %v1159_v11 = vpop.permute.xlu0 %1158 }
 0x214   : > { %v1060_v1 = vpop.permute.xlu1 %1059 }
 0x215   : > { %1079 = vrot.lane.b32.xlu0 %v1016_v6, %s2636_s9  ;;  %v4773_v6 = vld [vmem:[#allocation46_spill] sm:$0xff]  ;;  %v1635_v9 = vsel %vm1613_vm7, %v1602_v28, %v1060_v1  ;;  %s4253_s9 = scalar_lea.vmem %s4544_s4, %s2446_s21  ;;  %s2409_s21 = sshll.u32 %s4798_s19, 1 }
 0x216   : > { %1475 = vrot.lane.b32.xlu1 %v1115_v21, %s2639_s8  ;;  %v1535_v56 = vsel %vm378_vm0, %v3872_v2, %v4773_v6  ;;  %s235_s17 = scalar_lea.vmem %s4545_s5, %s2409_s21 }
 0x217   : > { %v1161_v57 = vpop.permute.xlu0 %1160  ;;  %v1568_v4 = vsel %vm1547_vm5, %v1535_v56, %v4774_v24 }
 0x218   : > { %v1458_v60 = vpop.permute.xlu1 %1457  ;;  %v1601_v55 = vsel %vm1580_vm6, %v1568_v4, %v4775_v15  ;;  %v1668_v25 = vsel %vm1646_vm8, %v1635_v9, %v1161_v57 }
 0x219   : > { %1477 = vrot.lane.b32.xlu0 %v1117_v49, %s2639_s8  ;;  %v1765_v16 = vsel %vm1745_vm11, %v1732_v44, %v1458_v60  ;;  %v1634_v2 = vsel %vm1613_vm7, %v1601_v55, %v4186_v10  ;;  %v1418_v10 = vsel %vm736_vm4, %v1415_v50, %v1417_v42 }
 0x21a   : > { %1178 = vrot.lane.b32.xlu1 %v1115_v21, %s2637_s14  ;;  %2535 = vmatmul.mubr.msk.f32.gmra.mxu1 %vm1787_vm12, %v1765_v16  ;;  %v1667_v14 = vsel %vm1646_vm8, %v1634_v2, %v1159_v11 }
 0x21b   : > { %v1259_v29 = vpop.permute.xlu0 %1258 }
 0x21c   : > { %v1257_v58 = vpop.permute.xlu1 %1256  ;;  %v1701_v23 = vsel %vm1679_vm10, %v1668_v25, %v1259_v29 }
 0x21d   : > { %1276 = vrot.lane.b32.xlu0 %v508_v33, %s2638_s22  ;;  %v1700_v41 = vsel %vm1679_vm10, %v1667_v14, %v1257_v58 }
 0x21e   : > { %1180 = vrot.lane.b32.xlu1 %v1117_v49, %s2637_s14 }
 0x21f   : > { %v4225_v17 = vpop.permute.xlu0 %961 }
 0x220   : > { %v1359_v32 = vpop.permute.xlu1 %1358 }
 0x221   : > { %1378 = vrot.lane.b32.xlu0 %v1315_v40, %s2640_s10  ;;  %v1733_v27 = vsel %vm1712_vm9, %v1700_v41, %v1359_v32  ;;  %v4776_v40 = vld [vmem:[#allocation53_spill] sm:$0xff]  ;;  %v4780_v32 = vld [vmem:[#allocation76_spill] sm:$0xff] }
 0x222   : > { %1278 = vrot.lane.b32.xlu1 %v509_v48, %s2638_s22  ;;  %v1538_v50 = vsel %vm378_vm0, %v3908_v62, %v4776_v40 }
 0x223   : > { %v1361_v35 = vpop.permute.xlu0 %1360  ;;  %v1571_v19 = vsel %vm1547_vm5, %v1538_v50, %v4778_v7 }
 0x224   : > { %v1062_v43 = vpop.permute.xlu1 %1061  ;;  %v1734_v39 = vsel %vm1712_vm9, %v1701_v23, %v1361_v35  ;;  %v1604_v54 = vsel %vm1580_vm6, %v1571_v19, %v4225_v17 }
 0x225   : > { %1479 = vrot.lane.b32.xlu0 %v1416_v3, %s2639_s8  ;;  %v1537_v3 = vsel %vm378_vm0, %v3920_v26, %v4777_v5 }
 0x226   : > { %v2509_v59 = vpop.f32.mrf.mxu0  ;;  %1380 = vrot.lane.b32.xlu1 %v1317_v63, %s2640_s10  ;;  %v1570_v47 = vsel %vm1547_vm5, %v1537_v3, %v4779_v38 }
 0x227   : > { %v1064_v0 = vpop.permute.xlu0 %1063  ;;  %v2179_v20 = vmul.f32 %v2509_v59, %v2509_v59  ;;  %2283 = vst.msk [vmem:[%s4253_s9 + $0x8] sm:$0xff] %vm378_vm0, %v2509_v59  ;;  %v2110_v57 = vsel %vm378_vm0, %v2509_v59, 0.0  ;;  %v1603_v22 = vsel %vm1580_vm6, %v1570_v47, %v4780_v32 }
 0x228   : > { %v1950_v49 = vpop.f32.mrf.mxu0  ;;  %v1460_v46 = vpop.permute.xlu1 %1459  ;;  %v1637_v62 = vsel %vm1613_vm7, %v1604_v54, %v1064_v0  ;;  %v1636_v6 = vsel %vm1613_vm7, %v1603_v22, %v1062_v43 }
 0x229   : > { %v2109_v21 = vsel %vm378_vm0, %v1950_v49, 0.0  ;;  %v2178_v33 = vmul.f32 %v1950_v49, %v1950_v49  ;;  %2282 = vst.msk [vmem:[%s4253_s9] sm:$0xff] %vm378_vm0, %v1950_v49  ;;  %v1766_v48 = vsel %vm1745_vm11, %v1733_v27, %v1460_v46  ;;  %v2211_v31 = vsel %vm378_vm0, %v2179_v20, 0.0 }
 0x22a   : > { %v2111_v1 = vadd.f32 %v2110_v57, %v2109_v21  ;;  %1481 = vrot.lane.b32.xlu1 %v1418_v10, %s2639_s8  ;;  %2537 = vmatprep.mubr.msk.f32.mxu1 %vm1787_vm12, %v1766_v48 }
 0x22b   : > { %v1462_v36 = vpop.permute.xlu0 %1461  ;;  %v2210_v52 = vsel %vm378_vm0, %v2178_v33, 0.0 }
 0x22c   : > { %v1767_v11 = vsel %vm1745_vm11, %v1734_v39, %v1462_v36  ;;  %v2212_v34 = vadd.f32 %v2211_v31, %v2210_v52  ;;  %v1163_v29 = vpop.permute.xlu1 %1162  ;;  %v4782_v52 = vld [vmem:[#allocation55_spill] sm:$0xff] }
 0x22d   : > { %2538 = vmatmul.mubr.msk.f32.gmra.mxu1 %vm1787_vm12, %v1767_v11  ;;  %v1669_v9 = vsel %vm1646_vm8, %v1636_v6, %v1163_v29  ;;  %v4783_v29 = vld [vmem:[#allocation67_spill] sm:$0xff] }
 0x22f   : > { %v1261_v37 = vpop.permute.xlu0 %1260 }
 0x230   : > { %v1165_v60 = vpop.permute.xlu1 %1164  ;;  %v1702_v43 = vsel %vm1679_vm10, %v1669_v9, %v1261_v37  ;;  %v1540_v37 = vsel %vm378_vm0, %v3956_v8, %v4782_v52 }
 0x231   : > { %v1670_v26 = vsel %vm1646_vm8, %v1637_v62, %v1165_v60  ;;  %v4784_v60 = vld [vmem:[#allocation70_spill] sm:$0xff] }
 0x232   : > { %v1573_v40 = vsel %vm1547_vm5, %v1540_v37, %v4784_v60 }
 0x233   : > { %v1263_v44 = vpop.permute.xlu0 %1262 }
 0x234   : > { %v964_v18 = vpop.permute.xlu1 %963  ;;  %v1703_v0 = vsel %vm1679_vm10, %v1670_v26, %v1263_v44 }
 0x237   : > { %v966_v16 = vpop.permute.xlu0 %965 }
 0x238   : > { %v1363_v35 = vpop.permute.xlu1 %1362  ;;  %v1606_v5 = vsel %vm1580_vm6, %v1573_v40, %v966_v16 }
 0x239   : > { %v1735_v23 = vsel %vm1712_vm9, %v1702_v43, %v1363_v35 }
 0x23a   : > { %v2512_v28 = vpop.f32.mrf.mxu0 }
 0x23b   : > { %v1365_v58 = vpop.permute.xlu0 %1364  ;;  %2285 = vst.msk [vmem:[%s4253_s9 + $0x18] sm:$0xff] %vm378_vm0, %v2512_v28  ;;  %v2181_v63 = vmul.f32 %v2512_v28, %v2512_v28  ;;  %v2114_v2 = vsel %vm378_vm0, %v2512_v28, 0.0 }
 0x23c   : > { %v1960_v24 = vpop.f32.mrf.mxu0  ;;  %v1066_v4 = vpop.permute.xlu1 %1065  ;;  %v1736_v55 = vsel %vm1712_vm9, %v1703_v0, %v1365_v58 }
 0x23d   : > { %v2112_v17 = vsel %vm378_vm0, %v1960_v24, 0.0  ;;  %v2180_v42 = vmul.f32 %v1960_v24, %v1960_v24  ;;  %2284 = vst.msk [vmem:[%s4253_s9 + $0x10] sm:$0xff] %vm378_vm0, %v1960_v24  ;;  %v2215_v36 = vsel %vm378_vm0, %v2181_v63, 0.0 }
 0x23e   : > { %v2113_v15 = vadd.f32 %v2112_v17, %v2111_v1  ;;  %v4781_v1 = vld [vmem:[#allocation50_spill] sm:$0xff] }
 0x23f   : > { %v1068_v56 = vpop.permute.xlu0 %1067  ;;  %v2213_v25 = vsel %vm378_vm0, %v2180_v42, 0.0  ;;  %v1539_v31 = vsel %vm378_vm0, %v3968_v53, %v4781_v1  ;;  %v4787_v1 = vld [vmem:[#allocation71_spill] sm:$0xff] }
 0x240   : > { %v2214_v59 = vadd.f32 %v2213_v25, %v2212_v34  ;;  %v1464_v39 = vpop.permute.xlu1 %1463  ;;  %v2115_v20 = vadd.f32 %v2114_v2, %v2113_v15  ;;  %v1572_v44 = vsel %vm1547_vm5, %v1539_v31, %v4783_v29  ;;  %v1639_v19 = vsel %vm1613_vm7, %v1606_v5, %v1068_v56  ;;  %v4788_v29 = vld [vmem:[#allocation4_spill] sm:$0xff] }
 0x241   : > { %v1768_v10 = vsel %vm1745_vm11, %v1735_v23, %v1464_v39  ;;  %v1605_v8 = vsel %vm1580_vm6, %v1572_v44, %v964_v18 }
 0x242   : > { %2540 = vmatprep.mubr.msk.f32.mxu1 %vm1787_vm12, %v1768_v10  ;;  %v2216_v27 = vadd.f32 %v2215_v36, %v2214_v59  ;;  %v1638_v38 = vsel %vm1613_vm7, %v1605_v8, %v1066_v4  ;;  %v4785_v10 = vld [vmem:[#allocation57_spill] sm:$0xff] }
 0x243   : > { %v1466_v14 = vpop.permute.xlu0 %1465 }
 0x244   : > { %v1769_v41 = vsel %vm1745_vm11, %v1736_v55, %v1466_v14  ;;  %v1167_v49 = vpop.permute.xlu1 %1166 }
 0x245   : > { %2541 = vmatmul.mubr.msk.f32.gmra.mxu1 %vm1787_vm12, %v1769_v41  ;;  %v1671_v22 = vsel %vm1646_vm8, %v1638_v38, %v1167_v49 }
 0x247   : > { %v1265_v11 = vpop.permute.xlu0 %1264 }
 0x248   : > { %v1169_v57 = vpop.permute.xlu1 %1168  ;;  %v1704_v24 = vsel %vm1679_vm10, %v1671_v22, %v1265_v11 }
 0x249   : > { %v1672_v47 = vsel %vm1646_vm8, %v1639_v19, %v1169_v57  ;;  %v4786_v57 = vld [vmem:[#allocation52_spill] sm:$0xff] }
 0x24b   : > { %v1267_v46 = vpop.permute.xlu0 %1266 }
 0x24c   : > { %v4314_v33 = vpop.permute.xlu1 %967  ;;  %v1705_v18 = vsel %vm1679_vm10, %v1672_v47, %v1267_v46 }
 0x24e   : > { %v2515_v48 = vpop.f32.mrf.mxu0 }
 0x24f   : > { %v4312_v21 = vpop.permute.xlu0 %969  ;;  %2287 = vst.msk [vmem:[%s4253_s9 + $0x28] sm:$0xff] %vm378_vm0, %v2515_v48  ;;  %v2183_v3 = vmul.f32 %v2515_v48, %v2515_v48  ;;  %v2118_v54 = vsel %vm378_vm0, %v2515_v48, 0.0  ;;  %v1541_v48 = vsel %vm378_vm0, %v4004_v45, %v4786_v57 }
 0x250   : > { %v1970_v50 = vpop.f32.mrf.mxu0  ;;  %v1367_v58 = vpop.permute.xlu1 %1366  ;;  %v1574_v44 = vsel %vm1547_vm5, %v1541_v48, %v4788_v29 }
 0x251   : > { %v2116_v53 = vsel %vm378_vm0, %v1970_v50, 0.0  ;;  %v2182_v7 = vmul.f32 %v1970_v50, %v1970_v50  ;;  %2286 = vst.msk [vmem:[%s4253_s9 + $0x20] sm:$0xff] %vm378_vm0, %v1970_v50  ;;  %v2219_v26 = vsel %vm378_vm0, %v2183_v3, 0.0  ;;  %v1737_v63 = vsel %vm1712_vm9, %v1704_v24, %v1367_v58 }
 0x252   : > { %v2117_v35 = vadd.f32 %v2116_v53, %v2115_v20  ;;  %v1607_v40 = vsel %vm1580_vm6, %v1574_v44, %v4314_v33 }
 0x253   : > { %v1369_v34 = vpop.permute.xlu0 %1368  ;;  %v2217_v32 = vsel %vm378_vm0, %v2182_v7, 0.0 }
 0x254   : > { %v2218_v62 = vadd.f32 %v2217_v32, %v2216_v27  ;;  %v1070_v28 = vpop.permute.xlu1 %1069  ;;  %v2119_v6 = vadd.f32 %v2118_v54, %v2117_v35  ;;  %v1738_v9 = vsel %vm1712_vm9, %v1705_v18, %v1369_v34  ;;  %v1542_v27 = vsel %vm378_vm0, %v4014_v30, %v4785_v10  ;;  %v4792_v10 = vld [vmem:[#allocation29_spill] sm:$0xff] }
 0x255   : > { %v1575_v31 = vsel %vm1547_vm5, %v1542_v27, %v4787_v1  ;;  %v1640_v58 = vsel %vm1613_vm7, %v1607_v40, %v1070_v28 }
 0x256   : > { %v2220_v56 = vadd.f32 %v2219_v26, %v2218_v62  ;;  %v1608_v30 = vsel %vm1580_vm6, %v1575_v31, %v4312_v21 }
 0x257   : > { %v1072_v16 = vpop.permute.xlu0 %1071 }
 0x258   : > { %v1468_v42 = vpop.permute.xlu1 %1467  ;;  %v1641_v50 = vsel %vm1613_vm7, %v1608_v30, %v1072_v16 }
 0x259   : > { %v1770_v0 = vsel %vm1745_vm11, %v1737_v63, %v1468_v42 }
 0x25a   : > { %2543 = vmatprep.mubr.msk.f32.mxu1 %vm1787_vm12, %v1770_v0 }
 0x25b   : > { %v1470_v4 = vpop.permute.xlu0 %1469 }
 0x25c   : > { %v1771_v17 = vsel %vm1745_vm11, %v1738_v9, %v1470_v4  ;;  %v1171_v55 = vpop.permute.xlu1 %1170 }
 0x25d   : > { %2544 = vmatmul.mubr.msk.f32.gmra.mxu1 %vm1787_vm12, %v1771_v17  ;;  %v1673_v53 = vsel %vm1646_vm8, %v1640_v58, %v1171_v55 }
 0x25f   : > { %v1269_v15 = vpop.permute.xlu0 %1268 }
 0x260   : > { %v1173_v2 = vpop.permute.xlu1 %1172  ;;  %v1706_v19 = vsel %vm1679_vm10, %v1673_v53, %v1269_v15 }
 0x261   : > { %v1674_v5 = vsel %vm1646_vm8, %v1641_v50, %v1173_v2 }
 0x262   : > { %v2518_v25 = vpop.f32.mrf.mxu0 }
 0x263   : > { %v1271_v43 = vpop.permute.xlu0 %1270  ;;  %2289 = vst.msk [vmem:[%s4253_s9 + $0x38] sm:$0xff] %vm378_vm0, %v2518_v25  ;;  %v2185_v41 = vmul.f32 %v2518_v25, %v2518_v25  ;;  %v2122_v11 = vsel %vm378_vm0, %v2518_v25, 0.0 }
 0x264   : > { %v1980_v23 = vpop.f32.mrf.mxu0  ;;  %v4352_v59 = vpop.permute.xlu1 %971  ;;  %v1707_v8 = vsel %vm1679_vm10, %v1674_v5, %v1271_v43  ;;  %v4789_v43 = vld [vmem:[#allocation58_spill] sm:$0xff] }
 0x265   : > { %v2120_v39 = vsel %vm378_vm0, %v1980_v23, 0.0  ;;  %v2184_v20 = vmul.f32 %v1980_v23, %v1980_v23  ;;  %2288 = vst.msk [vmem:[%s4253_s9 + $0x30] sm:$0xff] %vm378_vm0, %v1980_v23  ;;  %v2223_v60 = vsel %vm378_vm0, %v2185_v41, 0.0  ;;  %v1544_v2 = vsel %vm378_vm0, %v4072_v13, %v4789_v43  ;;  %v4790_v23 = vld [vmem:[#allocation54_spill] sm:$0xff] }
 0x266   : > { %v2121_v36 = vadd.f32 %v2120_v39, %v2119_v6  ;;  %v1543_v41 = vsel %vm378_vm0, %v4060_v61, %v4790_v23  ;;  %v4791_v39 = vld [vmem:[#allocation72_spill] sm:$0xff] }
 0x267   : > { %v4350_v14 = vpop.permute.xlu0 %973  ;;  %v2221_v49 = vsel %vm378_vm0, %v2184_v20, 0.0  ;;  %v1577_v20 = vsel %vm1547_vm5, %v1544_v2, %v4791_v39  ;;  %v1576_v27 = vsel %vm1547_vm5, %v1543_v41, %v4792_v10 }
 0x268   : > { %v2222_v52 = vadd.f32 %v2221_v49, %v2220_v56  ;;  %v1371_v37 = vpop.permute.xlu1 %1370  ;;  %v2123_v34 = vadd.f32 %v2122_v11, %v2121_v36  ;;  %v1610_v11 = vsel %vm1580_vm6, %v1577_v20, %v4350_v14  ;;  %v1609_v49 = vsel %vm1580_vm6, %v1576_v27, %v4352_v59 }
 0x269   : > { %v1739_v33 = vsel %vm1712_vm9, %v1706_v19, %v1371_v37 }
 0x26a   : > { %v2224_v45 = vadd.f32 %v2223_v60, %v2222_v52  ;;  %v4793_v60 = vld [vmem:[#allocation56_spill] sm:$0xff] }
 0x26b   : > { %v1373_v46 = vpop.permute.xlu0 %1372  ;;  %v1545_v40 = vsel %vm378_vm0, %v4118_v12, %v4793_v60 }
 0x26c   : > { %v1074_v7 = vpop.permute.xlu1 %1073  ;;  %v1740_v21 = vsel %vm1712_vm9, %v1707_v8, %v1373_v46 }
 0x26d   : > { %v1642_v46 = vsel %vm1613_vm7, %v1609_v49, %v1074_v7 }
 0x26f   : > { %v1076_v3 = vpop.permute.xlu0 %1075 }
 0x270   : > { %v1472_v47 = vpop.permute.xlu1 %1471  ;;  %v1643_v13 = vsel %vm1613_vm7, %v1610_v11, %v1076_v3 }
 0x271   : > { %v1772_v54 = vsel %vm1745_vm11, %v1739_v33, %v1472_v47 }
 0x272   : > { %2546 = vmatprep.mubr.msk.f32.mxu1 %vm1787_vm12, %v1772_v54 }
 0x273   : > { %v1474_v35 = vpop.permute.xlu0 %1473 }
 0x274   : > { %v1773_v38 = vsel %vm1745_vm11, %v1740_v21, %v1474_v35  ;;  %v1175_v16 = vpop.permute.xlu1 %1174 }
 0x275   : > { %2547 = vmatmul.mubr.msk.f32.gmra.mxu1 %vm1787_vm12, %v1773_v38  ;;  %v1675_v48 = vsel %vm1646_vm8, %v1642_v46, %v1175_v16 }
 0x276   : > { %v2521_v22 = vpop.f32.mrf.mxu0 }
 0x277   : > { %v1273_v32 = vpop.permute.xlu0 %1272  ;;  %2291 = vst.msk [vmem:[%s4253_s9 + $0x48] sm:$0xff] %vm378_vm0, %v2521_v22  ;;  %v2187_v26 = vmul.f32 %v2521_v22, %v2521_v22  ;;  %v2126_v24 = vsel %vm378_vm0, %v2521_v22, 0.0 }
 0x278   : > { %v1990_v28 = vpop.f32.mrf.mxu0  ;;  %v1177_v6 = vpop.permute.xlu1 %1176  ;;  %v1708_v14 = vsel %vm1679_vm10, %v1675_v48, %v1273_v32 }
 0x279   : > { %v2124_v18 = vsel %vm378_vm0, %v1990_v28, 0.0  ;;  %v2186_v56 = vmul.f32 %v1990_v28, %v1990_v28  ;;  %2290 = vst.msk [vmem:[%s4253_s9 + $0x40] sm:$0xff] %vm378_vm0, %v1990_v28  ;;  %v2227_v15 = vsel %vm378_vm0, %v2187_v26, 0.0  ;;  %v1676_v61 = vsel %vm1646_vm8, %v1643_v13, %v1177_v6 }
 0x27a   : > { %v2125_v9 = vadd.f32 %v2124_v18, %v2123_v34 }
 0x27b   : > { %v1275_v62 = vpop.permute.xlu0 %1274  ;;  %v2225_v4 = vsel %vm378_vm0, %v2186_v56, 0.0 }
 0x27c   : > { %v2226_v17 = vadd.f32 %v2225_v4, %v2224_v45  ;;  %v976_v42 = vpop.permute.xlu1 %975  ;;  %v2127_v0 = vadd.f32 %v2126_v24, %v2125_v9  ;;  %v1709_v31 = vsel %vm1679_vm10, %v1676_v61, %v1275_v62  ;;  %v4794_v45 = vld [vmem:[#allocation8_spill] sm:$0xff]  ;;  %v4795_v9 = vld [vmem:[#allocation59_spill] sm:$0xff]  ;;  %v4796_v4 = vld [vmem:[#allocation73_spill] sm:$0xff] }
 0x27d   : > { %v1578_v58 = vsel %vm1547_vm5, %v1545_v40, %v4794_v45  ;;  %v1546_v24 = vsel %vm378_vm0, %v4127_v51, %v4795_v9 }
 0x27e   : > { %v2228_v55 = vadd.f32 %v2227_v15, %v2226_v17  ;;  %v1611_v53 = vsel %vm1580_vm6, %v1578_v58, %v976_v42  ;;  %v1579_v17 = vsel %vm1547_vm5, %v1546_v24, %v4796_v4 }
 0x27f   : > { %v978_v63 = vpop.permute.xlu0 %977 }
 0x280   : > { %v1375_v36 = vpop.permute.xlu1 %1374  ;;  %v1612_v42 = vsel %vm1580_vm6, %v1579_v17, %v978_v63 }
 0x281   : > { %v1741_v59 = vsel %vm1712_vm9, %v1708_v14, %v1375_v36 }
 0x283   : > { %v1377_v25 = vpop.permute.xlu0 %1376 }
 0x284   : > { %v1078_v1 = vpop.permute.xlu1 %1077  ;;  %v1742_v52 = vsel %vm1712_vm9, %v1709_v31, %v1377_v25 }
 0x285   : > { %v1644_v12 = vsel %vm1613_vm7, %v1611_v53, %v1078_v1 }
 0x287   : > { %v1080_v57 = vpop.permute.xlu0 %1079 }
 0x288   : > { %v1476_v29 = vpop.permute.xlu1 %1475  ;;  %v1645_v15 = vsel %vm1613_vm7, %v1612_v42, %v1080_v57 }
 0x289   : > { %v1774_v44 = vsel %vm1745_vm11, %v1741_v59, %v1476_v29 }
 0x28a   : > { %v2524_v30 = vpop.f32.mrf.mxu0  ;;  %2549 = vmatprep.mubr.msk.f32.mxu1 %vm1787_vm12, %v1774_v44 }
 0x28b   : > { %v1478_v37 = vpop.permute.xlu0 %1477  ;;  %2293 = vst.msk [vmem:[%s4253_s9 + $0x58] sm:$0xff] %vm378_vm0, %v2524_v30  ;;  %v2189_v7 = vmul.f32 %v2524_v30, %v2524_v30  ;;  %v2130_v35 = vsel %vm378_vm0, %v2524_v30, 0.0 }
 0x28c   : > { %v1775_v34 = vsel %vm1745_vm11, %v1742_v52, %v1478_v37  ;;  %v2000_v5 = vpop.f32.mrf.mxu0  ;;  %v1179_v3 = vpop.permute.xlu1 %1178 }
 0x28d   : > { %2550 = vmatmul.mubr.msk.f32.gmra.mxu1 %vm1787_vm12, %v1775_v34  ;;  %v2128_v8 = vsel %vm378_vm0, %v2000_v5, 0.0  ;;  %v2188_v21 = vmul.f32 %v2000_v5, %v2000_v5  ;;  %2292 = vst.msk [vmem:[%s4253_s9 + $0x50] sm:$0xff] %vm378_vm0, %v2000_v5  ;;  %v1677_v38 = vsel %vm1646_vm8, %v1644_v12, %v1179_v3  ;;  %v2231_v22 = vsel %vm378_vm0, %v2189_v7, 0.0 }
 0x28e   : > { %v2129_v19 = vadd.f32 %v2128_v8, %v2127_v0 }
 0x28f   : > { %v1277_v50 = vpop.permute.xlu0 %1276  ;;  %v2229_v33 = vsel %vm378_vm0, %v2188_v21, 0.0 }
 0x290   : > { %v2230_v54 = vadd.f32 %v2229_v33, %v2228_v55  ;;  %v1181_v32 = vpop.permute.xlu1 %1180  ;;  %v2131_v16 = vadd.f32 %v2130_v35, %v2129_v19  ;;  %v1710_v62 = vsel %vm1679_vm10, %v1677_v38, %v1277_v50 }
 0x291   : > { %v1678_v55 = vsel %vm1646_vm8, %v1645_v15, %v1181_v32 }
 0x292   : > { %v2232_v28 = vadd.f32 %v2231_v22, %v2230_v54 }
 0x293   : > { %v1379_v47 = vpop.permute.xlu0 %1378 }
 0x294   : > { %v1743_v6 = vsel %vm1712_vm9, %v1710_v62, %v1379_v47  ;;  %v1279_v56 = vpop.permute.xlu1 %1278 }
 0x295   : > { %v1711_v43 = vsel %vm1679_vm10, %v1678_v55, %v1279_v56 }
 0x297   : > { %v1480_v26 = vpop.permute.xlu0 %1479 }
 0x298   : > { %v1776_v18 = vsel %vm1745_vm11, %v1743_v6, %v1480_v26  ;;  %v1381_v0 = vpop.permute.xlu1 %1380 }
 0x299   : > { %2552 = vmatprep.mubr.msk.f32.mxu1 %vm1787_vm12, %v1776_v18  ;;  %v1744_v2 = vsel %vm1712_vm9, %v1711_v43, %v1381_v0 }
 0x29c   : > { %v1482_v25 = vpop.permute.xlu1 %1481 }
 0x29d   : > { %v1777_v23 = vsel %vm1745_vm11, %v1744_v2, %v1482_v25 }
 0x29e   : > { %v2527_v41 = vpop.f32.mrf.mxu0  ;;  %2553 = vmatmul.mubr.msk.f32.gmra.mxu1 %vm1787_vm12, %v1777_v23 }
 0x29f   : > { %2295 = vst.msk [vmem:[%s4253_s9 + $0x68] sm:$0xff] %vm378_vm0, %v2527_v41  ;;  %v2191_v63 = vmul.f32 %v2527_v41, %v2527_v41  ;;  %v2134_v10 = vsel %vm378_vm0, %v2527_v41, 0.0 }
 0x2a0   : > { %v2010_v51 = vpop.f32.mrf.mxu0 }
 0x2a1   : > { %v2132_v39 = vsel %vm378_vm0, %v2010_v51, 0.0  ;;  %v2190_v20 = vmul.f32 %v2010_v51, %v2010_v51  ;;  %2294 = vst.msk [vmem:[%s4253_s9 + $0x60] sm:$0xff] %vm378_vm0, %v2010_v51  ;;  %v2235_v13 = vsel %vm378_vm0, %v2191_v63, 0.0 }
 0x2a2   : > { %v2133_v36 = vadd.f32 %v2132_v39, %v2131_v16 }
 0x2a3   : > { %v2233_v27 = vsel %vm378_vm0, %v2190_v20, 0.0 }
 0x2a4   : > { %v2234_v11 = vadd.f32 %v2233_v27, %v2232_v28  ;;  %v2135_v49 = vadd.f32 %v2134_v10, %v2133_v36 }
 0x2a6   : > { %v2236_v46 = vadd.f32 %v2235_v13, %v2234_v11 }
 0x2b2   : > { %v2530_v61 = vpop.f32.mrf.mxu0 }
 0x2b3   : > { %2297 = vst.msk [vmem:[%s4253_s9 + $0x78] sm:$0xff] %vm378_vm0, %v2530_v61  ;;  %v2193_v48 = vmul.f32 %v2530_v61, %v2530_v61  ;;  %v2138_v14 = vsel %vm378_vm0, %v2530_v61, 0.0 }
 0x2b4   : > { %v2020_v57 = vpop.f32.mrf.mxu0 }
 0x2b5   : > { %v2136_v1 = vsel %vm378_vm0, %v2020_v57, 0.0  ;;  %v2192_v31 = vmul.f32 %v2020_v57, %v2020_v57  ;;  %2296 = vst.msk [vmem:[%s4253_s9 + $0x70] sm:$0xff] %vm378_vm0, %v2020_v57  ;;  %v2239_v29 = vsel %vm378_vm0, %v2193_v48, 0.0 }
 0x2b6   : > { %v2137_v52 = vadd.f32 %v2136_v1, %v2135_v49 }
 0x2b7   : > { %v2237_v37 = vsel %vm378_vm0, %v2192_v31, 0.0 }
 0x2b8   : > { %v2139_v59 = vadd.f32 %v2138_v14, %v2137_v52  ;;  %v2238_v34 = vadd.f32 %v2237_v37, %v2236_v46 }
 0x2ba   : > { %v2240_v44 = vadd.f32 %v2239_v29, %v2238_v34 }
 0x2c6   : > { %v2533_v30 = vpop.f32.mrf.mxu1 }
 0x2c7   : > { %2299 = vst.msk [vmem:[%s4253_s9 + $0x88] sm:$0xff] %vm378_vm0, %v2533_v30  ;;  %v2195_v40 = vmul.f32 %v2533_v30, %v2533_v30  ;;  %v2142_v5 = vsel %vm378_vm0, %v2533_v30, 0.0 }
 0x2c8   : > { %v2030_v60 = vpop.f32.mrf.mxu1 }
 0x2c9   : > { %v2140_v50 = vsel %vm378_vm0, %v2030_v60, 0.0  ;;  %v2194_v45 = vmul.f32 %v2030_v60, %v2030_v60  ;;  %2298 = vst.msk [vmem:[%s4253_s9 + $0x80] sm:$0xff] %vm378_vm0, %v2030_v60  ;;  %v2243_v8 = vsel %vm378_vm0, %v2195_v40, 0.0 }
 0x2ca   : > { %v2141_v58 = vadd.f32 %v2140_v50, %v2139_v59 }
 0x2cb   : > { %v2241_v3 = vsel %vm378_vm0, %v2194_v45, 0.0 }
 0x2cc   : > { %v2242_v53 = vadd.f32 %v2241_v3, %v2240_v44  ;;  %v2143_v7 = vadd.f32 %v2142_v5, %v2141_v58 }
 0x2ce   : > { %v2244_v21 = vadd.f32 %v2243_v8, %v2242_v53 }
 0x2da   : > { %v2536_v12 = vpop.f32.mrf.mxu1 }
 0x2db   : > { %2301 = vst.msk [vmem:[%s4253_s9 + $0x98] sm:$0xff] %vm378_vm0, %v2536_v12  ;;  %v2197_v35 = vmul.f32 %v2536_v12, %v2536_v12  ;;  %v2146_v54 = vsel %vm378_vm0, %v2536_v12, 0.0 }
 0x2dc   : > { %v2040_v19 = vpop.f32.mrf.mxu1 }
 0x2dd   : > { %v2144_v33 = vsel %vm378_vm0, %v2040_v19, 0.0  ;;  %v2196_v38 = vmul.f32 %v2040_v19, %v2040_v19  ;;  %2300 = vst.msk [vmem:[%s4253_s9 + $0x90] sm:$0xff] %vm378_vm0, %v2040_v19  ;;  %v2247_v62 = vsel %vm378_vm0, %v2197_v35, 0.0 }
 0x2de   : > { %v2145_v47 = vadd.f32 %v2144_v33, %v2143_v7 }
 0x2df   : > { %v2245_v32 = vsel %vm378_vm0, %v2196_v38, 0.0 }
 0x2e0   : > { %v2246_v16 = vadd.f32 %v2245_v32, %v2244_v21  ;;  %v2147_v22 = vadd.f32 %v2146_v54, %v2145_v47 }
 0x2e2   : > { %v2248_v28 = vadd.f32 %v2247_v62, %v2246_v16 }
 0x2ed   : > { %v2539_v6 = vpop.f32.mrf.mxu1 }
 0x2ee   : > { %2303 = vst.msk [vmem:[%s4253_s9 + $0xa8] sm:$0xff] %vm378_vm0, %v2539_v6  ;;  %v2199_v18 = vmul.f32 %v2539_v6, %v2539_v6  ;;  %v2150_v4 = vsel %vm378_vm0, %v2539_v6, 0.0 }
 0x2ef   : > { %v2050_v26 = vpop.f32.mrf.mxu1 }
 0x2f0   : > { %v2148_v56 = vsel %vm378_vm0, %v2050_v26, 0.0  ;;  %v2198_v9 = vmul.f32 %v2050_v26, %v2050_v26  ;;  %2302 = vst.msk [vmem:[%s4253_s9 + $0xa0] sm:$0xff] %vm378_vm0, %v2050_v26  ;;  %v2251_v15 = vsel %vm378_vm0, %v2199_v18, 0.0 }
 0x2f1   : > { %v2149_v24 = vadd.f32 %v2148_v56, %v2147_v22 }
 0x2f2   : > { %v2249_v17 = vsel %vm378_vm0, %v2198_v9, 0.0 }
 0x2f3   : > { %v2250_v42 = vadd.f32 %v2249_v17, %v2248_v28  ;;  %v2151_v0 = vadd.f32 %v2150_v4, %v2149_v24 }
 0x2f5   : > { %v2252_v55 = vadd.f32 %v2251_v15, %v2250_v42 }
 0x305   : > { %v2542_v43 = vpop.f32.mrf.mxu1 }
 0x306   : > { %2305 = vst.msk [vmem:[%s4253_s9 + $0xb8] sm:$0xff] %vm378_vm0, %v2542_v43  ;;  %v2201_v25 = vmul.f32 %v2542_v43, %v2542_v43  ;;  %v2154_v63 = vsel %vm378_vm0, %v2542_v43, 0.0 }
 0x307   : > { %v2060_v2 = vpop.f32.mrf.mxu1 }
 0x308   : > { %v2152_v23 = vsel %vm378_vm0, %v2060_v2, 0.0  ;;  %v2200_v41 = vmul.f32 %v2060_v2, %v2060_v2  ;;  %2304 = vst.msk [vmem:[%s4253_s9 + $0xb0] sm:$0xff] %vm378_vm0, %v2060_v2  ;;  %v2255_v10 = vsel %vm378_vm0, %v2201_v25, 0.0 }
 0x309   : > { %v2153_v51 = vadd.f32 %v2152_v23, %v2151_v0 }
 0x30a   : > { %v2253_v39 = vsel %vm378_vm0, %v2200_v41, 0.0 }
 0x30b   : > { %v2254_v20 = vadd.f32 %v2253_v39, %v2252_v55  ;;  %v2155_v36 = vadd.f32 %v2154_v63, %v2153_v51 }
 0x30d   : > { %v2256_v27 = vadd.f32 %v2255_v10, %v2254_v20 }
 0x31d   : > { %v2545_v11 = vpop.f32.mrf.mxu1 }
 0x31e   : > { %2307 = vst.msk [vmem:[%s4253_s9 + $0xc8] sm:$0xff] %vm378_vm0, %v2545_v11  ;;  %v2203_v14 = vmul.f32 %v2545_v11, %v2545_v11  ;;  %v2158_v34 = vsel %vm378_vm0, %v2545_v11, 0.0 }
 0x31f   : > { %v2070_v49 = vpop.f32.mrf.mxu1 }
 0x320   : > { %2306 = vst.msk [vmem:[%s4253_s9 + $0xc0] sm:$0xff] %vm378_vm0, %v2070_v49  ;;  %v2202_v61 = vmul.f32 %v2070_v49, %v2070_v49  ;;  %v2156_v48 = vsel %vm378_vm0, %v2070_v49, 0.0  ;;  %v2259_v30 = vsel %vm378_vm0, %v2203_v14, 0.0 }
 0x321   : > { %v2157_v52 = vadd.f32 %v2156_v48, %v2155_v36 }
 0x322   : > { %v2257_v31 = vsel %vm378_vm0, %v2202_v61, 0.0 }
 0x323   : > { %v2258_v59 = vadd.f32 %v2257_v31, %v2256_v27  ;;  %v2159_v44 = vadd.f32 %v2158_v34, %v2157_v52 }
 0x325   : > { %v2260_v50 = vadd.f32 %v2259_v30, %v2258_v59 }
 0x335   : > { %v2548_v13 = vpop.f32.mrf.mxu1 }
 0x336   : > { %2309 = vst.msk [vmem:[%s4253_s9 + $0xd8] sm:$0xff] %vm378_vm0, %v2548_v13  ;;  %v2205_v45 = vmul.f32 %v2548_v13, %v2548_v13  ;;  %v2162_v3 = vsel %vm378_vm0, %v2548_v13, 0.0 }
 0x337   : > { %v2080_v46 = vpop.f32.mrf.mxu1 }
 0x338   : > { %2308 = vst.msk [vmem:[%s4253_s9 + $0xd0] sm:$0xff] %vm378_vm0, %v2080_v46  ;;  %v2204_v37 = vmul.f32 %v2080_v46, %v2080_v46  ;;  %v2160_v29 = vsel %vm378_vm0, %v2080_v46, 0.0  ;;  %v2263_v8 = vsel %vm378_vm0, %v2205_v45, 0.0 }
 0x339   : > { %v2161_v40 = vadd.f32 %v2160_v29, %v2159_v44 }
 0x33a   : > { %v2261_v60 = vsel %vm378_vm0, %v2204_v37, 0.0 }
 0x33b   : > { %v2262_v5 = vadd.f32 %v2261_v60, %v2260_v50  ;;  %v2163_v7 = vadd.f32 %v2162_v3, %v2161_v40 }
 0x33d   : > { %v2264_v19 = vadd.f32 %v2263_v8, %v2262_v5 }
 0x34d   : > { %v2551_v57 = vpop.f32.mrf.mxu1 }
 0x34e   : > { %2311 = vst.msk [vmem:[%s4253_s9 + $0xe8] sm:$0xff] %vm378_vm0, %v2551_v57  ;;  %v2207_v35 = vmul.f32 %v2551_v57, %v2551_v57  ;;  %v2166_v47 = vsel %vm378_vm0, %v2551_v57, 0.0 }
 0x34f   : > { %v2090_v1 = vpop.f32.mrf.mxu1 }
 0x350   : > { %2310 = vst.msk [vmem:[%s4253_s9 + $0xe0] sm:$0xff] %vm378_vm0, %v2090_v1  ;;  %v2206_v58 = vmul.f32 %v2090_v1, %v2090_v1  ;;  %v2164_v53 = vsel %vm378_vm0, %v2090_v1, 0.0  ;;  %v2267_v16 = vsel %vm378_vm0, %v2207_v35, 0.0 }
 0x351   : > { %v2165_v12 = vadd.f32 %v2164_v53, %v2163_v7 }
 0x352   : > { %v2265_v21 = vsel %vm378_vm0, %v2206_v58, 0.0 }
 0x353   : > { %v2266_v33 = vadd.f32 %v2265_v21, %v2264_v19  ;;  %v2167_v32 = vadd.f32 %v2166_v47, %v2165_v12 }
 0x355   : > { %v2268_v26 = vadd.f32 %v2267_v16, %v2266_v33 }
 0x35e   : > { %v2554_v38 = vpop.f32.mrf.mxu1 }
 0x35f   : > { %2313 = vst.msk [vmem:[%s4253_s9 + $0xf8] sm:$0xff] %vm378_vm0, %v2554_v38  ;;  %v2209_v22 = vmul.f32 %v2554_v38, %v2554_v38  ;;  %v2170_v18 = vsel %vm378_vm0, %v2554_v38, 0.0 }
 0x360   : > { %v2100_v54 = vpop.f32.mrf.mxu1 }
 0x361   : > { %v2168_v62 = vsel %vm378_vm0, %v2100_v54, 0.0  ;;  %v2208_v28 = vmul.f32 %v2100_v54, %v2100_v54  ;;  %2312 = vst.msk [vmem:[%s4253_s9 + $0xf0] sm:$0xff] %vm378_vm0, %v2100_v54  ;;  %v2271_v4 = vsel %vm378_vm0, %v2209_v22, 0.0 }
 0x362   : > { %v2169_v6 = vadd.f32 %v2168_v62, %v2167_v32 }
 0x363   : > { %v2269_v56 = vsel %vm378_vm0, %v2208_v28, 0.0 }
 0x364   : > { %v2171_v9 = vadd.f32 %v2170_v18, %v2169_v6  ;;  %v2270_v24 = vadd.f32 %v2269_v56, %v2268_v26 }
 0x366   : > { %v2172_v17 = vrot.slane %v2171_v9, 4  ;;  %v2272_v42 = vadd.f32 %v2271_v4, %v2270_v24 }
 0x368   : > { %v2173_v0 = vadd.f32 %v2172_v17, %v2171_v9  ;;  %v2273_v15 = vrot.slane %v2272_v42, 4 }
 0x36a   : > { %v2174_v55 = vrot.slane %v2173_v0, 2  ;;  %v2274_v43 = vadd.f32 %v2273_v15, %v2272_v42 }
 0x36c   : > { %v2175_v2 = vadd.f32 %v2174_v55, %v2173_v0  ;;  %v2275_v25 = vrot.slane %v2274_v43, 2 }
 0x36e   : > { %v2176_v23 = vrot.slane %v2175_v2, 1  ;;  %v2276_v41 = vadd.f32 %v2275_v25, %v2274_v43 }
 0x370   : > { %v2277_v51 = vrot.slane %v2276_v41, 1  ;;  %v2177_v63 = vadd.f32 %v2176_v23, %v2175_v2 }
 0x372   : > { %v2278_v39 = vadd.f32 %v2277_v51, %v2276_v41 }
 0x374   : > { %v2280_v20 = vsel %vm2279_vm13, %v2177_v63, %v2278_v39 }
 0x375   : > { %2281 = vst.msk [vmem:[%s235_s17] sm:$0x3] %vm381_vm2, %v2280_v20 }
 0x376 PF: > { %s16_s18 = sadd.s32 1, %s2630_s18  }
 0x377   : > { %p13_p4 = scmp.ge.s32.totalorder %s16_s18, 4  }
 0x379   :  { %15 = sbr.rel (!%p13_p4) target bundleno = 1 (0x1), region = 80 }

</bundles_post_ra>
